<compile_context>
chip_gen: v7x
topology: tpu7x:2x2x1
jax: 0.10.0
libtpu: 0.0.40
codegen_flags: <defaults>
</compile_context>

<pallas_src>
import math

import jax
import jax.numpy as jnp
from jax.experimental import pallas as pl
from jax.experimental.pallas import tpu as pltpu

# ----------------------------- model configuration -----------------------------
B = 2                 # batch size
IMG_C = 3             # input image channels
H = W = 8             # spatial size of the backbone feature map
HW = H * W
C_BB = 8              # backbone.num_channels
D = 32                # transformer.d_model (hidden_dim)
NHEADS = 4
HEAD_DIM = D // NHEADS
FF = 64               # dim_feedforward
NUM_ENC_LAYERS = 1
NUM_DEC_LAYERS = 2
NUM_QUERIES = 8
NUM_CLASSES = 5       # -> class_embed output = NUM_CLASSES + 1
OUT_PAD = 128         # lane-dense width the head outputs are padded to


# ----------------------------- in-kernel building blocks ------------------------
def _ln(x, g, b, eps=1e-5):
    mu = jnp.mean(x, axis=-1, keepdims=True)
    xc = x - mu
    var = jnp.mean(xc * xc, axis=-1, keepdims=True)
    return xc * jax.lax.rsqrt(var + eps) * g + b


def _mha_out(q, k, v, wo, bo, bias):
    """Per-head softmax(q_h k_h^T / sqrt(hd) + bias) v_h with the output projection folded
    into the head loop: concat_h(head_h) @ Wo == sum_h head_h @ Wo[h*hd:(h+1)*hd, :]."""
    scale = 1.0 / math.sqrt(HEAD_DIM)
    out = bo                                           # [1, D] broadcasts over query rows
    for h in range(NHEADS):
        sl = slice(h * HEAD_DIM, (h + 1) * HEAD_DIM)
        s = jax.lax.dot_general(q[:, sl], k[:, sl], (((1,), (1,)), ((), ())),
                                preferred_element_type=jnp.float32) * scale
        if bias is not None:
            s = s + bias                               # [1, Lk] additive key-padding bias
        s = s - jnp.max(s, axis=-1, keepdims=True)
        e = jnp.exp(s)
        p_attn = e * pl.reciprocal(jnp.sum(e, axis=-1, keepdims=True), approx=True)
        head = jnp.dot(p_attn, v[:, sl], preferred_element_type=jnp.float32)      # [Lq, hd]
        out = out + jnp.dot(head, wo[sl, :], preferred_element_type=jnp.float32)  # [Lq, D]
    return out


def _self_attn(x, pos_add, ap, bias):
    """nn.MultiheadAttention with q = k = x + pos_add, v = x (packed Q/K projection)."""
    qk = jnp.dot(x + pos_add, ap['wqk'][...], preferred_element_type=jnp.float32) + ap['bqk'][...]
    v = jnp.dot(x, ap['wv'][...], preferred_element_type=jnp.float32) + ap['bv'][...]
    return _mha_out(qk[:, :D], qk[:, D:], v, ap['wo'][...], ap['bo'][...], bias)


def _cross_attn(q_in, k_in, v_in, ap, bias):
    wqk = ap['wqk'][...]
    bqk = ap['bqk'][...]
    q = jnp.dot(q_in, wqk[:, :D], preferred_element_type=jnp.float32) + bqk[:, :D]
    k = jnp.dot(k_in, wqk[:, D:], preferred_element_type=jnp.float32) + bqk[:, D:]
    v = jnp.dot(v_in, ap['wv'][...], preferred_element_type=jnp.float32) + ap['bv'][...]
    return _mha_out(q, k, v, ap['wo'][...], ap['bo'][...], bias)


def _ffn(x, lp):
    h = jnp.maximum(
        jnp.dot(x, lp['w1'][...], preferred_element_type=jnp.float32) + lp['b1'][...], 0.0)
    return jnp.dot(h, lp['w2'][...], preferred_element_type=jnp.float32) + lp['b2'][...]


def _encoder_layer(lp, src, pos, key_bias):
    a = _self_attn(src, pos, lp['sa'], key_bias)
    src = _ln(src + a, lp['n1_g'][...], lp['n1_b'][...])
    src = _ln(src + _ffn(src, lp), lp['n2_g'][...], lp['n2_b'][...])
    return src


def _decoder_layer(lp, tgt, memory, pos, qpos, key_bias):
    a = _self_attn(tgt, qpos, lp['sa'], None)
    tgt = _ln(tgt + a, lp['n1_g'][...], lp['n1_b'][...])
    a = _cross_attn(tgt + qpos, memory + pos, memory, lp['ca'], key_bias)
    tgt = _ln(tgt + a, lp['n2_g'][...], lp['n2_b'][...])
    tgt = _ln(tgt + _ffn(tgt, lp), lp['n3_g'][...], lp['n3_b'][...])
    return tgt


# ----------------------------- the fused DETR kernel -----------------------------
def _make_detr_kernel(treedef, n_leaves):
    def kernel(*refs):
        img_ref, pos_ref, mask_ref = refs[0], refs[1], refs[2]
        p = jax.tree_util.tree_unflatten(treedef, refs[3:3 + n_leaves])
        out_cls_ref = refs[3 + n_leaves]
        out_box_ref = refs[4 + n_leaves]

        img = img_ref[0]                                  # [HW, IMG_C]
        pos = pos_ref[0]                                  # [HW, D]
        key_bias = mask_ref[0] * (-1e9)                   # [1, HW] additive (-1e9 on padded keys)

        # Backbone stand-in (1x1 conv + ReLU) and self.input_proj (1x1 conv) as matmuls.
        feat = jnp.maximum(
            jnp.dot(img, p['backbone_w'][...], preferred_element_type=jnp.float32)
            + p['backbone_b'][...], 0.0)
        src = (jnp.dot(feat, p['input_proj_w'][...], preferred_element_type=jnp.float32)
               + p['input_proj_b'][...])                  # [HW, D]

        tp = p['transformer']
        memory = src
        for lp in tp['encoder_layers']:
            memory = _encoder_layer(lp, memory, pos, key_bias)

        qpos = p['query_embed'][...]                      # [Q, D]
        tgt = jnp.zeros_like(qpos)
        for lp in tp['decoder_layers']:
            tgt = _decoder_layer(lp, tgt, memory, pos, qpos, key_bias)
        hs = _ln(tgt, tp['dec_norm_g'][...], tp['dec_norm_b'][...])   # last decoder layer, normed

        # class_embed (weights padded to OUT_PAD lanes -> full-width unmasked store).
        out_cls_ref[0] = (jnp.dot(hs, p['class_w'][...], preferred_element_type=jnp.float32)
                          + p['class_b'][...])

        # bbox_embed: MLP(D, D, 4, num_layers=3) + sigmoid, final layer padded to OUT_PAD lanes.
        x = jnp.maximum(jnp.dot(hs, p['bbox_w1'][...], preferred_element_type=jnp.float32)
                        + p['bbox_b1'][...], 0.0)
        x = jnp.maximum(jnp.dot(x, p['bbox_w2'][...], preferred_element_type=jnp.float32)
                        + p['bbox_b2'][...], 0.0)
        bx = jnp.dot(x, p['bbox_w3'][...], preferred_element_type=jnp.float32) + p['bbox_b3'][...]
        out_box_ref[0] = 1.0 / (1.0 + jnp.exp(-bx))       # exact sigmoid, stays in [0, 1]
    return kernel


# ----------------------------- wrapper ------------------------------------------
def position_embedding_sine(mask, num_pos_feats, temperature=10000.0):
    """DETR PositionEmbeddingSine (normalize=True), channels-last output [B, H, W, 2*npf]."""
    not_mask = jnp.logical_not(mask).astype(jnp.float32)
    y_embed = jnp.cumsum(not_mask, axis=1)
    x_embed = jnp.cumsum(not_mask, axis=2)
    eps = 1e-6
    scale = 2.0 * math.pi
    y_embed = y_embed / (y_embed[:, -1:, :] + eps) * scale
    x_embed = x_embed / (x_embed[:, :, -1:] + eps) * scale
    dim_t = jnp.arange(num_pos_feats, dtype=jnp.float32)
    dim_t = temperature ** (2.0 * jnp.floor(dim_t / 2.0) / num_pos_feats)
    pos_x = x_embed[:, :, :, None] / dim_t
    pos_y = y_embed[:, :, :, None] / dim_t
    pos_x = jnp.stack([jnp.sin(pos_x[..., 0::2]), jnp.cos(pos_x[..., 1::2])],
                      axis=4).reshape(mask.shape + (num_pos_feats,))
    pos_y = jnp.stack([jnp.sin(pos_y[..., 0::2]), jnp.cos(pos_y[..., 1::2])],
                      axis=4).reshape(mask.shape + (num_pos_feats,))
    return jnp.concatenate([pos_y, pos_x], axis=3)        # [B, H, W, D] channels-last


def _const_index_map(ndim):
    def imap(b):
        return (0,) * ndim
    return imap


def detr_forward(params, images, mask):
    """images: [B, 3, H, W] (NCHW), mask: [B, H, W] bool (True on padded pixels)."""
    Bb, _, Hh, Ww = images.shape
    hw = Hh * Ww
    n_cls = NUM_CLASSES + 1

    # Single entry-boundary layout change: NCHW image -> channels-last rows [B, HW, C].
    img_rows = images.transpose(0, 2, 3, 1).reshape(Bb, hw, IMG_C).astype(jnp.float32)
    # TODO(synk): the sine positional embedding (a tiny mask cumsum) is computed outside Pallas.
    pos = position_embedding_sine(mask, D // 2).reshape(Bb, hw, D).astype(jnp.float32)
    maskf = mask.reshape(Bb, 1, hw).astype(jnp.float32)

    # Lane-dense heads: zero-pad the narrow class / bbox output weights to OUT_PAD lanes so the
    # kernel's final stores are full 128-wide vregs; the padding is sliced off below.
    p = dict(params)
    p['class_w'] = jnp.pad(params['class_w'], ((0, 0), (0, OUT_PAD - n_cls)))
    p['class_b'] = jnp.pad(params['class_b'], ((0, 0), (0, OUT_PAD - n_cls)))
    p['bbox_w3'] = jnp.pad(params['bbox_w3'], ((0, 0), (0, OUT_PAD - 4)))
    p['bbox_b3'] = jnp.pad(params['bbox_b3'], ((0, 0), (0, OUT_PAD - 4)))

    leaves, treedef = jax.tree_util.tree_flatten(p)
    kernel = _make_detr_kernel(treedef, len(leaves))

    in_specs = ([
        pl.BlockSpec((1, hw, IMG_C), lambda b: (b, 0, 0)),
        pl.BlockSpec((1, hw, D), lambda b: (b, 0, 0)),
        pl.BlockSpec((1, 1, hw), lambda b: (b, 0, 0)),
    ] + [pl.BlockSpec(leaf.shape, _const_index_map(leaf.ndim)) for leaf in leaves])

    out_cls, out_box = pl.pallas_call(
        kernel,
        out_shape=(
            jax.ShapeDtypeStruct((Bb, NUM_QUERIES, OUT_PAD), jnp.float32),
            jax.ShapeDtypeStruct((Bb, NUM_QUERIES, OUT_PAD), jnp.float32),
        ),
        grid=(Bb,),
        in_specs=in_specs,
        out_specs=(
            pl.BlockSpec((1, NUM_QUERIES, OUT_PAD), lambda b: (b, 0, 0)),
            pl.BlockSpec((1, NUM_QUERIES, OUT_PAD), lambda b: (b, 0, 0)),
        ),
        compiler_params=pltpu.CompilerParams(
            dimension_semantics=("parallel",)),   # batch -> v7x megacore; harmless on v5e/v6e
    )(img_rows, pos, maskf, *leaves)

    return {"pred_logits": out_cls[:, :, :n_cls], "pred_boxes": out_box[:, :, :4]}


# ----------------------------- deterministic params -----------------------------
class ParamGen:
    def __init__(self, key):
        self.key = key

    def normal(self, shape, scale=0.02):
        self.key, sub = jax.random.split(self.key)
        return (scale * jax.random.normal(sub, shape)).astype(jnp.float32)

    def zeros(self, shape):
        return jnp.zeros(shape, jnp.float32)

    def ones(self, shape):
        return jnp.ones(shape, jnp.float32)


def init_params(key):
    pg = ParamGen(key)

    def mha_p():
        # Q and K projection weights packed along the output dim ([D, 2D]) so self-attention
        # needs a single MXU pass for Q/K; V and the output projection stay separate.
        return dict(wqk=pg.normal((D, 2 * D)), bqk=pg.zeros((1, 2 * D)),
                    wv=pg.normal((D, D)), bv=pg.zeros((1, D)),
                    wo=pg.normal((D, D)), bo=pg.zeros((1, D)))

    def enc_layer_p():
        return dict(sa=mha_p(),
                    w1=pg.normal((D, FF)), b1=pg.zeros((1, FF)),
                    w2=pg.normal((FF, D)), b2=pg.zeros((1, D)),
                    n1_g=pg.ones((1, D)), n1_b=pg.zeros((1, D)),
                    n2_g=pg.ones((1, D)), n2_b=pg.zeros((1, D)))

    def dec_layer_p():
        return dict(sa=mha_p(), ca=mha_p(),
                    w1=pg.normal((D, FF)), b1=pg.zeros((1, FF)),
                    w2=pg.normal((FF, D)), b2=pg.zeros((1, D)),
                    n1_g=pg.ones((1, D)), n1_b=pg.zeros((1, D)),
                    n2_g=pg.ones((1, D)), n2_b=pg.zeros((1, D)),
                    n3_g=pg.ones((1, D)), n3_b=pg.zeros((1, D)))

    transformer = dict(
        encoder_layers=[enc_layer_p() for _ in range(NUM_ENC_LAYERS)],
        decoder_layers=[dec_layer_p() for _ in range(NUM_DEC_LAYERS)],
        dec_norm_g=pg.ones((1, D)), dec_norm_b=pg.zeros((1, D)),
    )
    return dict(
        backbone_w=pg.normal((IMG_C, C_BB)), backbone_b=pg.zeros((1, C_BB)),
        input_proj_w=pg.normal((C_BB, D)), input_proj_b=pg.zeros((1, D)),
        query_embed=pg.normal((NUM_QUERIES, D), scale=1.0),   # nn.Embedding weight
        transformer=transformer,
        class_w=pg.normal((D, NUM_CLASSES + 1)), class_b=pg.zeros((1, NUM_CLASSES + 1)),
        bbox_w1=pg.normal((D, D)), bbox_b1=pg.zeros((1, D)),
        bbox_w2=pg.normal((D, D)), bbox_b2=pg.zeros((1, D)),
        bbox_w3=pg.normal((D, 4)), bbox_b3=pg.zeros((1, 4)),
    )


# ----------------------------- main ----------------------------------------------
if __name__ == "__main__":
    key = jax.random.PRNGKey(0)
    pkey, xkey = jax.random.split(key)
    params = init_params(pkey)

    images = jax.random.normal(xkey, (B, IMG_C, H, W), jnp.float32)
    mask = jnp.zeros((B, H, W), dtype=bool)   # NestedTensor mask: no padded pixels

    out = jax.jit(detr_forward)(params, images, mask)
    jax.block_until_ready(out)

    assert out["pred_logits"].shape == (B, NUM_QUERIES, NUM_CLASSES + 1)
    assert out["pred_boxes"].shape == (B, NUM_QUERIES, 4)
    assert bool(jnp.all(jnp.isfinite(out["pred_logits"])))
    assert bool(jnp.all((out["pred_boxes"] >= 0.0) & (out["pred_boxes"] <= 1.0)))
    print("KERNEL_OK")
</pallas_src>

<mosaic_0001>
module attributes {stable_mosaic.version = 11 : i64} {
  func.func @kernel(%arg0: i32, %arg1: memref<1x64x3xf32, #tpu.memory_space<vmem>>, %arg2: memref<1x64x32xf32, #tpu.memory_space<vmem>>, %arg3: memref<1x1x64xf32, #tpu.memory_space<vmem>>, %arg4: memref<1x8xf32, #tpu.memory_space<vmem>>, %arg5: memref<3x8xf32, #tpu.memory_space<vmem>>, %arg6: memref<1x32xf32, #tpu.memory_space<vmem>>, %arg7: memref<1x32xf32, #tpu.memory_space<vmem>>, %arg8: memref<1x128xf32, #tpu.memory_space<vmem>>, %arg9: memref<32x32xf32, #tpu.memory_space<vmem>>, %arg10: memref<32x32xf32, #tpu.memory_space<vmem>>, %arg11: memref<32x128xf32, #tpu.memory_space<vmem>>, %arg12: memref<1x128xf32, #tpu.memory_space<vmem>>, %arg13: memref<32x128xf32, #tpu.memory_space<vmem>>, %arg14: memref<1x32xf32, #tpu.memory_space<vmem>>, %arg15: memref<8x32xf32, #tpu.memory_space<vmem>>, %arg16: memref<8x32xf32, #tpu.memory_space<vmem>>, %arg17: memref<1x32xf32, #tpu.memory_space<vmem>>, %arg18: memref<1x32xf32, #tpu.memory_space<vmem>>, %arg19: memref<1x64xf32, #tpu.memory_space<vmem>>, %arg20: memref<1x32xf32, #tpu.memory_space<vmem>>, %arg21: memref<1x32xf32, #tpu.memory_space<vmem>>, %arg22: memref<1x64xf32, #tpu.memory_space<vmem>>, %arg23: memref<1x32xf32, #tpu.memory_space<vmem>>, %arg24: memref<32x32xf32, #tpu.memory_space<vmem>>, %arg25: memref<32x64xf32, #tpu.memory_space<vmem>>, %arg26: memref<32x32xf32, #tpu.memory_space<vmem>>, %arg27: memref<1x32xf32, #tpu.memory_space<vmem>>, %arg28: memref<1x32xf32, #tpu.memory_space<vmem>>, %arg29: memref<1x32xf32, #tpu.memory_space<vmem>>, %arg30: memref<1x32xf32, #tpu.memory_space<vmem>>, %arg31: memref<1x32xf32, #tpu.memory_space<vmem>>, %arg32: memref<1x32xf32, #tpu.memory_space<vmem>>, %arg33: memref<1x32xf32, #tpu.memory_space<vmem>>, %arg34: memref<1x64xf32, #tpu.memory_space<vmem>>, %arg35: memref<1x32xf32, #tpu.memory_space<vmem>>, %arg36: memref<32x32xf32, #tpu.memory_space<vmem>>, %arg37: memref<32x64xf32, #tpu.memory_space<vmem>>, %arg38: memref<32x32xf32, #tpu.memory_space<vmem>>, %arg39: memref<32x64xf32, #tpu.memory_space<vmem>>, %arg40: memref<64x32xf32, #tpu.memory_space<vmem>>, %arg41: memref<1x64xf32, #tpu.memory_space<vmem>>, %arg42: memref<1x32xf32, #tpu.memory_space<vmem>>, %arg43: memref<1x32xf32, #tpu.memory_space<vmem>>, %arg44: memref<1x64xf32, #tpu.memory_space<vmem>>, %arg45: memref<1x32xf32, #tpu.memory_space<vmem>>, %arg46: memref<32x32xf32, #tpu.memory_space<vmem>>, %arg47: memref<32x64xf32, #tpu.memory_space<vmem>>, %arg48: memref<32x32xf32, #tpu.memory_space<vmem>>, %arg49: memref<1x32xf32, #tpu.memory_space<vmem>>, %arg50: memref<1x32xf32, #tpu.memory_space<vmem>>, %arg51: memref<1x32xf32, #tpu.memory_space<vmem>>, %arg52: memref<1x32xf32, #tpu.memory_space<vmem>>, %arg53: memref<1x32xf32, #tpu.memory_space<vmem>>, %arg54: memref<1x32xf32, #tpu.memory_space<vmem>>, %arg55: memref<1x32xf32, #tpu.memory_space<vmem>>, %arg56: memref<1x64xf32, #tpu.memory_space<vmem>>, %arg57: memref<1x32xf32, #tpu.memory_space<vmem>>, %arg58: memref<32x32xf32, #tpu.memory_space<vmem>>, %arg59: memref<32x64xf32, #tpu.memory_space<vmem>>, %arg60: memref<32x32xf32, #tpu.memory_space<vmem>>, %arg61: memref<32x64xf32, #tpu.memory_space<vmem>>, %arg62: memref<64x32xf32, #tpu.memory_space<vmem>>, %arg63: memref<1x64xf32, #tpu.memory_space<vmem>>, %arg64: memref<1x32xf32, #tpu.memory_space<vmem>>, %arg65: memref<1x32xf32, #tpu.memory_space<vmem>>, %arg66: memref<1x32xf32, #tpu.memory_space<vmem>>, %arg67: memref<1x32xf32, #tpu.memory_space<vmem>>, %arg68: memref<1x32xf32, #tpu.memory_space<vmem>>, %arg69: memref<1x32xf32, #tpu.memory_space<vmem>>, %arg70: memref<1x64xf32, #tpu.memory_space<vmem>>, %arg71: memref<1x32xf32, #tpu.memory_space<vmem>>, %arg72: memref<32x32xf32, #tpu.memory_space<vmem>>, %arg73: memref<32x64xf32, #tpu.memory_space<vmem>>, %arg74: memref<32x32xf32, #tpu.memory_space<vmem>>, %arg75: memref<32x64xf32, #tpu.memory_space<vmem>>, %arg76: memref<64x32xf32, #tpu.memory_space<vmem>>, %arg77: memref<1x8x128xf32, #tpu.memory_space<vmem>>, %arg78: memref<1x8x128xf32, #tpu.memory_space<vmem>>) attributes {dimension_semantics = [#tpu.dimension_semantics<parallel>], iteration_bounds = array<i64: 2>, scalar_prefetch = 0 : i64, scratch_operands = 0 : i64, tpu.core_type = #tpu.core_type<tc>, window_params = [{transform_indices = @transform_0, window_bounds = array<i64: 1, 64, 3>}, {transform_indices = @transform_1, window_bounds = array<i64: 1, 64, 32>}, {transform_indices = @transform_2, window_bounds = array<i64: 1, 1, 64>}, {pipeline_mode = #tpu.pipeline_mode<synchronous>, transform_indices = @transform_3, window_bounds = array<i64: 1, 8>}, {pipeline_mode = #tpu.pipeline_mode<synchronous>, transform_indices = @transform_4, window_bounds = array<i64: 3, 8>}, {pipeline_mode = #tpu.pipeline_mode<synchronous>, transform_indices = @transform_5, window_bounds = array<i64: 1, 32>}, {pipeline_mode = #tpu.pipeline_mode<synchronous>, transform_indices = @transform_6, window_bounds = array<i64: 1, 32>}, {pipeline_mode = #tpu.pipeline_mode<synchronous>, transform_indices = @transform_7, window_bounds = array<i64: 1, 128>}, {pipeline_mode = #tpu.pipeline_mode<synchronous>, transform_indices = @transform_8, window_bounds = array<i64: 32, 32>}, {pipeline_mode = #tpu.pipeline_mode<synchronous>, transform_indices = @transform_9, window_bounds = array<i64: 32, 32>}, {pipeline_mode = #tpu.pipeline_mode<synchronous>, transform_indices = @transform_10, window_bounds = array<i64: 32, 128>}, {pipeline_mode = #tpu.pipeline_mode<synchronous>, transform_indices = @transform_11, window_bounds = array<i64: 1, 128>}, {pipeline_mode = #tpu.pipeline_mode<synchronous>, transform_indices = @transform_12, window_bounds = array<i64: 32, 128>}, {pipeline_mode = #tpu.pipeline_mode<synchronous>, transform_indices = @transform_13, window_bounds = array<i64: 1, 32>}, {pipeline_mode = #tpu.pipeline_mode<synchronous>, transform_indices = @transform_14, window_bounds = array<i64: 8, 32>}, {pipeline_mode = #tpu.pipeline_mode<synchronous>, transform_indices = @transform_15, window_bounds = array<i64: 8, 32>}, {pipeline_mode = #tpu.pipeline_mode<synchronous>, transform_indices = @transform_16, window_bounds = array<i64: 1, 32>}, {pipeline_mode = #tpu.pipeline_mode<synchronous>, transform_indices = @transform_17, window_bounds = array<i64: 1, 32>}, {pipeline_mode = #tpu.pipeline_mode<synchronous>, transform_indices = @transform_18, window_bounds = array<i64: 1, 64>}, {pipeline_mode = #tpu.pipeline_mode<synchronous>, transform_indices = @transform_19, window_bounds = array<i64: 1, 32>}, {pipeline_mode = #tpu.pipeline_mode<synchronous>, transform_indices = @transform_20, window_bounds = array<i64: 1, 32>}, {pipeline_mode = #tpu.pipeline_mode<synchronous>, transform_indices = @transform_21, window_bounds = array<i64: 1, 64>}, {pipeline_mode = #tpu.pipeline_mode<synchronous>, transform_indices = @transform_22, window_bounds = array<i64: 1, 32>}, {pipeline_mode = #tpu.pipeline_mode<synchronous>, transform_indices = @transform_23, window_bounds = array<i64: 32, 32>}, {pipeline_mode = #tpu.pipeline_mode<synchronous>, transform_indices = @transform_24, window_bounds = array<i64: 32, 64>}, {pipeline_mode = #tpu.pipeline_mode<synchronous>, transform_indices = @transform_25, window_bounds = array<i64: 32, 32>}, {pipeline_mode = #tpu.pipeline_mode<synchronous>, transform_indices = @transform_26, window_bounds = array<i64: 1, 32>}, {pipeline_mode = #tpu.pipeline_mode<synchronous>, transform_indices = @transform_27, window_bounds = array<i64: 1, 32>}, {pipeline_mode = #tpu.pipeline_mode<synchronous>, transform_indices = @transform_28, window_bounds = array<i64: 1, 32>}, {pipeline_mode = #tpu.pipeline_mode<synchronous>, transform_indices = @transform_29, window_bounds = array<i64: 1, 32>}, {pipeline_mode = #tpu.pipeline_mode<synchronous>, transform_indices = @transform_30, window_bounds = array<i64: 1, 32>}, {pipeline_mode = #tpu.pipeline_mode<synchronous>, transform_indices = @transform_31, window_bounds = array<i64: 1, 32>}, {pipeline_mode = #tpu.pipeline_mode<synchronous>, transform_indices = @transform_32, window_bounds = array<i64: 1, 32>}, {pipeline_mode = #tpu.pipeline_mode<synchronous>, transform_indices = @transform_33, window_bounds = array<i64: 1, 64>}, {pipeline_mode = #tpu.pipeline_mode<synchronous>, transform_indices = @transform_34, window_bounds = array<i64: 1, 32>}, {pipeline_mode = #tpu.pipeline_mode<synchronous>, transform_indices = @transform_35, window_bounds = array<i64: 32, 32>}, {pipeline_mode = #tpu.pipeline_mode<synchronous>, transform_indices = @transform_36, window_bounds = array<i64: 32, 64>}, {pipeline_mode = #tpu.pipeline_mode<synchronous>, transform_indices = @transform_37, window_bounds = array<i64: 32, 32>}, {pipeline_mode = #tpu.pipeline_mode<synchronous>, transform_indices = @transform_38, window_bounds = array<i64: 32, 64>}, {pipeline_mode = #tpu.pipeline_mode<synchronous>, transform_indices = @transform_39, window_bounds = array<i64: 64, 32>}, {pipeline_mode = #tpu.pipeline_mode<synchronous>, transform_indices = @transform_40, window_bounds = array<i64: 1, 64>}, {pipeline_mode = #tpu.pipeline_mode<synchronous>, transform_indices = @transform_41, window_bounds = array<i64: 1, 32>}, {pipeline_mode = #tpu.pipeline_mode<synchronous>, transform_indices = @transform_42, window_bounds = array<i64: 1, 32>}, {pipeline_mode = #tpu.pipeline_mode<synchronous>, transform_indices = @transform_43, window_bounds = array<i64: 1, 64>}, {pipeline_mode = #tpu.pipeline_mode<synchronous>, transform_indices = @transform_44, window_bounds = array<i64: 1, 32>}, {pipeline_mode = #tpu.pipeline_mode<synchronous>, transform_indices = @transform_45, window_bounds = array<i64: 32, 32>}, {pipeline_mode = #tpu.pipeline_mode<synchronous>, transform_indices = @transform_46, window_bounds = array<i64: 32, 64>}, {pipeline_mode = #tpu.pipeline_mode<synchronous>, transform_indices = @transform_47, window_bounds = array<i64: 32, 32>}, {pipeline_mode = #tpu.pipeline_mode<synchronous>, transform_indices = @transform_48, window_bounds = array<i64: 1, 32>}, {pipeline_mode = #tpu.pipeline_mode<synchronous>, transform_indices = @transform_49, window_bounds = array<i64: 1, 32>}, {pipeline_mode = #tpu.pipeline_mode<synchronous>, transform_indices = @transform_50, window_bounds = array<i64: 1, 32>}, {pipeline_mode = #tpu.pipeline_mode<synchronous>, transform_indices = @transform_51, window_bounds = array<i64: 1, 32>}, {pipeline_mode = #tpu.pipeline_mode<synchronous>, transform_indices = @transform_52, window_bounds = array<i64: 1, 32>}, {pipeline_mode = #tpu.pipeline_mode<synchronous>, transform_indices = @transform_53, window_bounds = array<i64: 1, 32>}, {pipeline_mode = #tpu.pipeline_mode<synchronous>, transform_indices = @transform_54, window_bounds = array<i64: 1, 32>}, {pipeline_mode = #tpu.pipeline_mode<synchronous>, transform_indices = @transform_55, window_bounds = array<i64: 1, 64>}, {pipeline_mode = #tpu.pipeline_mode<synchronous>, transform_indices = @transform_56, window_bounds = array<i64: 1, 32>}, {pipeline_mode = #tpu.pipeline_mode<synchronous>, transform_indices = @transform_57, window_bounds = array<i64: 32, 32>}, {pipeline_mode = #tpu.pipeline_mode<synchronous>, transform_indices = @transform_58, window_bounds = array<i64: 32, 64>}, {pipeline_mode = #tpu.pipeline_mode<synchronous>, transform_indices = @transform_59, window_bounds = array<i64: 32, 32>}, {pipeline_mode = #tpu.pipeline_mode<synchronous>, transform_indices = @transform_60, window_bounds = array<i64: 32, 64>}, {pipeline_mode = #tpu.pipeline_mode<synchronous>, transform_indices = @transform_61, window_bounds = array<i64: 64, 32>}, {pipeline_mode = #tpu.pipeline_mode<synchronous>, transform_indices = @transform_62, window_bounds = array<i64: 1, 64>}, {pipeline_mode = #tpu.pipeline_mode<synchronous>, transform_indices = @transform_63, window_bounds = array<i64: 1, 32>}, {pipeline_mode = #tpu.pipeline_mode<synchronous>, transform_indices = @transform_64, window_bounds = array<i64: 1, 32>}, {pipeline_mode = #tpu.pipeline_mode<synchronous>, transform_indices = @transform_65, window_bounds = array<i64: 1, 32>}, {pipeline_mode = #tpu.pipeline_mode<synchronous>, transform_indices = @transform_66, window_bounds = array<i64: 1, 32>}, {pipeline_mode = #tpu.pipeline_mode<synchronous>, transform_indices = @transform_67, window_bounds = array<i64: 1, 32>}, {pipeline_mode = #tpu.pipeline_mode<synchronous>, transform_indices = @transform_68, window_bounds = array<i64: 1, 32>}, {pipeline_mode = #tpu.pipeline_mode<synchronous>, transform_indices = @transform_69, window_bounds = array<i64: 1, 64>}, {pipeline_mode = #tpu.pipeline_mode<synchronous>, transform_indices = @transform_70, window_bounds = array<i64: 1, 32>}, {pipeline_mode = #tpu.pipeline_mode<synchronous>, transform_indices = @transform_71, window_bounds = array<i64: 32, 32>}, {pipeline_mode = #tpu.pipeline_mode<synchronous>, transform_indices = @transform_72, window_bounds = array<i64: 32, 64>}, {pipeline_mode = #tpu.pipeline_mode<synchronous>, transform_indices = @transform_73, window_bounds = array<i64: 32, 32>}, {pipeline_mode = #tpu.pipeline_mode<synchronous>, transform_indices = @transform_74, window_bounds = array<i64: 32, 64>}, {pipeline_mode = #tpu.pipeline_mode<synchronous>, transform_indices = @transform_75, window_bounds = array<i64: 64, 32>}, {transform_indices = @transform_76, window_bounds = array<i64: 1, 8, 128>}, {transform_indices = @transform_77, window_bounds = array<i64: 1, 8, 128>}]} {
    %c0 = arith.constant 0 : index
    %c0_0 = arith.constant 0 : index
    %c0_1 = arith.constant 0 : index
    %0 = vector.load %arg1[%c0, %c0_0, %c0_1] : memref<1x64x3xf32, #tpu.memory_space<vmem>>, vector<1x64x3xf32>
    %1 = vector.shape_cast %0 : vector<1x64x3xf32> to vector<64x3xf32>
    %c0_2 = arith.constant 0 : index
    %c0_3 = arith.constant 0 : index
    %c0_4 = arith.constant 0 : index
    %2 = vector.load %arg2[%c0_2, %c0_3, %c0_4] : memref<1x64x32xf32, #tpu.memory_space<vmem>>, vector<1x64x32xf32>
    %3 = vector.shape_cast %2 : vector<1x64x32xf32> to vector<64x32xf32>
    %c0_5 = arith.constant 0 : index
    %c0_6 = arith.constant 0 : index
    %c0_7 = arith.constant 0 : index
    %4 = vector.load %arg3[%c0_5, %c0_6, %c0_7] : memref<1x1x64xf32, #tpu.memory_space<vmem>>, vector<1x1x64xf32>
    %5 = vector.shape_cast %4 : vector<1x1x64xf32> to vector<1x64xf32>
    %cst = arith.constant -1.000000e+09 : f32
    %6 = vector.broadcast %cst : f32 to vector<1x64xf32>
    %7 = arith.mulf %5, %6 : vector<1x64xf32>
    %c0_8 = arith.constant 0 : index
    %c0_9 = arith.constant 0 : index
    %8 = vector.load %arg5[%c0_8, %c0_9] : memref<3x8xf32, #tpu.memory_space<vmem>>, vector<3x8xf32>
    %cst_10 = arith.constant dense<0.000000e+00> : vector<64x8xf32>
    %9 = tpu.matmul %1, %8, %cst_10 {dimension_numbers = #tpu.dot_dimension_numbers<[1], [0], [0], [1], [0, 0, 1, 1], [], []>} : vector<64x3xf32>, vector<3x8xf32>, vector<64x8xf32> -> vector<64x8xf32>
    %c0_11 = arith.constant 0 : index
    %c0_12 = arith.constant 0 : index
    %10 = vector.load %arg4[%c0_11, %c0_12] : memref<1x8xf32, #tpu.memory_space<vmem>>, vector<1x8xf32>
    %11 = vector.broadcast %10 : vector<1x8xf32> to vector<64x8xf32>
    %12 = arith.addf %9, %11 : vector<64x8xf32>
    %cst_13 = arith.constant 0.000000e+00 : f32
    %13 = vector.broadcast %cst_13 : f32 to vector<64x8xf32>
    %14 = arith.maximumf %12, %13 : vector<64x8xf32>
    %c0_14 = arith.constant 0 : index
    %c0_15 = arith.constant 0 : index
    %15 = vector.load %arg15[%c0_14, %c0_15] : memref<8x32xf32, #tpu.memory_space<vmem>>, vector<8x32xf32>
    %cst_16 = arith.constant dense<0.000000e+00> : vector<64x32xf32>
    %16 = tpu.matmul %14, %15, %cst_16 {dimension_numbers = #tpu.dot_dimension_numbers<[1], [0], [0], [1], [0, 0, 1, 1], [], []>} : vector<64x8xf32>, vector<8x32xf32>, vector<64x32xf32> -> vector<64x32xf32>
    %c0_17 = arith.constant 0 : index
    %c0_18 = arith.constant 0 : index
    %17 = vector.load %arg14[%c0_17, %c0_18] : memref<1x32xf32, #tpu.memory_space<vmem>>, vector<1x32xf32>
    %18 = vector.broadcast %17 : vector<1x32xf32> to vector<64x32xf32>
    %19 = arith.addf %16, %18 : vector<64x32xf32>
    %20 = arith.addf %19, %3 : vector<64x32xf32>
    %c0_19 = arith.constant 0 : index
    %c0_20 = arith.constant 0 : index
    %21 = vector.load %arg73[%c0_19, %c0_20] : memref<32x64xf32, #tpu.memory_space<vmem>>, vector<32x64xf32>
    %cst_21 = arith.constant dense<0.000000e+00> : vector<64x64xf32>
    %22 = tpu.matmul %20, %21, %cst_21 {dimension_numbers = #tpu.dot_dimension_numbers<[1], [0], [0], [1], [0, 0, 1, 1], [], []>} : vector<64x32xf32>, vector<32x64xf32>, vector<64x64xf32> -> vector<64x64xf32>
    %c0_22 = arith.constant 0 : index
    %c0_23 = arith.constant 0 : index
    %23 = vector.load %arg70[%c0_22, %c0_23] : memref<1x64xf32, #tpu.memory_space<vmem>>, vector<1x64xf32>
    %24 = vector.broadcast %23 : vector<1x64xf32> to vector<64x64xf32>
    %25 = arith.addf %22, %24 : vector<64x64xf32>
    %c0_24 = arith.constant 0 : index
    %c0_25 = arith.constant 0 : index
    %26 = vector.load %arg74[%c0_24, %c0_25] : memref<32x32xf32, #tpu.memory_space<vmem>>, vector<32x32xf32>
    %cst_26 = arith.constant dense<0.000000e+00> : vector<64x32xf32>
    %27 = tpu.matmul %19, %26, %cst_26 {dimension_numbers = #tpu.dot_dimension_numbers<[1], [0], [0], [1], [0, 0, 1, 1], [], []>} : vector<64x32xf32>, vector<32x32xf32>, vector<64x32xf32> -> vector<64x32xf32>
    %c0_27 = arith.constant 0 : index
    %c0_28 = arith.constant 0 : index
    %28 = vector.load %arg71[%c0_27, %c0_28] : memref<1x32xf32, #tpu.memory_space<vmem>>, vector<1x32xf32>
    %29 = vector.broadcast %28 : vector<1x32xf32> to vector<64x32xf32>
    %30 = arith.addf %27, %29 : vector<64x32xf32>
    %31 = vector.extract_strided_slice %25 {offsets = [0, 0], sizes = [64, 32], strides = [1, 1]} : vector<64x64xf32> to vector<64x32xf32>
    %32 = vector.extract_strided_slice %25 {offsets = [0, 32], sizes = [64, 32], strides = [1, 1]} : vector<64x64xf32> to vector<64x32xf32>
    %c0_29 = arith.constant 0 : index
    %c0_30 = arith.constant 0 : index
    %33 = vector.load %arg72[%c0_29, %c0_30] : memref<32x32xf32, #tpu.memory_space<vmem>>, vector<32x32xf32>
    %c0_31 = arith.constant 0 : index
    %c0_32 = arith.constant 0 : index
    %34 = vector.load %arg69[%c0_31, %c0_32] : memref<1x32xf32, #tpu.memory_space<vmem>>, vector<1x32xf32>
    %35 = vector.extract_strided_slice %31 {offsets = [0, 0], sizes = [64, 8], strides = [1, 1]} : vector<64x32xf32> to vector<64x8xf32>
    %36 = vector.extract_strided_slice %32 {offsets = [0, 0], sizes = [64, 8], strides = [1, 1]} : vector<64x32xf32> to vector<64x8xf32>
    %cst_33 = arith.constant dense<0.000000e+00> : vector<64x64xf32>
    %37 = tpu.matmul %35, %36, %cst_33 {dimension_numbers = #tpu.dot_dimension_numbers<[1], [1], [0], [0], [0, 0, 1, 0], [], []>} : vector<64x8xf32>, vector<64x8xf32>, vector<64x64xf32> -> vector<64x64xf32>
    %cst_34 = arith.constant 0.353553385 : f32
    %38 = vector.broadcast %cst_34 : f32 to vector<64x64xf32>
    %39 = arith.mulf %37, %38 : vector<64x64xf32>
    %40 = vector.broadcast %7 : vector<1x64xf32> to vector<64x64xf32>
    %41 = arith.addf %39, %40 : vector<64x64xf32>
    %cst_35 = arith.constant dense<0xFF800000> : vector<64xf32>
    %42 = vector.multi_reduction <maximumf>, %41, %cst_35 [1] : vector<64x64xf32> to vector<64xf32>
    %43 = vector.shape_cast %42 : vector<64xf32> to vector<64x1xf32>
    %44 = vector.broadcast %43 : vector<64x1xf32> to vector<64x64xf32>
    %45 = arith.subf %41, %44 : vector<64x64xf32>
    %46 = math.exp %45 : vector<64x64xf32>
    %cst_36 = arith.constant dense<0.000000e+00> : vector<64xf32>
    %47 = vector.multi_reduction <add>, %46, %cst_36 [1] : vector<64x64xf32> to vector<64xf32>
    %48 = vector.shape_cast %47 : vector<64xf32> to vector<64x1xf32>
    %49 = tpu.reciprocal %48 {approx = true} : vector<64x1xf32> -> vector<64x1xf32>
    %50 = vector.broadcast %49 : vector<64x1xf32> to vector<64x64xf32>
    %51 = arith.mulf %46, %50 : vector<64x64xf32>
    %52 = vector.extract_strided_slice %30 {offsets = [0, 0], sizes = [64, 8], strides = [1, 1]} : vector<64x32xf32> to vector<64x8xf32>
    %cst_37 = arith.constant dense<0.000000e+00> : vector<64x8xf32>
    %53 = tpu.matmul %51, %52, %cst_37 {dimension_numbers = #tpu.dot_dimension_numbers<[1], [0], [0], [1], [0, 0, 1, 1], [], []>} : vector<64x64xf32>, vector<64x8xf32>, vector<64x8xf32> -> vector<64x8xf32>
    %54 = vector.extract_strided_slice %33 {offsets = [0, 0], sizes = [8, 32], strides = [1, 1]} : vector<32x32xf32> to vector<8x32xf32>
    %cst_38 = arith.constant dense<0.000000e+00> : vector<64x32xf32>
    %55 = tpu.matmul %53, %54, %cst_38 {dimension_numbers = #tpu.dot_dimension_numbers<[1], [0], [0], [1], [0, 0, 1, 1], [], []>} : vector<64x8xf32>, vector<8x32xf32>, vector<64x32xf32> -> vector<64x32xf32>
    %56 = vector.broadcast %34 : vector<1x32xf32> to vector<64x32xf32>
    %57 = arith.addf %56, %55 : vector<64x32xf32>
    %58 = vector.extract_strided_slice %31 {offsets = [0, 8], sizes = [64, 8], strides = [1, 1]} : vector<64x32xf32> to vector<64x8xf32>
    %59 = vector.extract_strided_slice %32 {offsets = [0, 8], sizes = [64, 8], strides = [1, 1]} : vector<64x32xf32> to vector<64x8xf32>
    %cst_39 = arith.constant dense<0.000000e+00> : vector<64x64xf32>
    %60 = tpu.matmul %58, %59, %cst_39 {dimension_numbers = #tpu.dot_dimension_numbers<[1], [1], [0], [0], [0, 0, 1, 0], [], []>} : vector<64x8xf32>, vector<64x8xf32>, vector<64x64xf32> -> vector<64x64xf32>
    %cst_40 = arith.constant 0.353553385 : f32
    %61 = vector.broadcast %cst_40 : f32 to vector<64x64xf32>
    %62 = arith.mulf %60, %61 : vector<64x64xf32>
    %63 = vector.broadcast %7 : vector<1x64xf32> to vector<64x64xf32>
    %64 = arith.addf %62, %63 : vector<64x64xf32>
    %cst_41 = arith.constant dense<0xFF800000> : vector<64xf32>
    %65 = vector.multi_reduction <maximumf>, %64, %cst_41 [1] : vector<64x64xf32> to vector<64xf32>
    %66 = vector.shape_cast %65 : vector<64xf32> to vector<64x1xf32>
    %67 = vector.broadcast %66 : vector<64x1xf32> to vector<64x64xf32>
    %68 = arith.subf %64, %67 : vector<64x64xf32>
    %69 = math.exp %68 : vector<64x64xf32>
    %cst_42 = arith.constant dense<0.000000e+00> : vector<64xf32>
    %70 = vector.multi_reduction <add>, %69, %cst_42 [1] : vector<64x64xf32> to vector<64xf32>
    %71 = vector.shape_cast %70 : vector<64xf32> to vector<64x1xf32>
    %72 = tpu.reciprocal %71 {approx = true} : vector<64x1xf32> -> vector<64x1xf32>
    %73 = vector.broadcast %72 : vector<64x1xf32> to vector<64x64xf32>
    %74 = arith.mulf %69, %73 : vector<64x64xf32>
    %75 = vector.extract_strided_slice %30 {offsets = [0, 8], sizes = [64, 8], strides = [1, 1]} : vector<64x32xf32> to vector<64x8xf32>
    %cst_43 = arith.constant dense<0.000000e+00> : vector<64x8xf32>
    %76 = tpu.matmul %74, %75, %cst_43 {dimension_numbers = #tpu.dot_dimension_numbers<[1], [0], [0], [1], [0, 0, 1, 1], [], []>} : vector<64x64xf32>, vector<64x8xf32>, vector<64x8xf32> -> vector<64x8xf32>
    %77 = vector.extract_strided_slice %33 {offsets = [8, 0], sizes = [8, 32], strides = [1, 1]} : vector<32x32xf32> to vector<8x32xf32>
    %cst_44 = arith.constant dense<0.000000e+00> : vector<64x32xf32>
    %78 = tpu.matmul %76, %77, %cst_44 {dimension_numbers = #tpu.dot_dimension_numbers<[1], [0], [0], [1], [0, 0, 1, 1], [], []>} : vector<64x8xf32>, vector<8x32xf32>, vector<64x32xf32> -> vector<64x32xf32>
    %79 = arith.addf %57, %78 : vector<64x32xf32>
    %80 = vector.extract_strided_slice %31 {offsets = [0, 16], sizes = [64, 8], strides = [1, 1]} : vector<64x32xf32> to vector<64x8xf32>
    %81 = vector.extract_strided_slice %32 {offsets = [0, 16], sizes = [64, 8], strides = [1, 1]} : vector<64x32xf32> to vector<64x8xf32>
    %cst_45 = arith.constant dense<0.000000e+00> : vector<64x64xf32>
    %82 = tpu.matmul %80, %81, %cst_45 {dimension_numbers = #tpu.dot_dimension_numbers<[1], [1], [0], [0], [0, 0, 1, 0], [], []>} : vector<64x8xf32>, vector<64x8xf32>, vector<64x64xf32> -> vector<64x64xf32>
    %cst_46 = arith.constant 0.353553385 : f32
    %83 = vector.broadcast %cst_46 : f32 to vector<64x64xf32>
    %84 = arith.mulf %82, %83 : vector<64x64xf32>
    %85 = vector.broadcast %7 : vector<1x64xf32> to vector<64x64xf32>
    %86 = arith.addf %84, %85 : vector<64x64xf32>
    %cst_47 = arith.constant dense<0xFF800000> : vector<64xf32>
    %87 = vector.multi_reduction <maximumf>, %86, %cst_47 [1] : vector<64x64xf32> to vector<64xf32>
    %88 = vector.shape_cast %87 : vector<64xf32> to vector<64x1xf32>
    %89 = vector.broadcast %88 : vector<64x1xf32> to vector<64x64xf32>
    %90 = arith.subf %86, %89 : vector<64x64xf32>
    %91 = math.exp %90 : vector<64x64xf32>
    %cst_48 = arith.constant dense<0.000000e+00> : vector<64xf32>
    %92 = vector.multi_reduction <add>, %91, %cst_48 [1] : vector<64x64xf32> to vector<64xf32>
    %93 = vector.shape_cast %92 : vector<64xf32> to vector<64x1xf32>
    %94 = tpu.reciprocal %93 {approx = true} : vector<64x1xf32> -> vector<64x1xf32>
    %95 = vector.broadcast %94 : vector<64x1xf32> to vector<64x64xf32>
    %96 = arith.mulf %91, %95 : vector<64x64xf32>
    %97 = vector.extract_strided_slice %30 {offsets = [0, 16], sizes = [64, 8], strides = [1, 1]} : vector<64x32xf32> to vector<64x8xf32>
    %cst_49 = arith.constant dense<0.000000e+00> : vector<64x8xf32>
    %98 = tpu.matmul %96, %97, %cst_49 {dimension_numbers = #tpu.dot_dimension_numbers<[1], [0], [0], [1], [0, 0, 1, 1], [], []>} : vector<64x64xf32>, vector<64x8xf32>, vector<64x8xf32> -> vector<64x8xf32>
    %99 = vector.extract_strided_slice %33 {offsets = [16, 0], sizes = [8, 32], strides = [1, 1]} : vector<32x32xf32> to vector<8x32xf32>
    %cst_50 = arith.constant dense<0.000000e+00> : vector<64x32xf32>
    %100 = tpu.matmul %98, %99, %cst_50 {dimension_numbers = #tpu.dot_dimension_numbers<[1], [0], [0], [1], [0, 0, 1, 1], [], []>} : vector<64x8xf32>, vector<8x32xf32>, vector<64x32xf32> -> vector<64x32xf32>
    %101 = arith.addf %79, %100 : vector<64x32xf32>
    %102 = vector.extract_strided_slice %31 {offsets = [0, 24], sizes = [64, 8], strides = [1, 1]} : vector<64x32xf32> to vector<64x8xf32>
    %103 = vector.extract_strided_slice %32 {offsets = [0, 24], sizes = [64, 8], strides = [1, 1]} : vector<64x32xf32> to vector<64x8xf32>
    %cst_51 = arith.constant dense<0.000000e+00> : vector<64x64xf32>
    %104 = tpu.matmul %102, %103, %cst_51 {dimension_numbers = #tpu.dot_dimension_numbers<[1], [1], [0], [0], [0, 0, 1, 0], [], []>} : vector<64x8xf32>, vector<64x8xf32>, vector<64x64xf32> -> vector<64x64xf32>
    %cst_52 = arith.constant 0.353553385 : f32
    %105 = vector.broadcast %cst_52 : f32 to vector<64x64xf32>
    %106 = arith.mulf %104, %105 : vector<64x64xf32>
    %107 = vector.broadcast %7 : vector<1x64xf32> to vector<64x64xf32>
    %108 = arith.addf %106, %107 : vector<64x64xf32>
    %cst_53 = arith.constant dense<0xFF800000> : vector<64xf32>
    %109 = vector.multi_reduction <maximumf>, %108, %cst_53 [1] : vector<64x64xf32> to vector<64xf32>
    %110 = vector.shape_cast %109 : vector<64xf32> to vector<64x1xf32>
    %111 = vector.broadcast %110 : vector<64x1xf32> to vector<64x64xf32>
    %112 = arith.subf %108, %111 : vector<64x64xf32>
    %113 = math.exp %112 : vector<64x64xf32>
    %cst_54 = arith.constant dense<0.000000e+00> : vector<64xf32>
    %114 = vector.multi_reduction <add>, %113, %cst_54 [1] : vector<64x64xf32> to vector<64xf32>
    %115 = vector.shape_cast %114 : vector<64xf32> to vector<64x1xf32>
    %116 = tpu.reciprocal %115 {approx = true} : vector<64x1xf32> -> vector<64x1xf32>
    %117 = vector.broadcast %116 : vector<64x1xf32> to vector<64x64xf32>
    %118 = arith.mulf %113, %117 : vector<64x64xf32>
    %119 = vector.extract_strided_slice %30 {offsets = [0, 24], sizes = [64, 8], strides = [1, 1]} : vector<64x32xf32> to vector<64x8xf32>
    %cst_55 = arith.constant dense<0.000000e+00> : vector<64x8xf32>
    %120 = tpu.matmul %118, %119, %cst_55 {dimension_numbers = #tpu.dot_dimension_numbers<[1], [0], [0], [1], [0, 0, 1, 1], [], []>} : vector<64x64xf32>, vector<64x8xf32>, vector<64x8xf32> -> vector<64x8xf32>
    %121 = vector.extract_strided_slice %33 {offsets = [24, 0], sizes = [8, 32], strides = [1, 1]} : vector<32x32xf32> to vector<8x32xf32>
    %cst_56 = arith.constant dense<0.000000e+00> : vector<64x32xf32>
    %122 = tpu.matmul %120, %121, %cst_56 {dimension_numbers = #tpu.dot_dimension_numbers<[1], [0], [0], [1], [0, 0, 1, 1], [], []>} : vector<64x8xf32>, vector<8x32xf32>, vector<64x32xf32> -> vector<64x32xf32>
    %123 = arith.addf %101, %122 : vector<64x32xf32>
    %124 = arith.addf %19, %123 : vector<64x32xf32>
    %c0_57 = arith.constant 0 : index
    %c0_58 = arith.constant 0 : index
    %125 = vector.load %arg66[%c0_57, %c0_58] : memref<1x32xf32, #tpu.memory_space<vmem>>, vector<1x32xf32>
    %c0_59 = arith.constant 0 : index
    %c0_60 = arith.constant 0 : index
    %126 = vector.load %arg65[%c0_59, %c0_60] : memref<1x32xf32, #tpu.memory_space<vmem>>, vector<1x32xf32>
    %cst_61 = arith.constant dense<0.000000e+00> : vector<64xf32>
    %127 = vector.multi_reduction <add>, %124, %cst_61 [1] : vector<64x32xf32> to vector<64xf32>
    %128 = vector.shape_cast %127 : vector<64xf32> to vector<64x1xf32>
    %cst_62 = arith.constant 3.200000e+01 : f32
    %129 = vector.broadcast %cst_62 : f32 to vector<64x1xf32>
    %130 = arith.divf %128, %129 : vector<64x1xf32>
    %131 = vector.broadcast %130 : vector<64x1xf32> to vector<64x32xf32>
    %132 = arith.subf %124, %131 : vector<64x32xf32>
    %133 = arith.mulf %132, %132 : vector<64x32xf32>
    %cst_63 = arith.constant dense<0.000000e+00> : vector<64xf32>
    %134 = vector.multi_reduction <add>, %133, %cst_63 [1] : vector<64x32xf32> to vector<64xf32>
    %135 = vector.shape_cast %134 : vector<64xf32> to vector<64x1xf32>
    %cst_64 = arith.constant 3.200000e+01 : f32
    %136 = vector.broadcast %cst_64 : f32 to vector<64x1xf32>
    %137 = arith.divf %135, %136 : vector<64x1xf32>
    %cst_65 = arith.constant 9.99999974E-6 : f32
    %138 = vector.broadcast %cst_65 : f32 to vector<64x1xf32>
    %139 = arith.addf %137, %138 : vector<64x1xf32>
    %140 = math.rsqrt %139 : vector<64x1xf32>
    %141 = vector.broadcast %140 : vector<64x1xf32> to vector<64x32xf32>
    %142 = arith.mulf %132, %141 : vector<64x32xf32>
    %143 = vector.broadcast %125 : vector<1x32xf32> to vector<64x32xf32>
    %144 = arith.mulf %142, %143 : vector<64x32xf32>
    %145 = vector.broadcast %126 : vector<1x32xf32> to vector<64x32xf32>
    %146 = arith.addf %144, %145 : vector<64x32xf32>
    %c0_66 = arith.constant 0 : index
    %c0_67 = arith.constant 0 : index
    %147 = vector.load %arg75[%c0_66, %c0_67] : memref<32x64xf32, #tpu.memory_space<vmem>>, vector<32x64xf32>
    %cst_68 = arith.constant dense<0.000000e+00> : vector<64x64xf32>
    %148 = tpu.matmul %146, %147, %cst_68 {dimension_numbers = #tpu.dot_dimension_numbers<[1], [0], [0], [1], [0, 0, 1, 1], [], []>} : vector<64x32xf32>, vector<32x64xf32>, vector<64x64xf32> -> vector<64x64xf32>
    %c0_69 = arith.constant 0 : index
    %c0_70 = arith.constant 0 : index
    %149 = vector.load %arg63[%c0_69, %c0_70] : memref<1x64xf32, #tpu.memory_space<vmem>>, vector<1x64xf32>
    %150 = vector.broadcast %149 : vector<1x64xf32> to vector<64x64xf32>
    %151 = arith.addf %148, %150 : vector<64x64xf32>
    %cst_71 = arith.constant 0.000000e+00 : f32
    %152 = vector.broadcast %cst_71 : f32 to vector<64x64xf32>
    %153 = arith.maximumf %151, %152 : vector<64x64xf32>
    %c0_72 = arith.constant 0 : index
    %c0_73 = arith.constant 0 : index
    %154 = vector.load %arg76[%c0_72, %c0_73] : memref<64x32xf32, #tpu.memory_space<vmem>>, vector<64x32xf32>
    %cst_74 = arith.constant dense<0.000000e+00> : vector<64x32xf32>
    %155 = tpu.matmul %153, %154, %cst_74 {dimension_numbers = #tpu.dot_dimension_numbers<[1], [0], [0], [1], [0, 0, 1, 1], [], []>} : vector<64x64xf32>, vector<64x32xf32>, vector<64x32xf32> -> vector<64x32xf32>
    %c0_75 = arith.constant 0 : index
    %c0_76 = arith.constant 0 : index
    %156 = vector.load %arg64[%c0_75, %c0_76] : memref<1x32xf32, #tpu.memory_space<vmem>>, vector<1x32xf32>
    %157 = vector.broadcast %156 : vector<1x32xf32> to vector<64x32xf32>
    %158 = arith.addf %155, %157 : vector<64x32xf32>
    %159 = arith.addf %146, %158 : vector<64x32xf32>
    %c0_77 = arith.constant 0 : index
    %c0_78 = arith.constant 0 : index
    %160 = vector.load %arg68[%c0_77, %c0_78] : memref<1x32xf32, #tpu.memory_space<vmem>>, vector<1x32xf32>
    %c0_79 = arith.constant 0 : index
    %c0_80 = arith.constant 0 : index
    %161 = vector.load %arg67[%c0_79, %c0_80] : memref<1x32xf32, #tpu.memory_space<vmem>>, vector<1x32xf32>
    %cst_81 = arith.constant dense<0.000000e+00> : vector<64xf32>
    %162 = vector.multi_reduction <add>, %159, %cst_81 [1] : vector<64x32xf32> to vector<64xf32>
    %163 = vector.shape_cast %162 : vector<64xf32> to vector<64x1xf32>
    %cst_82 = arith.constant 3.200000e+01 : f32
    %164 = vector.broadcast %cst_82 : f32 to vector<64x1xf32>
    %165 = arith.divf %163, %164 : vector<64x1xf32>
    %166 = vector.broadcast %165 : vector<64x1xf32> to vector<64x32xf32>
    %167 = arith.subf %159, %166 : vector<64x32xf32>
    %168 = arith.mulf %167, %167 : vector<64x32xf32>
    %cst_83 = arith.constant dense<0.000000e+00> : vector<64xf32>
    %169 = vector.multi_reduction <add>, %168, %cst_83 [1] : vector<64x32xf32> to vector<64xf32>
    %170 = vector.shape_cast %169 : vector<64xf32> to vector<64x1xf32>
    %cst_84 = arith.constant 3.200000e+01 : f32
    %171 = vector.broadcast %cst_84 : f32 to vector<64x1xf32>
    %172 = arith.divf %170, %171 : vector<64x1xf32>
    %cst_85 = arith.constant 9.99999974E-6 : f32
    %173 = vector.broadcast %cst_85 : f32 to vector<64x1xf32>
    %174 = arith.addf %172, %173 : vector<64x1xf32>
    %175 = math.rsqrt %174 : vector<64x1xf32>
    %176 = vector.broadcast %175 : vector<64x1xf32> to vector<64x32xf32>
    %177 = arith.mulf %167, %176 : vector<64x32xf32>
    %178 = vector.broadcast %160 : vector<1x32xf32> to vector<64x32xf32>
    %179 = arith.mulf %177, %178 : vector<64x32xf32>
    %180 = vector.broadcast %161 : vector<1x32xf32> to vector<64x32xf32>
    %181 = arith.addf %179, %180 : vector<64x32xf32>
    %c0_86 = arith.constant 0 : index
    %c0_87 = arith.constant 0 : index
    %182 = vector.load %arg16[%c0_86, %c0_87] : memref<8x32xf32, #tpu.memory_space<vmem>>, vector<8x32xf32>
    %cst_88 = arith.constant 0.000000e+00 : f32
    %183 = vector.broadcast %cst_88 : f32 to vector<8x32xf32>
    %184 = arith.addf %183, %182 : vector<8x32xf32>
    %c0_89 = arith.constant 0 : index
    %c0_90 = arith.constant 0 : index
    %185 = vector.load %arg37[%c0_89, %c0_90] : memref<32x64xf32, #tpu.memory_space<vmem>>, vector<32x64xf32>
    %cst_91 = arith.constant dense<0.000000e+00> : vector<8x64xf32>
    %186 = tpu.matmul %184, %185, %cst_91 {dimension_numbers = #tpu.dot_dimension_numbers<[1], [0], [0], [1], [0, 0, 1, 1], [], []>} : vector<8x32xf32>, vector<32x64xf32>, vector<8x64xf32> -> vector<8x64xf32>
    %c0_92 = arith.constant 0 : index
    %c0_93 = arith.constant 0 : index
    %187 = vector.load %arg34[%c0_92, %c0_93] : memref<1x64xf32, #tpu.memory_space<vmem>>, vector<1x64xf32>
    %188 = vector.broadcast %187 : vector<1x64xf32> to vector<8x64xf32>
    %189 = arith.addf %186, %188 : vector<8x64xf32>
    %c0_94 = arith.constant 0 : index
    %c0_95 = arith.constant 0 : index
    %190 = vector.load %arg38[%c0_94, %c0_95] : memref<32x32xf32, #tpu.memory_space<vmem>>, vector<32x32xf32>
    %cst_96 = arith.constant dense<0.000000e+00> : vector<8x32xf32>
    %191 = tpu.matmul %183, %190, %cst_96 {dimension_numbers = #tpu.dot_dimension_numbers<[1], [0], [0], [1], [0, 0, 1, 1], [], []>} : vector<8x32xf32>, vector<32x32xf32>, vector<8x32xf32> -> vector<8x32xf32>
    %c0_97 = arith.constant 0 : index
    %c0_98 = arith.constant 0 : index
    %192 = vector.load %arg35[%c0_97, %c0_98] : memref<1x32xf32, #tpu.memory_space<vmem>>, vector<1x32xf32>
    %193 = vector.broadcast %192 : vector<1x32xf32> to vector<8x32xf32>
    %194 = arith.addf %191, %193 : vector<8x32xf32>
    %195 = vector.extract_strided_slice %189 {offsets = [0, 0], sizes = [8, 32], strides = [1, 1]} : vector<8x64xf32> to vector<8x32xf32>
    %196 = vector.extract_strided_slice %189 {offsets = [0, 32], sizes = [8, 32], strides = [1, 1]} : vector<8x64xf32> to vector<8x32xf32>
    %c0_99 = arith.constant 0 : index
    %c0_100 = arith.constant 0 : index
    %197 = vector.load %arg36[%c0_99, %c0_100] : memref<32x32xf32, #tpu.memory_space<vmem>>, vector<32x32xf32>
    %c0_101 = arith.constant 0 : index
    %c0_102 = arith.constant 0 : index
    %198 = vector.load %arg33[%c0_101, %c0_102] : memref<1x32xf32, #tpu.memory_space<vmem>>, vector<1x32xf32>
    %199 = vector.extract_strided_slice %195 {offsets = [0, 0], sizes = [8, 8], strides = [1, 1]} : vector<8x32xf32> to vector<8x8xf32>
    %200 = vector.extract_strided_slice %196 {offsets = [0, 0], sizes = [8, 8], strides = [1, 1]} : vector<8x32xf32> to vector<8x8xf32>
    %cst_103 = arith.constant dense<0.000000e+00> : vector<8x8xf32>
    %201 = tpu.matmul %199, %200, %cst_103 {dimension_numbers = #tpu.dot_dimension_numbers<[1], [1], [0], [0], [0, 0, 1, 0], [], []>} : vector<8x8xf32>, vector<8x8xf32>, vector<8x8xf32> -> vector<8x8xf32>
    %cst_104 = arith.constant 0.353553385 : f32
    %202 = vector.broadcast %cst_104 : f32 to vector<8x8xf32>
    %203 = arith.mulf %201, %202 : vector<8x8xf32>
    %cst_105 = arith.constant dense<0xFF800000> : vector<8xf32>
    %204 = vector.multi_reduction <maximumf>, %203, %cst_105 [1] : vector<8x8xf32> to vector<8xf32>
    %205 = vector.shape_cast %204 : vector<8xf32> to vector<8x1xf32>
    %206 = vector.broadcast %205 : vector<8x1xf32> to vector<8x8xf32>
    %207 = arith.subf %203, %206 : vector<8x8xf32>
    %208 = math.exp %207 : vector<8x8xf32>
    %cst_106 = arith.constant dense<0.000000e+00> : vector<8xf32>
    %209 = vector.multi_reduction <add>, %208, %cst_106 [1] : vector<8x8xf32> to vector<8xf32>
    %210 = vector.shape_cast %209 : vector<8xf32> to vector<8x1xf32>
    %211 = tpu.reciprocal %210 {approx = true} : vector<8x1xf32> -> vector<8x1xf32>
    %212 = vector.broadcast %211 : vector<8x1xf32> to vector<8x8xf32>
    %213 = arith.mulf %208, %212 : vector<8x8xf32>
    %214 = vector.extract_strided_slice %194 {offsets = [0, 0], sizes = [8, 8], strides = [1, 1]} : vector<8x32xf32> to vector<8x8xf32>
    %cst_107 = arith.constant dense<0.000000e+00> : vector<8x8xf32>
    %215 = tpu.matmul %213, %214, %cst_107 {dimension_numbers = #tpu.dot_dimension_numbers<[1], [0], [0], [1], [0, 0, 1, 1], [], []>} : vector<8x8xf32>, vector<8x8xf32>, vector<8x8xf32> -> vector<8x8xf32>
    %216 = vector.extract_strided_slice %197 {offsets = [0, 0], sizes = [8, 32], strides = [1, 1]} : vector<32x32xf32> to vector<8x32xf32>
    %cst_108 = arith.constant dense<0.000000e+00> : vector<8x32xf32>
    %217 = tpu.matmul %215, %216, %cst_108 {dimension_numbers = #tpu.dot_dimension_numbers<[1], [0], [0], [1], [0, 0, 1, 1], [], []>} : vector<8x8xf32>, vector<8x32xf32>, vector<8x32xf32> -> vector<8x32xf32>
    %218 = vector.broadcast %198 : vector<1x32xf32> to vector<8x32xf32>
    %219 = arith.addf %218, %217 : vector<8x32xf32>
    %220 = vector.extract_strided_slice %195 {offsets = [0, 8], sizes = [8, 8], strides = [1, 1]} : vector<8x32xf32> to vector<8x8xf32>
    %221 = vector.extract_strided_slice %196 {offsets = [0, 8], sizes = [8, 8], strides = [1, 1]} : vector<8x32xf32> to vector<8x8xf32>
    %cst_109 = arith.constant dense<0.000000e+00> : vector<8x8xf32>
    %222 = tpu.matmul %220, %221, %cst_109 {dimension_numbers = #tpu.dot_dimension_numbers<[1], [1], [0], [0], [0, 0, 1, 0], [], []>} : vector<8x8xf32>, vector<8x8xf32>, vector<8x8xf32> -> vector<8x8xf32>
    %cst_110 = arith.constant 0.353553385 : f32
    %223 = vector.broadcast %cst_110 : f32 to vector<8x8xf32>
    %224 = arith.mulf %222, %223 : vector<8x8xf32>
    %cst_111 = arith.constant dense<0xFF800000> : vector<8xf32>
    %225 = vector.multi_reduction <maximumf>, %224, %cst_111 [1] : vector<8x8xf32> to vector<8xf32>
    %226 = vector.shape_cast %225 : vector<8xf32> to vector<8x1xf32>
    %227 = vector.broadcast %226 : vector<8x1xf32> to vector<8x8xf32>
    %228 = arith.subf %224, %227 : vector<8x8xf32>
    %229 = math.exp %228 : vector<8x8xf32>
    %cst_112 = arith.constant dense<0.000000e+00> : vector<8xf32>
    %230 = vector.multi_reduction <add>, %229, %cst_112 [1] : vector<8x8xf32> to vector<8xf32>
    %231 = vector.shape_cast %230 : vector<8xf32> to vector<8x1xf32>
    %232 = tpu.reciprocal %231 {approx = true} : vector<8x1xf32> -> vector<8x1xf32>
    %233 = vector.broadcast %232 : vector<8x1xf32> to vector<8x8xf32>
    %234 = arith.mulf %229, %233 : vector<8x8xf32>
    %235 = vector.extract_strided_slice %194 {offsets = [0, 8], sizes = [8, 8], strides = [1, 1]} : vector<8x32xf32> to vector<8x8xf32>
    %cst_113 = arith.constant dense<0.000000e+00> : vector<8x8xf32>
    %236 = tpu.matmul %234, %235, %cst_113 {dimension_numbers = #tpu.dot_dimension_numbers<[1], [0], [0], [1], [0, 0, 1, 1], [], []>} : vector<8x8xf32>, vector<8x8xf32>, vector<8x8xf32> -> vector<8x8xf32>
    %237 = vector.extract_strided_slice %197 {offsets = [8, 0], sizes = [8, 32], strides = [1, 1]} : vector<32x32xf32> to vector<8x32xf32>
    %cst_114 = arith.constant dense<0.000000e+00> : vector<8x32xf32>
    %238 = tpu.matmul %236, %237, %cst_114 {dimension_numbers = #tpu.dot_dimension_numbers<[1], [0], [0], [1], [0, 0, 1, 1], [], []>} : vector<8x8xf32>, vector<8x32xf32>, vector<8x32xf32> -> vector<8x32xf32>
    %239 = arith.addf %219, %238 : vector<8x32xf32>
    %240 = vector.extract_strided_slice %195 {offsets = [0, 16], sizes = [8, 8], strides = [1, 1]} : vector<8x32xf32> to vector<8x8xf32>
    %241 = vector.extract_strided_slice %196 {offsets = [0, 16], sizes = [8, 8], strides = [1, 1]} : vector<8x32xf32> to vector<8x8xf32>
    %cst_115 = arith.constant dense<0.000000e+00> : vector<8x8xf32>
    %242 = tpu.matmul %240, %241, %cst_115 {dimension_numbers = #tpu.dot_dimension_numbers<[1], [1], [0], [0], [0, 0, 1, 0], [], []>} : vector<8x8xf32>, vector<8x8xf32>, vector<8x8xf32> -> vector<8x8xf32>
    %cst_116 = arith.constant 0.353553385 : f32
    %243 = vector.broadcast %cst_116 : f32 to vector<8x8xf32>
    %244 = arith.mulf %242, %243 : vector<8x8xf32>
    %cst_117 = arith.constant dense<0xFF800000> : vector<8xf32>
    %245 = vector.multi_reduction <maximumf>, %244, %cst_117 [1] : vector<8x8xf32> to vector<8xf32>
    %246 = vector.shape_cast %245 : vector<8xf32> to vector<8x1xf32>
    %247 = vector.broadcast %246 : vector<8x1xf32> to vector<8x8xf32>
    %248 = arith.subf %244, %247 : vector<8x8xf32>
    %249 = math.exp %248 : vector<8x8xf32>
    %cst_118 = arith.constant dense<0.000000e+00> : vector<8xf32>
    %250 = vector.multi_reduction <add>, %249, %cst_118 [1] : vector<8x8xf32> to vector<8xf32>
    %251 = vector.shape_cast %250 : vector<8xf32> to vector<8x1xf32>
    %252 = tpu.reciprocal %251 {approx = true} : vector<8x1xf32> -> vector<8x1xf32>
    %253 = vector.broadcast %252 : vector<8x1xf32> to vector<8x8xf32>
    %254 = arith.mulf %249, %253 : vector<8x8xf32>
    %255 = vector.extract_strided_slice %194 {offsets = [0, 16], sizes = [8, 8], strides = [1, 1]} : vector<8x32xf32> to vector<8x8xf32>
    %cst_119 = arith.constant dense<0.000000e+00> : vector<8x8xf32>
    %256 = tpu.matmul %254, %255, %cst_119 {dimension_numbers = #tpu.dot_dimension_numbers<[1], [0], [0], [1], [0, 0, 1, 1], [], []>} : vector<8x8xf32>, vector<8x8xf32>, vector<8x8xf32> -> vector<8x8xf32>
    %257 = vector.extract_strided_slice %197 {offsets = [16, 0], sizes = [8, 32], strides = [1, 1]} : vector<32x32xf32> to vector<8x32xf32>
    %cst_120 = arith.constant dense<0.000000e+00> : vector<8x32xf32>
    %258 = tpu.matmul %256, %257, %cst_120 {dimension_numbers = #tpu.dot_dimension_numbers<[1], [0], [0], [1], [0, 0, 1, 1], [], []>} : vector<8x8xf32>, vector<8x32xf32>, vector<8x32xf32> -> vector<8x32xf32>
    %259 = arith.addf %239, %258 : vector<8x32xf32>
    %260 = vector.extract_strided_slice %195 {offsets = [0, 24], sizes = [8, 8], strides = [1, 1]} : vector<8x32xf32> to vector<8x8xf32>
    %261 = vector.extract_strided_slice %196 {offsets = [0, 24], sizes = [8, 8], strides = [1, 1]} : vector<8x32xf32> to vector<8x8xf32>
    %cst_121 = arith.constant dense<0.000000e+00> : vector<8x8xf32>
    %262 = tpu.matmul %260, %261, %cst_121 {dimension_numbers = #tpu.dot_dimension_numbers<[1], [1], [0], [0], [0, 0, 1, 0], [], []>} : vector<8x8xf32>, vector<8x8xf32>, vector<8x8xf32> -> vector<8x8xf32>
    %cst_122 = arith.constant 0.353553385 : f32
    %263 = vector.broadcast %cst_122 : f32 to vector<8x8xf32>
    %264 = arith.mulf %262, %263 : vector<8x8xf32>
    %cst_123 = arith.constant dense<0xFF800000> : vector<8xf32>
    %265 = vector.multi_reduction <maximumf>, %264, %cst_123 [1] : vector<8x8xf32> to vector<8xf32>
    %266 = vector.shape_cast %265 : vector<8xf32> to vector<8x1xf32>
    %267 = vector.broadcast %266 : vector<8x1xf32> to vector<8x8xf32>
    %268 = arith.subf %264, %267 : vector<8x8xf32>
    %269 = math.exp %268 : vector<8x8xf32>
    %cst_124 = arith.constant dense<0.000000e+00> : vector<8xf32>
    %270 = vector.multi_reduction <add>, %269, %cst_124 [1] : vector<8x8xf32> to vector<8xf32>
    %271 = vector.shape_cast %270 : vector<8xf32> to vector<8x1xf32>
    %272 = tpu.reciprocal %271 {approx = true} : vector<8x1xf32> -> vector<8x1xf32>
    %273 = vector.broadcast %272 : vector<8x1xf32> to vector<8x8xf32>
    %274 = arith.mulf %269, %273 : vector<8x8xf32>
    %275 = vector.extract_strided_slice %194 {offsets = [0, 24], sizes = [8, 8], strides = [1, 1]} : vector<8x32xf32> to vector<8x8xf32>
    %cst_125 = arith.constant dense<0.000000e+00> : vector<8x8xf32>
    %276 = tpu.matmul %274, %275, %cst_125 {dimension_numbers = #tpu.dot_dimension_numbers<[1], [0], [0], [1], [0, 0, 1, 1], [], []>} : vector<8x8xf32>, vector<8x8xf32>, vector<8x8xf32> -> vector<8x8xf32>
    %277 = vector.extract_strided_slice %197 {offsets = [24, 0], sizes = [8, 32], strides = [1, 1]} : vector<32x32xf32> to vector<8x32xf32>
    %cst_126 = arith.constant dense<0.000000e+00> : vector<8x32xf32>
    %278 = tpu.matmul %276, %277, %cst_126 {dimension_numbers = #tpu.dot_dimension_numbers<[1], [0], [0], [1], [0, 0, 1, 1], [], []>} : vector<8x8xf32>, vector<8x32xf32>, vector<8x32xf32> -> vector<8x32xf32>
    %279 = arith.addf %259, %278 : vector<8x32xf32>
    %280 = arith.addf %183, %279 : vector<8x32xf32>
    %c0_127 = arith.constant 0 : index
    %c0_128 = arith.constant 0 : index
    %281 = vector.load %arg28[%c0_127, %c0_128] : memref<1x32xf32, #tpu.memory_space<vmem>>, vector<1x32xf32>
    %c0_129 = arith.constant 0 : index
    %c0_130 = arith.constant 0 : index
    %282 = vector.load %arg27[%c0_129, %c0_130] : memref<1x32xf32, #tpu.memory_space<vmem>>, vector<1x32xf32>
    %cst_131 = arith.constant dense<0.000000e+00> : vector<8xf32>
    %283 = vector.multi_reduction <add>, %280, %cst_131 [1] : vector<8x32xf32> to vector<8xf32>
    %284 = vector.shape_cast %283 : vector<8xf32> to vector<8x1xf32>
    %cst_132 = arith.constant 3.200000e+01 : f32
    %285 = vector.broadcast %cst_132 : f32 to vector<8x1xf32>
    %286 = arith.divf %284, %285 : vector<8x1xf32>
    %287 = vector.broadcast %286 : vector<8x1xf32> to vector<8x32xf32>
    %288 = arith.subf %280, %287 : vector<8x32xf32>
    %289 = arith.mulf %288, %288 : vector<8x32xf32>
    %cst_133 = arith.constant dense<0.000000e+00> : vector<8xf32>
    %290 = vector.multi_reduction <add>, %289, %cst_133 [1] : vector<8x32xf32> to vector<8xf32>
    %291 = vector.shape_cast %290 : vector<8xf32> to vector<8x1xf32>
    %cst_134 = arith.constant 3.200000e+01 : f32
    %292 = vector.broadcast %cst_134 : f32 to vector<8x1xf32>
    %293 = arith.divf %291, %292 : vector<8x1xf32>
    %cst_135 = arith.constant 9.99999974E-6 : f32
    %294 = vector.broadcast %cst_135 : f32 to vector<8x1xf32>
    %295 = arith.addf %293, %294 : vector<8x1xf32>
    %296 = math.rsqrt %295 : vector<8x1xf32>
    %297 = vector.broadcast %296 : vector<8x1xf32> to vector<8x32xf32>
    %298 = arith.mulf %288, %297 : vector<8x32xf32>
    %299 = vector.broadcast %281 : vector<1x32xf32> to vector<8x32xf32>
    %300 = arith.mulf %298, %299 : vector<8x32xf32>
    %301 = vector.broadcast %282 : vector<1x32xf32> to vector<8x32xf32>
    %302 = arith.addf %300, %301 : vector<8x32xf32>
    %303 = arith.addf %302, %182 : vector<8x32xf32>
    %304 = arith.addf %181, %3 : vector<64x32xf32>
    %c0_136 = arith.constant 0 : index
    %c0_137 = arith.constant 0 : index
    %305 = vector.load %arg25[%c0_136, %c0_137] : memref<32x64xf32, #tpu.memory_space<vmem>>, vector<32x64xf32>
    %c0_138 = arith.constant 0 : index
    %c0_139 = arith.constant 0 : index
    %306 = vector.load %arg22[%c0_138, %c0_139] : memref<1x64xf32, #tpu.memory_space<vmem>>, vector<1x64xf32>
    %307 = vector.extract_strided_slice %305 {offsets = [0, 0], sizes = [32, 32], strides = [1, 1]} : vector<32x64xf32> to vector<32x32xf32>
    %cst_140 = arith.constant dense<0.000000e+00> : vector<8x32xf32>
    %308 = tpu.matmul %303, %307, %cst_140 {dimension_numbers = #tpu.dot_dimension_numbers<[1], [0], [0], [1], [0, 0, 1, 1], [], []>} : vector<8x32xf32>, vector<32x32xf32>, vector<8x32xf32> -> vector<8x32xf32>
    %309 = vector.extract_strided_slice %306 {offsets = [0, 0], sizes = [1, 32], strides = [1, 1]} : vector<1x64xf32> to vector<1x32xf32>
    %310 = vector.broadcast %309 : vector<1x32xf32> to vector<8x32xf32>
    %311 = arith.addf %308, %310 : vector<8x32xf32>
    %312 = vector.extract_strided_slice %305 {offsets = [0, 32], sizes = [32, 32], strides = [1, 1]} : vector<32x64xf32> to vector<32x32xf32>
    %cst_141 = arith.constant dense<0.000000e+00> : vector<64x32xf32>
    %313 = tpu.matmul %304, %312, %cst_141 {dimension_numbers = #tpu.dot_dimension_numbers<[1], [0], [0], [1], [0, 0, 1, 1], [], []>} : vector<64x32xf32>, vector<32x32xf32>, vector<64x32xf32> -> vector<64x32xf32>
    %314 = vector.extract_strided_slice %306 {offsets = [0, 32], sizes = [1, 32], strides = [1, 1]} : vector<1x64xf32> to vector<1x32xf32>
    %315 = vector.broadcast %314 : vector<1x32xf32> to vector<64x32xf32>
    %316 = arith.addf %313, %315 : vector<64x32xf32>
    %c0_142 = arith.constant 0 : index
    %c0_143 = arith.constant 0 : index
    %317 = vector.load %arg26[%c0_142, %c0_143] : memref<32x32xf32, #tpu.memory_space<vmem>>, vector<32x32xf32>
    %cst_144 = arith.constant dense<0.000000e+00> : vector<64x32xf32>
    %318 = tpu.matmul %181, %317, %cst_144 {dimension_numbers = #tpu.dot_dimension_numbers<[1], [0], [0], [1], [0, 0, 1, 1], [], []>} : vector<64x32xf32>, vector<32x32xf32>, vector<64x32xf32> -> vector<64x32xf32>
    %c0_145 = arith.constant 0 : index
    %c0_146 = arith.constant 0 : index
    %319 = vector.load %arg23[%c0_145, %c0_146] : memref<1x32xf32, #tpu.memory_space<vmem>>, vector<1x32xf32>
    %320 = vector.broadcast %319 : vector<1x32xf32> to vector<64x32xf32>
    %321 = arith.addf %318, %320 : vector<64x32xf32>
    %c0_147 = arith.constant 0 : index
    %c0_148 = arith.constant 0 : index
    %322 = vector.load %arg24[%c0_147, %c0_148] : memref<32x32xf32, #tpu.memory_space<vmem>>, vector<32x32xf32>
    %c0_149 = arith.constant 0 : index
    %c0_150 = arith.constant 0 : index
    %323 = vector.load %arg21[%c0_149, %c0_150] : memref<1x32xf32, #tpu.memory_space<vmem>>, vector<1x32xf32>
    %324 = vector.extract_strided_slice %311 {offsets = [0, 0], sizes = [8, 8], strides = [1, 1]} : vector<8x32xf32> to vector<8x8xf32>
    %325 = vector.extract_strided_slice %316 {offsets = [0, 0], sizes = [64, 8], strides = [1, 1]} : vector<64x32xf32> to vector<64x8xf32>
    %cst_151 = arith.constant dense<0.000000e+00> : vector<8x64xf32>
    %326 = tpu.matmul %324, %325, %cst_151 {dimension_numbers = #tpu.dot_dimension_numbers<[1], [1], [0], [0], [0, 0, 1, 0], [], []>} : vector<8x8xf32>, vector<64x8xf32>, vector<8x64xf32> -> vector<8x64xf32>
    %cst_152 = arith.constant 0.353553385 : f32
    %327 = vector.broadcast %cst_152 : f32 to vector<8x64xf32>
    %328 = arith.mulf %326, %327 : vector<8x64xf32>
    %329 = vector.broadcast %7 : vector<1x64xf32> to vector<8x64xf32>
    %330 = arith.addf %328, %329 : vector<8x64xf32>
    %cst_153 = arith.constant dense<0xFF800000> : vector<8xf32>
    %331 = vector.multi_reduction <maximumf>, %330, %cst_153 [1] : vector<8x64xf32> to vector<8xf32>
    %332 = vector.shape_cast %331 : vector<8xf32> to vector<8x1xf32>
    %333 = vector.broadcast %332 : vector<8x1xf32> to vector<8x64xf32>
    %334 = arith.subf %330, %333 : vector<8x64xf32>
    %335 = math.exp %334 : vector<8x64xf32>
    %cst_154 = arith.constant dense<0.000000e+00> : vector<8xf32>
    %336 = vector.multi_reduction <add>, %335, %cst_154 [1] : vector<8x64xf32> to vector<8xf32>
    %337 = vector.shape_cast %336 : vector<8xf32> to vector<8x1xf32>
    %338 = tpu.reciprocal %337 {approx = true} : vector<8x1xf32> -> vector<8x1xf32>
    %339 = vector.broadcast %338 : vector<8x1xf32> to vector<8x64xf32>
    %340 = arith.mulf %335, %339 : vector<8x64xf32>
    %341 = vector.extract_strided_slice %321 {offsets = [0, 0], sizes = [64, 8], strides = [1, 1]} : vector<64x32xf32> to vector<64x8xf32>
    %cst_155 = arith.constant dense<0.000000e+00> : vector<8x8xf32>
    %342 = tpu.matmul %340, %341, %cst_155 {dimension_numbers = #tpu.dot_dimension_numbers<[1], [0], [0], [1], [0, 0, 1, 1], [], []>} : vector<8x64xf32>, vector<64x8xf32>, vector<8x8xf32> -> vector<8x8xf32>
    %343 = vector.extract_strided_slice %322 {offsets = [0, 0], sizes = [8, 32], strides = [1, 1]} : vector<32x32xf32> to vector<8x32xf32>
    %cst_156 = arith.constant dense<0.000000e+00> : vector<8x32xf32>
    %344 = tpu.matmul %342, %343, %cst_156 {dimension_numbers = #tpu.dot_dimension_numbers<[1], [0], [0], [1], [0, 0, 1, 1], [], []>} : vector<8x8xf32>, vector<8x32xf32>, vector<8x32xf32> -> vector<8x32xf32>
    %345 = vector.broadcast %323 : vector<1x32xf32> to vector<8x32xf32>
    %346 = arith.addf %345, %344 : vector<8x32xf32>
    %347 = vector.extract_strided_slice %311 {offsets = [0, 8], sizes = [8, 8], strides = [1, 1]} : vector<8x32xf32> to vector<8x8xf32>
    %348 = vector.extract_strided_slice %316 {offsets = [0, 8], sizes = [64, 8], strides = [1, 1]} : vector<64x32xf32> to vector<64x8xf32>
    %cst_157 = arith.constant dense<0.000000e+00> : vector<8x64xf32>
    %349 = tpu.matmul %347, %348, %cst_157 {dimension_numbers = #tpu.dot_dimension_numbers<[1], [1], [0], [0], [0, 0, 1, 0], [], []>} : vector<8x8xf32>, vector<64x8xf32>, vector<8x64xf32> -> vector<8x64xf32>
    %cst_158 = arith.constant 0.353553385 : f32
    %350 = vector.broadcast %cst_158 : f32 to vector<8x64xf32>
    %351 = arith.mulf %349, %350 : vector<8x64xf32>
    %352 = vector.broadcast %7 : vector<1x64xf32> to vector<8x64xf32>
    %353 = arith.addf %351, %352 : vector<8x64xf32>
    %cst_159 = arith.constant dense<0xFF800000> : vector<8xf32>
    %354 = vector.multi_reduction <maximumf>, %353, %cst_159 [1] : vector<8x64xf32> to vector<8xf32>
    %355 = vector.shape_cast %354 : vector<8xf32> to vector<8x1xf32>
    %356 = vector.broadcast %355 : vector<8x1xf32> to vector<8x64xf32>
    %357 = arith.subf %353, %356 : vector<8x64xf32>
    %358 = math.exp %357 : vector<8x64xf32>
    %cst_160 = arith.constant dense<0.000000e+00> : vector<8xf32>
    %359 = vector.multi_reduction <add>, %358, %cst_160 [1] : vector<8x64xf32> to vector<8xf32>
    %360 = vector.shape_cast %359 : vector<8xf32> to vector<8x1xf32>
    %361 = tpu.reciprocal %360 {approx = true} : vector<8x1xf32> -> vector<8x1xf32>
    %362 = vector.broadcast %361 : vector<8x1xf32> to vector<8x64xf32>
    %363 = arith.mulf %358, %362 : vector<8x64xf32>
    %364 = vector.extract_strided_slice %321 {offsets = [0, 8], sizes = [64, 8], strides = [1, 1]} : vector<64x32xf32> to vector<64x8xf32>
    %cst_161 = arith.constant dense<0.000000e+00> : vector<8x8xf32>
    %365 = tpu.matmul %363, %364, %cst_161 {dimension_numbers = #tpu.dot_dimension_numbers<[1], [0], [0], [1], [0, 0, 1, 1], [], []>} : vector<8x64xf32>, vector<64x8xf32>, vector<8x8xf32> -> vector<8x8xf32>
    %366 = vector.extract_strided_slice %322 {offsets = [8, 0], sizes = [8, 32], strides = [1, 1]} : vector<32x32xf32> to vector<8x32xf32>
    %cst_162 = arith.constant dense<0.000000e+00> : vector<8x32xf32>
    %367 = tpu.matmul %365, %366, %cst_162 {dimension_numbers = #tpu.dot_dimension_numbers<[1], [0], [0], [1], [0, 0, 1, 1], [], []>} : vector<8x8xf32>, vector<8x32xf32>, vector<8x32xf32> -> vector<8x32xf32>
    %368 = arith.addf %346, %367 : vector<8x32xf32>
    %369 = vector.extract_strided_slice %311 {offsets = [0, 16], sizes = [8, 8], strides = [1, 1]} : vector<8x32xf32> to vector<8x8xf32>
    %370 = vector.extract_strided_slice %316 {offsets = [0, 16], sizes = [64, 8], strides = [1, 1]} : vector<64x32xf32> to vector<64x8xf32>
    %cst_163 = arith.constant dense<0.000000e+00> : vector<8x64xf32>
    %371 = tpu.matmul %369, %370, %cst_163 {dimension_numbers = #tpu.dot_dimension_numbers<[1], [1], [0], [0], [0, 0, 1, 0], [], []>} : vector<8x8xf32>, vector<64x8xf32>, vector<8x64xf32> -> vector<8x64xf32>
    %cst_164 = arith.constant 0.353553385 : f32
    %372 = vector.broadcast %cst_164 : f32 to vector<8x64xf32>
    %373 = arith.mulf %371, %372 : vector<8x64xf32>
    %374 = vector.broadcast %7 : vector<1x64xf32> to vector<8x64xf32>
    %375 = arith.addf %373, %374 : vector<8x64xf32>
    %cst_165 = arith.constant dense<0xFF800000> : vector<8xf32>
    %376 = vector.multi_reduction <maximumf>, %375, %cst_165 [1] : vector<8x64xf32> to vector<8xf32>
    %377 = vector.shape_cast %376 : vector<8xf32> to vector<8x1xf32>
    %378 = vector.broadcast %377 : vector<8x1xf32> to vector<8x64xf32>
    %379 = arith.subf %375, %378 : vector<8x64xf32>
    %380 = math.exp %379 : vector<8x64xf32>
    %cst_166 = arith.constant dense<0.000000e+00> : vector<8xf32>
    %381 = vector.multi_reduction <add>, %380, %cst_166 [1] : vector<8x64xf32> to vector<8xf32>
    %382 = vector.shape_cast %381 : vector<8xf32> to vector<8x1xf32>
    %383 = tpu.reciprocal %382 {approx = true} : vector<8x1xf32> -> vector<8x1xf32>
    %384 = vector.broadcast %383 : vector<8x1xf32> to vector<8x64xf32>
    %385 = arith.mulf %380, %384 : vector<8x64xf32>
    %386 = vector.extract_strided_slice %321 {offsets = [0, 16], sizes = [64, 8], strides = [1, 1]} : vector<64x32xf32> to vector<64x8xf32>
    %cst_167 = arith.constant dense<0.000000e+00> : vector<8x8xf32>
    %387 = tpu.matmul %385, %386, %cst_167 {dimension_numbers = #tpu.dot_dimension_numbers<[1], [0], [0], [1], [0, 0, 1, 1], [], []>} : vector<8x64xf32>, vector<64x8xf32>, vector<8x8xf32> -> vector<8x8xf32>
    %388 = vector.extract_strided_slice %322 {offsets = [16, 0], sizes = [8, 32], strides = [1, 1]} : vector<32x32xf32> to vector<8x32xf32>
    %cst_168 = arith.constant dense<0.000000e+00> : vector<8x32xf32>
    %389 = tpu.matmul %387, %388, %cst_168 {dimension_numbers = #tpu.dot_dimension_numbers<[1], [0], [0], [1], [0, 0, 1, 1], [], []>} : vector<8x8xf32>, vector<8x32xf32>, vector<8x32xf32> -> vector<8x32xf32>
    %390 = arith.addf %368, %389 : vector<8x32xf32>
    %391 = vector.extract_strided_slice %311 {offsets = [0, 24], sizes = [8, 8], strides = [1, 1]} : vector<8x32xf32> to vector<8x8xf32>
    %392 = vector.extract_strided_slice %316 {offsets = [0, 24], sizes = [64, 8], strides = [1, 1]} : vector<64x32xf32> to vector<64x8xf32>
    %cst_169 = arith.constant dense<0.000000e+00> : vector<8x64xf32>
    %393 = tpu.matmul %391, %392, %cst_169 {dimension_numbers = #tpu.dot_dimension_numbers<[1], [1], [0], [0], [0, 0, 1, 0], [], []>} : vector<8x8xf32>, vector<64x8xf32>, vector<8x64xf32> -> vector<8x64xf32>
    %cst_170 = arith.constant 0.353553385 : f32
    %394 = vector.broadcast %cst_170 : f32 to vector<8x64xf32>
    %395 = arith.mulf %393, %394 : vector<8x64xf32>
    %396 = vector.broadcast %7 : vector<1x64xf32> to vector<8x64xf32>
    %397 = arith.addf %395, %396 : vector<8x64xf32>
    %cst_171 = arith.constant dense<0xFF800000> : vector<8xf32>
    %398 = vector.multi_reduction <maximumf>, %397, %cst_171 [1] : vector<8x64xf32> to vector<8xf32>
    %399 = vector.shape_cast %398 : vector<8xf32> to vector<8x1xf32>
    %400 = vector.broadcast %399 : vector<8x1xf32> to vector<8x64xf32>
    %401 = arith.subf %397, %400 : vector<8x64xf32>
    %402 = math.exp %401 : vector<8x64xf32>
    %cst_172 = arith.constant dense<0.000000e+00> : vector<8xf32>
    %403 = vector.multi_reduction <add>, %402, %cst_172 [1] : vector<8x64xf32> to vector<8xf32>
    %404 = vector.shape_cast %403 : vector<8xf32> to vector<8x1xf32>
    %405 = tpu.reciprocal %404 {approx = true} : vector<8x1xf32> -> vector<8x1xf32>
    %406 = vector.broadcast %405 : vector<8x1xf32> to vector<8x64xf32>
    %407 = arith.mulf %402, %406 : vector<8x64xf32>
    %408 = vector.extract_strided_slice %321 {offsets = [0, 24], sizes = [64, 8], strides = [1, 1]} : vector<64x32xf32> to vector<64x8xf32>
    %cst_173 = arith.constant dense<0.000000e+00> : vector<8x8xf32>
    %409 = tpu.matmul %407, %408, %cst_173 {dimension_numbers = #tpu.dot_dimension_numbers<[1], [0], [0], [1], [0, 0, 1, 1], [], []>} : vector<8x64xf32>, vector<64x8xf32>, vector<8x8xf32> -> vector<8x8xf32>
    %410 = vector.extract_strided_slice %322 {offsets = [24, 0], sizes = [8, 32], strides = [1, 1]} : vector<32x32xf32> to vector<8x32xf32>
    %cst_174 = arith.constant dense<0.000000e+00> : vector<8x32xf32>
    %411 = tpu.matmul %409, %410, %cst_174 {dimension_numbers = #tpu.dot_dimension_numbers<[1], [0], [0], [1], [0, 0, 1, 1], [], []>} : vector<8x8xf32>, vector<8x32xf32>, vector<8x32xf32> -> vector<8x32xf32>
    %412 = arith.addf %390, %411 : vector<8x32xf32>
    %413 = arith.addf %302, %412 : vector<8x32xf32>
    %c0_175 = arith.constant 0 : index
    %c0_176 = arith.constant 0 : index
    %414 = vector.load %arg30[%c0_175, %c0_176] : memref<1x32xf32, #tpu.memory_space<vmem>>, vector<1x32xf32>
    %c0_177 = arith.constant 0 : index
    %c0_178 = arith.constant 0 : index
    %415 = vector.load %arg29[%c0_177, %c0_178] : memref<1x32xf32, #tpu.memory_space<vmem>>, vector<1x32xf32>
    %cst_179 = arith.constant dense<0.000000e+00> : vector<8xf32>
    %416 = vector.multi_reduction <add>, %413, %cst_179 [1] : vector<8x32xf32> to vector<8xf32>
    %417 = vector.shape_cast %416 : vector<8xf32> to vector<8x1xf32>
    %cst_180 = arith.constant 3.200000e+01 : f32
    %418 = vector.broadcast %cst_180 : f32 to vector<8x1xf32>
    %419 = arith.divf %417, %418 : vector<8x1xf32>
    %420 = vector.broadcast %419 : vector<8x1xf32> to vector<8x32xf32>
    %421 = arith.subf %413, %420 : vector<8x32xf32>
    %422 = arith.mulf %421, %421 : vector<8x32xf32>
    %cst_181 = arith.constant dense<0.000000e+00> : vector<8xf32>
    %423 = vector.multi_reduction <add>, %422, %cst_181 [1] : vector<8x32xf32> to vector<8xf32>
    %424 = vector.shape_cast %423 : vector<8xf32> to vector<8x1xf32>
    %cst_182 = arith.constant 3.200000e+01 : f32
    %425 = vector.broadcast %cst_182 : f32 to vector<8x1xf32>
    %426 = arith.divf %424, %425 : vector<8x1xf32>
    %cst_183 = arith.constant 9.99999974E-6 : f32
    %427 = vector.broadcast %cst_183 : f32 to vector<8x1xf32>
    %428 = arith.addf %426, %427 : vector<8x1xf32>
    %429 = math.rsqrt %428 : vector<8x1xf32>
    %430 = vector.broadcast %429 : vector<8x1xf32> to vector<8x32xf32>
    %431 = arith.mulf %421, %430 : vector<8x32xf32>
    %432 = vector.broadcast %414 : vector<1x32xf32> to vector<8x32xf32>
    %433 = arith.mulf %431, %432 : vector<8x32xf32>
    %434 = vector.broadcast %415 : vector<1x32xf32> to vector<8x32xf32>
    %435 = arith.addf %433, %434 : vector<8x32xf32>
    %c0_184 = arith.constant 0 : index
    %c0_185 = arith.constant 0 : index
    %436 = vector.load %arg39[%c0_184, %c0_185] : memref<32x64xf32, #tpu.memory_space<vmem>>, vector<32x64xf32>
    %cst_186 = arith.constant dense<0.000000e+00> : vector<8x64xf32>
    %437 = tpu.matmul %435, %436, %cst_186 {dimension_numbers = #tpu.dot_dimension_numbers<[1], [0], [0], [1], [0, 0, 1, 1], [], []>} : vector<8x32xf32>, vector<32x64xf32>, vector<8x64xf32> -> vector<8x64xf32>
    %c0_187 = arith.constant 0 : index
    %c0_188 = arith.constant 0 : index
    %438 = vector.load %arg19[%c0_187, %c0_188] : memref<1x64xf32, #tpu.memory_space<vmem>>, vector<1x64xf32>
    %439 = vector.broadcast %438 : vector<1x64xf32> to vector<8x64xf32>
    %440 = arith.addf %437, %439 : vector<8x64xf32>
    %cst_189 = arith.constant 0.000000e+00 : f32
    %441 = vector.broadcast %cst_189 : f32 to vector<8x64xf32>
    %442 = arith.maximumf %440, %441 : vector<8x64xf32>
    %c0_190 = arith.constant 0 : index
    %c0_191 = arith.constant 0 : index
    %443 = vector.load %arg40[%c0_190, %c0_191] : memref<64x32xf32, #tpu.memory_space<vmem>>, vector<64x32xf32>
    %cst_192 = arith.constant dense<0.000000e+00> : vector<8x32xf32>
    %444 = tpu.matmul %442, %443, %cst_192 {dimension_numbers = #tpu.dot_dimension_numbers<[1], [0], [0], [1], [0, 0, 1, 1], [], []>} : vector<8x64xf32>, vector<64x32xf32>, vector<8x32xf32> -> vector<8x32xf32>
    %c0_193 = arith.constant 0 : index
    %c0_194 = arith.constant 0 : index
    %445 = vector.load %arg20[%c0_193, %c0_194] : memref<1x32xf32, #tpu.memory_space<vmem>>, vector<1x32xf32>
    %446 = vector.broadcast %445 : vector<1x32xf32> to vector<8x32xf32>
    %447 = arith.addf %444, %446 : vector<8x32xf32>
    %448 = arith.addf %435, %447 : vector<8x32xf32>
    %c0_195 = arith.constant 0 : index
    %c0_196 = arith.constant 0 : index
    %449 = vector.load %arg32[%c0_195, %c0_196] : memref<1x32xf32, #tpu.memory_space<vmem>>, vector<1x32xf32>
    %c0_197 = arith.constant 0 : index
    %c0_198 = arith.constant 0 : index
    %450 = vector.load %arg31[%c0_197, %c0_198] : memref<1x32xf32, #tpu.memory_space<vmem>>, vector<1x32xf32>
    %cst_199 = arith.constant dense<0.000000e+00> : vector<8xf32>
    %451 = vector.multi_reduction <add>, %448, %cst_199 [1] : vector<8x32xf32> to vector<8xf32>
    %452 = vector.shape_cast %451 : vector<8xf32> to vector<8x1xf32>
    %cst_200 = arith.constant 3.200000e+01 : f32
    %453 = vector.broadcast %cst_200 : f32 to vector<8x1xf32>
    %454 = arith.divf %452, %453 : vector<8x1xf32>
    %455 = vector.broadcast %454 : vector<8x1xf32> to vector<8x32xf32>
    %456 = arith.subf %448, %455 : vector<8x32xf32>
    %457 = arith.mulf %456, %456 : vector<8x32xf32>
    %cst_201 = arith.constant dense<0.000000e+00> : vector<8xf32>
    %458 = vector.multi_reduction <add>, %457, %cst_201 [1] : vector<8x32xf32> to vector<8xf32>
    %459 = vector.shape_cast %458 : vector<8xf32> to vector<8x1xf32>
    %cst_202 = arith.constant 3.200000e+01 : f32
    %460 = vector.broadcast %cst_202 : f32 to vector<8x1xf32>
    %461 = arith.divf %459, %460 : vector<8x1xf32>
    %cst_203 = arith.constant 9.99999974E-6 : f32
    %462 = vector.broadcast %cst_203 : f32 to vector<8x1xf32>
    %463 = arith.addf %461, %462 : vector<8x1xf32>
    %464 = math.rsqrt %463 : vector<8x1xf32>
    %465 = vector.broadcast %464 : vector<8x1xf32> to vector<8x32xf32>
    %466 = arith.mulf %456, %465 : vector<8x32xf32>
    %467 = vector.broadcast %449 : vector<1x32xf32> to vector<8x32xf32>
    %468 = arith.mulf %466, %467 : vector<8x32xf32>
    %469 = vector.broadcast %450 : vector<1x32xf32> to vector<8x32xf32>
    %470 = arith.addf %468, %469 : vector<8x32xf32>
    %471 = arith.addf %470, %182 : vector<8x32xf32>
    %c0_204 = arith.constant 0 : index
    %c0_205 = arith.constant 0 : index
    %472 = vector.load %arg59[%c0_204, %c0_205] : memref<32x64xf32, #tpu.memory_space<vmem>>, vector<32x64xf32>
    %cst_206 = arith.constant dense<0.000000e+00> : vector<8x64xf32>
    %473 = tpu.matmul %471, %472, %cst_206 {dimension_numbers = #tpu.dot_dimension_numbers<[1], [0], [0], [1], [0, 0, 1, 1], [], []>} : vector<8x32xf32>, vector<32x64xf32>, vector<8x64xf32> -> vector<8x64xf32>
    %c0_207 = arith.constant 0 : index
    %c0_208 = arith.constant 0 : index
    %474 = vector.load %arg56[%c0_207, %c0_208] : memref<1x64xf32, #tpu.memory_space<vmem>>, vector<1x64xf32>
    %475 = vector.broadcast %474 : vector<1x64xf32> to vector<8x64xf32>
    %476 = arith.addf %473, %475 : vector<8x64xf32>
    %c0_209 = arith.constant 0 : index
    %c0_210 = arith.constant 0 : index
    %477 = vector.load %arg60[%c0_209, %c0_210] : memref<32x32xf32, #tpu.memory_space<vmem>>, vector<32x32xf32>
    %cst_211 = arith.constant dense<0.000000e+00> : vector<8x32xf32>
    %478 = tpu.matmul %470, %477, %cst_211 {dimension_numbers = #tpu.dot_dimension_numbers<[1], [0], [0], [1], [0, 0, 1, 1], [], []>} : vector<8x32xf32>, vector<32x32xf32>, vector<8x32xf32> -> vector<8x32xf32>
    %c0_212 = arith.constant 0 : index
    %c0_213 = arith.constant 0 : index
    %479 = vector.load %arg57[%c0_212, %c0_213] : memref<1x32xf32, #tpu.memory_space<vmem>>, vector<1x32xf32>
    %480 = vector.broadcast %479 : vector<1x32xf32> to vector<8x32xf32>
    %481 = arith.addf %478, %480 : vector<8x32xf32>
    %482 = vector.extract_strided_slice %476 {offsets = [0, 0], sizes = [8, 32], strides = [1, 1]} : vector<8x64xf32> to vector<8x32xf32>
    %483 = vector.extract_strided_slice %476 {offsets = [0, 32], sizes = [8, 32], strides = [1, 1]} : vector<8x64xf32> to vector<8x32xf32>
    %c0_214 = arith.constant 0 : index
    %c0_215 = arith.constant 0 : index
    %484 = vector.load %arg58[%c0_214, %c0_215] : memref<32x32xf32, #tpu.memory_space<vmem>>, vector<32x32xf32>
    %c0_216 = arith.constant 0 : index
    %c0_217 = arith.constant 0 : index
    %485 = vector.load %arg55[%c0_216, %c0_217] : memref<1x32xf32, #tpu.memory_space<vmem>>, vector<1x32xf32>
    %486 = vector.extract_strided_slice %482 {offsets = [0, 0], sizes = [8, 8], strides = [1, 1]} : vector<8x32xf32> to vector<8x8xf32>
    %487 = vector.extract_strided_slice %483 {offsets = [0, 0], sizes = [8, 8], strides = [1, 1]} : vector<8x32xf32> to vector<8x8xf32>
    %cst_218 = arith.constant dense<0.000000e+00> : vector<8x8xf32>
    %488 = tpu.matmul %486, %487, %cst_218 {dimension_numbers = #tpu.dot_dimension_numbers<[1], [1], [0], [0], [0, 0, 1, 0], [], []>} : vector<8x8xf32>, vector<8x8xf32>, vector<8x8xf32> -> vector<8x8xf32>
    %cst_219 = arith.constant 0.353553385 : f32
    %489 = vector.broadcast %cst_219 : f32 to vector<8x8xf32>
    %490 = arith.mulf %488, %489 : vector<8x8xf32>
    %cst_220 = arith.constant dense<0xFF800000> : vector<8xf32>
    %491 = vector.multi_reduction <maximumf>, %490, %cst_220 [1] : vector<8x8xf32> to vector<8xf32>
    %492 = vector.shape_cast %491 : vector<8xf32> to vector<8x1xf32>
    %493 = vector.broadcast %492 : vector<8x1xf32> to vector<8x8xf32>
    %494 = arith.subf %490, %493 : vector<8x8xf32>
    %495 = math.exp %494 : vector<8x8xf32>
    %cst_221 = arith.constant dense<0.000000e+00> : vector<8xf32>
    %496 = vector.multi_reduction <add>, %495, %cst_221 [1] : vector<8x8xf32> to vector<8xf32>
    %497 = vector.shape_cast %496 : vector<8xf32> to vector<8x1xf32>
    %498 = tpu.reciprocal %497 {approx = true} : vector<8x1xf32> -> vector<8x1xf32>
    %499 = vector.broadcast %498 : vector<8x1xf32> to vector<8x8xf32>
    %500 = arith.mulf %495, %499 : vector<8x8xf32>
    %501 = vector.extract_strided_slice %481 {offsets = [0, 0], sizes = [8, 8], strides = [1, 1]} : vector<8x32xf32> to vector<8x8xf32>
    %cst_222 = arith.constant dense<0.000000e+00> : vector<8x8xf32>
    %502 = tpu.matmul %500, %501, %cst_222 {dimension_numbers = #tpu.dot_dimension_numbers<[1], [0], [0], [1], [0, 0, 1, 1], [], []>} : vector<8x8xf32>, vector<8x8xf32>, vector<8x8xf32> -> vector<8x8xf32>
    %503 = vector.extract_strided_slice %484 {offsets = [0, 0], sizes = [8, 32], strides = [1, 1]} : vector<32x32xf32> to vector<8x32xf32>
    %cst_223 = arith.constant dense<0.000000e+00> : vector<8x32xf32>
    %504 = tpu.matmul %502, %503, %cst_223 {dimension_numbers = #tpu.dot_dimension_numbers<[1], [0], [0], [1], [0, 0, 1, 1], [], []>} : vector<8x8xf32>, vector<8x32xf32>, vector<8x32xf32> -> vector<8x32xf32>
    %505 = vector.broadcast %485 : vector<1x32xf32> to vector<8x32xf32>
    %506 = arith.addf %505, %504 : vector<8x32xf32>
    %507 = vector.extract_strided_slice %482 {offsets = [0, 8], sizes = [8, 8], strides = [1, 1]} : vector<8x32xf32> to vector<8x8xf32>
    %508 = vector.extract_strided_slice %483 {offsets = [0, 8], sizes = [8, 8], strides = [1, 1]} : vector<8x32xf32> to vector<8x8xf32>
    %cst_224 = arith.constant dense<0.000000e+00> : vector<8x8xf32>
    %509 = tpu.matmul %507, %508, %cst_224 {dimension_numbers = #tpu.dot_dimension_numbers<[1], [1], [0], [0], [0, 0, 1, 0], [], []>} : vector<8x8xf32>, vector<8x8xf32>, vector<8x8xf32> -> vector<8x8xf32>
    %cst_225 = arith.constant 0.353553385 : f32
    %510 = vector.broadcast %cst_225 : f32 to vector<8x8xf32>
    %511 = arith.mulf %509, %510 : vector<8x8xf32>
    %cst_226 = arith.constant dense<0xFF800000> : vector<8xf32>
    %512 = vector.multi_reduction <maximumf>, %511, %cst_226 [1] : vector<8x8xf32> to vector<8xf32>
    %513 = vector.shape_cast %512 : vector<8xf32> to vector<8x1xf32>
    %514 = vector.broadcast %513 : vector<8x1xf32> to vector<8x8xf32>
    %515 = arith.subf %511, %514 : vector<8x8xf32>
    %516 = math.exp %515 : vector<8x8xf32>
    %cst_227 = arith.constant dense<0.000000e+00> : vector<8xf32>
    %517 = vector.multi_reduction <add>, %516, %cst_227 [1] : vector<8x8xf32> to vector<8xf32>
    %518 = vector.shape_cast %517 : vector<8xf32> to vector<8x1xf32>
    %519 = tpu.reciprocal %518 {approx = true} : vector<8x1xf32> -> vector<8x1xf32>
    %520 = vector.broadcast %519 : vector<8x1xf32> to vector<8x8xf32>
    %521 = arith.mulf %516, %520 : vector<8x8xf32>
    %522 = vector.extract_strided_slice %481 {offsets = [0, 8], sizes = [8, 8], strides = [1, 1]} : vector<8x32xf32> to vector<8x8xf32>
    %cst_228 = arith.constant dense<0.000000e+00> : vector<8x8xf32>
    %523 = tpu.matmul %521, %522, %cst_228 {dimension_numbers = #tpu.dot_dimension_numbers<[1], [0], [0], [1], [0, 0, 1, 1], [], []>} : vector<8x8xf32>, vector<8x8xf32>, vector<8x8xf32> -> vector<8x8xf32>
    %524 = vector.extract_strided_slice %484 {offsets = [8, 0], sizes = [8, 32], strides = [1, 1]} : vector<32x32xf32> to vector<8x32xf32>
    %cst_229 = arith.constant dense<0.000000e+00> : vector<8x32xf32>
    %525 = tpu.matmul %523, %524, %cst_229 {dimension_numbers = #tpu.dot_dimension_numbers<[1], [0], [0], [1], [0, 0, 1, 1], [], []>} : vector<8x8xf32>, vector<8x32xf32>, vector<8x32xf32> -> vector<8x32xf32>
    %526 = arith.addf %506, %525 : vector<8x32xf32>
    %527 = vector.extract_strided_slice %482 {offsets = [0, 16], sizes = [8, 8], strides = [1, 1]} : vector<8x32xf32> to vector<8x8xf32>
    %528 = vector.extract_strided_slice %483 {offsets = [0, 16], sizes = [8, 8], strides = [1, 1]} : vector<8x32xf32> to vector<8x8xf32>
    %cst_230 = arith.constant dense<0.000000e+00> : vector<8x8xf32>
    %529 = tpu.matmul %527, %528, %cst_230 {dimension_numbers = #tpu.dot_dimension_numbers<[1], [1], [0], [0], [0, 0, 1, 0], [], []>} : vector<8x8xf32>, vector<8x8xf32>, vector<8x8xf32> -> vector<8x8xf32>
    %cst_231 = arith.constant 0.353553385 : f32
    %530 = vector.broadcast %cst_231 : f32 to vector<8x8xf32>
    %531 = arith.mulf %529, %530 : vector<8x8xf32>
    %cst_232 = arith.constant dense<0xFF800000> : vector<8xf32>
    %532 = vector.multi_reduction <maximumf>, %531, %cst_232 [1] : vector<8x8xf32> to vector<8xf32>
    %533 = vector.shape_cast %532 : vector<8xf32> to vector<8x1xf32>
    %534 = vector.broadcast %533 : vector<8x1xf32> to vector<8x8xf32>
    %535 = arith.subf %531, %534 : vector<8x8xf32>
    %536 = math.exp %535 : vector<8x8xf32>
    %cst_233 = arith.constant dense<0.000000e+00> : vector<8xf32>
    %537 = vector.multi_reduction <add>, %536, %cst_233 [1] : vector<8x8xf32> to vector<8xf32>
    %538 = vector.shape_cast %537 : vector<8xf32> to vector<8x1xf32>
    %539 = tpu.reciprocal %538 {approx = true} : vector<8x1xf32> -> vector<8x1xf32>
    %540 = vector.broadcast %539 : vector<8x1xf32> to vector<8x8xf32>
    %541 = arith.mulf %536, %540 : vector<8x8xf32>
    %542 = vector.extract_strided_slice %481 {offsets = [0, 16], sizes = [8, 8], strides = [1, 1]} : vector<8x32xf32> to vector<8x8xf32>
    %cst_234 = arith.constant dense<0.000000e+00> : vector<8x8xf32>
    %543 = tpu.matmul %541, %542, %cst_234 {dimension_numbers = #tpu.dot_dimension_numbers<[1], [0], [0], [1], [0, 0, 1, 1], [], []>} : vector<8x8xf32>, vector<8x8xf32>, vector<8x8xf32> -> vector<8x8xf32>
    %544 = vector.extract_strided_slice %484 {offsets = [16, 0], sizes = [8, 32], strides = [1, 1]} : vector<32x32xf32> to vector<8x32xf32>
    %cst_235 = arith.constant dense<0.000000e+00> : vector<8x32xf32>
    %545 = tpu.matmul %543, %544, %cst_235 {dimension_numbers = #tpu.dot_dimension_numbers<[1], [0], [0], [1], [0, 0, 1, 1], [], []>} : vector<8x8xf32>, vector<8x32xf32>, vector<8x32xf32> -> vector<8x32xf32>
    %546 = arith.addf %526, %545 : vector<8x32xf32>
    %547 = vector.extract_strided_slice %482 {offsets = [0, 24], sizes = [8, 8], strides = [1, 1]} : vector<8x32xf32> to vector<8x8xf32>
    %548 = vector.extract_strided_slice %483 {offsets = [0, 24], sizes = [8, 8], strides = [1, 1]} : vector<8x32xf32> to vector<8x8xf32>
    %cst_236 = arith.constant dense<0.000000e+00> : vector<8x8xf32>
    %549 = tpu.matmul %547, %548, %cst_236 {dimension_numbers = #tpu.dot_dimension_numbers<[1], [1], [0], [0], [0, 0, 1, 0], [], []>} : vector<8x8xf32>, vector<8x8xf32>, vector<8x8xf32> -> vector<8x8xf32>
    %cst_237 = arith.constant 0.353553385 : f32
    %550 = vector.broadcast %cst_237 : f32 to vector<8x8xf32>
    %551 = arith.mulf %549, %550 : vector<8x8xf32>
    %cst_238 = arith.constant dense<0xFF800000> : vector<8xf32>
    %552 = vector.multi_reduction <maximumf>, %551, %cst_238 [1] : vector<8x8xf32> to vector<8xf32>
    %553 = vector.shape_cast %552 : vector<8xf32> to vector<8x1xf32>
    %554 = vector.broadcast %553 : vector<8x1xf32> to vector<8x8xf32>
    %555 = arith.subf %551, %554 : vector<8x8xf32>
    %556 = math.exp %555 : vector<8x8xf32>
    %cst_239 = arith.constant dense<0.000000e+00> : vector<8xf32>
    %557 = vector.multi_reduction <add>, %556, %cst_239 [1] : vector<8x8xf32> to vector<8xf32>
    %558 = vector.shape_cast %557 : vector<8xf32> to vector<8x1xf32>
    %559 = tpu.reciprocal %558 {approx = true} : vector<8x1xf32> -> vector<8x1xf32>
    %560 = vector.broadcast %559 : vector<8x1xf32> to vector<8x8xf32>
    %561 = arith.mulf %556, %560 : vector<8x8xf32>
    %562 = vector.extract_strided_slice %481 {offsets = [0, 24], sizes = [8, 8], strides = [1, 1]} : vector<8x32xf32> to vector<8x8xf32>
    %cst_240 = arith.constant dense<0.000000e+00> : vector<8x8xf32>
    %563 = tpu.matmul %561, %562, %cst_240 {dimension_numbers = #tpu.dot_dimension_numbers<[1], [0], [0], [1], [0, 0, 1, 1], [], []>} : vector<8x8xf32>, vector<8x8xf32>, vector<8x8xf32> -> vector<8x8xf32>
    %564 = vector.extract_strided_slice %484 {offsets = [24, 0], sizes = [8, 32], strides = [1, 1]} : vector<32x32xf32> to vector<8x32xf32>
    %cst_241 = arith.constant dense<0.000000e+00> : vector<8x32xf32>
    %565 = tpu.matmul %563, %564, %cst_241 {dimension_numbers = #tpu.dot_dimension_numbers<[1], [0], [0], [1], [0, 0, 1, 1], [], []>} : vector<8x8xf32>, vector<8x32xf32>, vector<8x32xf32> -> vector<8x32xf32>
    %566 = arith.addf %546, %565 : vector<8x32xf32>
    %567 = arith.addf %470, %566 : vector<8x32xf32>
    %c0_242 = arith.constant 0 : index
    %c0_243 = arith.constant 0 : index
    %568 = vector.load %arg50[%c0_242, %c0_243] : memref<1x32xf32, #tpu.memory_space<vmem>>, vector<1x32xf32>
    %c0_244 = arith.constant 0 : index
    %c0_245 = arith.constant 0 : index
    %569 = vector.load %arg49[%c0_244, %c0_245] : memref<1x32xf32, #tpu.memory_space<vmem>>, vector<1x32xf32>
    %cst_246 = arith.constant dense<0.000000e+00> : vector<8xf32>
    %570 = vector.multi_reduction <add>, %567, %cst_246 [1] : vector<8x32xf32> to vector<8xf32>
    %571 = vector.shape_cast %570 : vector<8xf32> to vector<8x1xf32>
    %cst_247 = arith.constant 3.200000e+01 : f32
    %572 = vector.broadcast %cst_247 : f32 to vector<8x1xf32>
    %573 = arith.divf %571, %572 : vector<8x1xf32>
    %574 = vector.broadcast %573 : vector<8x1xf32> to vector<8x32xf32>
    %575 = arith.subf %567, %574 : vector<8x32xf32>
    %576 = arith.mulf %575, %575 : vector<8x32xf32>
    %cst_248 = arith.constant dense<0.000000e+00> : vector<8xf32>
    %577 = vector.multi_reduction <add>, %576, %cst_248 [1] : vector<8x32xf32> to vector<8xf32>
    %578 = vector.shape_cast %577 : vector<8xf32> to vector<8x1xf32>
    %cst_249 = arith.constant 3.200000e+01 : f32
    %579 = vector.broadcast %cst_249 : f32 to vector<8x1xf32>
    %580 = arith.divf %578, %579 : vector<8x1xf32>
    %cst_250 = arith.constant 9.99999974E-6 : f32
    %581 = vector.broadcast %cst_250 : f32 to vector<8x1xf32>
    %582 = arith.addf %580, %581 : vector<8x1xf32>
    %583 = math.rsqrt %582 : vector<8x1xf32>
    %584 = vector.broadcast %583 : vector<8x1xf32> to vector<8x32xf32>
    %585 = arith.mulf %575, %584 : vector<8x32xf32>
    %586 = vector.broadcast %568 : vector<1x32xf32> to vector<8x32xf32>
    %587 = arith.mulf %585, %586 : vector<8x32xf32>
    %588 = vector.broadcast %569 : vector<1x32xf32> to vector<8x32xf32>
    %589 = arith.addf %587, %588 : vector<8x32xf32>
    %590 = arith.addf %589, %182 : vector<8x32xf32>
    %591 = arith.addf %181, %3 : vector<64x32xf32>
    %c0_251 = arith.constant 0 : index
    %c0_252 = arith.constant 0 : index
    %592 = vector.load %arg47[%c0_251, %c0_252] : memref<32x64xf32, #tpu.memory_space<vmem>>, vector<32x64xf32>
    %c0_253 = arith.constant 0 : index
    %c0_254 = arith.constant 0 : index
    %593 = vector.load %arg44[%c0_253, %c0_254] : memref<1x64xf32, #tpu.memory_space<vmem>>, vector<1x64xf32>
    %594 = vector.extract_strided_slice %592 {offsets = [0, 0], sizes = [32, 32], strides = [1, 1]} : vector<32x64xf32> to vector<32x32xf32>
    %cst_255 = arith.constant dense<0.000000e+00> : vector<8x32xf32>
    %595 = tpu.matmul %590, %594, %cst_255 {dimension_numbers = #tpu.dot_dimension_numbers<[1], [0], [0], [1], [0, 0, 1, 1], [], []>} : vector<8x32xf32>, vector<32x32xf32>, vector<8x32xf32> -> vector<8x32xf32>
    %596 = vector.extract_strided_slice %593 {offsets = [0, 0], sizes = [1, 32], strides = [1, 1]} : vector<1x64xf32> to vector<1x32xf32>
    %597 = vector.broadcast %596 : vector<1x32xf32> to vector<8x32xf32>
    %598 = arith.addf %595, %597 : vector<8x32xf32>
    %599 = vector.extract_strided_slice %592 {offsets = [0, 32], sizes = [32, 32], strides = [1, 1]} : vector<32x64xf32> to vector<32x32xf32>
    %cst_256 = arith.constant dense<0.000000e+00> : vector<64x32xf32>
    %600 = tpu.matmul %591, %599, %cst_256 {dimension_numbers = #tpu.dot_dimension_numbers<[1], [0], [0], [1], [0, 0, 1, 1], [], []>} : vector<64x32xf32>, vector<32x32xf32>, vector<64x32xf32> -> vector<64x32xf32>
    %601 = vector.extract_strided_slice %593 {offsets = [0, 32], sizes = [1, 32], strides = [1, 1]} : vector<1x64xf32> to vector<1x32xf32>
    %602 = vector.broadcast %601 : vector<1x32xf32> to vector<64x32xf32>
    %603 = arith.addf %600, %602 : vector<64x32xf32>
    %c0_257 = arith.constant 0 : index
    %c0_258 = arith.constant 0 : index
    %604 = vector.load %arg48[%c0_257, %c0_258] : memref<32x32xf32, #tpu.memory_space<vmem>>, vector<32x32xf32>
    %cst_259 = arith.constant dense<0.000000e+00> : vector<64x32xf32>
    %605 = tpu.matmul %181, %604, %cst_259 {dimension_numbers = #tpu.dot_dimension_numbers<[1], [0], [0], [1], [0, 0, 1, 1], [], []>} : vector<64x32xf32>, vector<32x32xf32>, vector<64x32xf32> -> vector<64x32xf32>
    %c0_260 = arith.constant 0 : index
    %c0_261 = arith.constant 0 : index
    %606 = vector.load %arg45[%c0_260, %c0_261] : memref<1x32xf32, #tpu.memory_space<vmem>>, vector<1x32xf32>
    %607 = vector.broadcast %606 : vector<1x32xf32> to vector<64x32xf32>
    %608 = arith.addf %605, %607 : vector<64x32xf32>
    %c0_262 = arith.constant 0 : index
    %c0_263 = arith.constant 0 : index
    %609 = vector.load %arg46[%c0_262, %c0_263] : memref<32x32xf32, #tpu.memory_space<vmem>>, vector<32x32xf32>
    %c0_264 = arith.constant 0 : index
    %c0_265 = arith.constant 0 : index
    %610 = vector.load %arg43[%c0_264, %c0_265] : memref<1x32xf32, #tpu.memory_space<vmem>>, vector<1x32xf32>
    %611 = vector.extract_strided_slice %598 {offsets = [0, 0], sizes = [8, 8], strides = [1, 1]} : vector<8x32xf32> to vector<8x8xf32>
    %612 = vector.extract_strided_slice %603 {offsets = [0, 0], sizes = [64, 8], strides = [1, 1]} : vector<64x32xf32> to vector<64x8xf32>
    %cst_266 = arith.constant dense<0.000000e+00> : vector<8x64xf32>
    %613 = tpu.matmul %611, %612, %cst_266 {dimension_numbers = #tpu.dot_dimension_numbers<[1], [1], [0], [0], [0, 0, 1, 0], [], []>} : vector<8x8xf32>, vector<64x8xf32>, vector<8x64xf32> -> vector<8x64xf32>
    %cst_267 = arith.constant 0.353553385 : f32
    %614 = vector.broadcast %cst_267 : f32 to vector<8x64xf32>
    %615 = arith.mulf %613, %614 : vector<8x64xf32>
    %616 = vector.broadcast %7 : vector<1x64xf32> to vector<8x64xf32>
    %617 = arith.addf %615, %616 : vector<8x64xf32>
    %cst_268 = arith.constant dense<0xFF800000> : vector<8xf32>
    %618 = vector.multi_reduction <maximumf>, %617, %cst_268 [1] : vector<8x64xf32> to vector<8xf32>
    %619 = vector.shape_cast %618 : vector<8xf32> to vector<8x1xf32>
    %620 = vector.broadcast %619 : vector<8x1xf32> to vector<8x64xf32>
    %621 = arith.subf %617, %620 : vector<8x64xf32>
    %622 = math.exp %621 : vector<8x64xf32>
    %cst_269 = arith.constant dense<0.000000e+00> : vector<8xf32>
    %623 = vector.multi_reduction <add>, %622, %cst_269 [1] : vector<8x64xf32> to vector<8xf32>
    %624 = vector.shape_cast %623 : vector<8xf32> to vector<8x1xf32>
    %625 = tpu.reciprocal %624 {approx = true} : vector<8x1xf32> -> vector<8x1xf32>
    %626 = vector.broadcast %625 : vector<8x1xf32> to vector<8x64xf32>
    %627 = arith.mulf %622, %626 : vector<8x64xf32>
    %628 = vector.extract_strided_slice %608 {offsets = [0, 0], sizes = [64, 8], strides = [1, 1]} : vector<64x32xf32> to vector<64x8xf32>
    %cst_270 = arith.constant dense<0.000000e+00> : vector<8x8xf32>
    %629 = tpu.matmul %627, %628, %cst_270 {dimension_numbers = #tpu.dot_dimension_numbers<[1], [0], [0], [1], [0, 0, 1, 1], [], []>} : vector<8x64xf32>, vector<64x8xf32>, vector<8x8xf32> -> vector<8x8xf32>
    %630 = vector.extract_strided_slice %609 {offsets = [0, 0], sizes = [8, 32], strides = [1, 1]} : vector<32x32xf32> to vector<8x32xf32>
    %cst_271 = arith.constant dense<0.000000e+00> : vector<8x32xf32>
    %631 = tpu.matmul %629, %630, %cst_271 {dimension_numbers = #tpu.dot_dimension_numbers<[1], [0], [0], [1], [0, 0, 1, 1], [], []>} : vector<8x8xf32>, vector<8x32xf32>, vector<8x32xf32> -> vector<8x32xf32>
    %632 = vector.broadcast %610 : vector<1x32xf32> to vector<8x32xf32>
    %633 = arith.addf %632, %631 : vector<8x32xf32>
    %634 = vector.extract_strided_slice %598 {offsets = [0, 8], sizes = [8, 8], strides = [1, 1]} : vector<8x32xf32> to vector<8x8xf32>
    %635 = vector.extract_strided_slice %603 {offsets = [0, 8], sizes = [64, 8], strides = [1, 1]} : vector<64x32xf32> to vector<64x8xf32>
    %cst_272 = arith.constant dense<0.000000e+00> : vector<8x64xf32>
    %636 = tpu.matmul %634, %635, %cst_272 {dimension_numbers = #tpu.dot_dimension_numbers<[1], [1], [0], [0], [0, 0, 1, 0], [], []>} : vector<8x8xf32>, vector<64x8xf32>, vector<8x64xf32> -> vector<8x64xf32>
    %cst_273 = arith.constant 0.353553385 : f32
    %637 = vector.broadcast %cst_273 : f32 to vector<8x64xf32>
    %638 = arith.mulf %636, %637 : vector<8x64xf32>
    %639 = vector.broadcast %7 : vector<1x64xf32> to vector<8x64xf32>
    %640 = arith.addf %638, %639 : vector<8x64xf32>
    %cst_274 = arith.constant dense<0xFF800000> : vector<8xf32>
    %641 = vector.multi_reduction <maximumf>, %640, %cst_274 [1] : vector<8x64xf32> to vector<8xf32>
    %642 = vector.shape_cast %641 : vector<8xf32> to vector<8x1xf32>
    %643 = vector.broadcast %642 : vector<8x1xf32> to vector<8x64xf32>
    %644 = arith.subf %640, %643 : vector<8x64xf32>
    %645 = math.exp %644 : vector<8x64xf32>
    %cst_275 = arith.constant dense<0.000000e+00> : vector<8xf32>
    %646 = vector.multi_reduction <add>, %645, %cst_275 [1] : vector<8x64xf32> to vector<8xf32>
    %647 = vector.shape_cast %646 : vector<8xf32> to vector<8x1xf32>
    %648 = tpu.reciprocal %647 {approx = true} : vector<8x1xf32> -> vector<8x1xf32>
    %649 = vector.broadcast %648 : vector<8x1xf32> to vector<8x64xf32>
    %650 = arith.mulf %645, %649 : vector<8x64xf32>
    %651 = vector.extract_strided_slice %608 {offsets = [0, 8], sizes = [64, 8], strides = [1, 1]} : vector<64x32xf32> to vector<64x8xf32>
    %cst_276 = arith.constant dense<0.000000e+00> : vector<8x8xf32>
    %652 = tpu.matmul %650, %651, %cst_276 {dimension_numbers = #tpu.dot_dimension_numbers<[1], [0], [0], [1], [0, 0, 1, 1], [], []>} : vector<8x64xf32>, vector<64x8xf32>, vector<8x8xf32> -> vector<8x8xf32>
    %653 = vector.extract_strided_slice %609 {offsets = [8, 0], sizes = [8, 32], strides = [1, 1]} : vector<32x32xf32> to vector<8x32xf32>
    %cst_277 = arith.constant dense<0.000000e+00> : vector<8x32xf32>
    %654 = tpu.matmul %652, %653, %cst_277 {dimension_numbers = #tpu.dot_dimension_numbers<[1], [0], [0], [1], [0, 0, 1, 1], [], []>} : vector<8x8xf32>, vector<8x32xf32>, vector<8x32xf32> -> vector<8x32xf32>
    %655 = arith.addf %633, %654 : vector<8x32xf32>
    %656 = vector.extract_strided_slice %598 {offsets = [0, 16], sizes = [8, 8], strides = [1, 1]} : vector<8x32xf32> to vector<8x8xf32>
    %657 = vector.extract_strided_slice %603 {offsets = [0, 16], sizes = [64, 8], strides = [1, 1]} : vector<64x32xf32> to vector<64x8xf32>
    %cst_278 = arith.constant dense<0.000000e+00> : vector<8x64xf32>
    %658 = tpu.matmul %656, %657, %cst_278 {dimension_numbers = #tpu.dot_dimension_numbers<[1], [1], [0], [0], [0, 0, 1, 0], [], []>} : vector<8x8xf32>, vector<64x8xf32>, vector<8x64xf32> -> vector<8x64xf32>
    %cst_279 = arith.constant 0.353553385 : f32
    %659 = vector.broadcast %cst_279 : f32 to vector<8x64xf32>
    %660 = arith.mulf %658, %659 : vector<8x64xf32>
    %661 = vector.broadcast %7 : vector<1x64xf32> to vector<8x64xf32>
    %662 = arith.addf %660, %661 : vector<8x64xf32>
    %cst_280 = arith.constant dense<0xFF800000> : vector<8xf32>
    %663 = vector.multi_reduction <maximumf>, %662, %cst_280 [1] : vector<8x64xf32> to vector<8xf32>
    %664 = vector.shape_cast %663 : vector<8xf32> to vector<8x1xf32>
    %665 = vector.broadcast %664 : vector<8x1xf32> to vector<8x64xf32>
    %666 = arith.subf %662, %665 : vector<8x64xf32>
    %667 = math.exp %666 : vector<8x64xf32>
    %cst_281 = arith.constant dense<0.000000e+00> : vector<8xf32>
    %668 = vector.multi_reduction <add>, %667, %cst_281 [1] : vector<8x64xf32> to vector<8xf32>
    %669 = vector.shape_cast %668 : vector<8xf32> to vector<8x1xf32>
    %670 = tpu.reciprocal %669 {approx = true} : vector<8x1xf32> -> vector<8x1xf32>
    %671 = vector.broadcast %670 : vector<8x1xf32> to vector<8x64xf32>
    %672 = arith.mulf %667, %671 : vector<8x64xf32>
    %673 = vector.extract_strided_slice %608 {offsets = [0, 16], sizes = [64, 8], strides = [1, 1]} : vector<64x32xf32> to vector<64x8xf32>
    %cst_282 = arith.constant dense<0.000000e+00> : vector<8x8xf32>
    %674 = tpu.matmul %672, %673, %cst_282 {dimension_numbers = #tpu.dot_dimension_numbers<[1], [0], [0], [1], [0, 0, 1, 1], [], []>} : vector<8x64xf32>, vector<64x8xf32>, vector<8x8xf32> -> vector<8x8xf32>
    %675 = vector.extract_strided_slice %609 {offsets = [16, 0], sizes = [8, 32], strides = [1, 1]} : vector<32x32xf32> to vector<8x32xf32>
    %cst_283 = arith.constant dense<0.000000e+00> : vector<8x32xf32>
    %676 = tpu.matmul %674, %675, %cst_283 {dimension_numbers = #tpu.dot_dimension_numbers<[1], [0], [0], [1], [0, 0, 1, 1], [], []>} : vector<8x8xf32>, vector<8x32xf32>, vector<8x32xf32> -> vector<8x32xf32>
    %677 = arith.addf %655, %676 : vector<8x32xf32>
    %678 = vector.extract_strided_slice %598 {offsets = [0, 24], sizes = [8, 8], strides = [1, 1]} : vector<8x32xf32> to vector<8x8xf32>
    %679 = vector.extract_strided_slice %603 {offsets = [0, 24], sizes = [64, 8], strides = [1, 1]} : vector<64x32xf32> to vector<64x8xf32>
    %cst_284 = arith.constant dense<0.000000e+00> : vector<8x64xf32>
    %680 = tpu.matmul %678, %679, %cst_284 {dimension_numbers = #tpu.dot_dimension_numbers<[1], [1], [0], [0], [0, 0, 1, 0], [], []>} : vector<8x8xf32>, vector<64x8xf32>, vector<8x64xf32> -> vector<8x64xf32>
    %cst_285 = arith.constant 0.353553385 : f32
    %681 = vector.broadcast %cst_285 : f32 to vector<8x64xf32>
    %682 = arith.mulf %680, %681 : vector<8x64xf32>
    %683 = vector.broadcast %7 : vector<1x64xf32> to vector<8x64xf32>
    %684 = arith.addf %682, %683 : vector<8x64xf32>
    %cst_286 = arith.constant dense<0xFF800000> : vector<8xf32>
    %685 = vector.multi_reduction <maximumf>, %684, %cst_286 [1] : vector<8x64xf32> to vector<8xf32>
    %686 = vector.shape_cast %685 : vector<8xf32> to vector<8x1xf32>
    %687 = vector.broadcast %686 : vector<8x1xf32> to vector<8x64xf32>
    %688 = arith.subf %684, %687 : vector<8x64xf32>
    %689 = math.exp %688 : vector<8x64xf32>
    %cst_287 = arith.constant dense<0.000000e+00> : vector<8xf32>
    %690 = vector.multi_reduction <add>, %689, %cst_287 [1] : vector<8x64xf32> to vector<8xf32>
    %691 = vector.shape_cast %690 : vector<8xf32> to vector<8x1xf32>
    %692 = tpu.reciprocal %691 {approx = true} : vector<8x1xf32> -> vector<8x1xf32>
    %693 = vector.broadcast %692 : vector<8x1xf32> to vector<8x64xf32>
    %694 = arith.mulf %689, %693 : vector<8x64xf32>
    %695 = vector.extract_strided_slice %608 {offsets = [0, 24], sizes = [64, 8], strides = [1, 1]} : vector<64x32xf32> to vector<64x8xf32>
    %cst_288 = arith.constant dense<0.000000e+00> : vector<8x8xf32>
    %696 = tpu.matmul %694, %695, %cst_288 {dimension_numbers = #tpu.dot_dimension_numbers<[1], [0], [0], [1], [0, 0, 1, 1], [], []>} : vector<8x64xf32>, vector<64x8xf32>, vector<8x8xf32> -> vector<8x8xf32>
    %697 = vector.extract_strided_slice %609 {offsets = [24, 0], sizes = [8, 32], strides = [1, 1]} : vector<32x32xf32> to vector<8x32xf32>
    %cst_289 = arith.constant dense<0.000000e+00> : vector<8x32xf32>
    %698 = tpu.matmul %696, %697, %cst_289 {dimension_numbers = #tpu.dot_dimension_numbers<[1], [0], [0], [1], [0, 0, 1, 1], [], []>} : vector<8x8xf32>, vector<8x32xf32>, vector<8x32xf32> -> vector<8x32xf32>
    %699 = arith.addf %677, %698 : vector<8x32xf32>
    %700 = arith.addf %589, %699 : vector<8x32xf32>
    %c0_290 = arith.constant 0 : index
    %c0_291 = arith.constant 0 : index
    %701 = vector.load %arg52[%c0_290, %c0_291] : memref<1x32xf32, #tpu.memory_space<vmem>>, vector<1x32xf32>
    %c0_292 = arith.constant 0 : index
    %c0_293 = arith.constant 0 : index
    %702 = vector.load %arg51[%c0_292, %c0_293] : memref<1x32xf32, #tpu.memory_space<vmem>>, vector<1x32xf32>
    %cst_294 = arith.constant dense<0.000000e+00> : vector<8xf32>
    %703 = vector.multi_reduction <add>, %700, %cst_294 [1] : vector<8x32xf32> to vector<8xf32>
    %704 = vector.shape_cast %703 : vector<8xf32> to vector<8x1xf32>
    %cst_295 = arith.constant 3.200000e+01 : f32
    %705 = vector.broadcast %cst_295 : f32 to vector<8x1xf32>
    %706 = arith.divf %704, %705 : vector<8x1xf32>
    %707 = vector.broadcast %706 : vector<8x1xf32> to vector<8x32xf32>
    %708 = arith.subf %700, %707 : vector<8x32xf32>
    %709 = arith.mulf %708, %708 : vector<8x32xf32>
    %cst_296 = arith.constant dense<0.000000e+00> : vector<8xf32>
    %710 = vector.multi_reduction <add>, %709, %cst_296 [1] : vector<8x32xf32> to vector<8xf32>
    %711 = vector.shape_cast %710 : vector<8xf32> to vector<8x1xf32>
    %cst_297 = arith.constant 3.200000e+01 : f32
    %712 = vector.broadcast %cst_297 : f32 to vector<8x1xf32>
    %713 = arith.divf %711, %712 : vector<8x1xf32>
    %cst_298 = arith.constant 9.99999974E-6 : f32
    %714 = vector.broadcast %cst_298 : f32 to vector<8x1xf32>
    %715 = arith.addf %713, %714 : vector<8x1xf32>
    %716 = math.rsqrt %715 : vector<8x1xf32>
    %717 = vector.broadcast %716 : vector<8x1xf32> to vector<8x32xf32>
    %718 = arith.mulf %708, %717 : vector<8x32xf32>
    %719 = vector.broadcast %701 : vector<1x32xf32> to vector<8x32xf32>
    %720 = arith.mulf %718, %719 : vector<8x32xf32>
    %721 = vector.broadcast %702 : vector<1x32xf32> to vector<8x32xf32>
    %722 = arith.addf %720, %721 : vector<8x32xf32>
    %c0_299 = arith.constant 0 : index
    %c0_300 = arith.constant 0 : index
    %723 = vector.load %arg61[%c0_299, %c0_300] : memref<32x64xf32, #tpu.memory_space<vmem>>, vector<32x64xf32>
    %cst_301 = arith.constant dense<0.000000e+00> : vector<8x64xf32>
    %724 = tpu.matmul %722, %723, %cst_301 {dimension_numbers = #tpu.dot_dimension_numbers<[1], [0], [0], [1], [0, 0, 1, 1], [], []>} : vector<8x32xf32>, vector<32x64xf32>, vector<8x64xf32> -> vector<8x64xf32>
    %c0_302 = arith.constant 0 : index
    %c0_303 = arith.constant 0 : index
    %725 = vector.load %arg41[%c0_302, %c0_303] : memref<1x64xf32, #tpu.memory_space<vmem>>, vector<1x64xf32>
    %726 = vector.broadcast %725 : vector<1x64xf32> to vector<8x64xf32>
    %727 = arith.addf %724, %726 : vector<8x64xf32>
    %cst_304 = arith.constant 0.000000e+00 : f32
    %728 = vector.broadcast %cst_304 : f32 to vector<8x64xf32>
    %729 = arith.maximumf %727, %728 : vector<8x64xf32>
    %c0_305 = arith.constant 0 : index
    %c0_306 = arith.constant 0 : index
    %730 = vector.load %arg62[%c0_305, %c0_306] : memref<64x32xf32, #tpu.memory_space<vmem>>, vector<64x32xf32>
    %cst_307 = arith.constant dense<0.000000e+00> : vector<8x32xf32>
    %731 = tpu.matmul %729, %730, %cst_307 {dimension_numbers = #tpu.dot_dimension_numbers<[1], [0], [0], [1], [0, 0, 1, 1], [], []>} : vector<8x64xf32>, vector<64x32xf32>, vector<8x32xf32> -> vector<8x32xf32>
    %c0_308 = arith.constant 0 : index
    %c0_309 = arith.constant 0 : index
    %732 = vector.load %arg42[%c0_308, %c0_309] : memref<1x32xf32, #tpu.memory_space<vmem>>, vector<1x32xf32>
    %733 = vector.broadcast %732 : vector<1x32xf32> to vector<8x32xf32>
    %734 = arith.addf %731, %733 : vector<8x32xf32>
    %735 = arith.addf %722, %734 : vector<8x32xf32>
    %c0_310 = arith.constant 0 : index
    %c0_311 = arith.constant 0 : index
    %736 = vector.load %arg54[%c0_310, %c0_311] : memref<1x32xf32, #tpu.memory_space<vmem>>, vector<1x32xf32>
    %c0_312 = arith.constant 0 : index
    %c0_313 = arith.constant 0 : index
    %737 = vector.load %arg53[%c0_312, %c0_313] : memref<1x32xf32, #tpu.memory_space<vmem>>, vector<1x32xf32>
    %cst_314 = arith.constant dense<0.000000e+00> : vector<8xf32>
    %738 = vector.multi_reduction <add>, %735, %cst_314 [1] : vector<8x32xf32> to vector<8xf32>
    %739 = vector.shape_cast %738 : vector<8xf32> to vector<8x1xf32>
    %cst_315 = arith.constant 3.200000e+01 : f32
    %740 = vector.broadcast %cst_315 : f32 to vector<8x1xf32>
    %741 = arith.divf %739, %740 : vector<8x1xf32>
    %742 = vector.broadcast %741 : vector<8x1xf32> to vector<8x32xf32>
    %743 = arith.subf %735, %742 : vector<8x32xf32>
    %744 = arith.mulf %743, %743 : vector<8x32xf32>
    %cst_316 = arith.constant dense<0.000000e+00> : vector<8xf32>
    %745 = vector.multi_reduction <add>, %744, %cst_316 [1] : vector<8x32xf32> to vector<8xf32>
    %746 = vector.shape_cast %745 : vector<8xf32> to vector<8x1xf32>
    %cst_317 = arith.constant 3.200000e+01 : f32
    %747 = vector.broadcast %cst_317 : f32 to vector<8x1xf32>
    %748 = arith.divf %746, %747 : vector<8x1xf32>
    %cst_318 = arith.constant 9.99999974E-6 : f32
    %749 = vector.broadcast %cst_318 : f32 to vector<8x1xf32>
    %750 = arith.addf %748, %749 : vector<8x1xf32>
    %751 = math.rsqrt %750 : vector<8x1xf32>
    %752 = vector.broadcast %751 : vector<8x1xf32> to vector<8x32xf32>
    %753 = arith.mulf %743, %752 : vector<8x32xf32>
    %754 = vector.broadcast %736 : vector<1x32xf32> to vector<8x32xf32>
    %755 = arith.mulf %753, %754 : vector<8x32xf32>
    %756 = vector.broadcast %737 : vector<1x32xf32> to vector<8x32xf32>
    %757 = arith.addf %755, %756 : vector<8x32xf32>
    %c0_319 = arith.constant 0 : index
    %c0_320 = arith.constant 0 : index
    %758 = vector.load %arg18[%c0_319, %c0_320] : memref<1x32xf32, #tpu.memory_space<vmem>>, vector<1x32xf32>
    %c0_321 = arith.constant 0 : index
    %c0_322 = arith.constant 0 : index
    %759 = vector.load %arg17[%c0_321, %c0_322] : memref<1x32xf32, #tpu.memory_space<vmem>>, vector<1x32xf32>
    %cst_323 = arith.constant dense<0.000000e+00> : vector<8xf32>
    %760 = vector.multi_reduction <add>, %757, %cst_323 [1] : vector<8x32xf32> to vector<8xf32>
    %761 = vector.shape_cast %760 : vector<8xf32> to vector<8x1xf32>
    %cst_324 = arith.constant 3.200000e+01 : f32
    %762 = vector.broadcast %cst_324 : f32 to vector<8x1xf32>
    %763 = arith.divf %761, %762 : vector<8x1xf32>
    %764 = vector.broadcast %763 : vector<8x1xf32> to vector<8x32xf32>
    %765 = arith.subf %757, %764 : vector<8x32xf32>
    %766 = arith.mulf %765, %765 : vector<8x32xf32>
    %cst_325 = arith.constant dense<0.000000e+00> : vector<8xf32>
    %767 = vector.multi_reduction <add>, %766, %cst_325 [1] : vector<8x32xf32> to vector<8xf32>
    %768 = vector.shape_cast %767 : vector<8xf32> to vector<8x1xf32>
    %cst_326 = arith.constant 3.200000e+01 : f32
    %769 = vector.broadcast %cst_326 : f32 to vector<8x1xf32>
    %770 = arith.divf %768, %769 : vector<8x1xf32>
    %cst_327 = arith.constant 9.99999974E-6 : f32
    %771 = vector.broadcast %cst_327 : f32 to vector<8x1xf32>
    %772 = arith.addf %770, %771 : vector<8x1xf32>
    %773 = math.rsqrt %772 : vector<8x1xf32>
    %774 = vector.broadcast %773 : vector<8x1xf32> to vector<8x32xf32>
    %775 = arith.mulf %765, %774 : vector<8x32xf32>
    %776 = vector.broadcast %758 : vector<1x32xf32> to vector<8x32xf32>
    %777 = arith.mulf %775, %776 : vector<8x32xf32>
    %778 = vector.broadcast %759 : vector<1x32xf32> to vector<8x32xf32>
    %779 = arith.addf %777, %778 : vector<8x32xf32>
    %c0_328 = arith.constant 0 : index
    %c0_329 = arith.constant 0 : index
    %780 = vector.load %arg13[%c0_328, %c0_329] : memref<32x128xf32, #tpu.memory_space<vmem>>, vector<32x128xf32>
    %cst_330 = arith.constant dense<0.000000e+00> : vector<8x128xf32>
    %781 = tpu.matmul %779, %780, %cst_330 {dimension_numbers = #tpu.dot_dimension_numbers<[1], [0], [0], [1], [0, 0, 1, 1], [], []>} : vector<8x32xf32>, vector<32x128xf32>, vector<8x128xf32> -> vector<8x128xf32>
    %c0_331 = arith.constant 0 : index
    %c0_332 = arith.constant 0 : index
    %782 = vector.load %arg12[%c0_331, %c0_332] : memref<1x128xf32, #tpu.memory_space<vmem>>, vector<1x128xf32>
    %783 = vector.broadcast %782 : vector<1x128xf32> to vector<8x128xf32>
    %784 = arith.addf %781, %783 : vector<8x128xf32>
    %c0_333 = arith.constant 0 : index
    %c0_334 = arith.constant 0 : index
    %c0_335 = arith.constant 0 : index
    %785 = vector.load %arg77[%c0_333, %c0_334, %c0_335] : memref<1x8x128xf32, #tpu.memory_space<vmem>>, vector<1x8x128xf32>
    %786 = vector.shape_cast %785 : vector<1x8x128xf32> to vector<8x128xf32>
    %787 = vector.shape_cast %784 : vector<8x128xf32> to vector<1x8x128xf32>
    tpu.vector_store %arg77[%c0_333, %c0_334, %c0_335], %787 {strides = array<i32>} : memref<1x8x128xf32, #tpu.memory_space<vmem>>, vector<1x8x128xf32>,
    %c0_336 = arith.constant 0 : index
    %c0_337 = arith.constant 0 : index
    %788 = vector.load %arg9[%c0_336, %c0_337] : memref<32x32xf32, #tpu.memory_space<vmem>>, vector<32x32xf32>
    %cst_338 = arith.constant dense<0.000000e+00> : vector<8x32xf32>
    %789 = tpu.matmul %779, %788, %cst_338 {dimension_numbers = #tpu.dot_dimension_numbers<[1], [0], [0], [1], [0, 0, 1, 1], [], []>} : vector<8x32xf32>, vector<32x32xf32>, vector<8x32xf32> -> vector<8x32xf32>
    %c0_339 = arith.constant 0 : index
    %c0_340 = arith.constant 0 : index
    %790 = vector.load %arg6[%c0_339, %c0_340] : memref<1x32xf32, #tpu.memory_space<vmem>>, vector<1x32xf32>
    %791 = vector.broadcast %790 : vector<1x32xf32> to vector<8x32xf32>
    %792 = arith.addf %789, %791 : vector<8x32xf32>
    %cst_341 = arith.constant 0.000000e+00 : f32
    %793 = vector.broadcast %cst_341 : f32 to vector<8x32xf32>
    %794 = arith.maximumf %792, %793 : vector<8x32xf32>
    %c0_342 = arith.constant 0 : index
    %c0_343 = arith.constant 0 : index
    %795 = vector.load %arg10[%c0_342, %c0_343] : memref<32x32xf32, #tpu.memory_space<vmem>>, vector<32x32xf32>
    %cst_344 = arith.constant dense<0.000000e+00> : vector<8x32xf32>
    %796 = tpu.matmul %794, %795, %cst_344 {dimension_numbers = #tpu.dot_dimension_numbers<[1], [0], [0], [1], [0, 0, 1, 1], [], []>} : vector<8x32xf32>, vector<32x32xf32>, vector<8x32xf32> -> vector<8x32xf32>
    %c0_345 = arith.constant 0 : index
    %c0_346 = arith.constant 0 : index
    %797 = vector.load %arg7[%c0_345, %c0_346] : memref<1x32xf32, #tpu.memory_space<vmem>>, vector<1x32xf32>
    %798 = vector.broadcast %797 : vector<1x32xf32> to vector<8x32xf32>
    %799 = arith.addf %796, %798 : vector<8x32xf32>
    %cst_347 = arith.constant 0.000000e+00 : f32
    %800 = vector.broadcast %cst_347 : f32 to vector<8x32xf32>
    %801 = arith.maximumf %799, %800 : vector<8x32xf32>
    %c0_348 = arith.constant 0 : index
    %c0_349 = arith.constant 0 : index
    %802 = vector.load %arg11[%c0_348, %c0_349] : memref<32x128xf32, #tpu.memory_space<vmem>>, vector<32x128xf32>
    %cst_350 = arith.constant dense<0.000000e+00> : vector<8x128xf32>
    %803 = tpu.matmul %801, %802, %cst_350 {dimension_numbers = #tpu.dot_dimension_numbers<[1], [0], [0], [1], [0, 0, 1, 1], [], []>} : vector<8x32xf32>, vector<32x128xf32>, vector<8x128xf32> -> vector<8x128xf32>
    %c0_351 = arith.constant 0 : index
    %c0_352 = arith.constant 0 : index
    %804 = vector.load %arg8[%c0_351, %c0_352] : memref<1x128xf32, #tpu.memory_space<vmem>>, vector<1x128xf32>
    %805 = vector.broadcast %804 : vector<1x128xf32> to vector<8x128xf32>
    %806 = arith.addf %803, %805 : vector<8x128xf32>
    %cst_353 = arith.constant 0.000000e+00 : f32
    %807 = vector.broadcast %cst_353 : f32 to vector<8x128xf32>
    %808 = arith.subf %807, %806 : vector<8x128xf32>
    %809 = math.exp %808 : vector<8x128xf32>
    %cst_354 = arith.constant 1.000000e+00 : f32
    %810 = vector.broadcast %cst_354 : f32 to vector<8x128xf32>
    %811 = arith.addf %810, %809 : vector<8x128xf32>
    %cst_355 = arith.constant 1.000000e+00 : f32
    %812 = vector.broadcast %cst_355 : f32 to vector<8x128xf32>
    %813 = arith.divf %812, %811 : vector<8x128xf32>
    %c0_356 = arith.constant 0 : index
    %c0_357 = arith.constant 0 : index
    %c0_358 = arith.constant 0 : index
    %814 = vector.load %arg78[%c0_356, %c0_357, %c0_358] : memref<1x8x128xf32, #tpu.memory_space<vmem>>, vector<1x8x128xf32>
    %815 = vector.shape_cast %814 : vector<1x8x128xf32> to vector<8x128xf32>
    %816 = vector.shape_cast %813 : vector<8x128xf32> to vector<1x8x128xf32>
    tpu.vector_store %arg78[%c0_356, %c0_357, %c0_358], %816 {strides = array<i32>} : memref<1x8x128xf32, #tpu.memory_space<vmem>>, vector<1x8x128xf32>,
    return
  }
  func.func @transform_0(%arg0: i32) -> (i32, i32, i32) {
    %c0_i32 = arith.constant 0 : i32
    %c0_i32_0 = arith.constant 0 : i32
    %c0_i32_1 = arith.constant 0 : i32
    return %arg0, %c0_i32, %c0_i32_0 : i32, i32, i32
  }
  func.func @transform_1(%arg0: i32) -> (i32, i32, i32) {
    %c0_i32 = arith.constant 0 : i32
    %c0_i32_0 = arith.constant 0 : i32
    %c0_i32_1 = arith.constant 0 : i32
    return %arg0, %c0_i32, %c0_i32_0 : i32, i32, i32
  }
  func.func @transform_2(%arg0: i32) -> (i32, i32, i32) {
    %c0_i32 = arith.constant 0 : i32
    %c0_i32_0 = arith.constant 0 : i32
    %c0_i32_1 = arith.constant 0 : i32
    return %arg0, %c0_i32, %c0_i32_0 : i32, i32, i32
  }
  func.func @transform_3(%arg0: i32) -> (i32, i32) {
    %c0_i32 = arith.constant 0 : i32
    %c0_i32_0 = arith.constant 0 : i32
    %c0_i32_1 = arith.constant 0 : i32
    return %c0_i32, %c0_i32_0 : i32, i32
  }
  func.func @transform_4(%arg0: i32) -> (i32, i32) {
    %c0_i32 = arith.constant 0 : i32
    %c0_i32_0 = arith.constant 0 : i32
    %c0_i32_1 = arith.constant 0 : i32
    return %c0_i32, %c0_i32_0 : i32, i32
  }
  func.func @transform_5(%arg0: i32) -> (i32, i32) {
    %c0_i32 = arith.constant 0 : i32
    %c0_i32_0 = arith.constant 0 : i32
    %c0_i32_1 = arith.constant 0 : i32
    return %c0_i32, %c0_i32_0 : i32, i32
  }
  func.func @transform_6(%arg0: i32) -> (i32, i32) {
    %c0_i32 = arith.constant 0 : i32
    %c0_i32_0 = arith.constant 0 : i32
    %c0_i32_1 = arith.constant 0 : i32
    return %c0_i32, %c0_i32_0 : i32, i32
  }
  func.func @transform_7(%arg0: i32) -> (i32, i32) {
    %c0_i32 = arith.constant 0 : i32
    %c0_i32_0 = arith.constant 0 : i32
    %c0_i32_1 = arith.constant 0 : i32
    return %c0_i32, %c0_i32_0 : i32, i32
  }
  func.func @transform_8(%arg0: i32) -> (i32, i32) {
    %c0_i32 = arith.constant 0 : i32
    %c0_i32_0 = arith.constant 0 : i32
    %c0_i32_1 = arith.constant 0 : i32
    return %c0_i32, %c0_i32_0 : i32, i32
  }
  func.func @transform_9(%arg0: i32) -> (i32, i32) {
    %c0_i32 = arith.constant 0 : i32
    %c0_i32_0 = arith.constant 0 : i32
    %c0_i32_1 = arith.constant 0 : i32
    return %c0_i32, %c0_i32_0 : i32, i32
  }
  func.func @transform_10(%arg0: i32) -> (i32, i32) {
    %c0_i32 = arith.constant 0 : i32
    %c0_i32_0 = arith.constant 0 : i32
    %c0_i32_1 = arith.constant 0 : i32
    return %c0_i32, %c0_i32_0 : i32, i32
  }
  func.func @transform_11(%arg0: i32) -> (i32, i32) {
    %c0_i32 = arith.constant 0 : i32
    %c0_i32_0 = arith.constant 0 : i32
    %c0_i32_1 = arith.constant 0 : i32
    return %c0_i32, %c0_i32_0 : i32, i32
  }
  func.func @transform_12(%arg0: i32) -> (i32, i32) {
    %c0_i32 = arith.constant 0 : i32
    %c0_i32_0 = arith.constant 0 : i32
    %c0_i32_1 = arith.constant 0 : i32
    return %c0_i32, %c0_i32_0 : i32, i32
  }
  func.func @transform_13(%arg0: i32) -> (i32, i32) {
    %c0_i32 = arith.constant 0 : i32
    %c0_i32_0 = arith.constant 0 : i32
    %c0_i32_1 = arith.constant 0 : i32
    return %c0_i32, %c0_i32_0 : i32, i32
  }
  func.func @transform_14(%arg0: i32) -> (i32, i32) {
    %c0_i32 = arith.constant 0 : i32
    %c0_i32_0 = arith.constant 0 : i32
    %c0_i32_1 = arith.constant 0 : i32
    return %c0_i32, %c0_i32_0 : i32, i32
  }
  func.func @transform_15(%arg0: i32) -> (i32, i32) {
    %c0_i32 = arith.constant 0 : i32
    %c0_i32_0 = arith.constant 0 : i32
    %c0_i32_1 = arith.constant 0 : i32
    return %c0_i32, %c0_i32_0 : i32, i32
  }
  func.func @transform_16(%arg0: i32) -> (i32, i32) {
    %c0_i32 = arith.constant 0 : i32
    %c0_i32_0 = arith.constant 0 : i32
    %c0_i32_1 = arith.constant 0 : i32
    return %c0_i32, %c0_i32_0 : i32, i32
  }
  func.func @transform_17(%arg0: i32) -> (i32, i32) {
    %c0_i32 = arith.constant 0 : i32
    %c0_i32_0 = arith.constant 0 : i32
    %c0_i32_1 = arith.constant 0 : i32
    return %c0_i32, %c0_i32_0 : i32, i32
  }
  func.func @transform_18(%arg0: i32) -> (i32, i32) {
    %c0_i32 = arith.constant 0 : i32
    %c0_i32_0 = arith.constant 0 : i32
    %c0_i32_1 = arith.constant 0 : i32
    return %c0_i32, %c0_i32_0 : i32, i32
  }
  func.func @transform_19(%arg0: i32) -> (i32, i32) {
    %c0_i32 = arith.constant 0 : i32
    %c0_i32_0 = arith.constant 0 : i32
    %c0_i32_1 = arith.constant 0 : i32
    return %c0_i32, %c0_i32_0 : i32, i32
  }
  func.func @transform_20(%arg0: i32) -> (i32, i32) {
    %c0_i32 = arith.constant 0 : i32
    %c0_i32_0 = arith.constant 0 : i32
    %c0_i32_1 = arith.constant 0 : i32
    return %c0_i32, %c0_i32_0 : i32, i32
  }
  func.func @transform_21(%arg0: i32) -> (i32, i32) {
    %c0_i32 = arith.constant 0 : i32
    %c0_i32_0 = arith.constant 0 : i32
    %c0_i32_1 = arith.constant 0 : i32
    return %c0_i32, %c0_i32_0 : i32, i32
  }
  func.func @transform_22(%arg0: i32) -> (i32, i32) {
    %c0_i32 = arith.constant 0 : i32
    %c0_i32_0 = arith.constant 0 : i32
    %c0_i32_1 = arith.constant 0 : i32
    return %c0_i32, %c0_i32_0 : i32, i32
  }
  func.func @transform_23(%arg0: i32) -> (i32, i32) {
    %c0_i32 = arith.constant 0 : i32
    %c0_i32_0 = arith.constant 0 : i32
    %c0_i32_1 = arith.constant 0 : i32
    return %c0_i32, %c0_i32_0 : i32, i32
  }
  func.func @transform_24(%arg0: i32) -> (i32, i32) {
    %c0_i32 = arith.constant 0 : i32
    %c0_i32_0 = arith.constant 0 : i32
    %c0_i32_1 = arith.constant 0 : i32
    return %c0_i32, %c0_i32_0 : i32, i32
  }
  func.func @transform_25(%arg0: i32) -> (i32, i32) {
    %c0_i32 = arith.constant 0 : i32
    %c0_i32_0 = arith.constant 0 : i32
    %c0_i32_1 = arith.constant 0 : i32
    return %c0_i32, %c0_i32_0 : i32, i32
  }
  func.func @transform_26(%arg0: i32) -> (i32, i32) {
    %c0_i32 = arith.constant 0 : i32
    %c0_i32_0 = arith.constant 0 : i32
    %c0_i32_1 = arith.constant 0 : i32
    return %c0_i32, %c0_i32_0 : i32, i32
  }
  func.func @transform_27(%arg0: i32) -> (i32, i32) {
    %c0_i32 = arith.constant 0 : i32
    %c0_i32_0 = arith.constant 0 : i32
    %c0_i32_1 = arith.constant 0 : i32
    return %c0_i32, %c0_i32_0 : i32, i32
  }
  func.func @transform_28(%arg0: i32) -> (i32, i32) {
    %c0_i32 = arith.constant 0 : i32
    %c0_i32_0 = arith.constant 0 : i32
    %c0_i32_1 = arith.constant 0 : i32
    return %c0_i32, %c0_i32_0 : i32, i32
  }
  func.func @transform_29(%arg0: i32) -> (i32, i32) {
    %c0_i32 = arith.constant 0 : i32
    %c0_i32_0 = arith.constant 0 : i32
    %c0_i32_1 = arith.constant 0 : i32
    return %c0_i32, %c0_i32_0 : i32, i32
  }
  func.func @transform_30(%arg0: i32) -> (i32, i32) {
    %c0_i32 = arith.constant 0 : i32
    %c0_i32_0 = arith.constant 0 : i32
    %c0_i32_1 = arith.constant 0 : i32
    return %c0_i32, %c0_i32_0 : i32, i32
  }
  func.func @transform_31(%arg0: i32) -> (i32, i32) {
    %c0_i32 = arith.constant 0 : i32
    %c0_i32_0 = arith.constant 0 : i32
    %c0_i32_1 = arith.constant 0 : i32
    return %c0_i32, %c0_i32_0 : i32, i32
  }
  func.func @transform_32(%arg0: i32) -> (i32, i32) {
    %c0_i32 = arith.constant 0 : i32
    %c0_i32_0 = arith.constant 0 : i32
    %c0_i32_1 = arith.constant 0 : i32
    return %c0_i32, %c0_i32_0 : i32, i32
  }
  func.func @transform_33(%arg0: i32) -> (i32, i32) {
    %c0_i32 = arith.constant 0 : i32
    %c0_i32_0 = arith.constant 0 : i32
    %c0_i32_1 = arith.constant 0 : i32
    return %c0_i32, %c0_i32_0 : i32, i32
  }
  func.func @transform_34(%arg0: i32) -> (i32, i32) {
    %c0_i32 = arith.constant 0 : i32
    %c0_i32_0 = arith.constant 0 : i32
    %c0_i32_1 = arith.constant 0 : i32
    return %c0_i32, %c0_i32_0 : i32, i32
  }
  func.func @transform_35(%arg0: i32) -> (i32, i32) {
    %c0_i32 = arith.constant 0 : i32
    %c0_i32_0 = arith.constant 0 : i32
    %c0_i32_1 = arith.constant 0 : i32
    return %c0_i32, %c0_i32_0 : i32, i32
  }
  func.func @transform_36(%arg0: i32) -> (i32, i32) {
    %c0_i32 = arith.constant 0 : i32
    %c0_i32_0 = arith.constant 0 : i32
    %c0_i32_1 = arith.constant 0 : i32
    return %c0_i32, %c0_i32_0 : i32, i32
  }
  func.func @transform_37(%arg0: i32) -> (i32, i32) {
    %c0_i32 = arith.constant 0 : i32
    %c0_i32_0 = arith.constant 0 : i32
    %c0_i32_1 = arith.constant 0 : i32
    return %c0_i32, %c0_i32_0 : i32, i32
  }
  func.func @transform_38(%arg0: i32) -> (i32, i32) {
    %c0_i32 = arith.constant 0 : i32
    %c0_i32_0 = arith.constant 0 : i32
    %c0_i32_1 = arith.constant 0 : i32
    return %c0_i32, %c0_i32_0 : i32, i32
  }
  func.func @transform_39(%arg0: i32) -> (i32, i32) {
    %c0_i32 = arith.constant 0 : i32
    %c0_i32_0 = arith.constant 0 : i32
    %c0_i32_1 = arith.constant 0 : i32
    return %c0_i32, %c0_i32_0 : i32, i32
  }
  func.func @transform_40(%arg0: i32) -> (i32, i32) {
    %c0_i32 = arith.constant 0 : i32
    %c0_i32_0 = arith.constant 0 : i32
    %c0_i32_1 = arith.constant 0 : i32
    return %c0_i32, %c0_i32_0 : i32, i32
  }
  func.func @transform_41(%arg0: i32) -> (i32, i32) {
    %c0_i32 = arith.constant 0 : i32
    %c0_i32_0 = arith.constant 0 : i32
    %c0_i32_1 = arith.constant 0 : i32
    return %c0_i32, %c0_i32_0 : i32, i32
  }
  func.func @transform_42(%arg0: i32) -> (i32, i32) {
    %c0_i32 = arith.constant 0 : i32
    %c0_i32_0 = arith.constant 0 : i32
    %c0_i32_1 = arith.constant 0 : i32
    return %c0_i32, %c0_i32_0 : i32, i32
  }
  func.func @transform_43(%arg0: i32) -> (i32, i32) {
    %c0_i32 = arith.constant 0 : i32
    %c0_i32_0 = arith.constant 0 : i32
    %c0_i32_1 = arith.constant 0 : i32
    return %c0_i32, %c0_i32_0 : i32, i32
  }
  func.func @transform_44(%arg0: i32) -> (i32, i32) {
    %c0_i32 = arith.constant 0 : i32
    %c0_i32_0 = arith.constant 0 : i32
    %c0_i32_1 = arith.constant 0 : i32
    return %c0_i32, %c0_i32_0 : i32, i32
  }
  func.func @transform_45(%arg0: i32) -> (i32, i32) {
    %c0_i32 = arith.constant 0 : i32
    %c0_i32_0 = arith.constant 0 : i32
    %c0_i32_1 = arith.constant 0 : i32
    return %c0_i32, %c0_i32_0 : i32, i32
  }
  func.func @transform_46(%arg0: i32) -> (i32, i32) {
    %c0_i32 = arith.constant 0 : i32
    %c0_i32_0 = arith.constant 0 : i32
    %c0_i32_1 = arith.constant 0 : i32
    return %c0_i32, %c0_i32_0 : i32, i32
  }
  func.func @transform_47(%arg0: i32) -> (i32, i32) {
    %c0_i32 = arith.constant 0 : i32
    %c0_i32_0 = arith.constant 0 : i32
    %c0_i32_1 = arith.constant 0 : i32
    return %c0_i32, %c0_i32_0 : i32, i32
  }
  func.func @transform_48(%arg0: i32) -> (i32, i32) {
    %c0_i32 = arith.constant 0 : i32
    %c0_i32_0 = arith.constant 0 : i32
    %c0_i32_1 = arith.constant 0 : i32
    return %c0_i32, %c0_i32_0 : i32, i32
  }
  func.func @transform_49(%arg0: i32) -> (i32, i32) {
    %c0_i32 = arith.constant 0 : i32
    %c0_i32_0 = arith.constant 0 : i32
    %c0_i32_1 = arith.constant 0 : i32
    return %c0_i32, %c0_i32_0 : i32, i32
  }
  func.func @transform_50(%arg0: i32) -> (i32, i32) {
    %c0_i32 = arith.constant 0 : i32
    %c0_i32_0 = arith.constant 0 : i32
    %c0_i32_1 = arith.constant 0 : i32
    return %c0_i32, %c0_i32_0 : i32, i32
  }
  func.func @transform_51(%arg0: i32) -> (i32, i32) {
    %c0_i32 = arith.constant 0 : i32
    %c0_i32_0 = arith.constant 0 : i32
    %c0_i32_1 = arith.constant 0 : i32
    return %c0_i32, %c0_i32_0 : i32, i32
  }
  func.func @transform_52(%arg0: i32) -> (i32, i32) {
    %c0_i32 = arith.constant 0 : i32
    %c0_i32_0 = arith.constant 0 : i32
    %c0_i32_1 = arith.constant 0 : i32
    return %c0_i32, %c0_i32_0 : i32, i32
  }
  func.func @transform_53(%arg0: i32) -> (i32, i32) {
    %c0_i32 = arith.constant 0 : i32
    %c0_i32_0 = arith.constant 0 : i32
    %c0_i32_1 = arith.constant 0 : i32
    return %c0_i32, %c0_i32_0 : i32, i32
  }
  func.func @transform_54(%arg0: i32) -> (i32, i32) {
    %c0_i32 = arith.constant 0 : i32
    %c0_i32_0 = arith.constant 0 : i32
    %c0_i32_1 = arith.constant 0 : i32
    return %c0_i32, %c0_i32_0 : i32, i32
  }
  func.func @transform_55(%arg0: i32) -> (i32, i32) {
    %c0_i32 = arith.constant 0 : i32
    %c0_i32_0 = arith.constant 0 : i32
    %c0_i32_1 = arith.constant 0 : i32
    return %c0_i32, %c0_i32_0 : i32, i32
  }
  func.func @transform_56(%arg0: i32) -> (i32, i32) {
    %c0_i32 = arith.constant 0 : i32
    %c0_i32_0 = arith.constant 0 : i32
    %c0_i32_1 = arith.constant 0 : i32
    return %c0_i32, %c0_i32_0 : i32, i32
  }
  func.func @transform_57(%arg0: i32) -> (i32, i32) {
    %c0_i32 = arith.constant 0 : i32
    %c0_i32_0 = arith.constant 0 : i32
    %c0_i32_1 = arith.constant 0 : i32
    return %c0_i32, %c0_i32_0 : i32, i32
  }
  func.func @transform_58(%arg0: i32) -> (i32, i32) {
    %c0_i32 = arith.constant 0 : i32
    %c0_i32_0 = arith.constant 0 : i32
    %c0_i32_1 = arith.constant 0 : i32
    return %c0_i32, %c0_i32_0 : i32, i32
  }
  func.func @transform_59(%arg0: i32) -> (i32, i32) {
    %c0_i32 = arith.constant 0 : i32
    %c0_i32_0 = arith.constant 0 : i32
    %c0_i32_1 = arith.constant 0 : i32
    return %c0_i32, %c0_i32_0 : i32, i32
  }
  func.func @transform_60(%arg0: i32) -> (i32, i32) {
    %c0_i32 = arith.constant 0 : i32
    %c0_i32_0 = arith.constant 0 : i32
    %c0_i32_1 = arith.constant 0 : i32
    return %c0_i32, %c0_i32_0 : i32, i32
  }
  func.func @transform_61(%arg0: i32) -> (i32, i32) {
    %c0_i32 = arith.constant 0 : i32
    %c0_i32_0 = arith.constant 0 : i32
    %c0_i32_1 = arith.constant 0 : i32
    return %c0_i32, %c0_i32_0 : i32, i32
  }
  func.func @transform_62(%arg0: i32) -> (i32, i32) {
    %c0_i32 = arith.constant 0 : i32
    %c0_i32_0 = arith.constant 0 : i32
    %c0_i32_1 = arith.constant 0 : i32
    return %c0_i32, %c0_i32_0 : i32, i32
  }
  func.func @transform_63(%arg0: i32) -> (i32, i32) {
    %c0_i32 = arith.constant 0 : i32
    %c0_i32_0 = arith.constant 0 : i32
    %c0_i32_1 = arith.constant 0 : i32
    return %c0_i32, %c0_i32_0 : i32, i32
  }
  func.func @transform_64(%arg0: i32) -> (i32, i32) {
    %c0_i32 = arith.constant 0 : i32
    %c0_i32_0 = arith.constant 0 : i32
    %c0_i32_1 = arith.constant 0 : i32
    return %c0_i32, %c0_i32_0 : i32, i32
  }
  func.func @transform_65(%arg0: i32) -> (i32, i32) {
    %c0_i32 = arith.constant 0 : i32
    %c0_i32_0 = arith.constant 0 : i32
    %c0_i32_1 = arith.constant 0 : i32
    return %c0_i32, %c0_i32_0 : i32, i32
  }
  func.func @transform_66(%arg0: i32) -> (i32, i32) {
    %c0_i32 = arith.constant 0 : i32
    %c0_i32_0 = arith.constant 0 : i32
    %c0_i32_1 = arith.constant 0 : i32
    return %c0_i32, %c0_i32_0 : i32, i32
  }
  func.func @transform_67(%arg0: i32) -> (i32, i32) {
    %c0_i32 = arith.constant 0 : i32
    %c0_i32_0 = arith.constant 0 : i32
    %c0_i32_1 = arith.constant 0 : i32
    return %c0_i32, %c0_i32_0 : i32, i32
  }
  func.func @transform_68(%arg0: i32) -> (i32, i32) {
    %c0_i32 = arith.constant 0 : i32
    %c0_i32_0 = arith.constant 0 : i32
    %c0_i32_1 = arith.constant 0 : i32
    return %c0_i32, %c0_i32_0 : i32, i32
  }
  func.func @transform_69(%arg0: i32) -> (i32, i32) {
    %c0_i32 = arith.constant 0 : i32
    %c0_i32_0 = arith.constant 0 : i32
    %c0_i32_1 = arith.constant 0 : i32
    return %c0_i32, %c0_i32_0 : i32, i32
  }
  func.func @transform_70(%arg0: i32) -> (i32, i32) {
    %c0_i32 = arith.constant 0 : i32
    %c0_i32_0 = arith.constant 0 : i32
    %c0_i32_1 = arith.constant 0 : i32
    return %c0_i32, %c0_i32_0 : i32, i32
  }
  func.func @transform_71(%arg0: i32) -> (i32, i32) {
    %c0_i32 = arith.constant 0 : i32
    %c0_i32_0 = arith.constant 0 : i32
    %c0_i32_1 = arith.constant 0 : i32
    return %c0_i32, %c0_i32_0 : i32, i32
  }
  func.func @transform_72(%arg0: i32) -> (i32, i32) {
    %c0_i32 = arith.constant 0 : i32
    %c0_i32_0 = arith.constant 0 : i32
    %c0_i32_1 = arith.constant 0 : i32
    return %c0_i32, %c0_i32_0 : i32, i32
  }
  func.func @transform_73(%arg0: i32) -> (i32, i32) {
    %c0_i32 = arith.constant 0 : i32
    %c0_i32_0 = arith.constant 0 : i32
    %c0_i32_1 = arith.constant 0 : i32
    return %c0_i32, %c0_i32_0 : i32, i32
  }
  func.func @transform_74(%arg0: i32) -> (i32, i32) {
    %c0_i32 = arith.constant 0 : i32
    %c0_i32_0 = arith.constant 0 : i32
    %c0_i32_1 = arith.constant 0 : i32
    return %c0_i32, %c0_i32_0 : i32, i32
  }
  func.func @transform_75(%arg0: i32) -> (i32, i32) {
    %c0_i32 = arith.constant 0 : i32
    %c0_i32_0 = arith.constant 0 : i32
    %c0_i32_1 = arith.constant 0 : i32
    return %c0_i32, %c0_i32_0 : i32, i32
  }
  func.func @transform_76(%arg0: i32) -> (i32, i32, i32) {
    %c0_i32 = arith.constant 0 : i32
    %c0_i32_0 = arith.constant 0 : i32
    %c0_i32_1 = arith.constant 0 : i32
    return %arg0, %c0_i32, %c0_i32_0 : i32, i32, i32
  }
  func.func @transform_77(%arg0: i32) -> (i32, i32, i32) {
    %c0_i32 = arith.constant 0 : i32
    %c0_i32_0 = arith.constant 0 : i32
    %c0_i32_1 = arith.constant 0 : i32
    return %arg0, %c0_i32, %c0_i32_0 : i32, i32, i32
  }
}

</mosaic_0001>

<bundles_post_ra>
// kernel: detr_forward.1
= control target key start
LH: loop header
LB: loop body
LE: loop exit
PB: predicated region body
PF: predicated region fallthrough
CT: control target
= control target key end

     0   :  { %s17382_s6 = smov 1   ;;  %s17383_s10 = smov 2   ;;  %s20254_s0 = inlined_call_operand.smem [shape: u32[78], index: -1, kind: input, shape index: {}] }
   0x1   :  { %s17509_s5 = sld [smem:[%s20254_s0]]   ;;  %s17384_s14 = smov 3  }
   0x2   :  { %s17514_s9 = sld [smem:[%s20254_s0 + %s17382_s6]]   ;;  %s17385_s18 = smov 4  }
   0x3   :  { %s17519_s13 = sld [smem:[%s20254_s0 + %s17383_s10]]   ;;  %s17386_s22 = smov 5  }
   0x4   :  { %s17524_s17 = sld [smem:[%s20254_s0 + %s17384_s14]]   ;;  %s17387_s26 = smov 6  }
   0x5   :  { %s17529_s21 = sld [smem:[%s20254_s0 + %s17385_s18]]   ;;  %s17388_s30 = smov 7  }
   0x6   :  { %s17534_s25 = sld [smem:[%s20254_s0 + %s17386_s22]]   ;;  %s17389_s4 = smov 8  }
   0x7   :  { %20348 = sst [smem:[#allocation68_spill]] %s17509_s5  ;;  %s17390_s10 = smov 9  }
   0x8   :  { %20349 = sst [smem:[#allocation69_spill]] %s17514_s9  ;;  %s17391_s15 = smov 10  }
   0x9   :  { %20350 = sst [smem:[#allocation70_spill]] %s17519_s13  ;;  %s17392_s20 = smov 11  }
   0xa   :  { %20351 = sst [smem:[#allocation71_spill]] %s17524_s17  ;;  %s17394_s1 = smov 13  }
   0xb   :  { %20352 = sst [smem:[#allocation72_spill]] %s17529_s21  ;;  %s17395_s7 = smov 14  }
   0xc   :  { %20353 = sst [smem:[#allocation73_spill]] %s17534_s25  ;;  %s17397_s22 = smov 16  }
   0xd   :  { %s17539_s29 = sld [smem:[%s20254_s0 + %s17387_s26]]   ;;  %s17393_s26 = smov 12  }
   0xe   :  { %s17544_s3 = sld [smem:[%s20254_s0 + %s17388_s30]]   ;;  %s17398_s28 = smov 17  }
   0xf   :  { %s17549_s8 = sld [smem:[%s20254_s0 + %s17389_s4]]  }
  0x10   :  { %s17554_s14 = sld [smem:[%s20254_s0 + %s17390_s10]]  }
  0x11   :  { %s17559_s19 = sld [smem:[%s20254_s0 + %s17391_s15]]   ;;  %s17396_s15 = smov 15  }
  0x12   :  { %s17564_s24 = sld [smem:[%s20254_s0 + %s17392_s20]]  }
  0x13   :  { %20354 = sst [smem:[#allocation74_spill]] %s17539_s29 }
  0x14   :  { %20355 = sst [smem:[#allocation75_spill]] %s17544_s3 }
  0x15   :  { %20356 = sst [smem:[#allocation76_spill]] %s17549_s8 }
  0x16   :  { %20357 = sst [smem:[#allocation77_spill]] %s17554_s14 }
  0x17   :  { %20358 = sst [smem:[#allocation78_spill]] %s17559_s19 }
  0x18   :  { %20359 = sst [smem:[#allocation79_spill]] %s17564_s24 }
  0x19   :  { %s17569_s30 = sld [smem:[%s20254_s0 + %s17393_s26]]  }
  0x1a   :  { %s17574_s6 = sld [smem:[%s20254_s0 + %s17394_s1]]  }
  0x1b   :  { %s17579_s12 = sld [smem:[%s20254_s0 + %s17395_s7]]   ;;  %s17399_s7 = smov 18  }
  0x1c   :  { %s17584_s20 = sld [smem:[%s20254_s0 + %s17396_s15]]   ;;  %s17400_s15 = smov 19  }
  0x1d   :  { %s17589_s27 = sld [smem:[%s20254_s0 + %s17397_s22]]   ;;  %s17401_s22 = smov 20  }
  0x1e   :  { %s17594_s4 = sld [smem:[%s20254_s0 + %s17398_s28]]   ;;  %s17402_s28 = smov 21  }
  0x1f   :  { %20360 = sst [smem:[#allocation80_spill]] %s17569_s30 }
  0x20   :  { %20361 = sst [smem:[#allocation81_spill]] %s17574_s6 }
  0x21   :  { %20362 = sst [smem:[#allocation82_spill]] %s17579_s12 }
  0x22   :  { %20363 = sst [smem:[#allocation83_spill]] %s17584_s20 }
  0x23   :  { %20364 = sst [smem:[#allocation84_spill]] %s17589_s27 }
  0x24   :  { %20365 = sst [smem:[#allocation85_spill]] %s17594_s4 }
  0x25   :  { %s17599_s3 = sld [smem:[%s20254_s0 + %s17399_s7]]   ;;  %s17403_s7 = smov 22  }
  0x26   :  { %s17604_s29 = sld [smem:[%s20254_s0 + %s17400_s15]]   ;;  %s17404_s15 = smov 23  }
  0x27   :  { %s17609_s25 = sld [smem:[%s20254_s0 + %s17401_s22]]   ;;  %s17405_s22 = smov 24  }
  0x28   :  { %s17614_s24 = sld [smem:[%s20254_s0 + %s17402_s28]]   ;;  %s17406_s28 = smov 25  }
  0x29   :  { %s17619_s19 = sld [smem:[%s20254_s0 + %s17403_s7]]   ;;  %s17407_s7 = smov 26  }
  0x2a   :  { %s17624_s14 = sld [smem:[%s20254_s0 + %s17404_s15]]   ;;  %s17408_s15 = smov 27  }
  0x2b   :  { %20366 = sst [smem:[#allocation86_spill]] %s17599_s3 }
  0x2c   :  { %20367 = sst [smem:[#allocation87_spill]] %s17604_s29 }
  0x2d   :  { %20368 = sst [smem:[#allocation88_spill]] %s17609_s25 }
  0x2e   :  { %20369 = sst [smem:[#allocation89_spill]] %s17614_s24 }
  0x2f   :  { %20370 = sst [smem:[#allocation90_spill]] %s17619_s19 }
  0x30   :  { %20371 = sst [smem:[#allocation91_spill]] %s17624_s14 }
  0x31   :  { %s17629_s27 = sld [smem:[%s20254_s0 + %s17405_s22]]   ;;  %s17409_s22 = smov 28  }
  0x32   :  { %s17634_s8 = sld [smem:[%s20254_s0 + %s17406_s28]]   ;;  %s17410_s28 = smov 29  }
  0x33   :  { %s17639_s4 = sld [smem:[%s20254_s0 + %s17407_s7]]   ;;  %s17411_s7 = smov 30  }
  0x34   :  { %s17644_s30 = sld [smem:[%s20254_s0 + %s17408_s15]]   ;;  %s17412_s15 = smov 31  }
  0x35   :  { %s17649_s29 = sld [smem:[%s20254_s0 + %s17409_s22]]   ;;  %s17413_s22 = smov 32  }
  0x36   :  { %s17654_s3 = sld [smem:[%s20254_s0 + %s17410_s28]]   ;;  %s17414_s28 = smov 33  }
  0x37   :  { %20372 = sst [smem:[#allocation92_spill]] %s17629_s27 }
  0x38   :  { %20373 = sst [smem:[#allocation93_spill]] %s17634_s8 }
  0x39   :  { %20374 = sst [smem:[#allocation94_spill]] %s17639_s4 }
  0x3a   :  { %s17659_s25 = sld [smem:[%s20254_s0 + %s17411_s7]]   ;;  %s17415_s7 = smov 34  }
  0x3b   :  { %20375 = sst [smem:[#allocation95_spill]] %s17649_s29 }
  0x3c   :  { %20376 = sst [smem:[#allocation96_spill]] %s17654_s3 }
  0x3d   :  { %s17664_s14 = sld [smem:[%s20254_s0 + %s17412_s15]]   ;;  %s17416_s15 = smov 35  }
  0x3e   :  { %s17669_s19 = sld [smem:[%s20254_s0 + %s17413_s22]]   ;;  %s17417_s22 = smov 36  }
  0x3f   :  { %s17674_s8 = sld [smem:[%s20254_s0 + %s17414_s28]]   ;;  %s17418_s28 = smov 37  }
  0x40   :  { %20377 = sst [smem:[#allocation97_spill]] %s17659_s25 }
  0x41   :  { %s17679_s24 = sld [smem:[%s20254_s0 + %s17415_s7]]   ;;  %s17419_s7 = smov 38  }
  0x42   :  { %s17684_s27 = sld [smem:[%s20254_s0 + %s17416_s15]]   ;;  %s17420_s15 = smov 39  }
  0x43   :  { %s17689_s20 = sld [smem:[%s20254_s0 + %s17417_s22]]   ;;  %s17421_s22 = smov 40  }
  0x44   :  { %20378 = sst [smem:[#allocation98_spill]] %s17669_s19 }
  0x45   :  { %20379 = sst [smem:[#allocation99_spill]] %s17674_s8 }
  0x46   :  { %s17694_s13 = sld [smem:[%s20254_s0 + %s17418_s28]]   ;;  %s17422_s28 = smov 41  }
  0x47   :  { %20380 = sst [smem:[#allocation100_spill]] %s17679_s24 }
  0x48   :  { %20381 = sst [smem:[#allocation101_spill]] %s17684_s27 }
  0x49   :  { %20382 = sst [smem:[#allocation102_spill]] %s17689_s20 }
  0x4a   :  { %s17699_s6 = sld [smem:[%s20254_s0 + %s17419_s7]]   ;;  %s17423_s7 = smov 42  }
  0x4b   :  { %s17704_s27 = sld [smem:[%s20254_s0 + %s17420_s15]]   ;;  %s17424_s15 = smov 43  }
  0x4c   :  { %20383 = sst [smem:[#allocation103_spill]] %s17694_s13 }
  0x4d   :  { %s17709_s20 = sld [smem:[%s20254_s0 + %s17421_s22]]   ;;  %s17425_s22 = smov 44  }
  0x4e   :  { %s17714_s13 = sld [smem:[%s20254_s0 + %s17422_s28]]   ;;  %s17426_s28 = smov 45  }
  0x4f   :  { %s17729_s9 = sld [smem:[%s20254_s0 + %s17425_s22]]   ;;  %s17429_s22 = smov 48  }
  0x50   :  { %20384 = sst [smem:[#allocation104_spill]] %s17699_s6 }
  0x51   :  { %20385 = sst [smem:[#allocation105_spill]] %s17704_s27 }
  0x52   :  { %s17719_s6 = sld [smem:[%s20254_s0 + %s17423_s7]]   ;;  %s17427_s7 = smov 46  }
  0x53   :  { %s17724_s27 = sld [smem:[%s20254_s0 + %s17424_s15]]   ;;  %s17428_s15 = smov 47  }
  0x54   :  { %20386 = sst [smem:[#allocation106_spill]] %s17714_s13 }
  0x55   :  { %20389 = sst [smem:[#allocation109_spill]] %s17729_s9 }
  0x56   :  { %s17734_s17 = sld [smem:[%s20254_s0 + %s17426_s28]]   ;;  %s17430_s28 = smov 49  }
  0x57   :  { %s17739_s12 = sld [smem:[%s20254_s0 + %s17427_s7]]   ;;  %s17431_s7 = smov 50  }
  0x58   :  { %20387 = sst [smem:[#allocation107_spill]] %s17719_s6 }
  0x59   :  { %20388 = sst [smem:[#allocation108_spill]] %s17724_s27 }
  0x5a   :  { %s17744_s21 = sld [smem:[%s20254_s0 + %s17428_s15]]   ;;  %s17432_s15 = smov 51  }
  0x5b   :  { %s17749_s5 = sld [smem:[%s20254_s0 + %s17429_s22]]   ;;  %s17433_s22 = smov 52  }
  0x5c   :  { %20390 = sst [smem:[#allocation110_spill]] %s17734_s17 }
  0x5d   :  { %20391 = sst [smem:[#allocation111_spill]] %s17739_s12 }
  0x5e   :  { %s17754_s17 = sld [smem:[%s20254_s0 + %s17430_s28]]   ;;  %s17434_s28 = smov 53  }
  0x5f   :  { %s17759_s12 = sld [smem:[%s20254_s0 + %s17431_s7]]   ;;  %s17435_s7 = smov 54  }
  0x60   :  { %20392 = sst [smem:[#allocation112_spill]] %s17744_s21 }
  0x61   :  { %20393 = sst [smem:[#allocation113_spill]] %s17749_s5 }
  0x62   :  { %s17764_s21 = sld [smem:[%s20254_s0 + %s17432_s15]]   ;;  %s17436_s15 = smov 55  }
  0x63   :  { %s17769_s5 = sld [smem:[%s20254_s0 + %s17433_s22]]   ;;  %s17437_s22 = smov 56  }
  0x64   :  { %s17774_s27 = sld [smem:[%s20254_s0 + %s17434_s28]]   ;;  %s17438_s28 = smov 57  }
  0x65   :  { %20394 = sst [smem:[#allocation114_spill]] %s17759_s12 }
  0x66   :  { %s17779_s12 = sld [smem:[%s20254_s0 + %s17435_s7]]   ;;  %s17439_s7 = smov 58  }
  0x67   :  { %s17784_s13 = sld [smem:[%s20254_s0 + %s17436_s15]]   ;;  %s17440_s15 = smov 59  }
  0x68   :  { %s17794_s24 = sld [smem:[%s20254_s0 + %s17438_s28]]   ;;  %s17442_s28 = smov 61  }
  0x69   :  { %20395 = sst [smem:[#allocation115_spill]] %s17769_s5 }
  0x6a   :  { %s17789_s5 = sld [smem:[%s20254_s0 + %s17437_s22]]   ;;  %s17441_s22 = smov 60  }
  0x6b   :  { %s17804_s19 = sld [smem:[%s20254_s0 + %s17440_s15]]   ;;  %s17444_s15 = smov 63  }
  0x6c   :  { %20396 = sst [smem:[#allocation116_spill]] %s17779_s12 }
  0x6d   :  { %20397 = sst [smem:[#allocation117_spill]] %s17784_s13 }
  0x6e   :  { %20399 = sst [smem:[#allocation119_spill]] %s17794_s24 }
  0x6f   :  { %s17799_s12 = sld [smem:[%s20254_s0 + %s17439_s7]]   ;;  %s17443_s7 = smov 62  }
  0x70   :  { %20398 = sst [smem:[#allocation118_spill]] %s17789_s5 }
  0x71   :  { %20401 = sst [smem:[#allocation121_spill]] %s17804_s19 }
  0x72   :  { %s17809_s5 = sld [smem:[%s20254_s0 + %s17441_s22]]   ;;  %s17445_s22 = smov 64  }
  0x73   :  { %s17814_s24 = sld [smem:[%s20254_s0 + %s17442_s28]]   ;;  %s17446_s28 = smov 65  }
  0x74   :  { %s17824_s19 = sld [smem:[%s20254_s0 + %s17444_s15]]   ;;  %s17448_s15 = smov 67  }
  0x75   :  { %20400 = sst [smem:[#allocation120_spill]] %s17799_s12 }
  0x76   :  { %s17819_s12 = sld [smem:[%s20254_s0 + %s17443_s7]]   ;;  %s17447_s7 = smov 66  }
  0x77   :  { %s17839_s25 = sld [smem:[%s20254_s0 + %s17447_s7]]   ;;  %s17451_s7 = smov 70  }
  0x78   :  { %20402 = sst [smem:[#allocation122_spill]] %s17809_s5 }
  0x79   :  { %20403 = sst [smem:[#allocation123_spill]] %s17814_s24 }
  0x7a   :  { %20405 = sst [smem:[#allocation125_spill]] %s17824_s19 }
  0x7b   :  { %s17829_s5 = sld [smem:[%s20254_s0 + %s17445_s22]]   ;;  %s17449_s22 = smov 68  }
  0x7c   :  { %20404 = sst [smem:[#allocation124_spill]] %s17819_s12 }
  0x7d   :  { %s17834_s24 = sld [smem:[%s20254_s0 + %s17446_s28]]   ;;  %s17450_s28 = smov 69  }
  0x7e   :  { %s17844_s19 = sld [smem:[%s20254_s0 + %s17448_s15]]   ;;  %s17452_s15 = smov 71  }
  0x7f   :  { %s17849_s29 = sld [smem:[%s20254_s0 + %s17449_s22]]   ;;  %s17453_s22 = smov 72  }
  0x80   :  { %s17859_s4 = sld [smem:[%s20254_s0 + %s17451_s7]]   ;;  %s17455_s7 = smov 74  }
  0x81   :  { %20406 = sst [smem:[#allocation126_spill]] %s17829_s5 }
  0x83   :  { %20407 = sst [smem:[#allocation127_spill]] %s17834_s24 }
  0x84   :  { %20408 = sst [smem:[#allocation128_spill]] %s17844_s19 }
  0x85   :  { %20409 = sst [smem:[#allocation129_spill]] %s17849_s29 }
  0x86   :  { %s17854_s24 = sld [smem:[%s20254_s0 + %s17450_s28]]   ;;  %s17454_s28 = smov 73  }
  0x87   :  { %20411 = sst [smem:[#allocation131_spill]] %s17859_s4 }
  0x88   :  { %s17864_s19 = sld [smem:[%s20254_s0 + %s17452_s15]]   ;;  %s17456_s15 = smov 75  }
  0x89   :  { %s17869_s29 = sld [smem:[%s20254_s0 + %s17453_s22]]   ;;  %s17457_s22 = smov 76  }
  0x8a   :  { %s17879_s4 = sld [smem:[%s20254_s0 + %s17455_s7]]  }
  0x8c   :  { %20410 = sst [smem:[#allocation130_spill]] %s17854_s24 }
  0x8d   :  { %s17874_s24 = sld [smem:[%s20254_s0 + %s17454_s28]]   ;;  %s17458_s28 = smov 77  }
  0x8e   :  { %20412 = sst [smem:[#allocation132_spill]] %s17864_s19 }
  0x8f   :  { %20413 = sst [smem:[#allocation133_spill]] %s17869_s29 }
  0x90   :  { %20415 = sst [smem:[#allocation135_spill]] %s17879_s4 }
  0x91   :  { %s17884_s19 = sld [smem:[%s20254_s0 + %s17456_s15]]  }
  0x92   :  { %s17889_s29 = sld [smem:[%s20254_s0 + %s17457_s22]]  }
  0x93   :  { %20414 = sst [smem:[#allocation134_spill]] %s17874_s24 }
  0x94   :  { %s17894_s24 = sld [smem:[%s20254_s0 + %s17458_s28]]  }
  0x95   :  { %161 = vsyncpa [#allocation3], 0 }
  0x96   :  { %162 = vsyncpa [#allocation5], 0 }
  0x97   :  { %163 = vsyncpa [#allocation8], 0 }
  0x98   :  { %164 = vsyncpa [#allocation11], 0 }
  0x99   :  { %165 = vsyncpa [#allocation14], 0 }
  0x9a   :  { %166 = vsyncpa [#allocation17], 0 }
  0x9b   :  { %167 = vsyncpa [#allocation20], 0 }
  0x9c   :  { %168 = vsyncpa [#allocation23], 0 }
  0x9d   :  { %169 = vsyncpa [#allocation26], 0 }
  0x9e   :  { %170 = vsyncpa [#allocation29], 0 }
  0x9f   :  { %171 = vsyncpa [#allocation32], 0 }
  0xa0   :  { %172 = vsyncpa [#allocation35], 0 }
  0xa1   :  { %173 = vsyncpa [#allocation38], 0 }
  0xa2   :  { %174 = vsyncpa [#allocation41], 0 }
  0xa3   :  { %175 = vsyncpa [#allocation44], 0 }
  0xa4   :  { %176 = vsyncpa [#allocation47], 0 }
  0xa5   :  { %177 = vsyncpa [#allocation50], 0  ;;  %s17896_s7 = smov 0  }
  0xa6 LB: > { %s20416_s13 = sld [smem:[#allocation117_spill]]  ;;  %s20417_s4 = sld [smem:[#allocation135_spill]]  ;;  %s17380_s7 = sphi %s17896_s7, %s183_s7  }
  0xa7   : > { %s20418_s12 = sld [smem:[#allocation124_spill]]  ;;  %s20419_s9 = sld [smem:[#allocation109_spill]] }
  0xa8   : > { %s20420_s8 = sld [smem:[#allocation99_spill]]  ;;  %s20422_s5 = sld [smem:[#allocation126_spill]] }
  0xa9   : > { %s20421_s6 = sld [smem:[#allocation107_spill]]  ;;  %s20423_s3 = sld [smem:[#allocation96_spill]] }
  0xaa   : > { %s17902_s0 = sadd.s32 4294967295, %s17380_s7   ;;  %p12771_p0 = scmp.ge.s32.totalorder %s17380_s7, 1 }
  0xab   : > { %p1851_p1 = scmp.lt.s32.totalorder %s17380_s7, 3 }
  0xad   : > { %p17906_p2 = pnand %p12771_p0, %p1851_p1 }
  0xae   : > { %p15632_p3 = scmp.eq.s32.totalorder (!%p17906_p2), %s17902_s0, 0  ;;  %s17459_s11 = smov (!%p17906_p2), [#allocation4]  }
  0xaf   : > { %1855 = sbr.rel (%p17906_p2) target bundleno = 950 (0x3b6), region = 12  ;;  %s1944_s15 = sshll.u32 (!%p17906_p2), %s17459_s11, 4  ;;  %s1945_s15 = int_to_ptr.vmem [resolvable:$true] %s1944_s15 }
  0xb0   : > { %s17460_s16 = smov (!%p17906_p2), [#allocation7]   ;;  %s16474_s22 = scalar_lea.hbm (!%p17906_p2), %s17644_s30, 16 }
  0xb1   : > { %s1966_s18 = sshll.u32 (!%p17906_p2), %s17460_s16, 4  ;;  %p16475_p4 = scmp.ne.s32.totalorder (!%p17906_p2), %s17644_s30, %s16474_s22  ;;  %s1967_s18 = int_to_ptr.vmem [resolvable:$true] %s1966_s18 }
  0xb2   : > { %p16480_p7 = scmp.lt.u32.totalorder (!%p17906_p2), %s16474_s22, %s17644_s30 }
  0xb3   : > { %p16476_p5 = pnand (!%p17906_p2), %p16475_p4, %p15632_p3 }
  0xb5   : > { %p16477_p6 = pneg (!%p17906_p2), %p16476_p5 }
  0xb7   : > { %p16482_p8 = pnand %p16480_p7, %p16477_p6 }
  0xb9   : > { %16485 = shalt.err (!%p16482_p8)
}
  0xba   : > { %s16486_s23 = scalar_lea.vmem %s1945_s15, 16  ;;  %s16492_s26 = scalar_lea.vmem %s1945_s15, 32 }
  0xbb   : > { %p16487_p9 = scmp.ne.s32.totalorder %s1945_s15, %s16486_s23  ;;  %p16493_p12 = scmp.lt.s32.totalorder %s1945_s15, %s1945_s15 }
  0xbc   : > { %p16494_p13 = scmp.lt.s32.totalorder %s16492_s26, %s16486_s23 }
  0xbd   : > { %p16488_p10 = pnand %p16487_p9, %p15632_p3 }
  0xbe   : > { %p16495_p0 = por %p16494_p13, %p16493_p12 }
  0xbf   : > { %p16489_p11 = pneg %p16488_p10 }
  0xc1   : > { %p16496_p1 = pnand %p16495_p0, %p16489_p11 }
  0xc3   : > { %16499 = shalt.err (!%p16496_p1)
}
  0xc4   : > { %15507 = dma.hbm_to_vmem [thread:$0]  (%p15632_p3), %s17644_s30, 16, %s1945_s15, [#allocation5]  }
  0xc5   : > { %s16500_s28 = scalar_lea.hbm %s20423_s3, 16 }
  0xc6   : > { %p16501_p4 = scmp.ne.s32.totalorder %s20423_s3, %s16500_s28  ;;  %p16506_p7 = scmp.lt.u32.totalorder %s16500_s28, %s20423_s3 }
  0xc8   : > { %p16502_p5 = pnand %p16501_p4, %p15632_p3 }
  0xca   : > { %p16503_p6 = pneg %p16502_p5 }
  0xcc   : > { %p16508_p8 = pnand %p16506_p7, %p16503_p6 }
  0xce   : > { %16511 = shalt.err (!%p16508_p8)
}
  0xcf   : > { %s16512_s1 = scalar_lea.vmem %s1967_s18, 16  ;;  %s16518_s2 = scalar_lea.vmem %s1967_s18, 32 }
  0xd0   : > { %p16513_p9 = scmp.ne.s32.totalorder %s1967_s18, %s16512_s1  ;;  %p16519_p12 = scmp.lt.s32.totalorder %s1967_s18, %s1967_s18 }
  0xd1   : > { %p16520_p13 = scmp.lt.s32.totalorder %s16518_s2, %s16512_s1 }
  0xd2   : > { %p16514_p10 = pnand %p16513_p9, %p15632_p3 }
  0xd3   : > { %p16521_p0 = por %p16520_p13, %p16519_p12 }
  0xd4   : > { %p16515_p11 = pneg %p16514_p10 }
  0xd6   : > { %p16522_p1 = pnand %p16521_p0, %p16515_p11 }
  0xd8   : > { %16525 = shalt.err (!%p16522_p1)
}
  0xd9   : > { %15511 = dma.hbm_to_vmem [thread:$0]  (%p15632_p3), %s20423_s3, 16, %s1967_s18, [#allocation8]  }
  0xda   : > { %s17461_s11 = smov [#allocation10]   ;;  %s17462_s16 = smov [#allocation13]  }
  0xdb   : > { %s1988_s15 = sshll.u32 %s17461_s11, 4  ;;  %s2010_s22 = sshll.u32 %s17462_s16, 4  ;;  %s1989_s15 = int_to_ptr.vmem [resolvable:$true] %s1988_s15  ;;  %s2011_s22 = int_to_ptr.vmem [resolvable:$true] %s2010_s22 }
  0xdc   : > { %s16526_s23 = scalar_lea.hbm %s17664_s14, 16 }
  0xdd   : > { %p16527_p4 = scmp.ne.s32.totalorder %s17664_s14, %s16526_s23  ;;  %p16532_p7 = scmp.lt.u32.totalorder %s16526_s23, %s17664_s14 }
  0xdf   : > { %p16528_p5 = pnand %p16527_p4, %p15632_p3 }
  0xe1   : > { %p16529_p6 = pneg %p16528_p5 }
  0xe3   : > { %p16534_p8 = pnand %p16532_p7, %p16529_p6 }
  0xe5   : > { %16537 = shalt.err (!%p16534_p8)
}
  0xe6   : > { %s16538_s26 = scalar_lea.vmem %s1989_s15, 16  ;;  %s16544_s18 = scalar_lea.vmem %s1989_s15, 32 }
  0xe7   : > { %p16539_p9 = scmp.ne.s32.totalorder %s1989_s15, %s16538_s26  ;;  %p16545_p12 = scmp.lt.s32.totalorder %s1989_s15, %s1989_s15 }
  0xe8   : > { %p16546_p13 = scmp.lt.s32.totalorder %s16544_s18, %s16538_s26 }
  0xe9   : > { %p16540_p10 = pnand %p16539_p9, %p15632_p3 }
  0xea   : > { %p16547_p0 = por %p16546_p13, %p16545_p12 }
  0xeb   : > { %p16541_p11 = pneg %p16540_p10 }
  0xed   : > { %p16548_p1 = pnand %p16547_p0, %p16541_p11 }
  0xef   : > { %16551 = shalt.err (!%p16548_p1)
}
  0xf0   : > { %15515 = dma.hbm_to_vmem [thread:$0]  (%p15632_p3), %s17664_s14, 16, %s1989_s15, [#allocation11]  }
  0xf1   : > { %s16552_s28 = scalar_lea.hbm %s20420_s8, 16 }
  0xf2   : > { %p16553_p4 = scmp.ne.s32.totalorder %s20420_s8, %s16552_s28  ;;  %p16558_p7 = scmp.lt.u32.totalorder %s16552_s28, %s20420_s8 }
  0xf4   : > { %p16554_p5 = pnand %p16553_p4, %p15632_p3 }
  0xf6   : > { %p16555_p6 = pneg %p16554_p5 }
  0xf8   : > { %p16560_p8 = pnand %p16558_p7, %p16555_p6 }
  0xfa   : > { %16563 = shalt.err (!%p16560_p8)
}
  0xfb   : > { %s16564_s1 = scalar_lea.vmem %s2011_s22, 16  ;;  %s16570_s2 = scalar_lea.vmem %s2011_s22, 32 }
  0xfc   : > { %p16565_p9 = scmp.ne.s32.totalorder %s2011_s22, %s16564_s1  ;;  %p16571_p12 = scmp.lt.s32.totalorder %s2011_s22, %s2011_s22 }
  0xfd   : > { %p16572_p13 = scmp.lt.s32.totalorder %s16570_s2, %s16564_s1 }
  0xfe   : > { %p16566_p10 = pnand %p16565_p9, %p15632_p3 }
  0xff   : > { %p16573_p0 = por %p16572_p13, %p16571_p12 }
 0x100   : > { %p16567_p11 = pneg %p16566_p10 }
 0x102   : > { %p16574_p1 = pnand %p16573_p0, %p16567_p11 }
 0x104   : > { %16577 = shalt.err (!%p16574_p1)
}
 0x105   : > { %15519 = dma.hbm_to_vmem [thread:$0]  (%p15632_p3), %s20420_s8, 16, %s2011_s22, [#allocation14]  }
 0x106   : > { %s17463_s11 = smov [#allocation16]   ;;  %s17464_s16 = smov [#allocation19]  }
 0x107   : > { %s2047_s15 = sshll.u32 %s17463_s11, 4  ;;  %s2069_s23 = sshll.u32 %s17464_s16, 4  ;;  %s2048_s15 = int_to_ptr.vmem [resolvable:$true] %s2047_s15  ;;  %s2070_s23 = int_to_ptr.vmem [resolvable:$true] %s2069_s23 }
 0x108   : > { %s16578_s26 = scalar_lea.hbm %s17709_s20, 16 }
 0x109   : > { %p16579_p4 = scmp.ne.s32.totalorder %s17709_s20, %s16578_s26  ;;  %p16584_p7 = scmp.lt.u32.totalorder %s16578_s26, %s17709_s20 }
 0x10b   : > { %p16580_p5 = pnand %p16579_p4, %p15632_p3 }
 0x10d   : > { %p16581_p6 = pneg %p16580_p5 }
 0x10f   : > { %p16586_p8 = pnand %p16584_p7, %p16581_p6 }
 0x111   : > { %16589 = shalt.err (!%p16586_p8)
}
 0x112   : > { %s16590_s18 = scalar_lea.vmem %s2048_s15, 16  ;;  %s16596_s22 = scalar_lea.vmem %s2048_s15, 32 }
 0x113   : > { %p16591_p9 = scmp.ne.s32.totalorder %s2048_s15, %s16590_s18  ;;  %p16597_p12 = scmp.lt.s32.totalorder %s2048_s15, %s2048_s15 }
 0x114   : > { %p16598_p13 = scmp.lt.s32.totalorder %s16596_s22, %s16590_s18 }
 0x115   : > { %p16592_p10 = pnand %p16591_p9, %p15632_p3 }
 0x116   : > { %p16599_p0 = por %p16598_p13, %p16597_p12 }
 0x117   : > { %p16593_p11 = pneg %p16592_p10 }
 0x119   : > { %p16600_p1 = pnand %p16599_p0, %p16593_p11 }
 0x11b   : > { %16603 = shalt.err (!%p16600_p1)
}
 0x11c   : > { %15523 = dma.hbm_to_vmem [thread:$0]  (%p15632_p3), %s17709_s20, 16, %s2048_s15, [#allocation17]  }
 0x11d   : > { %s16604_s28 = scalar_lea.hbm %s20421_s6, 16 }
 0x11e   : > { %p16605_p4 = scmp.ne.s32.totalorder %s20421_s6, %s16604_s28  ;;  %p16610_p7 = scmp.lt.u32.totalorder %s16604_s28, %s20421_s6 }
 0x120   : > { %p16606_p5 = pnand %p16605_p4, %p15632_p3 }
 0x122   : > { %p16607_p6 = pneg %p16606_p5 }
 0x124   : > { %p16612_p8 = pnand %p16610_p7, %p16607_p6 }
 0x126   : > { %16615 = shalt.err (!%p16612_p8)
}
 0x127   : > { %s16616_s1 = scalar_lea.vmem %s2070_s23, 16  ;;  %s16622_s2 = scalar_lea.vmem %s2070_s23, 32 }
 0x128   : > { %p16617_p9 = scmp.ne.s32.totalorder %s2070_s23, %s16616_s1  ;;  %p16623_p12 = scmp.lt.s32.totalorder %s2070_s23, %s2070_s23 }
 0x129   : > { %p16624_p13 = scmp.lt.s32.totalorder %s16622_s2, %s16616_s1 }
 0x12a   : > { %p16618_p10 = pnand %p16617_p9, %p15632_p3 }
 0x12b   : > { %p16625_p0 = por %p16624_p13, %p16623_p12 }
 0x12c   : > { %p16619_p11 = pneg %p16618_p10 }
 0x12e   : > { %p16626_p1 = pnand %p16625_p0, %p16619_p11 }
 0x130   : > { %16629 = shalt.err (!%p16626_p1)
}
 0x131   : > { %15527 = dma.hbm_to_vmem [thread:$0]  (%p15632_p3), %s20421_s6, 16, %s2070_s23, [#allocation20]  }
 0x132   : > { %s17465_s11 = smov [#allocation22]   ;;  %s17466_s16 = smov [#allocation25]  }
 0x133   : > { %s2091_s15 = sshll.u32 %s17465_s11, 4  ;;  %s2122_s26 = sshll.u32 %s17466_s16, 4  ;;  %s2092_s15 = int_to_ptr.vmem [resolvable:$true] %s2091_s15  ;;  %s2123_s26 = int_to_ptr.vmem [resolvable:$true] %s2122_s26 }
 0x134   : > { %s16630_s18 = scalar_lea.hbm %s20419_s9, 16 }
 0x135   : > { %p16631_p4 = scmp.ne.s32.totalorder %s20419_s9, %s16630_s18  ;;  %p16636_p7 = scmp.lt.u32.totalorder %s16630_s18, %s20419_s9 }
 0x137   : > { %p16632_p5 = pnand %p16631_p4, %p15632_p3 }
 0x139   : > { %p16633_p6 = pneg %p16632_p5 }
 0x13b   : > { %p16638_p8 = pnand %p16636_p7, %p16633_p6 }
 0x13d   : > { %16641 = shalt.err (!%p16638_p8)
}
 0x13e   : > { %s16642_s22 = scalar_lea.vmem %s2092_s15, 16  ;;  %s16648_s23 = scalar_lea.vmem %s2092_s15, 32 }
 0x13f   : > { %p16643_p9 = scmp.ne.s32.totalorder %s2092_s15, %s16642_s22  ;;  %p16649_p12 = scmp.lt.s32.totalorder %s2092_s15, %s2092_s15 }
 0x140   : > { %p16650_p13 = scmp.lt.s32.totalorder %s16648_s23, %s16642_s22 }
 0x141   : > { %p16644_p10 = pnand %p16643_p9, %p15632_p3 }
 0x142   : > { %p16651_p0 = por %p16650_p13, %p16649_p12 }
 0x143   : > { %p16645_p11 = pneg %p16644_p10 }
 0x145   : > { %p16652_p1 = pnand %p16651_p0, %p16645_p11 }
 0x147   : > { %16655 = shalt.err (!%p16652_p1)
}
 0x148   : > { %15531 = dma.hbm_to_vmem [thread:$0]  (%p15632_p3), %s20419_s9, 16, %s2092_s15, [#allocation23]  }
 0x149   : > { %s16656_s28 = scalar_lea.hbm %s17754_s17, 16 }
 0x14a   : > { %p16657_p4 = scmp.ne.s32.totalorder %s17754_s17, %s16656_s28  ;;  %p16662_p7 = scmp.lt.u32.totalorder %s16656_s28, %s17754_s17 }
 0x14c   : > { %p16658_p5 = pnand %p16657_p4, %p15632_p3 }
 0x14e   : > { %p16659_p6 = pneg %p16658_p5 }
 0x150   : > { %p16664_p8 = pnand %p16662_p7, %p16659_p6 }
 0x152   : > { %16667 = shalt.err (!%p16664_p8)
}
 0x153   : > { %s16668_s1 = scalar_lea.vmem %s2123_s26, 16  ;;  %s16674_s2 = scalar_lea.vmem %s2123_s26, 32 }
 0x154   : > { %p16669_p9 = scmp.ne.s32.totalorder %s2123_s26, %s16668_s1  ;;  %p16675_p12 = scmp.lt.s32.totalorder %s2123_s26, %s2123_s26 }
 0x155   : > { %p16676_p13 = scmp.lt.s32.totalorder %s16674_s2, %s16668_s1 }
 0x156   : > { %p16670_p10 = pnand %p16669_p9, %p15632_p3 }
 0x157   : > { %p16677_p0 = por %p16676_p13, %p16675_p12 }
 0x158   : > { %p16671_p11 = pneg %p16670_p10 }
 0x15a   : > { %p16678_p1 = pnand %p16677_p0, %p16671_p11 }
 0x15c   : > { %16681 = shalt.err (!%p16678_p1)
}
 0x15d   : > { %15535 = dma.hbm_to_vmem [thread:$0]  (%p15632_p3), %s17754_s17, 16, %s2123_s26, [#allocation26]  }
 0x15e   : > { %s17467_s11 = smov [#allocation28]   ;;  %s17468_s16 = smov [#allocation31]  }
 0x15f   : > { %s2144_s15 = sshll.u32 %s17467_s11, 4  ;;  %s2166_s18 = sshll.u32 %s17468_s16, 4  ;;  %s2145_s15 = int_to_ptr.vmem [resolvable:$true] %s2144_s15  ;;  %s2167_s18 = int_to_ptr.vmem [resolvable:$true] %s2166_s18 }
 0x160   : > { %s16682_s22 = scalar_lea.hbm %s17764_s21, 16 }
 0x161   : > { %p16683_p4 = scmp.ne.s32.totalorder %s17764_s21, %s16682_s22  ;;  %p16688_p7 = scmp.lt.u32.totalorder %s16682_s22, %s17764_s21 }
 0x163   : > { %p16684_p5 = pnand %p16683_p4, %p15632_p3 }
 0x165   : > { %p16685_p6 = pneg %p16684_p5 }
 0x167   : > { %p16690_p8 = pnand %p16688_p7, %p16685_p6 }
 0x169   : > { %16693 = shalt.err (!%p16690_p8)
}
 0x16a   : > { %s16694_s23 = scalar_lea.vmem %s2145_s15, 16  ;;  %s16700_s26 = scalar_lea.vmem %s2145_s15, 32 }
 0x16b   : > { %p16695_p9 = scmp.ne.s32.totalorder %s2145_s15, %s16694_s23  ;;  %p16701_p12 = scmp.lt.s32.totalorder %s2145_s15, %s2145_s15 }
 0x16c   : > { %p16702_p13 = scmp.lt.s32.totalorder %s16700_s26, %s16694_s23 }
 0x16d   : > { %p16696_p10 = pnand %p16695_p9, %p15632_p3 }
 0x16e   : > { %p16703_p0 = por %p16702_p13, %p16701_p12 }
 0x16f   : > { %p16697_p11 = pneg %p16696_p10 }
 0x171   : > { %p16704_p1 = pnand %p16703_p0, %p16697_p11 }
 0x173   : > { %16707 = shalt.err (!%p16704_p1)
}
 0x174   : > { %15539 = dma.hbm_to_vmem [thread:$0]  (%p15632_p3), %s17764_s21, 16, %s2145_s15, [#allocation29]  }
 0x175   : > { %s16708_s28 = scalar_lea.hbm %s17774_s27, 16 }
 0x176   : > { %p16709_p4 = scmp.ne.s32.totalorder %s17774_s27, %s16708_s28  ;;  %p16714_p7 = scmp.lt.u32.totalorder %s16708_s28, %s17774_s27 }
 0x178   : > { %p16710_p5 = pnand %p16709_p4, %p15632_p3 }
 0x17a   : > { %p16711_p6 = pneg %p16710_p5 }
 0x17c   : > { %p16716_p8 = pnand %p16714_p7, %p16711_p6 }
 0x17e   : > { %16719 = shalt.err (!%p16716_p8)
}
 0x17f   : > { %s16720_s1 = scalar_lea.vmem %s2167_s18, 16  ;;  %s16726_s2 = scalar_lea.vmem %s2167_s18, 32 }
 0x180   : > { %p16721_p9 = scmp.ne.s32.totalorder %s2167_s18, %s16720_s1  ;;  %p16727_p12 = scmp.lt.s32.totalorder %s2167_s18, %s2167_s18 }
 0x181   : > { %p16728_p13 = scmp.lt.s32.totalorder %s16726_s2, %s16720_s1 }
 0x182   : > { %p16722_p10 = pnand %p16721_p9, %p15632_p3 }
 0x183   : > { %p16729_p0 = por %p16728_p13, %p16727_p12 }
 0x184   : > { %p16723_p11 = pneg %p16722_p10 }
 0x186   : > { %p16730_p1 = pnand %p16729_p0, %p16723_p11 }
 0x188   : > { %16733 = shalt.err (!%p16730_p1)
}
 0x189   : > { %15543 = dma.hbm_to_vmem [thread:$0]  (%p15632_p3), %s17774_s27, 16, %s2167_s18, [#allocation32]  }
 0x18a   : > { %s17469_s11 = smov [#allocation34]   ;;  %s17470_s16 = smov [#allocation37]  }
 0x18b   : > { %s2188_s15 = sshll.u32 %s17469_s11, 4  ;;  %s2225_s22 = sshll.u32 %s17470_s16, 4  ;;  %s2189_s15 = int_to_ptr.vmem [resolvable:$true] %s2188_s15  ;;  %s2226_s22 = int_to_ptr.vmem [resolvable:$true] %s2225_s22 }
 0x18c   : > { %s16734_s23 = scalar_lea.hbm %s20416_s13, 16 }
 0x18d   : > { %p16735_p4 = scmp.ne.s32.totalorder %s20416_s13, %s16734_s23  ;;  %p16740_p7 = scmp.lt.u32.totalorder %s16734_s23, %s20416_s13 }
 0x18f   : > { %p16736_p5 = pnand %p16735_p4, %p15632_p3 }
 0x191   : > { %p16737_p6 = pneg %p16736_p5 }
 0x193   : > { %p16742_p8 = pnand %p16740_p7, %p16737_p6 }
 0x195   : > { %16745 = shalt.err (!%p16742_p8)
}
 0x196   : > { %s16746_s26 = scalar_lea.vmem %s2189_s15, 16  ;;  %s16752_s18 = scalar_lea.vmem %s2189_s15, 32 }
 0x197   : > { %p16747_p9 = scmp.ne.s32.totalorder %s2189_s15, %s16746_s26  ;;  %p16753_p12 = scmp.lt.s32.totalorder %s2189_s15, %s2189_s15 }
 0x198   : > { %p16754_p13 = scmp.lt.s32.totalorder %s16752_s18, %s16746_s26 }
 0x199   : > { %p16748_p10 = pnand %p16747_p9, %p15632_p3 }
 0x19a   : > { %p16755_p0 = por %p16754_p13, %p16753_p12 }
 0x19b   : > { %p16749_p11 = pneg %p16748_p10 }
 0x19d   : > { %p16756_p1 = pnand %p16755_p0, %p16749_p11 }
 0x19f   : > { %16759 = shalt.err (!%p16756_p1)
}
 0x1a0   : > { %15547 = dma.hbm_to_vmem [thread:$0]  (%p15632_p3), %s20416_s13, 16, %s2189_s15, [#allocation35]  }
 0x1a1   : > { %s16760_s28 = scalar_lea.hbm %s20418_s12, 16 }
 0x1a2   : > { %p16761_p4 = scmp.ne.s32.totalorder %s20418_s12, %s16760_s28  ;;  %p16766_p7 = scmp.lt.u32.totalorder %s16760_s28, %s20418_s12 }
 0x1a4   : > { %p16762_p5 = pnand %p16761_p4, %p15632_p3 }
 0x1a6   : > { %p16763_p6 = pneg %p16762_p5 }
 0x1a8   : > { %p16768_p8 = pnand %p16766_p7, %p16763_p6 }
 0x1aa   : > { %16771 = shalt.err (!%p16768_p8)
}
 0x1ab   : > { %s16772_s1 = scalar_lea.vmem %s2226_s22, 16  ;;  %s16778_s2 = scalar_lea.vmem %s2226_s22, 32 }
 0x1ac   : > { %p16773_p9 = scmp.ne.s32.totalorder %s2226_s22, %s16772_s1  ;;  %p16779_p12 = scmp.lt.s32.totalorder %s2226_s22, %s2226_s22 }
 0x1ad   : > { %p16780_p13 = scmp.lt.s32.totalorder %s16778_s2, %s16772_s1 }
 0x1ae   : > { %p16774_p10 = pnand %p16773_p9, %p15632_p3 }
 0x1af   : > { %p16781_p0 = por %p16780_p13, %p16779_p12 }
 0x1b0   : > { %p16775_p11 = pneg %p16774_p10 }
 0x1b2   : > { %p16782_p1 = pnand %p16781_p0, %p16775_p11 }
 0x1b4   : > { %16785 = shalt.err (!%p16782_p1)
}
 0x1b5   : > { %15551 = dma.hbm_to_vmem [thread:$0]  (%p15632_p3), %s20418_s12, 16, %s2226_s22, [#allocation38]  }
 0x1b6   : > { %s17471_s11 = smov [#allocation40]   ;;  %s17472_s16 = smov [#allocation43]  }
 0x1b7   : > { %s2247_s15 = sshll.u32 %s17471_s11, 4  ;;  %s2269_s23 = sshll.u32 %s17472_s16, 4  ;;  %s2248_s15 = int_to_ptr.vmem [resolvable:$true] %s2247_s15  ;;  %s2270_s23 = int_to_ptr.vmem [resolvable:$true] %s2269_s23 }
 0x1b8   : > { %s16786_s26 = scalar_lea.hbm %s20422_s5, 16 }
 0x1b9   : > { %p16787_p4 = scmp.ne.s32.totalorder %s20422_s5, %s16786_s26  ;;  %p16792_p7 = scmp.lt.u32.totalorder %s16786_s26, %s20422_s5 }
 0x1bb   : > { %p16788_p5 = pnand %p16787_p4, %p15632_p3 }
 0x1bd   : > { %p16789_p6 = pneg %p16788_p5 }
 0x1bf   : > { %p16794_p8 = pnand %p16792_p7, %p16789_p6 }
 0x1c1   : > { %16797 = shalt.err (!%p16794_p8)
}
 0x1c2   : > { %s16798_s18 = scalar_lea.vmem %s2248_s15, 16  ;;  %s16804_s22 = scalar_lea.vmem %s2248_s15, 32 }
 0x1c3   : > { %p16799_p9 = scmp.ne.s32.totalorder %s2248_s15, %s16798_s18  ;;  %p16805_p12 = scmp.lt.s32.totalorder %s2248_s15, %s2248_s15 }
 0x1c4   : > { %p16806_p13 = scmp.lt.s32.totalorder %s16804_s22, %s16798_s18 }
 0x1c5   : > { %p16800_p10 = pnand %p16799_p9, %p15632_p3 }
 0x1c6   : > { %p16807_p0 = por %p16806_p13, %p16805_p12 }
 0x1c7   : > { %p16801_p11 = pneg %p16800_p10 }
 0x1c9   : > { %p16808_p1 = pnand %p16807_p0, %p16801_p11 }
 0x1cb   : > { %16811 = shalt.err (!%p16808_p1)
}
 0x1cc   : > { %15555 = dma.hbm_to_vmem [thread:$0]  (%p15632_p3), %s20422_s5, 16, %s2248_s15, [#allocation41]  }
 0x1cd   : > { %s16812_s28 = scalar_lea.hbm %s17839_s25, 16 }
 0x1ce   : > { %p16813_p4 = scmp.ne.s32.totalorder %s17839_s25, %s16812_s28  ;;  %p16818_p7 = scmp.lt.u32.totalorder %s16812_s28, %s17839_s25 }
 0x1d0   : > { %p16814_p5 = pnand %p16813_p4, %p15632_p3 }
 0x1d2   : > { %p16815_p6 = pneg %p16814_p5 }
 0x1d4   : > { %p16820_p8 = pnand %p16818_p7, %p16815_p6 }
 0x1d6   : > { %16823 = shalt.err (!%p16820_p8)
}
 0x1d7   : > { %s16824_s1 = scalar_lea.vmem %s2270_s23, 16  ;;  %s16830_s2 = scalar_lea.vmem %s2270_s23, 32 }
 0x1d8   : > { %p16825_p9 = scmp.ne.s32.totalorder %s2270_s23, %s16824_s1  ;;  %p16831_p12 = scmp.lt.s32.totalorder %s2270_s23, %s2270_s23 }
 0x1d9   : > { %p16832_p13 = scmp.lt.s32.totalorder %s16830_s2, %s16824_s1 }
 0x1da   : > { %p16826_p10 = pnand %p16825_p9, %p15632_p3 }
 0x1db   : > { %p16833_p0 = por %p16832_p13, %p16831_p12 }
 0x1dc   : > { %p16827_p11 = pneg %p16826_p10 }
 0x1de   : > { %p16834_p1 = pnand %p16833_p0, %p16827_p11 }
 0x1e0   : > { %16837 = shalt.err (!%p16834_p1)
}
 0x1e1   : > { %s20425_s11 = sld [smem:[#allocation129_spill]]  ;;  %s17473_s15 = smov [#allocation46]  }
 0x1e2   : > { %15559 = dma.hbm_to_vmem [thread:$0]  (%p15632_p3), %s17839_s25, 16, %s2270_s23, [#allocation44]  }
 0x1e3   : > { %s2291_s16 = sshll.u32 %s17473_s15, 4  ;;  %s2292_s16 = int_to_ptr.vmem [resolvable:$true] %s2291_s16 }
 0x1e7   : > { %s16838_s26 = scalar_lea.hbm %s20425_s11, 16 }
 0x1e8   : > { %p16839_p4 = scmp.ne.s32.totalorder %s20425_s11, %s16838_s26  ;;  %p16844_p7 = scmp.lt.u32.totalorder %s16838_s26, %s20425_s11 }
 0x1ea   : > { %p16840_p5 = pnand %p16839_p4, %p15632_p3 }
 0x1ec   : > { %p16841_p6 = pneg %p16840_p5 }
 0x1ee   : > { %p16846_p8 = pnand %p16844_p7, %p16841_p6 }
 0x1f0   : > { %16849 = shalt.err (!%p16846_p8)
}
 0x1f1   : > { %s16850_s18 = scalar_lea.vmem %s2292_s16, 16  ;;  %s16856_s22 = scalar_lea.vmem %s2292_s16, 32 }
 0x1f2   : > { %p16851_p9 = scmp.ne.s32.totalorder %s2292_s16, %s16850_s18  ;;  %p16857_p12 = scmp.lt.s32.totalorder %s2292_s16, %s2292_s16 }
 0x1f3   : > { %p16858_p13 = scmp.lt.s32.totalorder %s16856_s22, %s16850_s18 }
 0x1f4   : > { %p16852_p10 = pnand %p16851_p9, %p15632_p3 }
 0x1f5   : > { %p16859_p0 = por %p16858_p13, %p16857_p12 }
 0x1f6   : > { %p16853_p11 = pneg %p16852_p10 }
 0x1f8   : > { %p16860_p1 = pnand %p16859_p0, %p16853_p11 }
 0x1fa   : > { %16863 = shalt.err (!%p16860_p1)
}
 0x1fb   : > { %s20426_s23 = sld [smem:[#allocation94_spill]]  ;;  %s17474_s28 = smov [#allocation2]  }
 0x1fc   : > { %15563 = dma.hbm_to_vmem [thread:$0]  (%p15632_p3), %s20425_s11, 16, %s2292_s16, [#allocation47]  }
 0x1fd   : > { %s1933_s1 = sshll.u32 %s17474_s28, 4  ;;  %s17475_s2 = smov [#allocation6]   ;;  %s1934_s1 = int_to_ptr.vmem [resolvable:$true] %s1933_s1 }
 0x1fe   : > { %s1955_s15 = sshll.u32 %s17475_s2, 4  ;;  %s1956_s15 = int_to_ptr.vmem [resolvable:$true] %s1955_s15 }
 0x201   : > { %s16864_s26 = scalar_lea.hbm %s20426_s23, 16 }
 0x202   : > { %p16865_p4 = scmp.ne.s32.totalorder %s20426_s23, %s16864_s26  ;;  %p16870_p7 = scmp.lt.u32.totalorder %s16864_s26, %s20426_s23 }
 0x204   : > { %p16866_p5 = pnand %p16865_p4, %p15632_p3 }
 0x206   : > { %p16867_p6 = pneg %p16866_p5 }
 0x208   : > { %p16872_p8 = pnand %p16870_p7, %p16867_p6 }
 0x20a   : > { %16875 = shalt.err (!%p16872_p8)
}
 0x20b   : > { %s16876_s18 = scalar_lea.vmem %s1934_s1, 16  ;;  %s16882_s16 = scalar_lea.vmem %s1934_s1, 32 }
 0x20c   : > { %p16877_p9 = scmp.ne.s32.totalorder %s1934_s1, %s16876_s18  ;;  %p16883_p12 = scmp.lt.s32.totalorder %s1934_s1, %s1934_s1 }
 0x20d   : > { %p16884_p13 = scmp.lt.s32.totalorder %s16882_s16, %s16876_s18 }
 0x20e   : > { %p16878_p10 = pnand %p16877_p9, %p15632_p3 }
 0x20f   : > { %p16885_p0 = por %p16884_p13, %p16883_p12 }
 0x210   : > { %p16879_p11 = pneg %p16878_p10 }
 0x212   : > { %p16886_p1 = pnand %p16885_p0, %p16879_p11 }
 0x214   : > { %16889 = shalt.err (!%p16886_p1)
}
 0x215   : > { %s20427_s22 = sld [smem:[#allocation95_spill]] }
 0x216   : > { %15505 = dma.hbm_to_vmem [thread:$0]  (%p15632_p3), %s20426_s23, 16, %s1934_s1, [#allocation3]  }
 0x21b   : > { %s16890_s28 = scalar_lea.hbm %s20427_s22, 16 }
 0x21c   : > { %p16891_p4 = scmp.ne.s32.totalorder %s20427_s22, %s16890_s28  ;;  %p16896_p7 = scmp.lt.u32.totalorder %s16890_s28, %s20427_s22 }
 0x21e   : > { %p16892_p5 = pnand %p16891_p4, %p15632_p3 }
 0x220   : > { %p16893_p6 = pneg %p16892_p5 }
 0x222   : > { %p16898_p8 = pnand %p16896_p7, %p16893_p6 }
 0x224   : > { %16901 = shalt.err (!%p16898_p8)
}
 0x225   : > { %s16902_s2 = scalar_lea.vmem %s1956_s15, 16  ;;  %s16908_s26 = scalar_lea.vmem %s1956_s15, 32 }
 0x226   : > { %p16903_p9 = scmp.ne.s32.totalorder %s1956_s15, %s16902_s2  ;;  %p16909_p12 = scmp.lt.s32.totalorder %s1956_s15, %s1956_s15 }
 0x227   : > { %p16910_p13 = scmp.lt.s32.totalorder %s16908_s26, %s16902_s2 }
 0x228   : > { %p16904_p10 = pnand %p16903_p9, %p15632_p3 }
 0x229   : > { %p16911_p0 = por %p16910_p13, %p16909_p12 }
 0x22a   : > { %p16905_p11 = pneg %p16904_p10 }
 0x22c   : > { %p16912_p1 = pnand %p16911_p0, %p16905_p11 }
 0x22e   : > { %16915 = shalt.err (!%p16912_p1)
}
 0x22f   : > { %s20428_s1 = sld [smem:[#allocation97_spill]]  ;;  %s17476_s18 = smov [#allocation9]  }
 0x230   : > { %15509 = dma.hbm_to_vmem [thread:$0]  (%p15632_p3), %s20427_s22, 16, %s1956_s15, [#allocation5]  }
 0x231   : > { %s1977_s16 = sshll.u32 %s17476_s18, 4  ;;  %s17477_s28 = smov [#allocation12]   ;;  %s1978_s16 = int_to_ptr.vmem [resolvable:$true] %s1977_s16 }
 0x232   : > { %s1999_s3 = sshll.u32 %s17477_s28, 4  ;;  %s2000_s3 = int_to_ptr.vmem [resolvable:$true] %s1999_s3 }
 0x235   : > { %s16916_s5 = scalar_lea.hbm %s20428_s1, 16 }
 0x236   : > { %p16917_p4 = scmp.ne.s32.totalorder %s20428_s1, %s16916_s5  ;;  %p16922_p7 = scmp.lt.u32.totalorder %s16916_s5, %s20428_s1 }
 0x238   : > { %p16918_p5 = pnand %p16917_p4, %p15632_p3 }
 0x23a   : > { %p16919_p6 = pneg %p16918_p5 }
 0x23c   : > { %p16924_p8 = pnand %p16922_p7, %p16919_p6 }
 0x23e   : > { %16927 = shalt.err (!%p16924_p8)
}
 0x23f   : > { %s16928_s2 = scalar_lea.vmem %s1978_s16, 16  ;;  %s16934_s15 = scalar_lea.vmem %s1978_s16, 32 }
 0x240   : > { %p16929_p9 = scmp.ne.s32.totalorder %s1978_s16, %s16928_s2  ;;  %p16935_p12 = scmp.lt.s32.totalorder %s1978_s16, %s1978_s16 }
 0x241   : > { %p16936_p13 = scmp.lt.s32.totalorder %s16934_s15, %s16928_s2 }
 0x242   : > { %p16930_p10 = pnand %p16929_p9, %p15632_p3 }
 0x243   : > { %p16937_p0 = por %p16936_p13, %p16935_p12 }
 0x244   : > { %p16931_p11 = pneg %p16930_p10 }
 0x246   : > { %p16938_p1 = pnand %p16937_p0, %p16931_p11 }
 0x248   : > { %16941 = shalt.err (!%p16938_p1)
}
 0x249   : > { %s20429_s26 = sld [smem:[#allocation98_spill]] }
 0x24a   : > { %15513 = dma.hbm_to_vmem [thread:$0]  (%p15632_p3), %s20428_s1, 16, %s1978_s16, [#allocation8]  }
 0x24f   : > { %s16942_s5 = scalar_lea.hbm %s20429_s26, 16 }
 0x250   : > { %p16943_p4 = scmp.ne.s32.totalorder %s20429_s26, %s16942_s5  ;;  %p16948_p7 = scmp.lt.u32.totalorder %s16942_s5, %s20429_s26 }
 0x252   : > { %p16944_p5 = pnand %p16943_p4, %p15632_p3 }
 0x254   : > { %p16945_p6 = pneg %p16944_p5 }
 0x256   : > { %p16950_p8 = pnand %p16948_p7, %p16945_p6 }
 0x258   : > { %16953 = shalt.err (!%p16950_p8)
}
 0x259   : > { %s16954_s18 = scalar_lea.vmem %s2000_s3, 16  ;;  %s16960_s28 = scalar_lea.vmem %s2000_s3, 32 }
 0x25a   : > { %p16955_p9 = scmp.ne.s32.totalorder %s2000_s3, %s16954_s18  ;;  %p16961_p12 = scmp.lt.s32.totalorder %s2000_s3, %s2000_s3 }
 0x25b   : > { %p16962_p13 = scmp.lt.s32.totalorder %s16960_s28, %s16954_s18 }
 0x25c   : > { %p16956_p10 = pnand %p16955_p9, %p15632_p3 }
 0x25d   : > { %p16963_p0 = por %p16962_p13, %p16961_p12 }
 0x25e   : > { %p16957_p11 = pneg %p16956_p10 }
 0x260   : > { %p16964_p1 = pnand %p16963_p0, %p16957_p11 }
 0x262   : > { %16967 = shalt.err (!%p16964_p1)
}
 0x263   : > { %s20430_s16 = sld [smem:[#allocation100_spill]]  ;;  %s17478_s2 = smov [#allocation15]  }
 0x264   : > { %15517 = dma.hbm_to_vmem [thread:$0]  (%p15632_p3), %s20429_s26, 16, %s2000_s3, [#allocation11]  }
 0x265   : > { %s2021_s15 = sshll.u32 %s17478_s2, 4  ;;  %s17479_s5 = smov [#allocation18]   ;;  %s2022_s15 = int_to_ptr.vmem [resolvable:$true] %s2021_s15 }
 0x266   : > { %s2058_s1 = sshll.u32 %s17479_s5, 4  ;;  %s2059_s1 = int_to_ptr.vmem [resolvable:$true] %s2058_s1 }
 0x269   : > { %s16968_s6 = scalar_lea.hbm %s20430_s16, 16 }
 0x26a   : > { %p16969_p4 = scmp.ne.s32.totalorder %s20430_s16, %s16968_s6  ;;  %p16974_p7 = scmp.lt.u32.totalorder %s16968_s6, %s20430_s16 }
 0x26c   : > { %p16970_p5 = pnand %p16969_p4, %p15632_p3 }
 0x26e   : > { %p16971_p6 = pneg %p16970_p5 }
 0x270   : > { %p16976_p8 = pnand %p16974_p7, %p16971_p6 }
 0x272   : > { %16979 = shalt.err (!%p16976_p8)
}
 0x273   : > { %s16980_s18 = scalar_lea.vmem %s2022_s15, 16  ;;  %s16986_s3 = scalar_lea.vmem %s2022_s15, 32 }
 0x274   : > { %p16981_p9 = scmp.ne.s32.totalorder %s2022_s15, %s16980_s18  ;;  %p16987_p12 = scmp.lt.s32.totalorder %s2022_s15, %s2022_s15 }
 0x275   : > { %p16988_p13 = scmp.lt.s32.totalorder %s16986_s3, %s16980_s18 }
 0x276   : > { %p16982_p10 = pnand %p16981_p9, %p15632_p3 }
 0x277   : > { %p16989_p0 = por %p16988_p13, %p16987_p12 }
 0x278   : > { %p16983_p11 = pneg %p16982_p10 }
 0x27a   : > { %p16990_p1 = pnand %p16989_p0, %p16983_p11 }
 0x27c   : > { %16993 = shalt.err (!%p16990_p1)
}
 0x27d   : > { %s20431_s28 = sld [smem:[#allocation106_spill]] }
 0x27e   : > { %15521 = dma.hbm_to_vmem [thread:$0]  (%p15632_p3), %s20430_s16, 16, %s2022_s15, [#allocation14]  }
 0x283   : > { %s16994_s6 = scalar_lea.hbm %s20431_s28, 16 }
 0x284   : > { %p16995_p4 = scmp.ne.s32.totalorder %s20431_s28, %s16994_s6  ;;  %p17000_p7 = scmp.lt.u32.totalorder %s16994_s6, %s20431_s28 }
 0x286   : > { %p16996_p5 = pnand %p16995_p4, %p15632_p3 }
 0x288   : > { %p16997_p6 = pneg %p16996_p5 }
 0x28a   : > { %p17002_p8 = pnand %p17000_p7, %p16997_p6 }
 0x28c   : > { %17005 = shalt.err (!%p17002_p8)
}
 0x28d   : > { %s17006_s2 = scalar_lea.vmem %s2059_s1, 16  ;;  %s17012_s5 = scalar_lea.vmem %s2059_s1, 32 }
 0x28e   : > { %p17007_p9 = scmp.ne.s32.totalorder %s2059_s1, %s17006_s2  ;;  %p17013_p12 = scmp.lt.s32.totalorder %s2059_s1, %s2059_s1 }
 0x28f   : > { %p17014_p13 = scmp.lt.s32.totalorder %s17012_s5, %s17006_s2 }
 0x290   : > { %p17008_p10 = pnand %p17007_p9, %p15632_p3 }
 0x291   : > { %p17015_p0 = por %p17014_p13, %p17013_p12 }
 0x292   : > { %p17009_p11 = pneg %p17008_p10 }
 0x294   : > { %p17016_p1 = pnand %p17015_p0, %p17009_p11 }
 0x296   : > { %17019 = shalt.err (!%p17016_p1)
}
 0x297   : > { %s20432_s15 = sld [smem:[#allocation108_spill]]  ;;  %s17480_s18 = smov [#allocation21]  }
 0x298   : > { %15525 = dma.hbm_to_vmem [thread:$0]  (%p15632_p3), %s20431_s28, 16, %s2059_s1, [#allocation17]  }
 0x299   : > { %s2080_s3 = sshll.u32 %s17480_s18, 4  ;;  %s17481_s6 = smov [#allocation24]   ;;  %s2081_s3 = int_to_ptr.vmem [resolvable:$true] %s2080_s3 }
 0x29a   : > { %s2111_s8 = sshll.u32 %s17481_s6, 4  ;;  %s2112_s8 = int_to_ptr.vmem [resolvable:$true] %s2111_s8 }
 0x29d   : > { %s17020_s9 = scalar_lea.hbm %s20432_s15, 16 }
 0x29e   : > { %p17021_p4 = scmp.ne.s32.totalorder %s20432_s15, %s17020_s9  ;;  %p17026_p7 = scmp.lt.u32.totalorder %s17020_s9, %s20432_s15 }
 0x2a0   : > { %p17022_p5 = pnand %p17021_p4, %p15632_p3 }
 0x2a2   : > { %p17023_p6 = pneg %p17022_p5 }
 0x2a4   : > { %p17028_p8 = pnand %p17026_p7, %p17023_p6 }
 0x2a6   : > { %17031 = shalt.err (!%p17028_p8)
}
 0x2a7   : > { %s17032_s2 = scalar_lea.vmem %s2081_s3, 16  ;;  %s17038_s1 = scalar_lea.vmem %s2081_s3, 32 }
 0x2a8   : > { %p17033_p9 = scmp.ne.s32.totalorder %s2081_s3, %s17032_s2  ;;  %p17039_p12 = scmp.lt.s32.totalorder %s2081_s3, %s2081_s3 }
 0x2a9   : > { %p17040_p13 = scmp.lt.s32.totalorder %s17038_s1, %s17032_s2 }
 0x2aa   : > { %p17034_p10 = pnand %p17033_p9, %p15632_p3 }
 0x2ab   : > { %p17041_p0 = por %p17040_p13, %p17039_p12 }
 0x2ac   : > { %p17035_p11 = pneg %p17034_p10 }
 0x2ae   : > { %p17042_p1 = pnand %p17041_p0, %p17035_p11 }
 0x2b0   : > { %17045 = shalt.err (!%p17042_p1)
}
 0x2b1   : > { %s20433_s5 = sld [smem:[#allocation113_spill]] }
 0x2b2   : > { %15529 = dma.hbm_to_vmem [thread:$0]  (%p15632_p3), %s20432_s15, 16, %s2081_s3, [#allocation20]  }
 0x2b7   : > { %s17046_s9 = scalar_lea.hbm %s20433_s5, 16 }
 0x2b8   : > { %p17047_p4 = scmp.ne.s32.totalorder %s20433_s5, %s17046_s9  ;;  %p17052_p7 = scmp.lt.u32.totalorder %s17046_s9, %s20433_s5 }
 0x2ba   : > { %p17048_p5 = pnand %p17047_p4, %p15632_p3 }
 0x2bc   : > { %p17049_p6 = pneg %p17048_p5 }
 0x2be   : > { %p17054_p8 = pnand %p17052_p7, %p17049_p6 }
 0x2c0   : > { %17057 = shalt.err (!%p17054_p8)
}
 0x2c1   : > { %s17058_s18 = scalar_lea.vmem %s2112_s8, 16  ;;  %s17064_s6 = scalar_lea.vmem %s2112_s8, 32 }
 0x2c2   : > { %p17059_p9 = scmp.ne.s32.totalorder %s2112_s8, %s17058_s18  ;;  %p17065_p12 = scmp.lt.s32.totalorder %s2112_s8, %s2112_s8 }
 0x2c3   : > { %p17066_p13 = scmp.lt.s32.totalorder %s17064_s6, %s17058_s18 }
 0x2c4   : > { %p17060_p10 = pnand %p17059_p9, %p15632_p3 }
 0x2c5   : > { %p17067_p0 = por %p17066_p13, %p17065_p12 }
 0x2c6   : > { %p17061_p11 = pneg %p17060_p10 }
 0x2c8   : > { %p17068_p1 = pnand %p17067_p0, %p17061_p11 }
 0x2ca   : > { %17071 = shalt.err (!%p17068_p1)
}
 0x2cb   : > { %s20434_s3 = sld [smem:[#allocation114_spill]]  ;;  %s17482_s2 = smov [#allocation27]  }
 0x2cc   : > { %15533 = dma.hbm_to_vmem [thread:$0]  (%p15632_p3), %s20433_s5, 16, %s2112_s8, [#allocation23]  }
 0x2cd   : > { %s2133_s1 = sshll.u32 %s17482_s2, 4  ;;  %s17483_s9 = smov [#allocation30]   ;;  %s2134_s1 = int_to_ptr.vmem [resolvable:$true] %s2133_s1 }
 0x2ce   : > { %s2155_s11 = sshll.u32 %s17483_s9, 4  ;;  %s2156_s11 = int_to_ptr.vmem [resolvable:$true] %s2155_s11 }
 0x2d1   : > { %s17072_s12 = scalar_lea.hbm %s20434_s3, 16 }
 0x2d2   : > { %p17073_p4 = scmp.ne.s32.totalorder %s20434_s3, %s17072_s12  ;;  %p17078_p7 = scmp.lt.u32.totalorder %s17072_s12, %s20434_s3 }
 0x2d4   : > { %p17074_p5 = pnand %p17073_p4, %p15632_p3 }
 0x2d6   : > { %p17075_p6 = pneg %p17074_p5 }
 0x2d8   : > { %p17080_p8 = pnand %p17078_p7, %p17075_p6 }
 0x2da   : > { %17083 = shalt.err (!%p17080_p8)
}
 0x2db   : > { %s17084_s18 = scalar_lea.vmem %s2134_s1, 16  ;;  %s17090_s8 = scalar_lea.vmem %s2134_s1, 32 }
 0x2dc   : > { %p17085_p9 = scmp.ne.s32.totalorder %s2134_s1, %s17084_s18  ;;  %p17091_p12 = scmp.lt.s32.totalorder %s2134_s1, %s2134_s1 }
 0x2dd   : > { %p17092_p13 = scmp.lt.s32.totalorder %s17090_s8, %s17084_s18 }
 0x2de   : > { %p17086_p10 = pnand %p17085_p9, %p15632_p3 }
 0x2df   : > { %p17093_p0 = por %p17092_p13, %p17091_p12 }
 0x2e0   : > { %p17087_p11 = pneg %p17086_p10 }
 0x2e2   : > { %p17094_p1 = pnand %p17093_p0, %p17087_p11 }
 0x2e4   : > { %17097 = shalt.err (!%p17094_p1)
}
 0x2e5   : > { %s20435_s6 = sld [smem:[#allocation115_spill]] }
 0x2e6   : > { %15537 = dma.hbm_to_vmem [thread:$0]  (%p15632_p3), %s20434_s3, 16, %s2134_s1, [#allocation26]  }
 0x2eb   : > { %s17098_s12 = scalar_lea.hbm %s20435_s6, 16 }
 0x2ec   : > { %p17099_p4 = scmp.ne.s32.totalorder %s20435_s6, %s17098_s12  ;;  %p17104_p7 = scmp.lt.u32.totalorder %s17098_s12, %s20435_s6 }
 0x2ee   : > { %p17100_p5 = pnand %p17099_p4, %p15632_p3 }
 0x2f0   : > { %p17101_p6 = pneg %p17100_p5 }
 0x2f2   : > { %p17106_p8 = pnand %p17104_p7, %p17101_p6 }
 0x2f4   : > { %17109 = shalt.err (!%p17106_p8)
}
 0x2f5   : > { %s17110_s2 = scalar_lea.vmem %s2156_s11, 16  ;;  %s17116_s9 = scalar_lea.vmem %s2156_s11, 32 }
 0x2f6   : > { %p17111_p9 = scmp.ne.s32.totalorder %s2156_s11, %s17110_s2  ;;  %p17117_p12 = scmp.lt.s32.totalorder %s2156_s11, %s2156_s11 }
 0x2f7   : > { %p17118_p13 = scmp.lt.s32.totalorder %s17116_s9, %s17110_s2 }
 0x2f8   : > { %p17112_p10 = pnand %p17111_p9, %p15632_p3 }
 0x2f9   : > { %p17119_p0 = por %p17118_p13, %p17117_p12 }
 0x2fa   : > { %p17113_p11 = pneg %p17112_p10 }
 0x2fc   : > { %p17120_p1 = pnand %p17119_p0, %p17113_p11 }
 0x2fe   : > { %17123 = shalt.err (!%p17120_p1)
}
 0x2ff   : > { %s20436_s1 = sld [smem:[#allocation116_spill]]  ;;  %s17484_s18 = smov [#allocation33]  }
 0x300   : > { %15541 = dma.hbm_to_vmem [thread:$0]  (%p15632_p3), %s20435_s6, 16, %s2156_s11, [#allocation29]  }
 0x301   : > { %s2177_s8 = sshll.u32 %s17484_s18, 4  ;;  %s17485_s12 = smov [#allocation36]   ;;  %s2178_s8 = int_to_ptr.vmem [resolvable:$true] %s2177_s8 }
 0x302   : > { %s2199_s3 = sshll.u32 %s17485_s12, 4  ;;  %s2200_s3 = int_to_ptr.vmem [resolvable:$true] %s2199_s3 }
 0x305   : > { %s17124_s5 = scalar_lea.hbm %s20436_s1, 16 }
 0x306   : > { %p17125_p4 = scmp.ne.s32.totalorder %s20436_s1, %s17124_s5  ;;  %p17130_p7 = scmp.lt.u32.totalorder %s17124_s5, %s20436_s1 }
 0x308   : > { %p17126_p5 = pnand %p17125_p4, %p15632_p3 }
 0x30a   : > { %p17127_p6 = pneg %p17126_p5 }
 0x30c   : > { %p17132_p8 = pnand %p17130_p7, %p17127_p6 }
 0x30e   : > { %17135 = shalt.err (!%p17132_p8)
}
 0x30f   : > { %s17136_s2 = scalar_lea.vmem %s2178_s8, 16  ;;  %s17142_s11 = scalar_lea.vmem %s2178_s8, 32 }
 0x310   : > { %p17137_p9 = scmp.ne.s32.totalorder %s2178_s8, %s17136_s2  ;;  %p17143_p12 = scmp.lt.s32.totalorder %s2178_s8, %s2178_s8 }
 0x311   : > { %p17144_p13 = scmp.lt.s32.totalorder %s17142_s11, %s17136_s2 }
 0x312   : > { %p17138_p10 = pnand %p17137_p9, %p15632_p3 }
 0x313   : > { %p17145_p0 = por %p17144_p13, %p17143_p12 }
 0x314   : > { %p17139_p11 = pneg %p17138_p10 }
 0x316   : > { %p17146_p1 = pnand %p17145_p0, %p17139_p11 }
 0x318   : > { %17149 = shalt.err (!%p17146_p1)
}
 0x319   : > { %s20437_s9 = sld [smem:[#allocation118_spill]] }
 0x31a   : > { %15545 = dma.hbm_to_vmem [thread:$0]  (%p15632_p3), %s20436_s1, 16, %s2178_s8, [#allocation32]  }
 0x31f   : > { %s17150_s5 = scalar_lea.hbm %s20437_s9, 16 }
 0x320   : > { %p17151_p4 = scmp.ne.s32.totalorder %s20437_s9, %s17150_s5  ;;  %p17156_p7 = scmp.lt.u32.totalorder %s17150_s5, %s20437_s9 }
 0x322   : > { %p17152_p5 = pnand %p17151_p4, %p15632_p3 }
 0x324   : > { %p17153_p6 = pneg %p17152_p5 }
 0x326   : > { %p17158_p8 = pnand %p17156_p7, %p17153_p6 }
 0x328   : > { %17161 = shalt.err (!%p17158_p8)
}
 0x329   : > { %s17162_s18 = scalar_lea.vmem %s2200_s3, 16  ;;  %s17168_s12 = scalar_lea.vmem %s2200_s3, 32 }
 0x32a   : > { %p17163_p9 = scmp.ne.s32.totalorder %s2200_s3, %s17162_s18  ;;  %p17169_p12 = scmp.lt.s32.totalorder %s2200_s3, %s2200_s3 }
 0x32b   : > { %p17170_p13 = scmp.lt.s32.totalorder %s17168_s12, %s17162_s18 }
 0x32c   : > { %p17164_p10 = pnand %p17163_p9, %p15632_p3 }
 0x32d   : > { %p17171_p0 = por %p17170_p13, %p17169_p12 }
 0x32e   : > { %p17165_p11 = pneg %p17164_p10 }
 0x330   : > { %p17172_p1 = pnand %p17171_p0, %p17165_p11 }
 0x332   : > { %17175 = shalt.err (!%p17172_p1)
}
 0x333   : > { %s20438_s8 = sld [smem:[#allocation125_spill]]  ;;  %s17486_s2 = smov [#allocation39]  }
 0x334   : > { %15549 = dma.hbm_to_vmem [thread:$0]  (%p15632_p3), %s20437_s9, 16, %s2200_s3, [#allocation35]  }
 0x335   : > { %s2236_s11 = sshll.u32 %s17486_s2, 4  ;;  %s17487_s5 = smov [#allocation42]   ;;  %s2237_s11 = int_to_ptr.vmem [resolvable:$true] %s2236_s11 }
 0x336   : > { %s2258_s1 = sshll.u32 %s17487_s5, 4  ;;  %s2259_s1 = int_to_ptr.vmem [resolvable:$true] %s2258_s1 }
 0x339   : > { %s17176_s6 = scalar_lea.hbm %s20438_s8, 16 }
 0x33a   : > { %p17177_p4 = scmp.ne.s32.totalorder %s20438_s8, %s17176_s6  ;;  %p17182_p7 = scmp.lt.u32.totalorder %s17176_s6, %s20438_s8 }
 0x33c   : > { %p17178_p5 = pnand %p17177_p4, %p15632_p3 }
 0x33e   : > { %p17179_p6 = pneg %p17178_p5 }
 0x340   : > { %p17184_p8 = pnand %p17182_p7, %p17179_p6 }
 0x342   : > { %17187 = shalt.err (!%p17184_p8)
}
 0x343   : > { %s17188_s18 = scalar_lea.vmem %s2237_s11, 16  ;;  %s17194_s3 = scalar_lea.vmem %s2237_s11, 32 }
 0x344   : > { %p17189_p9 = scmp.ne.s32.totalorder %s2237_s11, %s17188_s18  ;;  %p17195_p12 = scmp.lt.s32.totalorder %s2237_s11, %s2237_s11 }
 0x345   : > { %p17196_p13 = scmp.lt.s32.totalorder %s17194_s3, %s17188_s18 }
 0x346   : > { %p17190_p10 = pnand %p17189_p9, %p15632_p3 }
 0x347   : > { %p17197_p0 = por %p17196_p13, %p17195_p12 }
 0x348   : > { %p17191_p11 = pneg %p17190_p10 }
 0x34a   : > { %p17198_p1 = pnand %p17197_p0, %p17191_p11 }
 0x34c   : > { %17201 = shalt.err (!%p17198_p1)
}
 0x34d   : > { %s20439_s12 = sld [smem:[#allocation127_spill]] }
 0x34e   : > { %15553 = dma.hbm_to_vmem [thread:$0]  (%p15632_p3), %s20438_s8, 16, %s2237_s11, [#allocation38]  }
 0x353   : > { %s17202_s6 = scalar_lea.hbm %s20439_s12, 16 }
 0x354   : > { %p17203_p4 = scmp.ne.s32.totalorder %s20439_s12, %s17202_s6  ;;  %p17208_p7 = scmp.lt.u32.totalorder %s17202_s6, %s20439_s12 }
 0x356   : > { %p17204_p5 = pnand %p17203_p4, %p15632_p3 }
 0x358   : > { %p17205_p6 = pneg %p17204_p5 }
 0x35a   : > { %p17210_p8 = pnand %p17208_p7, %p17205_p6 }
 0x35c   : > { %17213 = shalt.err (!%p17210_p8)
}
 0x35d   : > { %s17214_s2 = scalar_lea.vmem %s2259_s1, 16  ;;  %s17220_s5 = scalar_lea.vmem %s2259_s1, 32 }
 0x35e   : > { %p17215_p9 = scmp.ne.s32.totalorder %s2259_s1, %s17214_s2  ;;  %p17221_p12 = scmp.lt.s32.totalorder %s2259_s1, %s2259_s1 }
 0x35f   : > { %p17222_p13 = scmp.lt.s32.totalorder %s17220_s5, %s17214_s2 }
 0x360   : > { %p17216_p10 = pnand %p17215_p9, %p15632_p3 }
 0x361   : > { %p17223_p0 = por %p17222_p13, %p17221_p12 }
 0x362   : > { %p17217_p11 = pneg %p17216_p10 }
 0x364   : > { %p17224_p1 = pnand %p17223_p0, %p17217_p11 }
 0x366   : > { %17227 = shalt.err (!%p17224_p1)
}
 0x367   : > { %s20440_s11 = sld [smem:[#allocation128_spill]]  ;;  %s17488_s18 = smov [#allocation45]  }
 0x368   : > { %15557 = dma.hbm_to_vmem [thread:$0]  (%p15632_p3), %s20439_s12, 16, %s2259_s1, [#allocation41]  }
 0x369   : > { %s2280_s3 = sshll.u32 %s17488_s18, 4  ;;  %s17489_s6 = smov [#allocation48]   ;;  %s2281_s3 = int_to_ptr.vmem [resolvable:$true] %s2280_s3 }
 0x36a   : > { %s2302_s8 = sshll.u32 %s17489_s6, 4  ;;  %s2303_s8 = int_to_ptr.vmem [resolvable:$true] %s2302_s8 }
 0x36d   : > { %s17228_s9 = scalar_lea.hbm %s20440_s11, 16 }
 0x36e   : > { %p17229_p4 = scmp.ne.s32.totalorder %s20440_s11, %s17228_s9  ;;  %p17234_p7 = scmp.lt.u32.totalorder %s17228_s9, %s20440_s11 }
 0x370   : > { %p17230_p5 = pnand %p17229_p4, %p15632_p3 }
 0x372   : > { %p17231_p6 = pneg %p17230_p5 }
 0x374   : > { %p17236_p8 = pnand %p17234_p7, %p17231_p6 }
 0x376   : > { %17239 = shalt.err (!%p17236_p8)
}
 0x377   : > { %s17240_s2 = scalar_lea.vmem %s2281_s3, 16  ;;  %s17246_s1 = scalar_lea.vmem %s2281_s3, 32 }
 0x378   : > { %p17241_p9 = scmp.ne.s32.totalorder %s2281_s3, %s17240_s2  ;;  %p17247_p12 = scmp.lt.s32.totalorder %s2281_s3, %s2281_s3 }
 0x379   : > { %p17248_p13 = scmp.lt.s32.totalorder %s17246_s1, %s17240_s2 }
 0x37a   : > { %p17242_p10 = pnand %p17241_p9, %p15632_p3 }
 0x37b   : > { %p17249_p0 = por %p17248_p13, %p17247_p12 }
 0x37c   : > { %p17243_p11 = pneg %p17242_p10 }
 0x37e   : > { %p17250_p1 = pnand %p17249_p0, %p17243_p11 }
 0x380   : > { %17253 = shalt.err (!%p17250_p1)
}
 0x381   : > { %s20441_s5 = sld [smem:[#allocation130_spill]] }
 0x382   : > { %15561 = dma.hbm_to_vmem [thread:$0]  (%p15632_p3), %s20440_s11, 16, %s2281_s3, [#allocation44]  }
 0x387   : > { %s17254_s9 = scalar_lea.hbm %s20441_s5, 16 }
 0x388   : > { %p17255_p4 = scmp.ne.s32.totalorder %s20441_s5, %s17254_s9  ;;  %p17260_p7 = scmp.lt.u32.totalorder %s17254_s9, %s20441_s5 }
 0x38a   : > { %p17256_p5 = pnand %p17255_p4, %p15632_p3 }
 0x38c   : > { %p17257_p6 = pneg %p17256_p5 }
 0x38e   : > { %p17262_p8 = pnand %p17260_p7, %p17257_p6 }
 0x390   : > { %17265 = shalt.err (!%p17262_p8)
}
 0x391   : > { %s17266_s18 = scalar_lea.vmem %s2303_s8, 16  ;;  %s17272_s6 = scalar_lea.vmem %s2303_s8, 32 }
 0x392   : > { %p17267_p9 = scmp.ne.s32.totalorder %s2303_s8, %s17266_s18  ;;  %p17273_p12 = scmp.lt.s32.totalorder %s2303_s8, %s2303_s8 }
 0x393   : > { %p17274_p13 = scmp.lt.s32.totalorder %s17272_s6, %s17266_s18 }
 0x394   : > { %p17268_p10 = pnand %p17267_p9, %p15632_p3 }
 0x395   : > { %p17275_p0 = por %p17274_p13, %p17273_p12 }
 0x396   : > { %p17269_p11 = pneg %p17268_p10 }
 0x398   : > { %p17276_p1 = pnand %p17275_p0, %p17269_p11 }
 0x39a   : > { %17279 = shalt.err (!%p17276_p1)
}
 0x39b   : > { %s20442_s3 = sld [smem:[#allocation131_spill]]  ;;  %s17490_s2 = smov [#allocation49]  }
 0x39c   : > { %15565 = dma.hbm_to_vmem [thread:$0]  (%p15632_p3), %s20441_s5, 16, %s2303_s8, [#allocation47]  }
 0x39d   : > { %s2313_s1 = sshll.u32 %s17490_s2, 4  ;;  %s2314_s1 = int_to_ptr.vmem [resolvable:$true] %s2313_s1 }
 0x3a1   : > { %s17280_s9 = scalar_lea.hbm %s20442_s3, 16 }
 0x3a2   : > { %p17281_p4 = scmp.ne.s32.totalorder %s20442_s3, %s17280_s9  ;;  %p17286_p7 = scmp.lt.u32.totalorder %s17280_s9, %s20442_s3 }
 0x3a4   : > { %p17282_p5 = pnand %p17281_p4, %p15632_p3 }
 0x3a6   : > { %p17283_p6 = pneg %p17282_p5 }
 0x3a8   : > { %p17288_p8 = pnand %p17286_p7, %p17283_p6 }
 0x3aa   : > { %17291 = shalt.err (!%p17288_p8)
}
 0x3ab   : > { %s17292_s18 = scalar_lea.vmem %s2314_s1, 16  ;;  %s17298_s6 = scalar_lea.vmem %s2314_s1, 32 }
 0x3ac   : > { %p17293_p9 = scmp.ne.s32.totalorder %s2314_s1, %s17292_s18  ;;  %p17299_p12 = scmp.lt.s32.totalorder %s2314_s1, %s2314_s1 }
 0x3ad   : > { %p17300_p13 = scmp.lt.s32.totalorder %s17298_s6, %s17292_s18 }
 0x3ae   : > { %p17294_p10 = pnand %p17293_p9, %p15632_p3 }
 0x3af   : > { %p17301_p0 = por %p17300_p13, %p17299_p12 }
 0x3b0   : > { %p17295_p11 = pneg %p17294_p10 }
 0x3b2   : > { %p17302_p1 = pnand %p17301_p0, %p17295_p11 }
 0x3b4   : > { %17305 = shalt.err (!%p17302_p1)
}
 0x3b5   : > { %15567 = dma.hbm_to_vmem [thread:$0]  (%p15632_p3), %s20442_s3, 16, %s2314_s1, [#allocation50]  }
 0x3b6 PF: > { %2363 = sbr.rel (%p17906_p2) target bundleno = 19905 (0x4dc1), region = 324  ;;  %p15664_p4 = scmp.eq.s32.totalorder (!%p17906_p2), %s17902_s0, 0 }
 0x3bd   : > { %17311 = dma.done.wait (%p15664_p4), [#allocation3], 16  }
 0x3be   : > { %17313 = vsyncadd (%p15664_p4), [#allocation3], 4294967280 }
 0x3bf   : > { %17315 = dma.done.wait (%p15664_p4), [#allocation5], 32  }
 0x3c0   : > { %17317 = vsyncadd (%p15664_p4), [#allocation5], 4294967264 }
 0x3c1   : > { %17319 = dma.done.wait (%p15664_p4), [#allocation8], 32  }
 0x3c2   : > { %17321 = vsyncadd (%p15664_p4), [#allocation8], 4294967264 }
 0x3c3   : > { %17323 = dma.done.wait (%p15664_p4), [#allocation11], 32  }
 0x3c4   : > { %17325 = vsyncadd (%p15664_p4), [#allocation11], 4294967264 }
 0x3c5   : > { %17327 = dma.done.wait (%p15664_p4), [#allocation14], 32  }
 0x3c6   : > { %17329 = vsyncadd (%p15664_p4), [#allocation14], 4294967264 }
 0x3c7   : > { %17331 = dma.done.wait (%p15664_p4), [#allocation17], 32  }
 0x3c8   : > { %17333 = vsyncadd (%p15664_p4), [#allocation17], 4294967264 }
 0x3c9   : > { %17335 = dma.done.wait (%p15664_p4), [#allocation20], 32  }
 0x3ca   : > { %17337 = vsyncadd (%p15664_p4), [#allocation20], 4294967264 }
 0x3cb   : > { %17339 = dma.done.wait (%p15664_p4), [#allocation23], 32  }
 0x3cc   : > { %17341 = vsyncadd (%p15664_p4), [#allocation23], 4294967264 }
 0x3cd   : > { %17343 = dma.done.wait (%p15664_p4), [#allocation26], 32  }
 0x3ce   : > { %17345 = vsyncadd (%p15664_p4), [#allocation26], 4294967264 }
 0x3cf   : > { %17347 = dma.done.wait (%p15664_p4), [#allocation29], 32  }
 0x3d0   : > { %17349 = vsyncadd (%p15664_p4), [#allocation29], 4294967264 }
 0x3d1   : > { %17351 = dma.done.wait (%p15664_p4), [#allocation32], 32  }
 0x3d2   : > { %17353 = vsyncadd (%p15664_p4), [#allocation32], 4294967264 }
 0x3d3   : > { %17355 = dma.done.wait (%p15664_p4), [#allocation35], 32  }
 0x3d4   : > { %17357 = vsyncadd (%p15664_p4), [#allocation35], 4294967264 }
 0x3d5   : > { %17359 = dma.done.wait (%p15664_p4), [#allocation38], 32  }
 0x3d6   : > { %17361 = vsyncadd (%p15664_p4), [#allocation38], 4294967264 }
 0x3d7   : > { %17363 = dma.done.wait (%p15664_p4), [#allocation41], 32  }
 0x3d8   : > { %17365 = vsyncadd (%p15664_p4), [#allocation41], 4294967264 }
 0x3d9   : > { %17367 = dma.done.wait (%p15664_p4), [#allocation44], 32  }
 0x3da   : > { %17369 = vsyncadd (%p15664_p4), [#allocation44], 4294967264 }
 0x3db   : > { %17371 = dma.done.wait (%p15664_p4), [#allocation47], 32  }
 0x3dc   : > { %17373 = vsyncadd (%p15664_p4), [#allocation47], 4294967264 }
 0x3dd   : > { %17375 = dma.done.wait (%p15664_p4), [#allocation50], 16  }
 0x3de   : > { %17377 = vsyncadd (%p15664_p4), [#allocation50], 4294967280  ;;  %s20443_s10 = sld [smem:[#allocation68_spill]]  ;;  %s20444_s8 = sld [smem:[#allocation72_spill]]  ;;  %vm2742_vm0 = vcmask 1042432   ;;  %vm2717_vm1 = vcmask 23552  }
 0x3df   : > { %p2670_p2 = scmp.lt.s32.totalorder %s17902_s0, 1  ;;  %s20445_s9 = sld [smem:[#allocation82_spill]]  ;;  %vm2867_vm2 = vcmask 64512   ;;  %vm3016_vm3 = vcmask 261120   ;;  %vm3474_vm5 = vcmask 523264   ;;  %vm17500_vm6 = vmmov 0  }
 0x3e0   : > { %s20446_s18 = sld [smem:[#allocation133_spill]]  ;;  %s20447_s6 = sld [smem:[#allocation134_spill]]  ;;  %vm18477_vm4 = vmpackc.low %vm2867_vm2, %vm2867_vm2 }
 0x3e1   : > { %s20495_s0 = smov (!%p2670_p2, %s17902_s0), 1  ;;  %s20459_s3 = sld [smem:[#allocation103_spill]] }
 0x3e2   : > { %s13233_s2 = sshll.u32 %s20495_s0, 6  ;;  %s20461_s5 = smov 80  }
 0x3e3   : > { %s20465_s11 = smov 104   ;;  %s20466_s12 = sld [smem:[#allocation92_spill]] }
 0x3e4   : > { %s2674_s1 = scalar_lea.vmem %s20443_s10, %s13233_s2  ;;  %v2709_v0 = vld [vmem:[%s20444_s8] sm:$0x7]  ;;  %s20448_s10 = sld [smem:[#allocation71_spill]] }
 0x3e5   : > { %v2691_v1 = vld [vmem:[%s2674_s1] sm:$0xff]  ;;  %13803 = vmatprep.subr.msk.mxu0 %vm2742_vm0, %v2709_v0  ;;  %v2692_v2 = vld [vmem:[%s2674_s1 + $0x8] sm:$0xff]  ;;  %v2693_v3 = vld [vmem:[%s2674_s1 + $0x10] sm:$0xff]  ;;  %s20449_s8 = sld [smem:[#allocation69_spill]]  ;;  %s20476_s13 = sld [smem:[#allocation120_spill]] }
 0x3e6   : > { %13805 = vmatprep.mubr.msk.f32.mxu0 %vm2717_vm1, %v2691_v1  ;;  %13804 = vmatpush3.msk.msra.mxu0 %vm2742_vm0, %v2709_v0  ;;  %v2694_v4 = vld [vmem:[%s2674_s1 + $0x18] sm:$0xff]  ;;  %v2695_v5 = vld [vmem:[%s2674_s1 + $0x20] sm:$0xff]  ;;  %v2696_v6 = vld [vmem:[%s2674_s1 + $0x28] sm:$0xff] }
 0x3e7   : > { %13806 = vmatmul.mubr.msk.f32.vlgmr.msra.gmra.mrb[0].mxu0 %vm2717_vm1, %v2692_v2  ;;  %v2697_v7 = vld [vmem:[%s2674_s1 + $0x30] sm:$0xff]  ;;  %v2698_v8 = vld [vmem:[%s2674_s1 + $0x38] sm:$0xff]  ;;  %v2859_v9 = vld [vmem:[%s20445_s9] sm:$0xff]  ;;  %s20450_s1 = sld [smem:[#allocation81_spill]] }
 0x3e8   : > { %13808 = vmatprep.mubr.msk.f32.mxu0 %vm2717_vm1, %v2693_v3  ;;  %13817 = vmatprep.subr.mxu1 %v2859_v9  ;;  %v3005_v10 = vld [vmem:[%s20446_s18] sm:$0xff]  ;;  %v3006_v11 = vld [vmem:[%s20446_s18 + $0x8] sm:$0xff]  ;;  %v3007_v15 = vld [vmem:[%s20446_s18 + $0x10] sm:$0xff] }
 0x3e9   : > { %13818 = vmatpush3.msra.mxu1 %v2859_v9  ;;  %v3146_v12 = vld [vmem:[%s20447_s6] sm:$0xff]  ;;  %v14913_v13 = vpack.c.bf16 %v3006_v11, %v3005_v10  ;;  %v3147_v14 = vld [vmem:[%s20447_s6 + $0x8] sm:$0xff]  ;;  %v3008_v16 = vld [vmem:[%s20446_s18 + $0x18] sm:$0xff] }
 0x3ea   : > { %v14921_v17 = vpack.c.bf16 %v3147_v14, %v3146_v12  ;;  %v14917_v18 = vpack.c.bf16 %v3008_v16, %v3007_v15  ;;  %v12844_v19 = vld [vmem:[%s20448_s10] ss:$0 sm:$0xff]  ;;  %v3148_v44 = vld [vmem:[%s20447_s6 + $0x10] sm:$0xff]  ;;  %v3149_v45 = vld [vmem:[%s20447_s6 + $0x18] sm:$0xff]  ;;  %s20311_s10 = smov 88   ;;  %s20463_s6 = sld [smem:[#allocation101_spill]] }
 0x3eb   : > { %13809 = vmatmul.mubr.msk.f32.gmra.mrb[2].mxu0 %vm2717_vm1, %v2694_v4  ;;  %14914 = vmatprep.subr.bf16.mxu0 %v14913_v13  ;;  %v14925_v46 = vpack.c.bf16 %v3149_v45, %v3148_v44  ;;  %s18342_s9 = scalar_lea.vmem %s20449_s8, %s13233_s2  ;;  %v12872_v16 = vld [vmem:[#allocation49] ss:$0 sm:$0xff]  ;;  %s20315_s2 = smov 96  }
 0x3ec   : > { %13811 = vmatprep.mubr.msk.f32.mxu0 %vm2717_vm1, %v2695_v5  ;;  %14916 = vmatpush3.bf16.msra.mxu0 %v14913_v13  ;;  %v2699_v50 = vld [vmem:[%s18342_s9] sm:$0xff]  ;;  %v2700_v52 = vld [vmem:[%s18342_s9 + $0x8] sm:$0xff]  ;;  %v2702_v55 = vld [vmem:[%s18342_s9 + $0x18] sm:$0xff]  ;;  %s20323_s8 = smov 120  }
 0x3ed   : > { %14922 = vmatprep.subr.bf16.mxu1 %v14921_v17  ;;  %14918 = vmatprep.subr.bf16.mxu0 %v14917_v18  ;;  %v12854_v47 = vld [vmem:[%s20450_s1] ss:$0 sm:$0xff]  ;;  %v2701_v59 = vld [vmem:[%s18342_s9 + $0x10] sm:$0xff]  ;;  %v2704_v0 = vld [vmem:[%s18342_s9 + $0x28] sm:$0xff]  ;;  %s20453_s1 = sld [smem:[#allocation70_spill]] }
 0x3ee   : > { %v2703_v3 = vld [vmem:[%s18342_s9 + $0x20] sm:$0xff]  ;;  %v2705_v11 = vld [vmem:[%s18342_s9 + $0x30] sm:$0xff] }
 0x3ef   : > { %13812 = vmatmul.mubr.msk.f32.gmra.mrb[4].mxu0 %vm2717_vm1, %v2696_v6 }
 0x3f0   : > { %13814 = vmatprep.mubr.msk.f32.mxu0 %vm2717_vm1, %v2697_v7  ;;  %14920 = vmatpush3.bf16.msra.mxu0 %v14917_v18  ;;  %v12863_v18 = vld [vmem:[#allocation48] ss:$0 sm:$0xff] }
 0x3f3   : > { %13815 = vmatmul.mubr.msk.f32.gmra.mrb[6].mxu0 %vm2717_vm1, %v2698_v8  ;;  %v2706_v8 = vld [vmem:[%s18342_s9 + $0x38] sm:$0xff] }
 0x4ba   : > { %v13807_v20 = vpop.f32.mrb[0].mxu0 }
 0x4bb   : > { %v2818_v21 = vadd.f32 %v13807_v20, %v12844_v19  ;;  %v2812_v22 = vpop.f32.mrb[1].mxu0 }
 0x4bc   : > { %v2813_v23 = vadd.f32 %v12844_v19, %v2812_v22 }
 0x4bd   : > { %v2852_v26 = vmax.f32 %v2818_v21, 0.0 }
 0x4be   : > { %v2851_v24 = vmax.f32 %v2813_v23, 0.0  ;;  %v13810_v25 = vpop.f32.mrb[2].mxu0 }
 0x4bf   : > { %v2828_v27 = vadd.f32 %v13810_v25, %v12844_v19  ;;  %v2822_v28 = vpop.f32.mrb[3].mxu0 }
 0x4c0   : > { %v2823_v29 = vadd.f32 %v12844_v19, %v2822_v28  ;;  %13819 = vmatprep.mubr.msk.f32.mxu1 %vm2867_vm2, %v2851_v24 }
 0x4c1   : > { %v2854_v30 = vmax.f32 %v2828_v27, 0.0  ;;  %13820 = vmatmul.mubr.msk.f32.vlgmr.msra.gmra.mrb[0].mxu1 %vm2867_vm2, %v2852_v26 }
 0x4c2   : > { %v2853_v31 = vmax.f32 %v2823_v29, 0.0  ;;  %v13813_v32 = vpop.f32.mrb[4].mxu0  ;;  %14924 = vmatpush3.bf16.msra.mxu1 %v14921_v17 }
 0x4c3   : > { %v2838_v33 = vadd.f32 %v13813_v32, %v12844_v19  ;;  %v2832_v34 = vpop.f32.mrb[5].mxu0  ;;  %14926 = vmatprep.subr.bf16.mxu1 %v14925_v46 }
 0x4c4   : > { %v2833_v35 = vadd.f32 %v12844_v19, %v2832_v34  ;;  %13822 = vmatprep.mubr.msk.f32.mxu1 %vm2867_vm2, %v2853_v31 }
 0x4c5   : > { %v2856_v36 = vmax.f32 %v2838_v33, 0.0  ;;  %13823 = vmatmul.mubr.msk.f32.gmra.mrb[2].mxu1 %vm2867_vm2, %v2854_v30 }
 0x4c6   : > { %v2855_v37 = vmax.f32 %v2833_v35, 0.0  ;;  %v13816_v38 = vpop.f32.mrb[6].mxu0  ;;  %14928 = vmatpush3.bf16.msra.mxu1 %v14925_v46 }
 0x4c7   : > { %v2848_v39 = vadd.f32 %v13816_v38, %v12844_v19  ;;  %v2842_v40 = vpop.f32.mrb[7].mxu0 }
 0x4c8   : > { %v2843_v41 = vadd.f32 %v12844_v19, %v2842_v40  ;;  %13825 = vmatprep.mubr.msk.f32.mxu1 %vm2867_vm2, %v2855_v37 }
 0x4c9   : > { %v2858_v42 = vmax.f32 %v2848_v39, 0.0  ;;  %13826 = vmatmul.mubr.msk.f32.gmra.mrb[4].mxu1 %vm2867_vm2, %v2856_v36 }
 0x4ca   : > { %v2857_v43 = vmax.f32 %v2843_v41, 0.0 }
 0x4cc   : > { %13828 = vmatprep.mubr.msk.f32.mxu1 %vm2867_vm2, %v2857_v43 }
 0x4cd   : > { %13829 = vmatmul.mubr.msk.f32.gmra.mrb[6].mxu1 %vm2867_vm2, %v2858_v42 }
 0x594   : > { %v13821_v48 = vpop.f32.mrb[0].mxu1 }
 0x595   : > { %v18345_v49 = vadd.f32 %v13821_v48, %v12854_v47  ;;  %v2958_v51 = vpop.f32.mrb[1].mxu1 }
 0x596   : > { %v18349_v53 = vadd.f32 %v12854_v47, %v2958_v51 }
 0x597   : > { %v2998_v57 = vadd.f32 %v18345_v49, %v2700_v52 }
 0x598   : > { %v2997_v54 = vadd.f32 %v18349_v53, %v2699_v50  ;;  %v13824_v56 = vpop.f32.mrb[2].mxu1  ;;  %13859 = vmatprep.mubr.msk.f32.mxu1 %vm3016_vm3, %v18349_v53 }
 0x599   : > { %v18356_v58 = vadd.f32 %v13824_v56, %v12854_v47  ;;  %v2968_v60 = vpop.f32.mrb[3].mxu1  ;;  %13860 = vmatmul.mubr.msk.f32.vlgmr.msra.gmra.mrb[8].mxu1 %vm3016_vm3, %v18345_v49 }
 0x59a   : > { %v18361_v61 = vadd.f32 %v12854_v47, %v2968_v60  ;;  %13839 = vmatprep.mubr.msk.f32.mxu0 %vm3016_vm3, %v2997_v54 }
 0x59b   : > { %v3000_v62 = vadd.f32 %v18356_v58, %v2702_v55  ;;  %13840 = vmatmul.mubr.msk.f32.vlgmr.msra.gmra.mrb[8].mxu0 %vm3016_vm3, %v2998_v57 }
 0x59c   : > { %v2999_v63 = vadd.f32 %v18361_v61, %v2701_v59  ;;  %v13827_v1 = vpop.f32.mrb[4].mxu1  ;;  %13862 = vmatprep.mubr.msk.f32.mxu1 %vm3016_vm3, %v18361_v61 }
 0x59d   : > { %v18370_v2 = vadd.f32 %v13827_v1, %v12854_v47  ;;  %v2978_v4 = vpop.f32.mrb[5].mxu1  ;;  %13863 = vmatmul.mubr.msk.f32.gmra.mrb[10].mxu1 %vm3016_vm3, %v18356_v58 }
 0x59e   : > { %v18375_v5 = vadd.f32 %v12854_v47, %v2978_v4  ;;  %13842 = vmatprep.mubr.msk.f32.mxu0 %vm3016_vm3, %v2999_v63 }
 0x59f   : > { %v3002_v6 = vadd.f32 %v18370_v2, %v2704_v0  ;;  %13843 = vmatmul.mubr.msk.f32.gmra.mrb[10].mxu0 %vm3016_vm3, %v3000_v62 }
 0x5a0   : > { %v3001_v7 = vadd.f32 %v18375_v5, %v2703_v3  ;;  %v13830_v9 = vpop.f32.mrb[6].mxu1  ;;  %13865 = vmatprep.mubr.msk.f32.mxu1 %vm3016_vm3, %v18375_v5 }
 0x5a1   : > { %v18384_v10 = vadd.f32 %v13830_v9, %v12854_v47  ;;  %v2988_v12 = vpop.f32.mrb[7].mxu1  ;;  %13866 = vmatmul.mubr.msk.f32.gmra.mrb[12].mxu1 %vm3016_vm3, %v18370_v2 }
 0x5a2   : > { %v18389_v13 = vadd.f32 %v12854_v47, %v2988_v12  ;;  %13845 = vmatprep.mubr.msk.f32.mxu0 %vm3016_vm3, %v3001_v7 }
 0x5a3   : > { %v3004_v14 = vadd.f32 %v18384_v10, %v2706_v8  ;;  %13846 = vmatmul.mubr.msk.f32.gmra.mrb[12].mxu0 %vm3016_vm3, %v3002_v6 }
 0x5a4   : > { %v3003_v15 = vadd.f32 %v18389_v13, %v2705_v11  ;;  %13868 = vmatprep.mubr.msk.f32.mxu1 %vm3016_vm3, %v18389_v13 }
 0x5a5   : > { %13869 = vmatmul.mubr.msk.f32.gmra.mrb[14].mxu1 %vm3016_vm3, %v18384_v10 }
 0x5a6   : > { %13848 = vmatprep.mubr.msk.f32.mxu0 %vm3016_vm3, %v3003_v15 }
 0x5a7   : > { %13849 = vmatmul.mubr.msk.f32.gmra.mrb[14].mxu0 %vm3016_vm3, %v3004_v14 }
 0x66c   : > { %v13861_v17 = vpop.f32.mrb[8].mxu1 }
 0x66d   : > { %v3253_v19 = vadd.f32 %v13861_v17, %v12872_v16  ;;  %v3247_v20 = vpop.f32.mrb[9].mxu1 }
 0x66e   : > { %v3248_v21 = vadd.f32 %v12872_v16, %v3247_v20  ;;  %v13841_v22 = vpop.f32.mrb[8].mxu0 }
 0x66f   : > { %v18401_v23 = vadd.f32 %v13841_v22, %v12863_v18  ;;  %v3107_v24 = vpop.f32.mrb[9].mxu0 }
 0x670   : > { %v18403_v25 = vadd.f32 %v12863_v18, %v3107_v24  ;;  %v13864_v26 = vpop.f32.mrb[10].mxu1  ;;  %v14953_v27 = vpack.c.bf16 %v3253_v19, %v3248_v21  ;;  %v18405_v28 = vpack.i.bf16 %v3253_v19, %v3248_v21 }
 0x671   : > { %v3263_v29 = vadd.f32 %v13864_v26, %v12872_v16  ;;  %v3257_v30 = vpop.f32.mrb[11].mxu1 }
 0x672   : > { %v3258_v31 = vadd.f32 %v12872_v16, %v3257_v30  ;;  %v13844_v32 = vpop.f32.mrb[10].mxu0  ;;  %13887 = vmatprep.mubr.msk.f32.mxu0 %vm2867_vm2, %v18403_v25  ;;  %14954 = vmatprep.subr.bf16.mxu1 %v14953_v27  ;;  %v18411_v33 = vpack.i.bf16 %v18401_v23, %v18403_v25 }
 0x673   : > { %v18413_v34 = vadd.f32 %v13844_v32, %v12863_v18  ;;  %v3117_v35 = vpop.f32.mrb[11].mxu0  ;;  %14956 = vmatpush3.bf16.msra.mxu1 %v14953_v27 }
 0x674   : > { %v18415_v36 = vadd.f32 %v12863_v18, %v3117_v35  ;;  %15824 = vrot.lane.b32.xlu0 %v18411_v33, %s20315_s2  ;;  %v13867_v37 = vpop.f32.mrb[12].mxu1  ;;  %v14957_v38 = vpack.c.bf16 %v3263_v29, %v3258_v31  ;;  %v18419_v39 = vpack.i.bf16 %v3263_v29, %v3258_v31 }
 0x675   : > { %v3273_v40 = vadd.f32 %v13867_v37, %v12872_v16  ;;  %v3267_v41 = vpop.f32.mrb[13].mxu1 }
 0x676   : > { %v13847_v42 = vpop.f32.mrb[12].mxu0  ;;  %14958 = vmatprep.subr.bf16.mxu1 %v14957_v38  ;;  %v3268_v43 = vadd.f32 %v12872_v16, %v3267_v41  ;;  %v18423_v44 = vpack.i.bf16 %v18413_v34, %v18415_v36 }
 0x677   : > { %v18425_v45 = vadd.f32 %v13847_v42, %v12863_v18  ;;  %v3127_v46 = vpop.f32.mrb[13].mxu0  ;;  %14960 = vmatpush3.bf16.msra.mxu1 %v14957_v38 }
 0x678   : > { %v18427_v47 = vadd.f32 %v12863_v18, %v3127_v46  ;;  %15829 = vrot.lane.b32.xlu0 %v18423_v44, %s20315_s2  ;;  %v14961_v48 = vpack.c.bf16 %v3273_v40, %v3268_v43  ;;  %v13870_v50 = vpop.f32.mrb[14].mxu1  ;;  %v18431_v51 = vpack.i.bf16 %v3273_v40, %v3268_v43 }
 0x679   : > { %v3283_v52 = vadd.f32 %v13870_v50, %v12872_v16  ;;  %v3277_v54 = vpop.f32.mrb[15].mxu1 }
 0x67a   : > { %v13850_v55 = vpop.f32.mrb[14].mxu0  ;;  %14962 = vmatprep.subr.bf16.mxu1 %v14961_v48  ;;  %v18435_v56 = vpack.i.bf16 %v18425_v45, %v18427_v47  ;;  %v3278_v57 = vadd.f32 %v12872_v16, %v3277_v54 }
 0x67b   : > { %v18437_v59 = vadd.f32 %v13850_v55, %v12863_v18  ;;  %v3137_v60 = vpop.f32.mrb[15].mxu0  ;;  %14964 = vmatpush3.bf16.msra.mxu1 %v14961_v48 }
 0x67c   : > { %v18439_v62 = vadd.f32 %v12863_v18, %v3137_v60  ;;  %15834 = vrot.lane.b32.xlu1 %v18435_v56, %s20315_s2  ;;  %15844 = vrot.lane.b32.xlu0 %v18411_v33, %s20311_s10  ;;  %v14965_v63 = vpack.c.bf16 %v3283_v52, %v3278_v57  ;;  %v18445_v0 = vpack.i.bf16 %v3283_v52, %v3278_v57 }
 0x67e   : > { %v18449_v1 = vpack.i.bf16 %v18437_v59, %v18439_v62  ;;  %14966 = vmatprep.subr.bf16.mxu1 %v14965_v63 }
 0x67f   : > { %14968 = vmatpush3.bf16.msra.mxu1 %v14965_v63 }
 0x680   : > { %15839 = vrot.lane.b32.xlu1 %v18449_v1, %s20315_s2  ;;  %15854 = vrot.lane.b32.xlu0 %v18435_v56, %s20311_s10  ;;  %s20319_s2 = smov 72  }
 0x684   : > { %15849 = vrot.lane.b32.xlu1 %v18423_v44, %s20311_s10  ;;  %3835 = vrot.lane.b32.xlu0 %v18403_v25, %s20323_s8 }
 0x688   : > { %15859 = vrot.lane.b32.xlu1 %v18449_v1, %s20311_s10  ;;  %3839 = vrot.lane.b32.xlu0 %v18415_v36, %s20323_s8  ;;  %s2682_s10 = scalar_lea.vmem %s20453_s1, %s20495_s0  ;;  %s20317_s1 = smov 112  }
 0x68c   : > { %3837 = vrot.lane.b32.xlu1 %v18401_v23, %s20323_s8  ;;  %3843 = vrot.lane.b32.xlu0 %v18427_v47, %s20323_s8 }
 0x690   : > { %3841 = vrot.lane.b32.xlu1 %v18413_v34, %s20323_s8  ;;  %3847 = vrot.lane.b32.xlu0 %v18439_v62, %s20323_s8 }
 0x694   : > { %3845 = vrot.lane.b32.xlu1 %v18425_v45, %s20323_s8 }
 0x698   : > { %3849 = vrot.lane.b32.xlu1 %v18437_v59, %s20323_s8 }
 0x6e6   : > { %v15825_v3 = vpop.permute.xlu0 %15824 }
 0x6e7   : > { %v15827_v4 = vunpack.i.h.bf16 %v15825_v3  ;;  %v15826_v6 = vunpack.i.l.bf16 %v15825_v3 }
 0x6e9   : > { %v14929_v8 = vpack.c.bf16 %v15827_v4, %v15826_v6  ;;  %v3461_v4 = vlaneseq }
 0x6ea   : > { %v15830_v9 = vpop.permute.xlu0 %15829 }
 0x6eb   : > { %v15832_v11 = vunpack.i.h.bf16 %v15830_v9  ;;  %v15831_v12 = vunpack.i.l.bf16 %v15830_v9  ;;  %14931 = vmatprep.subr.msk.bf16.mxu0 %vm18477_vm4, %v14929_v8  ;;  %v3462_v6 = vshrl.u32 %v3461_v4, 7 }
 0x6ec   : > { %14934 = vmatpush3.bf16.xpose.msk.msra.mxu0 %vm18477_vm4, %v14929_v8  ;;  %v2707_v8 = vld [vmem:[%s2682_s10] sm:$0x1]  ;;  %s20313_s10 = smov 80  }
 0x6ed   : > { %v14935_v14 = vpack.c.bf16 %v15832_v11, %v15831_v12  ;;  %v2708_v9 = vmul.f32 -1e+09, %v2707_v8  ;;  %v3463_v11 = vsub.s32 0, %v3462_v6 }
 0x6ee   : > { %v15835_v15 = vpop.permute.xlu1 %15834  ;;  %v15845_v24 = vpop.permute.xlu0 %15844 }
 0x6ef   : > { %v15837_v16 = vunpack.i.h.bf16 %v15835_v15  ;;  %v15836_v17 = vunpack.i.l.bf16 %v15835_v15  ;;  %14937 = vmatprep.subr.msk.bf16.mxu0 %vm18477_vm4, %v14935_v14  ;;  %v15847_v26 = vunpack.i.h.bf16 %v15845_v24  ;;  %v15846_v27 = vunpack.i.l.bf16 %v15845_v24 }
 0x6f0   : > { %v18537_v12 = vrot.slane %v2708_v9, %v3463_v11 }
 0x6f1   : > { %v14941_v18 = vpack.c.bf16 %v15837_v16, %v15836_v17  ;;  %v14969_v29 = vpack.c.bf16 %v15847_v26, %v15846_v27 }
 0x6f2   : > { %v15840_v19 = vpop.permute.xlu1 %15839  ;;  %v15855_v37 = vpop.permute.xlu0 %15854 }
 0x6f3   : > { %v15842_v20 = vunpack.i.h.bf16 %v15840_v19  ;;  %v15841_v21 = vunpack.i.l.bf16 %v15840_v19  ;;  %v15857_v38 = vunpack.i.h.bf16 %v15855_v37  ;;  %v15856_v40 = vunpack.i.l.bf16 %v15855_v37 }
 0x6f4   : > { %14940 = vmatpush3.bf16.xpose.msk.msra.mxu0 %vm18477_vm4, %v14935_v14 }
 0x6f5   : > { %14943 = vmatprep.subr.msk.bf16.mxu0 %vm18477_vm4, %v14941_v18  ;;  %v14947_v22 = vpack.c.bf16 %v15842_v20, %v15841_v21  ;;  %v14981_v41 = vpack.c.bf16 %v15857_v38, %v15856_v40 }
 0x6f6   : > { %v15850_v30 = vpop.permute.xlu1 %15849  ;;  %v3836_v43 = vpop.permute.xlu0 %3835 }
 0x6f7   : > { %v15852_v31 = vunpack.i.h.bf16 %v15850_v30  ;;  %v15851_v32 = vunpack.i.l.bf16 %v15850_v30 }
 0x6f9   : > { %v14975_v35 = vpack.c.bf16 %v15852_v31, %v15851_v32 }
 0x6fa   : > { %v15860_v42 = vpop.permute.xlu1 %15859  ;;  %v3840_v54 = vpop.permute.xlu0 %3839 }
 0x6fb   : > { %v15862_v46 = vunpack.i.h.bf16 %v15860_v42  ;;  %v15861_v48 = vunpack.i.l.bf16 %v15860_v42 }
 0x6fc   : > { %14946 = vmatpush3.bf16.xpose.msk.msra.mxu0 %vm18477_vm4, %v14941_v18 }
 0x6fd   : > { %14949 = vmatprep.subr.msk.bf16.mxu0 %vm18477_vm4, %v14947_v22  ;;  %v14987_v50 = vpack.c.bf16 %v15862_v46, %v15861_v48 }
 0x6fe   : > { %v3838_v52 = vpop.permute.xlu1 %3837  ;;  %v3844_v57 = vpop.permute.xlu0 %3843 }
 0x702   : > { %v3842_v55 = vpop.permute.xlu1 %3841  ;;  %v3848_v63 = vpop.permute.xlu0 %3847 }
 0x704   : > { %14952 = vmatpush3.bf16.xpose.msk.msra.mxu0 %vm18477_vm4, %v14947_v22 }
 0x705   : > { %14971 = vmatprep.subr.msk.bf16.mxu0 %vm18477_vm4, %v14969_v29 }
 0x706   : > { %v3846_v60 = vpop.permute.xlu1 %3845 }
 0x70a   : > { %v3850_v3 = vpop.permute.xlu1 %3849 }
 0x70b   : > { %13888 = vmatmul.mubr.msk.f32.vlgmr.msra.gmra.mrb[16].mxu0 %vm2867_vm2, %v18401_v23 }
 0x70c   : > { %13890 = vmatprep.mubr.msk.f32.mxu0 %vm2867_vm2, %v18415_v36  ;;  %14974 = vmatpush3.bf16.xpose.msk.msra.mxu0 %vm18477_vm4, %v14969_v29 }
 0x70d   : > { %14977 = vmatprep.subr.msk.bf16.mxu0 %vm18477_vm4, %v14975_v35 }
 0x70f   : > { %13891 = vmatmul.mubr.msk.f32.gmra.mrb[18].mxu0 %vm2867_vm2, %v18413_v34 }
 0x710   : > { %13893 = vmatprep.mubr.msk.f32.mxu0 %vm2867_vm2, %v18427_v47 }
 0x713   : > { %13894 = vmatmul.mubr.msk.f32.gmra.mrb[20].mxu0 %vm2867_vm2, %v18425_v45 }
 0x714   : > { %13896 = vmatprep.mubr.msk.f32.mxu0 %vm2867_vm2, %v18439_v62  ;;  %14980 = vmatpush3.bf16.xpose.msk.msra.mxu0 %vm18477_vm4, %v14975_v35 }
 0x715   : > { %14983 = vmatprep.subr.msk.bf16.mxu0 %vm18477_vm4, %v14981_v41 }
 0x717   : > { %13897 = vmatmul.mubr.msk.f32.gmra.mrb[22].mxu0 %vm2867_vm2, %v18437_v59 }
 0x718   : > { %13957 = vmatprep.mubr.msk.f32.mxu0 %vm2867_vm2, %v3836_v43 }
 0x71c   : > { %14986 = vmatpush3.bf16.xpose.msk.msra.mxu0 %vm18477_vm4, %v14981_v41 }
 0x71d   : > { %14989 = vmatprep.subr.msk.bf16.mxu0 %vm18477_vm4, %v14987_v50 }
 0x724   : > { %14992 = vmatpush3.bf16.xpose.msk.msra.mxu0 %vm18477_vm4, %v14987_v50 }
 0x72b   : > { %13958 = vmatmul.mubr.msk.f32.vlgmr.msra.gmra.mrb[24].mxu0 %vm2867_vm2, %v3838_v52 }
 0x72c   : > { %13960 = vmatprep.mubr.msk.f32.mxu0 %vm2867_vm2, %v3840_v54 }
 0x72f   : > { %13961 = vmatmul.mubr.msk.f32.gmra.mrb[26].mxu0 %vm2867_vm2, %v3842_v55 }
 0x730   : > { %13963 = vmatprep.mubr.msk.f32.mxu0 %vm2867_vm2, %v3844_v57 }
 0x733   : > { %13964 = vmatmul.mubr.msk.f32.gmra.mrb[28].mxu0 %vm2867_vm2, %v3846_v60 }
 0x734   : > { %13966 = vmatprep.mubr.msk.f32.mxu0 %vm2867_vm2, %v3848_v63 }
 0x737   : > { %13967 = vmatmul.mubr.msk.f32.gmra.mrb[30].mxu0 %vm2867_vm2, %v3850_v3 }
 0x7de   : > { %v13889_v14 = vpop.f32.mrb[16].mxu0 }
 0x7df   : > { %v3453_v15 = vmul.f32 0.35355338, %v13889_v14  ;;  %v3413_v16 = vpop.f32.mrb[17].mxu0 }
 0x7e0   : > { %v3452_v17 = vmul.f32 0.35355338, %v3413_v16 }
 0x7e1   : > { %v3467_v18 = vadd.f32 %v18537_v12, %v3453_v15 }
 0x7e2   : > { %v13892_v19 = vpop.f32.mrb[18].mxu0  ;;  %v3466_v20 = vadd.f32 %v18537_v12, %v3452_v17 }
 0x7e3   : > { %v3455_v21 = vmul.f32 0.35355338, %v13892_v19  ;;  %v3423_v22 = vpop.f32.mrb[19].mxu0  ;;  %v3478_v24 = vsel %vm3474_vm5, %v3467_v18, -inf }
 0x7e4   : > { %v3454_v26 = vmul.f32 0.35355338, %v3423_v22  ;;  %3479 = vmax.xlane.f32.xlu1 %v3478_v24  ;;  %v3475_v27 = vsel %vm3474_vm5, %v3466_v20, -inf }
 0x7e5   : > { %3476 = vmax.xlane.f32.xlu0 %v3475_v27  ;;  %v3469_v32 = vadd.f32 %v18537_v12, %v3455_v21 }
 0x7e6   : > { %v13895_v29 = vpop.f32.mrb[20].mxu0  ;;  %v3468_v30 = vadd.f32 %v18537_v12, %v3454_v26 }
 0x7e7   : > { %v3433_v31 = vpop.f32.mrb[21].mxu0  ;;  %v3457_v35 = vmul.f32 0.35355338, %v13895_v29  ;;  %v3484_v43 = vsel %vm3474_vm5, %v3469_v32, -inf }
 0x7e8   : > { %v3456_v37 = vmul.f32 0.35355338, %v3433_v31  ;;  %v3481_v38 = vsel %vm3474_vm5, %v3468_v30, -inf }
 0x7e9   : > { %3482 = vmax.xlane.f32.xlu0 %v3481_v38  ;;  %v3471_v52 = vadd.f32 %v18537_v12, %v3457_v35 }
 0x7ea   : > { %v13898_v40 = vpop.f32.mrb[22].mxu0  ;;  %v3470_v41 = vadd.f32 %v18537_v12, %v3456_v37 }
 0x7eb   : > { %v3443_v42 = vpop.f32.mrb[23].mxu0  ;;  %v3459_v46 = vmul.f32 0.35355338, %v13898_v40  ;;  %v3490_v55 = vsel %vm3474_vm5, %v3471_v52, -inf }
 0x7ec   : > { %v3458_v48 = vmul.f32 0.35355338, %v3443_v42  ;;  %v3487_v50 = vsel %vm3474_vm5, %v3470_v41, -inf }
 0x7ed   : > { %3485 = vmax.xlane.f32.xlu0 %v3484_v43  ;;  %3488 = vmax.xlane.f32.xlu1 %v3487_v50  ;;  %v3473_v60 = vadd.f32 %v18537_v12, %v3459_v46 }
 0x7ee   : > { %v3472_v54 = vadd.f32 %v18537_v12, %v3458_v48 }
 0x7ef   : > { %v3496_v63 = vsel %vm3474_vm5, %v3473_v60, -inf }
 0x7f0   : > { %v3493_v57 = vsel %vm3474_vm5, %v3472_v54, -inf }
 0x7f1   : > { %3491 = vmax.xlane.f32.xlu0 %v3490_v55  ;;  %3494 = vmax.xlane.f32.xlu1 %v3493_v57 }
 0x7f5   : > { %3497 = vmax.xlane.f32.xlu0 %v3496_v63 }
 0x7fe   : > { %v18555_v3 = vpop.f32.mrb[24].mxu0 }
 0x7ff   : > { %v18557_v4 = vpop.f32.mrb[25].mxu0 }
 0x802   : > { %v18559_v6 = vpop.f32.mrb[26].mxu0 }
 0x803   : > { %v18561_v8 = vpop.f32.mrb[27].mxu0 }
 0x806   : > { %v18563_v9 = vpop.f32.mrb[28].mxu0 }
 0x807   : > { %v18565_v11 = vpop.f32.mrb[29].mxu0 }
 0x80a   : > { %v18567_v14 = vpop.f32.mrb[30].mxu0 }
 0x80b   : > { %v18569_v15 = vpop.f32.mrb[31].mxu0 }
 0x871   : > { %v3480_v16 = vpop.xlane.xlu1 %3479 }
 0x872   : > { %v3500_v17 = vsub.f32 %v3467_v18, %v3480_v16  ;;  %v3477_v19 = vpop.xlane.xlu0 %3476 }
 0x873   : > { %v3499_v21 = vsub.f32 %v3466_v20, %v3477_v19 }
 0x874   : > { %v3509_v22 = vmul.f32 1.442695, %v3500_v17 }
 0x875   : > { %v3507_v24 = vmul.f32 1.442695, %v3499_v21 }
 0x876   : > { %16223 = vpow2.f32 %v3509_v22  ;;  %v3483_v26 = vpop.xlane.xlu0 %3482 }
 0x877   : > { %16225 = vpow2.f32 %v3507_v24  ;;  %v3501_v27 = vsub.f32 %v3468_v30, %v3483_v26 }
 0x879   : > { %v3511_v29 = vmul.f32 1.442695, %v3501_v27 }
 0x87a   : > { %v3486_v31 = vpop.xlane.xlu0 %3485  ;;  %v3489_v35 = vpop.xlane.xlu1 %3488 }
 0x87b   : > { %16227 = vpow2.f32 %v3511_v29  ;;  %v3502_v37 = vsub.f32 %v3469_v32, %v3486_v31  ;;  %v3503_v38 = vsub.f32 %v3470_v41, %v3489_v35  ;;  %v4004_v35 = vmul.f32 0.35355338, %v18557_v4 }
 0x87d   : > { %v3513_v40 = vmul.f32 1.442695, %v3502_v37  ;;  %v3515_v42 = vmul.f32 1.442695, %v3503_v38  ;;  %v4006_v37 = vmul.f32 0.35355338, %v18561_v8  ;;  %v18630_v38 = vadd.f32 %v4004_v35, %v18537_v12 }
 0x87e   : > { %v3492_v43 = vpop.xlane.xlu0 %3491  ;;  %v3495_v46 = vpop.xlane.xlu1 %3494  ;;  %v4009_v8 = vmul.f32 0.35355338, %v18563_v9 }
 0x87f   : > { %16229 = vpow2.f32 %v3513_v40  ;;  %v3504_v18 = vsub.f32 %v3471_v52, %v3492_v43  ;;  %v3505_v48 = vsub.f32 %v3472_v54, %v3495_v46  ;;  %v4005_v40 = vmul.f32 0.35355338, %v18555_v3 }
 0x880   : > { %v18571_v20 = vpop.eup %16223  ;;  %16231 = vpow2.f32 %v3515_v42  ;;  %v4007_v42 = vmul.f32 0.35355338, %v18559_v6  ;;  %v4020_v43 = vsel %vm3474_vm5, %v18630_v38, -inf  ;;  %v18637_v46 = vadd.f32 %v4006_v37, %v18537_v12 }
 0x881   : > { %v18573_v50 = vpop.eup %16225  ;;  %v3517_v55 = vmul.f32 1.442695, %v3504_v18  ;;  %v3519_v30 = vmul.f32 1.442695, %v3505_v48  ;;  %v3526_v57 = vsel %vm3474_vm5, %v18571_v20, 0.0  ;;  %v18641_v4 = vadd.f32 %v4005_v40, %v18537_v12 }
 0x882   : > { %3527 = vadd.xlane.f32.xlu0 %v3526_v57  ;;  %v3498_v32 = vpop.xlane.xlu0 %3497  ;;  %v3523_v41 = vsel %vm3474_vm5, %v18573_v50, 0.0  ;;  %v4008_v18 = vmul.f32 0.35355338, %v18565_v11  ;;  %v4026_v48 = vsel %vm3474_vm5, %v18637_v46, -inf  ;;  %v18647_v3 = vadd.f32 %v4007_v42, %v18537_v12 }
 0x883   : > { %16233 = vpow2.f32 %v3517_v55  ;;  %v3506_v63 = vsub.f32 %v3473_v60, %v3498_v32  ;;  %3524 = vadd.xlane.f32.xlu1 %v3523_v41  ;;  %v4010_v6 = vmul.f32 0.35355338, %v18569_v15  ;;  %v4023_v55 = vsel %vm3474_vm5, %v18641_v4, -inf }
 0x884   : > { %16235 = vpow2.f32 %v3519_v30  ;;  %v18653_v11 = vadd.f32 %v4008_v18, %v18537_v12  ;;  %v4011_v30 = vmul.f32 0.35355338, %v18567_v14  ;;  %v4029_v9 = vsel %vm3474_vm5, %v18647_v3, -inf }
 0x885   : > { %v18579_v52 = vpop.eup %16227  ;;  %v3521_v54 = vmul.f32 1.442695, %v3506_v63  ;;  %v18659_v57 = vadd.f32 %v4009_v8, %v18537_v12  ;;  %v18664_v32 = vadd.f32 %v4010_v6, %v18537_v12 }
 0x886   : > { %v3529_v16 = vsel %vm3474_vm5, %v18579_v52, 0.0  ;;  %v4032_v15 = vsel %vm3474_vm5, %v18653_v11, -inf  ;;  %v18669_v63 = vadd.f32 %v4011_v30, %v18537_v12 }
 0x887   : > { %16237 = vpow2.f32 %v3521_v54  ;;  %3530 = vadd.xlane.f32.xlu1 %v3529_v16  ;;  %v4035_v41 = vsel %vm3474_vm5, %v18659_v57, -inf  ;;  %v4038_v14 = vsel %vm3474_vm5, %v18664_v32, -inf }
 0x888   : > { %v4041_v54 = vsel %vm3474_vm5, %v18669_v63, -inf }
 0x889   : > { %v18583_v17 = vpop.eup %16229 }
 0x88a   : > { %v18585_v19 = vpop.eup %16231  ;;  %v3532_v21 = vsel %vm3474_vm5, %v18583_v17, 0.0 }
 0x88b   : > { %3533 = vadd.xlane.f32.xlu0 %v3532_v21  ;;  %v3535_v60 = vsel %vm3474_vm5, %v18585_v19, 0.0 }
 0x88c   : > { %3536 = vadd.xlane.f32.xlu1 %v3535_v60 }
 0x88d   : > { %v18591_v22 = vpop.eup %16233 }
 0x88e   : > { %v18593_v24 = vpop.eup %16235  ;;  %v3538_v26 = vsel %vm3474_vm5, %v18591_v22, 0.0 }
 0x88f   : > { %3539 = vadd.xlane.f32.xlu0 %v3538_v26  ;;  %v3541_v27 = vsel %vm3474_vm5, %v18593_v24, 0.0 }
 0x890   : > { %3542 = vadd.xlane.f32.xlu1 %v3541_v27 }
 0x891   : > { %v18599_v29 = vpop.eup %16237 }
 0x892   : > { %v3544_v31 = vsel %vm3474_vm5, %v18599_v29, 0.0 }
 0x893   : > { %3545 = vadd.xlane.f32.xlu0 %v3544_v31 }
 0x8a1   : > { %15864 = vrot.lane.b32.xlu1 %v18411_v33, %s20313_s10 }
 0x8a5   : > { %15874 = vrot.lane.b32.xlu1 %v18435_v56, %s20313_s10 }
 0x8a9   : > { %15879 = vrot.lane.b32.xlu1 %v18449_v1, %s20313_s10  ;;  %15869 = vrot.lane.b32.xlu0 %v18423_v44, %s20313_s10  ;;  %s20454_s10 = sld [smem:[#allocation132_spill]] }
 0x8ad   : > { %4408 = vrot.lane.b32.xlu1 %v18401_v23, %s20317_s1  ;;  %4406 = vrot.lane.b32.xlu0 %v18403_v25, %s20317_s1 }
 0x8af   : > { %v3286_v16 = vld [vmem:[%s20454_s10] sm:$0xff] }
 0x8b0   : > { %13927 = vmatprep.subr.mxu1 %v3286_v16 }
 0x8b1   : > { %4412 = vrot.lane.b32.xlu1 %v18413_v34, %s20317_s1  ;;  %4410 = vrot.lane.b32.xlu0 %v18415_v36, %s20317_s1 }
 0x8b5   : > { %4416 = vrot.lane.b32.xlu1 %v18425_v45, %s20317_s1  ;;  %4414 = vrot.lane.b32.xlu0 %v18427_v47, %s20317_s1 }
 0x8b9   : > { %4420 = vrot.lane.b32.xlu1 %v18437_v59, %s20317_s1  ;;  %4418 = vrot.lane.b32.xlu0 %v18439_v62, %s20317_s1  ;;  %s20321_s1 = smov 104  }
 0x8d8   : > { %4021 = vmax.xlane.f32.xlu0 %v4020_v43 }
 0x8dc   : > { %4027 = vmax.xlane.f32.xlu0 %v4026_v48 }
 0x8dd   : > { %4024 = vmax.xlane.f32.xlu1 %v4023_v55 }
 0x8e0   : > { %4030 = vmax.xlane.f32.xlu0 %v4029_v9 }
 0x8e1   : > { %4033 = vmax.xlane.f32.xlu1 %v4032_v15 }
 0x8e4   : > { %4036 = vmax.xlane.f32.xlu0 %v4035_v41 }
 0x8e5   : > { %4039 = vmax.xlane.f32.xlu1 %v4038_v14 }
 0x8e8   : > { %4042 = vmax.xlane.f32.xlu0 %v4041_v54 }
 0x8f6   : > { %15884 = vrot.lane.b32.xlu1 %v18405_v28, %s20323_s8 }
 0x90f   : > { %v3528_v21 = vpop.xlane.xlu0 %3527 }
 0x910   : > { %16239 = vrcp.f32 %v3528_v21  ;;  %v3525_v60 = vpop.xlane.xlu1 %3524 }
 0x911   : > { %16241 = vrcp.f32 %v3525_v60 }
 0x914   : > { %v3531_v26 = vpop.xlane.xlu1 %3530 }
 0x915   : > { %16243 = vrcp.f32 %v3531_v26 }
 0x918   : > { %v3534_v27 = vpop.xlane.xlu0 %3533 }
 0x919   : > { %16245 = vrcp.f32 %v3534_v27  ;;  %v3537_v31 = vpop.xlane.xlu1 %3536 }
 0x91a   : > { %v16240_v35 = vpop.eup %16239  ;;  %16247 = vrcp.f32 %v3537_v31 }
 0x91b   : > { %v16242_v37 = vpop.eup %16241  ;;  %v3556_v43 = vmul.f32 %v16240_v35, %v18571_v20 }
 0x91c   : > { %v3540_v40 = vpop.xlane.xlu0 %3539  ;;  %v3555_v42 = vmul.f32 %v16242_v37, %v18573_v50 }
 0x91d   : > { %16249 = vrcp.f32 %v3540_v40  ;;  %v3543_v18 = vpop.xlane.xlu1 %3542 }
 0x91e   : > { %16251 = vrcp.f32 %v3543_v18  ;;  %13915 = vmatprep.mubr.msk.f32.mxu1 %vm3474_vm5, %v3555_v42 }
 0x91f   : > { %v16244_v8 = vpop.eup %16243  ;;  %13916 = vmatmul.mubr.msk.f32.vlgmr.msra.gmra.mrb[16].mxu1 %vm3474_vm5, %v3556_v43 }
 0x920   : > { %v3546_v48 = vpop.xlane.xlu0 %3545  ;;  %v3557_v6 = vmul.f32 %v16244_v8, %v18579_v52  ;;  %13928 = vmatpush3.msra.mxu1 %v3286_v16 }
 0x921   : > { %16253 = vrcp.f32 %v3546_v48  ;;  %v15865_v55 = vpop.permute.xlu1 %15864 }
 0x922   : > { %v15867_v30 = vunpack.i.h.bf16 %v15865_v55  ;;  %v15866_v9 = vunpack.i.l.bf16 %v15865_v55  ;;  %13918 = vmatprep.mubr.msk.f32.mxu1 %vm3474_vm5, %v3557_v6 }
 0x923   : > { %v16246_v50 = vpop.eup %16245 }
 0x924   : > { %v16248_v20 = vpop.eup %16247  ;;  %v15009_v15 = vpack.c.bf16 %v15867_v30, %v15866_v9  ;;  %v15870_v41 = vpop.permute.xlu0 %15869  ;;  %v3558_v14 = vmul.f32 %v16246_v50, %v18583_v17 }
 0x925   : > { %v15872_v54 = vunpack.i.h.bf16 %v15870_v41  ;;  %v15871_v21 = vunpack.i.l.bf16 %v15870_v41  ;;  %v3559_v60 = vmul.f32 %v16248_v20, %v18585_v19  ;;  %v15875_v26 = vpop.permute.xlu1 %15874 }
 0x926   : > { %15011 = vmatprep.subr.msk.bf16.mxu0 %vm18477_vm4, %v15009_v15  ;;  %13919 = vmatmul.mubr.msk.f32.gmra.mrb[18].mxu1 %vm3474_vm5, %v3558_v14  ;;  %v15877_v35 = vunpack.i.h.bf16 %v15875_v26  ;;  %v15876_v37 = vunpack.i.l.bf16 %v15875_v26 }
 0x927   : > { %v16250_v52 = vpop.eup %16249  ;;  %v15015_v16 = vpack.c.bf16 %v15872_v54, %v15871_v21  ;;  %15014 = vmatpush3.bf16.xpose.msk.msra.mxu0 %vm18477_vm4, %v15009_v15  ;;  %13921 = vmatprep.mubr.msk.f32.mxu1 %vm3474_vm5, %v3559_v60 }
 0x928   : > { %v16252_v27 = vpop.eup %16251  ;;  %v4407_v31 = vpop.permute.xlu0 %4406  ;;  %v3560_v17 = vmul.f32 %v16250_v52, %v18591_v22  ;;  %v15021_v43 = vpack.c.bf16 %v15877_v35, %v15876_v37 }
 0x929   : > { %15017 = vmatprep.subr.msk.bf16.mxu0 %vm18477_vm4, %v15015_v16  ;;  %14027 = vmatprep.mubr.msk.f32.mxu0 %vm2867_vm2, %v4407_v31  ;;  %v3561_v19 = vmul.f32 %v16252_v27, %v18593_v24  ;;  %v15880_v22 = vpop.permute.xlu1 %15879 }
 0x92a   : > { %13922 = vmatmul.mubr.msk.f32.gmra.mrb[20].mxu1 %vm3474_vm5, %v3560_v17  ;;  %v15882_v24 = vunpack.i.h.bf16 %v15880_v22  ;;  %v15881_v18 = vunpack.i.l.bf16 %v15880_v22 }
 0x92b   : > { %v16254_v40 = vpop.eup %16253  ;;  %13924 = vmatprep.mubr.msk.f32.mxu1 %vm3474_vm5, %v3561_v19 }
 0x92c   : > { %v3562_v42 = vmul.f32 %v16254_v40, %v18599_v29  ;;  %v15027_v8 = vpack.c.bf16 %v15882_v24, %v15881_v18  ;;  %v4411_v48 = vpop.permute.xlu0 %4410 }
 0x92d   : > { %v4409_v29 = vpop.permute.xlu1 %4408 }
 0x92e   : > { %13925 = vmatmul.mubr.msk.f32.gmra.mrb[22].mxu1 %vm3474_vm5, %v3562_v42 }
 0x92f   : > { %15020 = vmatpush3.bf16.xpose.msk.msra.mxu0 %vm18477_vm4, %v15015_v16 }
 0x930   : > { %15023 = vmatprep.subr.msk.bf16.mxu0 %vm18477_vm4, %v15021_v43  ;;  %v4415_v55 = vpop.permute.xlu0 %4414 }
 0x931   : > { %v4413_v6 = vpop.permute.xlu1 %4412 }
 0x934   : > { %v4419_v9 = vpop.permute.xlu0 %4418 }
 0x935   : > { %v4417_v30 = vpop.permute.xlu1 %4416 }
 0x937   : > { %15026 = vmatpush3.bf16.xpose.msk.msra.mxu0 %vm18477_vm4, %v15021_v43 }
 0x938   : > { %15029 = vmatprep.subr.msk.bf16.mxu0 %vm18477_vm4, %v15027_v8 }
 0x939   : > { %v4421_v50 = vpop.permute.xlu1 %4420 }
 0x93f   : > { %15032 = vmatpush3.bf16.xpose.msk.msra.mxu0 %vm18477_vm4, %v15027_v8 }
 0x946   : > { %14028 = vmatmul.mubr.msk.f32.vlgmr.msra.gmra.mrb[32].mxu0 %vm2867_vm2, %v4409_v29 }
 0x947   : > { %14030 = vmatprep.mubr.msk.f32.mxu0 %vm2867_vm2, %v4411_v48 }
 0x94a   : > { %14031 = vmatmul.mubr.msk.f32.gmra.mrb[34].mxu0 %vm2867_vm2, %v4413_v6 }
 0x94b   : > { %14033 = vmatprep.mubr.msk.f32.mxu0 %vm2867_vm2, %v4415_v55 }
 0x94e   : > { %14034 = vmatmul.mubr.msk.f32.gmra.mrb[36].mxu0 %vm2867_vm2, %v4417_v30 }
 0x94f   : > { %14036 = vmatprep.mubr.msk.f32.mxu0 %vm2867_vm2, %v4419_v9 }
 0x952   : > { %14037 = vmatmul.mubr.msk.f32.gmra.mrb[38].mxu0 %vm2867_vm2, %v4421_v50 }
 0x965   : > { %v4022_v20 = vpop.xlane.xlu0 %4021 }
 0x966   : > { %v4044_v15 = vsub.f32 %v18630_v38, %v4022_v20 }
 0x968   : > { %v4052_v41 = vmul.f32 1.442695, %v4044_v15 }
 0x969   : > { %v4028_v14 = vpop.xlane.xlu0 %4027 }
 0x96a   : > { %16255 = vpow2.f32 %v4052_v41  ;;  %v4046_v54 = vsub.f32 %v18637_v46, %v4028_v14  ;;  %v4025_v21 = vpop.xlane.xlu1 %4024 }
 0x96b   : > { %v4045_v60 = vsub.f32 %v18641_v4, %v4025_v21 }
 0x96c   : > { %v4056_v52 = vmul.f32 1.442695, %v4046_v54 }
 0x96d   : > { %v4054_v16 = vmul.f32 1.442695, %v4045_v60  ;;  %v4031_v26 = vpop.xlane.xlu0 %4030 }
 0x96e   : > { %16257 = vpow2.f32 %v4056_v52  ;;  %v4047_v27 = vsub.f32 %v18647_v3, %v4031_v26  ;;  %v4034_v31 = vpop.xlane.xlu1 %4033 }
 0x96f   : > { %16259 = vpow2.f32 %v4054_v16  ;;  %v4048_v17 = vsub.f32 %v18653_v11, %v4034_v31 }
 0x970   : > { %v4058_v19 = vmul.f32 1.442695, %v4047_v27 }
 0x971   : > { %v4060_v38 = vmul.f32 1.442695, %v4048_v17  ;;  %v4037_v35 = vpop.xlane.xlu0 %4036 }
 0x972   : > { %16261 = vpow2.f32 %v4058_v19  ;;  %v4049_v37 = vsub.f32 %v18659_v57, %v4037_v35  ;;  %v4040_v46 = vpop.xlane.xlu1 %4039 }
 0x973   : > { %16263 = vpow2.f32 %v4060_v38  ;;  %v4050_v42 = vsub.f32 %v18664_v32, %v4040_v46 }
 0x974   : > { %v18724_v40 = vpop.eup %16255  ;;  %v4062_v4 = vmul.f32 1.442695, %v4049_v37 }
 0x975   : > { %v4043_v43 = vpop.xlane.xlu0 %4042  ;;  %v4068_v3 = vsel %vm3474_vm5, %v18724_v40, 0.0  ;;  %v4064_v48 = vmul.f32 1.442695, %v4050_v42 }
 0x976   : > { %16265 = vpow2.f32 %v4062_v4  ;;  %v4051_v11 = vsub.f32 %v18669_v63, %v4043_v43  ;;  %v15885_v22 = vpop.permute.xlu1 %15884  ;;  %4069 = vadd.xlane.f32.xlu1 %v4068_v3 }
 0x977   : > { %v15887_v24 = vunpack.i.h.bf16 %v15885_v22  ;;  %v15886_v18 = vunpack.i.l.bf16 %v15885_v22 }
 0x978   : > { %v18730_v8 = vpop.eup %16257  ;;  %v4066_v57 = vmul.f32 1.442695, %v4051_v11 }
 0x979   : > { %v18732_v29 = vpop.eup %16259  ;;  %v4074_v32 = vsel %vm3474_vm5, %v18730_v8, 0.0  ;;  %v14993_v6 = vpack.c.bf16 %v15887_v24, %v15886_v18 }
 0x97a   : > { %16267 = vpow2.f32 %v4066_v57  ;;  %4075 = vadd.xlane.f32.xlu1 %v4074_v32  ;;  %v4071_v55 = vsel %vm3474_vm5, %v18732_v29, 0.0 }
 0x97b   : > { %4072 = vadd.xlane.f32.xlu0 %v4071_v55  ;;  %14994 = vmatprep.subr.bf16.mxu1 %v14993_v6  ;;  %16269 = vpow2.f32 %v4064_v48 }
 0x97c   : > { %v18738_v63 = vpop.eup %16261 }
 0x97d   : > { %v18740_v30 = vpop.eup %16263  ;;  %v4077_v9 = vsel %vm3474_vm5, %v18738_v63, 0.0 }
 0x97e   : > { %v4080_v50 = vsel %vm3474_vm5, %v18740_v30, 0.0 }
 0x97f   : > { %4078 = vadd.xlane.f32.xlu0 %v4077_v9  ;;  %4081 = vadd.xlane.f32.xlu1 %v4080_v50 }
 0x980   : > { %v18746_v20 = vpop.eup %16265 }
 0x981   : > { %v4083_v15 = vsel %vm3474_vm5, %v18746_v20, 0.0 }
 0x983   : > { %4084 = vadd.xlane.f32.xlu0 %v4083_v15 }
 0x984   : > { %v18750_v41 = vpop.eup %16267 }
 0x985   : > { %v4089_v14 = vsel %vm3474_vm5, %v18750_v41, 0.0  ;;  %v18754_v54 = vpop.eup %16269 }
 0x986   : > { %v4086_v21 = vsel %vm3474_vm5, %v18754_v54, 0.0 }
 0x987   : > { %4090 = vadd.xlane.f32.xlu0 %v4089_v14 }
 0x98b   : > { %4087 = vadd.xlane.f32.xlu0 %v4086_v21 }
 0x990   : > { %15894 = vrot.lane.b32.xlu1 %v18431_v51, %s20323_s8 }
 0x994   : > { %15899 = vrot.lane.b32.xlu1 %v18445_v0, %s20323_s8 }
 0x998   : > { %15904 = vrot.lane.b32.xlu1 %v18411_v33, %s20319_s2 }
 0x99c   : > { %15909 = vrot.lane.b32.xlu1 %v18423_v44, %s20319_s2 }
 0x9a0   : > { %15919 = vrot.lane.b32.xlu1 %v18449_v1, %s20319_s2 }
 0x9a1   : > { %15889 = vrot.lane.b32.xlu0 %v18419_v39, %s20323_s8  ;;  %s20457_s8 = sld [smem:[#allocation83_spill]] }
 0x9a4   : > { %4971 = vrot.lane.b32.xlu1 %v18401_v23, %s20321_s1 }
 0x9a5   : > { %15914 = vrot.lane.b32.xlu0 %v18435_v56, %s20319_s2  ;;  %s20455_s2 = smov 112  }
 0x9a8   : > { %4975 = vrot.lane.b32.xlu1 %v18413_v34, %s20321_s1 }
 0x9a9   : > { %4969 = vrot.lane.b32.xlu0 %v18403_v25, %s20321_s1 }
 0x9ac   : > { %4979 = vrot.lane.b32.xlu1 %v18425_v45, %s20321_s1 }
 0x9ad   : > { %4973 = vrot.lane.b32.xlu0 %v18415_v36, %s20321_s1 }
 0x9b0   : > { %4983 = vrot.lane.b32.xlu1 %v18437_v59, %s20321_s1 }
 0x9b1   : > { %4977 = vrot.lane.b32.xlu0 %v18427_v47, %s20321_s1 }
 0x9b5   : > { %4981 = vrot.lane.b32.xlu0 %v18439_v62, %s20321_s1 }
 0x9f2   : > { %v13917_v23 = vpop.f32.mrb[16].mxu1 }
 0x9f3   : > { %v3653_v33 = vpop.f32.mrb[17].mxu1 }
 0x9f4   : > { %13929 = vmatprep.mubr.msk.f32.mxu1 %vm2867_vm2, %v3653_v33 }
 0x9f5   : > { %13930 = vmatmul.mubr.msk.f32.vlgmr.msra.gmra.mrb[24].mxu1 %vm2867_vm2, %v13917_v23 }
 0x9f6   : > { %14996 = vmatpush3.bf16.msra.mxu1 %v14993_v6 }
 0x9f9   : > { %v13920_v25 = vpop.f32.mrb[18].mxu1 }
 0x9fa   : > { %v3663_v34 = vpop.f32.mrb[19].mxu1 }
 0x9fb   : > { %13932 = vmatprep.mubr.msk.f32.mxu1 %vm2867_vm2, %v3663_v34 }
 0x9fc   : > { %13933 = vmatmul.mubr.msk.f32.gmra.mrb[26].mxu1 %vm2867_vm2, %v13920_v25 }
 0x9fd   : > { %v13923_v36 = vpop.f32.mrb[20].mxu1 }
 0x9fe   : > { %v3673_v44 = vpop.f32.mrb[21].mxu1 }
 0x9ff   : > { %13935 = vmatprep.mubr.msk.f32.mxu1 %vm2867_vm2, %v3673_v44 }
 0xa00   : > { %13936 = vmatmul.mubr.msk.f32.gmra.mrb[28].mxu1 %vm2867_vm2, %v13923_v36 }
 0xa01   : > { %v13926_v45 = vpop.f32.mrb[22].mxu1 }
 0xa02   : > { %v3683_v47 = vpop.f32.mrb[23].mxu1 }
 0xa03   : > { %13938 = vmatprep.mubr.msk.f32.mxu1 %vm2867_vm2, %v3683_v47  ;;  %v4070_v56 = vpop.xlane.xlu1 %4069 }
 0xa04   : > { %16271 = vrcp.f32 %v4070_v56  ;;  %13939 = vmatmul.mubr.msk.f32.gmra.mrb[30].mxu1 %vm2867_vm2, %v13926_v45 }
 0xa07   : > { %v4076_v59 = vpop.xlane.xlu1 %4075 }
 0xa08   : > { %v4073_v62 = vpop.xlane.xlu0 %4072 }
 0xa09   : > { %16273 = vrcp.f32 %v4073_v62 }
 0xa0a   : > { %16275 = vrcp.f32 %v4076_v59 }
 0xa0c   : > { %v4079_v1 = vpop.xlane.xlu0 %4078  ;;  %v4082_v60 = vpop.xlane.xlu1 %4081 }
 0xa0d   : > { %16277 = vrcp.f32 %v4079_v1 }
 0xa0e   : > { %v16272_v52 = vpop.eup %16271  ;;  %16279 = vrcp.f32 %v4082_v60 }
 0xa0f   : > { %v4100_v16 = vmul.f32 %v16272_v52, %v18724_v40 }
 0xa10   : > { %v18797_v26 = vpop.xlane.xlu0 %4084  ;;  %v15895_v27 = vpop.permute.xlu1 %15894 }
 0xa11   : > { %13985 = vmatprep.mubr.msk.f32.mxu1 %vm3474_vm5, %v4100_v16  ;;  %v15897_v11 = vunpack.i.h.bf16 %v15895_v27  ;;  %v15896_v40 = vunpack.i.l.bf16 %v15895_v27  ;;  %16281 = vrcp.f32 %v18797_v26 }
 0xa13   : > { %v15001_v36 = vpack.c.bf16 %v15897_v11, %v15896_v40  ;;  %v16274_v11 = vpop.eup %16273 }
 0xa14   : > { %v18800_v31 = vpop.xlane.xlu0 %4090  ;;  %v15900_v17 = vpop.permute.xlu1 %15899 }
 0xa15   : > { %v15902_v44 = vunpack.i.h.bf16 %v15900_v17  ;;  %v15901_v45 = vunpack.i.l.bf16 %v15900_v17 }
 0xa18   : > { %v18802_v19 = vpop.xlane.xlu0 %4087  ;;  %v15905_v38 = vpop.permute.xlu1 %15904 }
 0xa19   : > { %v15907_v35 = vunpack.i.h.bf16 %v15905_v38  ;;  %v15906_v37 = vunpack.i.l.bf16 %v15905_v38  ;;  %v14029_v46 = vpop.f32.mrb[32].mxu0  ;;  %16283 = vrcp.f32 %v18802_v19 }
 0xa1a   : > { %v4576_v4 = vmul.f32 0.35355338, %v14029_v46  ;;  %v4536_v42 = vpop.f32.mrb[33].mxu0  ;;  %v15005_v46 = vpack.c.bf16 %v15902_v44, %v15901_v45  ;;  %16285 = vrcp.f32 %v18800_v31 }
 0xa1b   : > { %v15049_v43 = vpack.c.bf16 %v15907_v35, %v15906_v37  ;;  %v4575_v3 = vmul.f32 0.35355338, %v4536_v42 }
 0xa1c   : > { %v15890_v22 = vpop.permute.xlu0 %15889  ;;  %v15910_v24 = vpop.permute.xlu1 %15909  ;;  %v18805_v18 = vadd.f32 %v4576_v4, %v18537_v12 }
 0xa1d   : > { %v15892_v57 = vunpack.i.h.bf16 %v15890_v22  ;;  %v15891_v48 = vunpack.i.l.bf16 %v15890_v22  ;;  %v15912_v32 = vunpack.i.h.bf16 %v15910_v24  ;;  %v15911_v6 = vunpack.i.l.bf16 %v15910_v24  ;;  %v14032_v55 = vpop.f32.mrb[34].mxu0  ;;  %15051 = vmatprep.subr.msk.bf16.mxu0 %vm18477_vm4, %v15049_v43  ;;  %v16276_v24 = vpop.eup %16275 }
 0xa1e   : > { %v4546_v9 = vpop.f32.mrb[35].mxu0  ;;  %15054 = vmatpush3.bf16.xpose.msk.msra.mxu0 %vm18477_vm4, %v15049_v43  ;;  %v4594_v50 = vsel %vm3474_vm5, %v18805_v18, -inf  ;;  %v18814_v15 = vadd.f32 %v4575_v3, %v18537_v12  ;;  %v4578_v33 = vmul.f32 0.35355338, %v14032_v55  ;;  %v16278_v55 = vpop.eup %16277 }
 0xa1f   : > { %v15055_v14 = vpack.c.bf16 %v15912_v32, %v15911_v6  ;;  %v4577_v21 = vmul.f32 0.35355338, %v4546_v9  ;;  %4595 = vmax.xlane.f32.xlu1 %v4594_v50  ;;  %v14997_v23 = vpack.c.bf16 %v15892_v57, %v15891_v48  ;;  %v4101_v32 = vmul.f32 %v16274_v11, %v18732_v29 }
 0xa20   : > { %v15915_v25 = vpop.permute.xlu0 %15914  ;;  %v4591_v34 = vsel %vm3474_vm5, %v18814_v15, -inf  ;;  %v18826_v35 = vadd.f32 %v4578_v33, %v18537_v12  ;;  %v15920_v60 = vpop.permute.xlu1 %15919  ;;  %v4102_v50 = vmul.f32 %v16276_v24, %v18730_v8  ;;  %v4103_v29 = vmul.f32 %v16278_v55, %v18738_v63 }
 0xa21   : > { %v15917_v47 = vunpack.i.h.bf16 %v15915_v25  ;;  %v15916_v56 = vunpack.i.l.bf16 %v15915_v25  ;;  %4592 = vmax.xlane.f32.xlu0 %v4591_v34  ;;  %14998 = vmatprep.subr.bf16.mxu1 %v14997_v23  ;;  %v14035_v62 = vpop.f32.mrb[36].mxu0  ;;  %v18821_v52 = vadd.f32 %v4577_v21, %v18537_v12  ;;  %v15922_v57 = vunpack.i.h.bf16 %v15920_v60  ;;  %v16280_v21 = vpop.eup %16279 }
 0xa22   : > { %15057 = vmatprep.subr.msk.bf16.mxu0 %vm18477_vm4, %v15055_v14  ;;  %15000 = vmatpush3.bf16.msra.mxu1 %v14997_v23  ;;  %v4556_v59 = vpop.f32.mrb[37].mxu0  ;;  %v4580_v27 = vmul.f32 0.35355338, %v14035_v62  ;;  %v4600_v26 = vsel %vm3474_vm5, %v18826_v35, -inf  ;;  %v15921_v19 = vunpack.i.l.bf16 %v15920_v60  ;;  %v16282_v31 = vpop.eup %16281  ;;  %v4104_v33 = vmul.f32 %v16280_v21, %v18740_v30 }
 0xa23   : > { %v4579_v16 = vmul.f32 0.35355338, %v4556_v59  ;;  %15002 = vmatprep.subr.bf16.mxu1 %v15001_v36  ;;  %v4597_v17 = vsel %vm3474_vm5, %v18821_v52, -inf  ;;  %v15061_v1 = vpack.c.bf16 %v15917_v47, %v15916_v56  ;;  %v16284_v25 = vpop.eup %16283  ;;  %v4105_v34 = vmul.f32 %v16282_v31, %v18746_v20 }
 0xa24   : > { %v4970_v38 = vpop.permute.xlu0 %4969  ;;  %v18843_v22 = vadd.f32 %v4580_v27, %v18537_v12  ;;  %v15067_v23 = vpack.c.bf16 %v15922_v57, %v15921_v19  ;;  %v4106_v44 = vmul.f32 %v16284_v25, %v18754_v54  ;;  %v4972_v63 = vpop.permute.xlu1 %4971  ;;  %v3287_v54 = vld [vmem:[%s20454_s10 + $0x8] sm:$0xff] }
 0xa25   : > { %4598 = vmax.xlane.f32.xlu0 %v4597_v17  ;;  %v14038_v37 = vpop.f32.mrb[38].mxu0  ;;  %14097 = vmatprep.mubr.msk.f32.mxu0 %vm2867_vm2, %v4970_v38  ;;  %v18830_v4 = vadd.f32 %v4579_v16, %v18537_v12 }
 0xa26   : > { %15004 = vmatpush3.bf16.msra.mxu1 %v15001_v36  ;;  %v4566_v42 = vpop.f32.mrb[39].mxu0  ;;  %15060 = vmatpush3.bf16.xpose.msk.msra.mxu0 %vm18477_vm4, %v15055_v14  ;;  %v4582_v40 = vmul.f32 0.35355338, %v14038_v37  ;;  %v4606_v9 = vsel %vm3474_vm5, %v18843_v22, -inf  ;;  %v16286_v36 = vpop.eup %16285 }
 0xa27   : > { %v4581_v43 = vmul.f32 0.35355338, %v4566_v42  ;;  %15006 = vmatprep.subr.bf16.mxu1 %v15005_v46  ;;  %15063 = vmatprep.subr.msk.bf16.mxu0 %vm18477_vm4, %v15061_v1  ;;  %v4603_v3 = vsel %vm3474_vm5, %v18830_v4, -inf  ;;  %v4107_v30 = vmul.f32 %v16286_v36, %v18750_v41 }
 0xa28   : > { %4604 = vmax.xlane.f32.xlu1 %v4603_v3  ;;  %v18856_v14 = vadd.f32 %v4582_v40, %v18537_v12  ;;  %v4974_v45 = vpop.permute.xlu0 %4973  ;;  %v4976_v47 = vpop.permute.xlu1 %4975 }
 0xa29   : > { %4601 = vmax.xlane.f32.xlu0 %v4600_v26  ;;  %v18846_v48 = vadd.f32 %v4581_v43, %v18537_v12 }
 0xa2a   : > { %15008 = vmatpush3.bf16.msra.mxu1 %v15005_v46  ;;  %v4612_v8 = vsel %vm3474_vm5, %v18856_v14, -inf }
 0xa2b   : > { %v4609_v6 = vsel %vm3474_vm5, %v18846_v48, -inf  ;;  %13997 = vmatprep.subr.mxu1 %v3287_v54 }
 0xa2c   : > { %4610 = vmax.xlane.f32.xlu1 %v4609_v6  ;;  %v4978_v20 = vpop.permute.xlu0 %4977  ;;  %v4980_v56 = vpop.permute.xlu1 %4979 }
 0xa2d   : > { %4607 = vmax.xlane.f32.xlu0 %v4606_v9  ;;  %13986 = vmatmul.mubr.msk.f32.vlgmr.msra.gmra.mrb[32].mxu1 %vm3474_vm5, %v4101_v32 }
 0xa2e   : > { %13988 = vmatprep.mubr.msk.f32.mxu1 %vm3474_vm5, %v4102_v50  ;;  %15066 = vmatpush3.bf16.xpose.msk.msra.mxu0 %vm18477_vm4, %v15061_v1 }
 0xa2f   : > { %15069 = vmatprep.subr.msk.bf16.mxu0 %vm18477_vm4, %v15067_v23  ;;  %13998 = vmatpush3.msra.mxu1 %v3287_v54 }
 0xa30   : > { %v4982_v41 = vpop.permute.xlu0 %4981  ;;  %v4984_v62 = vpop.permute.xlu1 %4983 }
 0xa31   : > { %4613 = vmax.xlane.f32.xlu0 %v4612_v8  ;;  %13989 = vmatmul.mubr.msk.f32.gmra.mrb[34].mxu1 %vm3474_vm5, %v4103_v29 }
 0xa32   : > { %13991 = vmatprep.mubr.msk.f32.mxu1 %vm3474_vm5, %v4104_v33 }
 0xa35   : > { %13992 = vmatmul.mubr.msk.f32.gmra.mrb[36].mxu1 %vm3474_vm5, %v4105_v34 }
 0xa36   : > { %13994 = vmatprep.mubr.msk.f32.mxu1 %vm3474_vm5, %v4106_v44  ;;  %15072 = vmatpush3.bf16.xpose.msk.msra.mxu0 %vm18477_vm4, %v15067_v23 }
 0xa39   : > { %13995 = vmatmul.mubr.msk.f32.gmra.mrb[38].mxu1 %vm3474_vm5, %v4107_v30 }
 0xa3d   : > { %14098 = vmatmul.mubr.msk.f32.vlgmr.msra.gmra.mrb[40].mxu0 %vm2867_vm2, %v4972_v63  ;;  %15924 = vrot.lane.b32.xlu1 %v18405_v28, %s20455_s2 }
 0xa3e   : > { %14100 = vmatprep.mubr.msk.f32.mxu0 %vm2867_vm2, %v4974_v45 }
 0xa41   : > { %14101 = vmatmul.mubr.msk.f32.gmra.mrb[42].mxu0 %vm2867_vm2, %v4976_v47 }
 0xa42   : > { %14103 = vmatprep.mubr.msk.f32.mxu0 %vm2867_vm2, %v4978_v20 }
 0xa45   : > { %14104 = vmatmul.mubr.msk.f32.gmra.mrb[44].mxu0 %vm2867_vm2, %v4980_v56 }
 0xa46   : > { %14106 = vmatprep.mubr.msk.f32.mxu0 %vm2867_vm2, %v4982_v41 }
 0xa49   : > { %14107 = vmatmul.mubr.msk.f32.gmra.mrb[46].mxu0 %vm2867_vm2, %v4984_v62 }
 0xaac   : > { %v4596_v59 = vpop.xlane.xlu1 %4595 }
 0xaad   : > { %v4616_v16 = vsub.f32 %v18805_v18, %v4596_v59 }
 0xaae   : > { %v4593_v27 = vpop.xlane.xlu0 %4592 }
 0xaaf   : > { %v4625_v38 = vmul.f32 1.442695, %v4616_v16  ;;  %v4615_v17 = vsub.f32 %v18814_v15, %v4593_v27 }
 0xab1   : > { %16287 = vpow2.f32 %v4625_v38  ;;  %v4623_v1 = vmul.f32 1.442695, %v4615_v17 }
 0xab2   : > { %v4599_v37 = vpop.xlane.xlu0 %4598 }
 0xab3   : > { %16289 = vpow2.f32 %v4623_v1  ;;  %v4617_v46 = vsub.f32 %v18821_v52, %v4599_v37 }
 0xab5   : > { %v4627_v60 = vmul.f32 1.442695, %v4617_v46  ;;  %v4605_v42 = vpop.xlane.xlu1 %4604 }
 0xab6   : > { %v4602_v43 = vpop.xlane.xlu0 %4601  ;;  %v4619_v3 = vsub.f32 %v18830_v4, %v4605_v42 }
 0xab7   : > { %16291 = vpow2.f32 %v4627_v60  ;;  %v4618_v11 = vsub.f32 %v18826_v35, %v4602_v43 }
 0xab8   : > { %v4631_v40 = vmul.f32 1.442695, %v4619_v3 }
 0xab9   : > { %v4629_v18 = vmul.f32 1.442695, %v4618_v11  ;;  %v4611_v26 = vpop.xlane.xlu1 %4610 }
 0xaba   : > { %16293 = vpow2.f32 %v4631_v40  ;;  %v4608_v24 = vpop.xlane.xlu0 %4607  ;;  %v4621_v4 = vsub.f32 %v18846_v48, %v4611_v26 }
 0xabb   : > { %v18893_v15 = vpop.eup %16287  ;;  %16295 = vpow2.f32 %v4629_v18  ;;  %v4620_v57 = vsub.f32 %v18843_v22, %v4608_v24 }
 0xabc   : > { %v4642_v52 = vsel %vm3474_vm5, %v18893_v15, 0.0  ;;  %v4635_v29 = vmul.f32 1.442695, %v4621_v4 }
 0xabd   : > { %v18898_v19 = vpop.eup %16289  ;;  %v4633_v32 = vmul.f32 1.442695, %v4620_v57  ;;  %4643 = vadd.xlane.f32.xlu0 %v4642_v52  ;;  %v15925_v35 = vpop.permute.xlu1 %15924 }
 0xabe   : > { %v4614_v6 = vpop.xlane.xlu0 %4613  ;;  %v15927_v55 = vunpack.i.h.bf16 %v15925_v35  ;;  %v15926_v9 = vunpack.i.l.bf16 %v15925_v35  ;;  %v4639_v50 = vsel %vm3474_vm5, %v18898_v19, 0.0 }
 0xabf   : > { %16297 = vpow2.f32 %v4633_v32  ;;  %v4622_v21 = vsub.f32 %v18856_v14, %v4614_v6  ;;  %4640 = vadd.xlane.f32.xlu1 %v4639_v50 }
 0xac0   : > { %v15033_v22 = vpack.c.bf16 %v15927_v55, %v15926_v9 }
 0xac1   : > { %v18904_v23 = vpop.eup %16291  ;;  %v4637_v31 = vmul.f32 1.442695, %v4622_v21 }
 0xac2   : > { %v4645_v48 = vsel %vm3474_vm5, %v18904_v23, 0.0  ;;  %15034 = vmatprep.subr.bf16.mxu1 %v15033_v22 }
 0xac3   : > { %16299 = vpow2.f32 %v4637_v31  ;;  %4646 = vadd.xlane.f32.xlu1 %v4645_v48 }
 0xac4   : > { %v18908_v8 = vpop.eup %16293  ;;  %16301 = vpow2.f32 %v4635_v29 }
 0xac5   : > { %v18910_v33 = vpop.eup %16295  ;;  %v4651_v14 = vsel %vm3474_vm5, %v18908_v8, 0.0 }
 0xac6   : > { %v4648_v25 = vsel %vm3474_vm5, %v18910_v33, 0.0 }
 0xac7   : > { %4649 = vadd.xlane.f32.xlu0 %v4648_v25  ;;  %4652 = vadd.xlane.f32.xlu1 %v4651_v14 }
 0xac9   : > { %v18916_v34 = vpop.eup %16297 }
 0xaca   : > { %v4654_v36 = vsel %vm3474_vm5, %v18916_v34, 0.0 }
 0xacb   : > { %4655 = vadd.xlane.f32.xlu0 %v4654_v36 }
 0xacd   : > { %v18920_v44 = vpop.eup %16299 }
 0xace   : > { %v4660_v63 = vsel %vm3474_vm5, %v18920_v44, 0.0  ;;  %v18924_v30 = vpop.eup %16301 }
 0xacf   : > { %4661 = vadd.xlane.f32.xlu0 %v4660_v63  ;;  %v4657_v45 = vsel %vm3474_vm5, %v18924_v30, 0.0 }
 0xad3   : > { %4658 = vadd.xlane.f32.xlu0 %v4657_v45 }
 0xad8   : > { %15934 = vrot.lane.b32.xlu1 %v18431_v51, %s20455_s2 }
 0xadc   : > { %15939 = vrot.lane.b32.xlu1 %v18445_v0, %s20455_s2 }
 0xae9   : > { %15929 = vrot.lane.b32.xlu0 %v18419_v39, %s20455_s2 }
 0xb00   : > { %v13987_v47 = vpop.f32.mrb[32].mxu1 }
 0xb01   : > { %v4230_v20 = vpop.f32.mrb[33].mxu1 }
 0xb02   : > { %13999 = vmatprep.mubr.msk.f32.mxu1 %vm2867_vm2, %v4230_v20 }
 0xb03   : > { %14000 = vmatmul.mubr.msk.f32.vlgmr.msra.gmra.mrb[24].mxu1 %vm2867_vm2, %v13987_v47 }
 0xb04   : > { %15036 = vmatpush3.bf16.msra.mxu1 %v15033_v22  ;;  %v13990_v54 = vpop.f32.mrb[34].mxu1 }
 0xb05   : > { %v4240_v56 = vpop.f32.mrb[35].mxu1 }
 0xb06   : > { %14002 = vmatprep.mubr.msk.f32.mxu1 %vm2867_vm2, %v4240_v56 }
 0xb07   : > { %14003 = vmatmul.mubr.msk.f32.gmra.mrb[26].mxu1 %vm2867_vm2, %v13990_v54 }
 0xb08   : > { %v13993_v41 = vpop.f32.mrb[36].mxu1 }
 0xb09   : > { %v4250_v62 = vpop.f32.mrb[37].mxu1 }
 0xb0a   : > { %14005 = vmatprep.mubr.msk.f32.mxu1 %vm2867_vm2, %v4250_v62 }
 0xb0b   : > { %14006 = vmatmul.mubr.msk.f32.gmra.mrb[28].mxu1 %vm2867_vm2, %v13993_v41 }
 0xb0c   : > { %v13996_v59 = vpop.f32.mrb[38].mxu1 }
 0xb0d   : > { %v4260_v16 = vpop.f32.mrb[39].mxu1 }
 0xb0e   : > { %14008 = vmatprep.mubr.msk.f32.mxu1 %vm2867_vm2, %v4260_v16 }
 0xb0f   : > { %14009 = vmatmul.mubr.msk.f32.gmra.mrb[30].mxu1 %vm2867_vm2, %v13996_v59 }
 0xb10   : > { %v14099_v27 = vpop.f32.mrb[40].mxu0 }
 0xb11   : > { %v5139_v38 = vmul.f32 0.35355338, %v14099_v27  ;;  %v5099_v17 = vpop.f32.mrb[41].mxu0 }
 0xb12   : > { %v5138_v1 = vmul.f32 0.35355338, %v5099_v17 }
 0xb13   : > { %v18943_v37 = vadd.f32 %v5139_v38, %v18537_v12 }
 0xb14   : > { %v14102_v46 = vpop.f32.mrb[42].mxu0  ;;  %v18946_v60 = vadd.f32 %v5138_v1, %v18537_v12 }
 0xb15   : > { %v5141_v42 = vmul.f32 0.35355338, %v14102_v46  ;;  %v5109_v43 = vpop.f32.mrb[43].mxu0  ;;  %v5157_v3 = vsel %vm3474_vm5, %v18943_v37, -inf }
 0xb16   : > { %v5140_v11 = vmul.f32 0.35355338, %v5109_v43  ;;  %5158 = vmax.xlane.f32.xlu0 %v5157_v3  ;;  %v5154_v40 = vsel %vm3474_vm5, %v18946_v60, -inf }
 0xb17   : > { %v18953_v18 = vadd.f32 %v5141_v42, %v18537_v12  ;;  %5155 = vmax.xlane.f32.xlu1 %v5154_v40 }
 0xb18   : > { %v14105_v26 = vpop.f32.mrb[44].mxu0  ;;  %v18956_v24 = vadd.f32 %v5140_v11, %v18537_v12 }
 0xb19   : > { %v5143_v57 = vmul.f32 0.35355338, %v14105_v26  ;;  %v5119_v52 = vpop.f32.mrb[45].mxu0  ;;  %v5163_v32 = vsel %vm3474_vm5, %v18953_v18, -inf }
 0xb1a   : > { %v5142_v4 = vmul.f32 0.35355338, %v5119_v52  ;;  %5164 = vmax.xlane.f32.xlu0 %v5163_v32  ;;  %v5160_v35 = vsel %vm3474_vm5, %v18956_v24, -inf }
 0xb1b   : > { %v18963_v6 = vadd.f32 %v5143_v57, %v18537_v12  ;;  %5161 = vmax.xlane.f32.xlu1 %v5160_v35  ;;  %v3288_v57 = vld [vmem:[%s20454_s10 + $0x10] sm:$0xff] }
 0xb1c   : > { %v18966_v55 = vadd.f32 %v5142_v4, %v18537_v12  ;;  %v14108_v9 = vpop.f32.mrb[46].mxu0 }
 0xb1d   : > { %v5145_v50 = vmul.f32 0.35355338, %v14108_v9  ;;  %v5129_v21 = vpop.f32.mrb[47].mxu0  ;;  %v5169_v22 = vsel %vm3474_vm5, %v18963_v6, -inf }
 0xb1e   : > { %v5144_v29 = vmul.f32 0.35355338, %v5129_v21  ;;  %5170 = vmax.xlane.f32.xlu0 %v5169_v22  ;;  %v5166_v31 = vsel %vm3474_vm5, %v18966_v55, -inf }
 0xb1f   : > { %v18973_v48 = vadd.f32 %v5145_v50, %v18537_v12  ;;  %5167 = vmax.xlane.f32.xlu1 %v5166_v31 }
 0xb20   : > { %v18976_v14 = vadd.f32 %v5144_v29, %v18537_v12 }
 0xb21   : > { %v5175_v25 = vsel %vm3474_vm5, %v18973_v48, -inf }
 0xb22   : > { %5176 = vmax.xlane.f32.xlu0 %v5175_v25  ;;  %v5172_v36 = vsel %vm3474_vm5, %v18976_v14, -inf }
 0xb23   : > { %5173 = vmax.xlane.f32.xlu1 %v5172_v36 }
 0xb34   : > { %15944 = vrot.lane.b32.xlu1 %v18405_v28, %s20321_s1 }
 0xb4a   : > { %v4644_v45 = vpop.xlane.xlu0 %4643 }
 0xb4c   : > { %v4641_v63 = vpop.xlane.xlu1 %4640 }
 0xb4d   : > { %16303 = vrcp.f32 %v4641_v63 }
 0xb4e   : > { %16305 = vrcp.f32 %v4644_v45 }
 0xb50   : > { %v4647_v47 = vpop.xlane.xlu1 %4646 }
 0xb51   : > { %16307 = vrcp.f32 %v4647_v47 }
 0xb54   : > { %v4650_v20 = vpop.xlane.xlu0 %4649  ;;  %v4653_v62 = vpop.xlane.xlu1 %4652 }
 0xb55   : > { %16309 = vrcp.f32 %v4650_v20 }
 0xb56   : > { %16311 = vrcp.f32 %v4653_v62 }
 0xb57   : > { %v16304_v54 = vpop.eup %16303 }
 0xb58   : > { %v4656_v56 = vpop.xlane.xlu0 %4655  ;;  %v4671_v41 = vmul.f32 %v16304_v54, %v18898_v19  ;;  %v15935_v16 = vpop.permute.xlu1 %15934 }
 0xb59   : > { %v15937_v17 = vunpack.i.h.bf16 %v15935_v16  ;;  %v15936_v1 = vunpack.i.l.bf16 %v15935_v16  ;;  %16313 = vrcp.f32 %v4656_v56  ;;  %v16306_v26 = vpop.eup %16305 }
 0xb5a   : > { %14055 = vmatprep.mubr.msk.f32.mxu1 %vm3474_vm5, %v4671_v41  ;;  %v4672_v32 = vmul.f32 %v16306_v26, %v18893_v15 }
 0xb5b   : > { %v15041_v19 = vpack.c.bf16 %v15937_v17, %v15936_v1  ;;  %v16308_v52 = vpop.eup %16307 }
 0xb5c   : > { %v4662_v59 = vpop.xlane.xlu0 %4661  ;;  %v15940_v42 = vpop.permute.xlu1 %15939  ;;  %v4673_v35 = vmul.f32 %v16308_v52, %v18904_v23 }
 0xb5d   : > { %v15942_v3 = vunpack.i.h.bf16 %v15940_v42  ;;  %v15941_v11 = vunpack.i.l.bf16 %v15940_v42 }
 0xb5f   : > { %v15045_v40 = vpack.c.bf16 %v15942_v3, %v15941_v11  ;;  %v16310_v4 = vpop.eup %16309 }
 0xb60   : > { %v4659_v27 = vpop.xlane.xlu0 %4658  ;;  %v16312_v9 = vpop.eup %16311  ;;  %v4674_v50 = vmul.f32 %v16310_v4, %v18910_v33 }
 0xb61   : > { %16315 = vrcp.f32 %v4659_v27  ;;  %v4675_v22 = vmul.f32 %v16312_v9, %v18908_v8 }
 0xb62   : > { %16317 = vrcp.f32 %v4662_v59 }
 0xb63   : > { %v16314_v21 = vpop.eup %16313 }
 0xb64   : > { %v15930_v38 = vpop.permute.xlu0 %15929  ;;  %v4676_v15 = vmul.f32 %v16314_v21, %v18916_v34 }
 0xb65   : > { %v15932_v46 = vunpack.i.h.bf16 %v15930_v38  ;;  %v15931_v28 = vunpack.i.l.bf16 %v15930_v38 }
 0xb67   : > { %v15037_v43 = vpack.c.bf16 %v15932_v46, %v15931_v28 }
 0xb69   : > { %15038 = vmatprep.subr.bf16.mxu1 %v15037_v43 }
 0xb6a   : > { %15040 = vmatpush3.bf16.msra.mxu1 %v15037_v43 }
 0xb6b   : > { %15042 = vmatprep.subr.bf16.mxu1 %v15041_v19  ;;  %v16316_v29 = vpop.eup %16315 }
 0xb6c   : > { %v16318_v31 = vpop.eup %16317  ;;  %v4677_v23 = vmul.f32 %v16316_v29, %v18924_v30 }
 0xb6d   : > { %v4678_v25 = vmul.f32 %v16318_v31, %v18920_v44 }
 0xb6e   : > { %15044 = vmatpush3.bf16.msra.mxu1 %v15041_v19 }
 0xb6f   : > { %15046 = vmatprep.subr.bf16.mxu1 %v15045_v40 }
 0xb72   : > { %15048 = vmatpush3.bf16.msra.mxu1 %v15045_v40 }
 0xb73   : > { %14067 = vmatprep.subr.mxu1 %v3288_v57 }
 0xb75   : > { %14056 = vmatmul.mubr.msk.f32.vlgmr.msra.gmra.mrb[40].mxu1 %vm3474_vm5, %v4672_v32 }
 0xb76   : > { %14058 = vmatprep.mubr.msk.f32.mxu1 %vm3474_vm5, %v4673_v35  ;;  %14068 = vmatpush3.msra.mxu1 %v3288_v57 }
 0xb79   : > { %14059 = vmatmul.mubr.msk.f32.gmra.mrb[42].mxu1 %vm3474_vm5, %v4674_v50 }
 0xb7a   : > { %14061 = vmatprep.mubr.msk.f32.mxu1 %vm3474_vm5, %v4675_v22 }
 0xb7d   : > { %14062 = vmatmul.mubr.msk.f32.gmra.mrb[44].mxu1 %vm3474_vm5, %v4676_v15 }
 0xb7e   : > { %14064 = vmatprep.mubr.msk.f32.mxu1 %vm3474_vm5, %v4677_v23 }
 0xb81   : > { %14065 = vmatmul.mubr.msk.f32.gmra.mrb[46].mxu1 %vm3474_vm5, %v4678_v25 }
 0xba3   : > { %v5159_v33 = vpop.xlane.xlu0 %5158 }
 0xba4   : > { %v5179_v8 = vsub.f32 %v18943_v37, %v5159_v33  ;;  %v5156_v36 = vpop.xlane.xlu1 %5155 }
 0xba5   : > { %v5178_v63 = vsub.f32 %v18946_v60, %v5156_v36 }
 0xba6   : > { %v5188_v45 = vmul.f32 1.442695, %v5179_v8 }
 0xba7   : > { %v5186_v47 = vmul.f32 1.442695, %v5178_v63  ;;  %v5165_v34 = vpop.xlane.xlu0 %5164 }
 0xba8   : > { %16319 = vpow2.f32 %v5188_v45  ;;  %v5181_v30 = vsub.f32 %v18953_v18, %v5165_v34  ;;  %v5162_v20 = vpop.xlane.xlu1 %5161 }
 0xba9   : > { %16321 = vpow2.f32 %v5186_v47  ;;  %v5180_v54 = vsub.f32 %v18956_v24, %v5162_v20 }
 0xbaa   : > { %v5192_v56 = vmul.f32 1.442695, %v5181_v30 }
 0xbab   : > { %v5190_v44 = vmul.f32 1.442695, %v5180_v54  ;;  %v5171_v41 = vpop.xlane.xlu0 %5170 }
 0xbac   : > { %16323 = vpow2.f32 %v5192_v56  ;;  %v5183_v62 = vsub.f32 %v18963_v6, %v5171_v41  ;;  %v5168_v37 = vpop.xlane.xlu1 %5167 }
 0xbad   : > { %16325 = vpow2.f32 %v5190_v44  ;;  %v5182_v60 = vsub.f32 %v18966_v55, %v5168_v37 }
 0xbae   : > { %v5196_v59 = vmul.f32 1.442695, %v5183_v62 }
 0xbaf   : > { %v5194_v16 = vmul.f32 1.442695, %v5182_v60  ;;  %v5177_v27 = vpop.xlane.xlu0 %5176 }
 0xbb0   : > { %16327 = vpow2.f32 %v5196_v59  ;;  %v5185_v18 = vsub.f32 %v18973_v48, %v5177_v27  ;;  %v5174_v38 = vpop.xlane.xlu1 %5173 }
 0xbb1   : > { %16329 = vpow2.f32 %v5194_v16  ;;  %v5184_v24 = vsub.f32 %v18976_v14, %v5174_v38 }
 0xbb2   : > { %v19009_v17 = vpop.eup %16319  ;;  %v5200_v1 = vmul.f32 1.442695, %v5185_v18 }
 0xbb3   : > { %v16322_v46 = vpop.eup %16321  ;;  %v5198_v28 = vmul.f32 1.442695, %v5184_v24  ;;  %v5205_v6 = vsel %vm3474_vm5, %v19009_v17, 0.0  ;;  %v3289_v24 = vld [vmem:[%s20454_s10 + $0x18] sm:$0xff]  ;;  %s20464_s10 = smov 72  }
 0xbb4   : > { %16331 = vpow2.f32 %v5200_v1  ;;  %5206 = vadd.xlane.f32.xlu0 %v5205_v6  ;;  %v15945_v55 = vpop.permute.xlu1 %15944  ;;  %v5202_v42 = vsel %vm3474_vm5, %v16322_v46, 0.0 }
 0xbb5   : > { %v15947_v43 = vunpack.i.h.bf16 %v15945_v55  ;;  %v15946_v3 = vunpack.i.l.bf16 %v15945_v55  ;;  %5203 = vadd.xlane.f32.xlu1 %v5202_v42  ;;  %16333 = vpow2.f32 %v5198_v28 }
 0xbb6   : > { %v19014_v48 = vpop.eup %16323 }
 0xbb7   : > { %v19016_v14 = vpop.eup %16325  ;;  %v5211_v11 = vsel %vm3474_vm5, %v19014_v48, 0.0  ;;  %v15073_v19 = vpack.c.bf16 %v15947_v43, %v15946_v3 }
 0xbb8   : > { %5212 = vadd.xlane.f32.xlu0 %v5211_v11  ;;  %v5208_v40 = vsel %vm3474_vm5, %v19016_v14, 0.0 }
 0xbb9   : > { %5209 = vadd.xlane.f32.xlu1 %v5208_v40  ;;  %15074 = vmatprep.subr.bf16.mxu1 %v15073_v19 }
 0xbba   : > { %v19022_v26 = vpop.eup %16327 }
 0xbbb   : > { %v19024_v57 = vpop.eup %16329  ;;  %v5217_v52 = vsel %vm3474_vm5, %v19022_v26, 0.0 }
 0xbbc   : > { %5218 = vadd.xlane.f32.xlu0 %v5217_v52  ;;  %v5214_v32 = vsel %vm3474_vm5, %v19024_v57, 0.0 }
 0xbbd   : > { %5215 = vadd.xlane.f32.xlu1 %v5214_v32 }
 0xbbe   : > { %v19030_v4 = vpop.eup %16331 }
 0xbbf   : > { %v5223_v35 = vsel %vm3474_vm5, %v19030_v4, 0.0  ;;  %v19034_v9 = vpop.eup %16333 }
 0xbc0   : > { %5224 = vadd.xlane.f32.xlu0 %v5223_v35  ;;  %v5220_v50 = vsel %vm3474_vm5, %v19034_v9, 0.0 }
 0xbc4   : > { %5221 = vadd.xlane.f32.xlu0 %v5220_v50  ;;  %v12913_v50 = vld [vmem:[#allocation46] ss:$0 sm:$0xff] }
 0xbce   : > { %15954 = vrot.lane.b32.xlu1 %v18431_v51, %s20321_s1 }
 0xbd2   : > { %15959 = vrot.lane.b32.xlu1 %v18445_v0, %s20321_s1 }
 0xbda   : > { %15949 = vrot.lane.b32.xlu0 %v18419_v39, %s20321_s1  ;;  %s20456_s1 = sld [smem:[#allocation102_spill]] }
 0xc41   : > { %v5207_v21 = vpop.xlane.xlu0 %5206 }
 0xc42   : > { %v5204_v22 = vpop.xlane.xlu1 %5203 }
 0xc43   : > { %16335 = vrcp.f32 %v5204_v22 }
 0xc44   : > { %16337 = vrcp.f32 %v5207_v21 }
 0xc45   : > { %v5213_v29 = vpop.xlane.xlu0 %5212 }
 0xc46   : > { %v5210_v15 = vpop.xlane.xlu1 %5209 }
 0xc47   : > { %16339 = vrcp.f32 %v5210_v15 }
 0xc48   : > { %v14057_v31 = vpop.f32.mrb[40].mxu1  ;;  %16341 = vrcp.f32 %v5213_v29 }
 0xc49   : > { %v4793_v23 = vpop.f32.mrb[41].mxu1  ;;  %v5219_v25 = vpop.xlane.xlu0 %5218 }
 0xc4a   : > { %14069 = vmatprep.mubr.msk.f32.mxu1 %vm2867_vm2, %v4793_v23  ;;  %v5216_v33 = vpop.xlane.xlu1 %5215 }
 0xc4b   : > { %14070 = vmatmul.mubr.msk.f32.vlgmr.msra.gmra.mrb[24].mxu1 %vm2867_vm2, %v14057_v31  ;;  %16343 = vrcp.f32 %v5216_v33 }
 0xc4c   : > { %15076 = vmatpush3.bf16.msra.mxu1 %v15073_v19  ;;  %v14060_v51 = vpop.f32.mrb[42].mxu1  ;;  %16345 = vrcp.f32 %v5219_v25 }
 0xc4d   : > { %v4803_v8 = vpop.f32.mrb[43].mxu1  ;;  %v5225_v0 = vpop.xlane.xlu0 %5224 }
 0xc4e   : > { %14072 = vmatprep.mubr.msk.f32.mxu1 %vm2867_vm2, %v4803_v8  ;;  %v15955_v39 = vpop.permute.xlu1 %15954  ;;  %v16336_v47 = vpop.eup %16335 }
 0xc4f   : > { %14073 = vmatmul.mubr.msk.f32.gmra.mrb[26].mxu1 %vm2867_vm2, %v14060_v51  ;;  %v5234_v54 = vmul.f32 %v16336_v47, %v16322_v46  ;;  %v15957_v56 = vunpack.i.h.bf16 %v15955_v39  ;;  %v15956_v44 = vunpack.i.l.bf16 %v15955_v39  ;;  %v16338_v38 = vpop.eup %16337 }
 0xc50   : > { %v14063_v36 = vpop.f32.mrb[44].mxu1  ;;  %v5235_v46 = vmul.f32 %v16338_v38, %v19009_v17 }
 0xc51   : > { %v4813_v63 = vpop.f32.mrb[45].mxu1  ;;  %v5222_v45 = vpop.xlane.xlu0 %5221  ;;  %v15081_v27 = vpack.c.bf16 %v15957_v56, %v15956_v44 }
 0xc52   : > { %14075 = vmatprep.mubr.msk.f32.mxu1 %vm2867_vm2, %v4813_v63  ;;  %v15960_v37 = vpop.permute.xlu1 %15959  ;;  %16347 = vrcp.f32 %v5222_v45  ;;  %v16340_v1 = vpop.eup %16339 }
 0xc53   : > { %14076 = vmatmul.mubr.msk.f32.gmra.mrb[28].mxu1 %vm2867_vm2, %v14063_v36  ;;  %v15962_v59 = vunpack.i.h.bf16 %v15960_v37  ;;  %v15961_v16 = vunpack.i.l.bf16 %v15960_v37  ;;  %16349 = vrcp.f32 %v5225_v0  ;;  %v16342_v28 = vpop.eup %16341  ;;  %v5236_v6 = vmul.f32 %v16340_v1, %v19016_v14 }
 0xc54   : > { %v14066_v34 = vpop.f32.mrb[46].mxu1  ;;  %v5237_v42 = vmul.f32 %v16342_v28, %v19014_v48 }
 0xc55   : > { %v4823_v30 = vpop.f32.mrb[47].mxu1  ;;  %v15950_v20 = vpop.permute.xlu0 %15949  ;;  %v15085_v18 = vpack.c.bf16 %v15962_v59, %v15961_v16 }
 0xc56   : > { %v15952_v41 = vunpack.i.h.bf16 %v15950_v20  ;;  %v15951_v62 = vunpack.i.l.bf16 %v15950_v20  ;;  %14078 = vmatprep.mubr.msk.f32.mxu1 %vm2867_vm2, %v4823_v30  ;;  %v16344_v55 = vpop.eup %16343 }
 0xc57   : > { %14079 = vmatmul.mubr.msk.f32.gmra.mrb[30].mxu1 %vm2867_vm2, %v14066_v34  ;;  %v16346_v43 = vpop.eup %16345  ;;  %v5238_v3 = vmul.f32 %v16344_v55, %v19024_v57 }
 0xc58   : > { %14125 = vmatprep.mubr.msk.f32.mxu1 %vm3474_vm5, %v5234_v54  ;;  %v15077_v60 = vpack.c.bf16 %v15952_v41, %v15951_v62  ;;  %v5239_v17 = vmul.f32 %v16346_v43, %v19022_v26 }
 0xc5a   : > { %15078 = vmatprep.subr.bf16.mxu1 %v15077_v60 }
 0xc5b   : > { %15080 = vmatpush3.bf16.msra.mxu1 %v15077_v60 }
 0xc5c   : > { %15082 = vmatprep.subr.bf16.mxu1 %v15081_v27  ;;  %v16348_v11 = vpop.eup %16347 }
 0xc5d   : > { %v16350_v19 = vpop.eup %16349  ;;  %v5240_v14 = vmul.f32 %v16348_v11, %v19034_v9 }
 0xc5e   : > { %v5241_v40 = vmul.f32 %v16350_v19, %v19030_v4 }
 0xc5f   : > { %15084 = vmatpush3.bf16.msra.mxu1 %v15081_v27 }
 0xc60   : > { %15086 = vmatprep.subr.bf16.mxu1 %v15085_v18 }
 0xc63   : > { %15088 = vmatpush3.bf16.msra.mxu1 %v15085_v18 }
 0xc64   : > { %14137 = vmatprep.subr.mxu1 %v3289_v24 }
 0xc66   : > { %14126 = vmatmul.mubr.msk.f32.vlgmr.msra.gmra.mrb[48].mxu1 %vm3474_vm5, %v5235_v46 }
 0xc67   : > { %14128 = vmatprep.mubr.msk.f32.mxu1 %vm3474_vm5, %v5236_v6  ;;  %14138 = vmatpush3.msra.mxu1 %v3289_v24 }
 0xc6a   : > { %14129 = vmatmul.mubr.msk.f32.gmra.mrb[50].mxu1 %vm3474_vm5, %v5237_v42 }
 0xc6b   : > { %14131 = vmatprep.mubr.msk.f32.mxu1 %vm3474_vm5, %v5238_v3 }
 0xc6e   : > { %14132 = vmatmul.mubr.msk.f32.gmra.mrb[52].mxu1 %vm3474_vm5, %v5239_v17 }
 0xc6f   : > { %14134 = vmatprep.mubr.msk.f32.mxu1 %vm3474_vm5, %v5240_v14 }
 0xc72   : > { %14135 = vmatmul.mubr.msk.f32.gmra.mrb[54].mxu1 %vm3474_vm5, %v5241_v40 }
 0xd39   : > { %v14127_v48 = vpop.f32.mrb[48].mxu1 }
 0xd3a   : > { %v5356_v57 = vpop.f32.mrb[49].mxu1 }
 0xd3b   : > { %14139 = vmatprep.mubr.msk.f32.mxu1 %vm2867_vm2, %v5356_v57 }
 0xd3c   : > { %14140 = vmatmul.mubr.msk.f32.vlgmr.msra.gmra.mrb[24].mxu1 %vm2867_vm2, %v14127_v48 }
 0xd3d   : > { %v14130_v52 = vpop.f32.mrb[50].mxu1 }
 0xd3e   : > { %v5366_v32 = vpop.f32.mrb[51].mxu1 }
 0xd3f   : > { %14142 = vmatprep.mubr.msk.f32.mxu1 %vm2867_vm2, %v5366_v32 }
 0xd40   : > { %14143 = vmatmul.mubr.msk.f32.gmra.mrb[26].mxu1 %vm2867_vm2, %v14130_v52 }
 0xd41   : > { %v14133_v26 = vpop.f32.mrb[52].mxu1 }
 0xd42   : > { %v5376_v35 = vpop.f32.mrb[53].mxu1 }
 0xd43   : > { %14145 = vmatprep.mubr.msk.f32.mxu1 %vm2867_vm2, %v5376_v35 }
 0xd44   : > { %14146 = vmatmul.mubr.msk.f32.gmra.mrb[28].mxu1 %vm2867_vm2, %v14133_v26 }
 0xd45   : > { %v14136_v4 = vpop.f32.mrb[54].mxu1 }
 0xd46   : > { %v5386_v9 = vpop.f32.mrb[55].mxu1 }
 0xd47   : > { %14148 = vmatprep.mubr.msk.f32.mxu1 %vm2867_vm2, %v5386_v9 }
 0xd48   : > { %14149 = vmatmul.mubr.msk.f32.gmra.mrb[30].mxu1 %vm2867_vm2, %v14136_v4 }
 0xe0f   : > { %v14141_v21 = vpop.f32.mrb[24].mxu1 }
 0xe10   : > { %v15465_v22 = vadd.f32 %v14141_v21, %v12913_v50  ;;  %v5485_v29 = vpop.f32.mrb[25].mxu1 }
 0xe11   : > { %v15466_v15 = vadd.f32 %v12913_v50, %v5485_v29 }
 0xe12   : > { %v5533_v31 = vadd.f32 %v15465_v22, %v18345_v49 }
 0xe13   : > { %v5532_v23 = vadd.f32 %v15466_v15, %v18349_v53  ;;  %v14144_v25 = vpop.f32.mrb[26].mxu1 }
 0xe14   : > { %v15467_v33 = vadd.f32 %v14144_v25, %v12913_v50  ;;  %v5495_v51 = vpop.f32.mrb[27].mxu1  ;;  %v5545_v8 = vsel %vm3016_vm3, %v5533_v31, 0.0 }
 0xe15   : > { %v15468_v0 = vadd.f32 %v12913_v50, %v5495_v51  ;;  %5546 = vadd.xlane.f32.xlu0 %v5545_v8  ;;  %v5542_v39 = vsel %vm3016_vm3, %v5532_v23, 0.0 }
 0xe16   : > { %v5535_v36 = vadd.f32 %v15467_v33, %v18356_v58  ;;  %5543 = vadd.xlane.f32.xlu1 %v5542_v39  ;;  %v5676_v39 = vld [vmem:[%s20417_s4 + $0x8] sm:$0xff] }
 0xe17   : > { %v5534_v63 = vadd.f32 %v15468_v0, %v18361_v61  ;;  %v14147_v45 = vpop.f32.mrb[28].mxu1  ;;  %v5675_v0 = vld [vmem:[%s20417_s4] sm:$0xff] }
 0xe18   : > { %v15469_v47 = vadd.f32 %v14147_v45, %v12913_v50  ;;  %v5505_v34 = vpop.f32.mrb[29].mxu1  ;;  %v5551_v49 = vsel %vm3016_vm3, %v5535_v36, 0.0  ;;  %v5678_v45 = vld [vmem:[%s20417_s4 + $0x18] sm:$0xff] }
 0xe19   : > { %v15470_v53 = vadd.f32 %v12913_v50, %v5505_v34  ;;  %5552 = vadd.xlane.f32.xlu0 %v5551_v49  ;;  %v5548_v30 = vsel %vm3016_vm3, %v5534_v63, 0.0  ;;  %v17498_v34 = vmov 0.0|0.0   ;;  %v5823_v49 = vld [vmem:[%s17884_s19] sm:$0xff] }
 0xe1a   : > { %v5537_v20 = vadd.f32 %v15469_v47, %v18370_v2  ;;  %5549 = vadd.xlane.f32.xlu1 %v5548_v30  ;;  %v5825_v30 = vld [vmem:[%s17884_s19 + $0x10] sm:$0xff] }
 0xe1b   : > { %v5536_v54 = vadd.f32 %v15470_v53, %v18375_v5  ;;  %v14150_v56 = vpop.f32.mrb[30].mxu1  ;;  %v5824_v53 = vld [vmem:[%s17884_s19 + $0x8] sm:$0xff] }
 0xe1c   : > { %v15471_v44 = vadd.f32 %v14150_v56, %v12913_v50  ;;  %v5515_v58 = vpop.f32.mrb[31].mxu1  ;;  %v5557_v41 = vsel %vm3016_vm3, %v5537_v20, 0.0 }
 0xe1d   : > { %v15472_v61 = vadd.f32 %v12913_v50, %v5515_v58  ;;  %5558 = vadd.xlane.f32.xlu0 %v5557_v41  ;;  %v5554_v62 = vsel %vm3016_vm3, %v5536_v54, 0.0  ;;  %v5828_v58 = vld [vmem:[%s17884_s19 + $0x28] sm:$0xff] }
 0xe1e   : > { %v5539_v37 = vadd.f32 %v15471_v44, %v18384_v10  ;;  %5555 = vadd.xlane.f32.xlu1 %v5554_v62  ;;  %v5827_v44 = vld [vmem:[%s17884_s19 + $0x20] sm:$0xff] }
 0xe1f   : > { %v5538_v60 = vadd.f32 %v15472_v61, %v18389_v13  ;;  %v15105_v41 = vpack.c.bf16 %v5828_v58, %v5827_v44 }
 0xe20   : > { %v5563_v59 = vsel %vm3016_vm3, %v5539_v37, 0.0 }
 0xe21   : > { %5564 = vadd.xlane.f32.xlu0 %v5563_v59  ;;  %v5560_v2 = vsel %vm3016_vm3, %v5538_v60, 0.0 }
 0xe22   : > { %5561 = vadd.xlane.f32.xlu1 %v5560_v2 }
 0xea2   : > { %v5547_v5 = vpop.xlane.xlu0 %5546 }
 0xea3   : > { %v5568_v16 = vmul.f32 0.03125, %v5547_v5  ;;  %v5544_v27 = vpop.xlane.xlu1 %5543 }
 0xea4   : > { %v5567_v18 = vmul.f32 0.03125, %v5544_v27 }
 0xea5   : > { %v19092_v38 = vsub.f32 %v5533_v31, %v5568_v16 }
 0xea6   : > { %v19094_v24 = vsub.f32 %v5532_v23, %v5567_v18  ;;  %v5553_v1 = vpop.xlane.xlu0 %5552 }
 0xea7   : > { %v5570_v46 = vmul.f32 0.03125, %v5553_v1  ;;  %v5550_v10 = vpop.xlane.xlu1 %5549  ;;  %v5584_v13 = vmul.f32 %v19092_v38, %v19092_v38 }
 0xea8   : > { %v5569_v28 = vmul.f32 0.03125, %v5550_v10  ;;  %v5583_v6 = vmul.f32 %v19094_v24, %v19094_v24 }
 0xea9   : > { %v19100_v55 = vsub.f32 %v5535_v36, %v5570_v46  ;;  %v5594_v42 = vsel %vm3016_vm3, %v5584_v13, 0.0  ;;  %v15089_v36 = vpack.c.bf16 %v5676_v39, %v5675_v0 }
 0xeaa   : > { %v19103_v43 = vsub.f32 %v5534_v63, %v5569_v28  ;;  %v5559_v3 = vpop.xlane.xlu0 %5558  ;;  %5595 = vadd.xlane.f32.xlu0 %v5594_v42  ;;  %v5591_v11 = vsel %vm3016_vm3, %v5583_v6, 0.0  ;;  %v5677_v63 = vld [vmem:[%s20417_s4 + $0x10] sm:$0xff]  ;;  %s20460_s4 = smov 120  }
 0xeab   : > { %v5572_v17 = vmul.f32 0.03125, %v5559_v3  ;;  %v5556_v19 = vpop.xlane.xlu1 %5555  ;;  %5592 = vadd.xlane.f32.xlu1 %v5591_v11  ;;  %v5586_v14 = vmul.f32 %v19100_v55, %v19100_v55  ;;  %15090 = vmatprep.subr.bf16.mxu0 %v15089_v36  ;;  %v15093_v47 = vpack.c.bf16 %v5678_v45, %v5677_v63  ;;  %v6114_v63 = vld [vmem:[%s20456_s1 + $0x18] sm:$0xff] }
 0xeac   : > { %v5571_v40 = vmul.f32 0.03125, %v5556_v19  ;;  %v5585_v48 = vmul.f32 %v19103_v43, %v19103_v43  ;;  %15092 = vmatpush3.bf16.msra.mxu0 %v15089_v36 }
 0xead   : > { %v19110_v57 = vsub.f32 %v5537_v20, %v5572_v17  ;;  %v5600_v52 = vsel %vm3016_vm3, %v5586_v14, 0.0  ;;  %15094 = vmatprep.subr.bf16.mxu0 %v15093_v47  ;;  %v15097_v20 = vpack.c.bf16 %v5824_v53, %v5823_v49 }
 0xeae   : > { %v19113_v32 = vsub.f32 %v5536_v54, %v5571_v40  ;;  %5601 = vadd.xlane.f32.xlu0 %v5600_v52  ;;  %v5565_v26 = vpop.xlane.xlu0 %5564  ;;  %v5597_v35 = vsel %vm3016_vm3, %v5585_v48, 0.0  ;;  %v5826_v54 = vld [vmem:[%s17884_s19 + $0x18] sm:$0xff]  ;;  %v13010_v48 = vld [vmem:[#allocation42] ss:$0 sm:$0xff] }
 0xeaf   : > { %v5574_v4 = vmul.f32 0.03125, %v5565_v26  ;;  %5598 = vadd.xlane.f32.xlu1 %v5597_v35  ;;  %v5562_v9 = vpop.xlane.xlu1 %5561  ;;  %v5588_v50 = vmul.f32 %v19110_v57, %v19110_v57  ;;  %v15101_v56 = vpack.c.bf16 %v5826_v54, %v5825_v30  ;;  %15098 = vmatprep.subr.bf16.mxu1 %v15097_v20 }
 0xeb0   : > { %v5573_v21 = vmul.f32 0.03125, %v5562_v9  ;;  %v5587_v22 = vmul.f32 %v19113_v32, %v19113_v32  ;;  %15096 = vmatpush3.bf16.msra.mxu0 %v15093_v47  ;;  %15100 = vmatpush3.bf16.msra.mxu1 %v15097_v20 }
 0xeb1   : > { %v19120_v29 = vsub.f32 %v5539_v37, %v5574_v4  ;;  %v5606_v15 = vsel %vm3016_vm3, %v5588_v50, 0.0  ;;  %15113 = vmatprep.subr.bf16.mxu0 %v17498_v34  ;;  %15102 = vmatprep.subr.bf16.mxu1 %v15101_v56 }
 0xeb2   : > { %v19123_v31 = vsub.f32 %v5538_v60, %v5573_v21  ;;  %5607 = vadd.xlane.f32.xlu0 %v5606_v15  ;;  %v5603_v23 = vsel %vm3016_vm3, %v5587_v22, 0.0  ;;  %v13011_v21 = vld [vmem:[#allocation40] ss:$0 sm:$0xff]  ;;  %v6111_v22 = vld [vmem:[%s20456_s1] sm:$0xff]  ;;  %v6112_v15 = vld [vmem:[%s20456_s1 + $0x8] sm:$0xff] }
 0xeb3   : > { %5604 = vadd.xlane.f32.xlu1 %v5603_v23  ;;  %v5590_v25 = vmul.f32 %v19120_v29, %v19120_v29  ;;  %v15114_v0 = vpack.c.bf16 %v6112_v15, %v6111_v22  ;;  %v13032_v22 = vld [vmem:[#allocation13] ss:$0 sm:$0xff] }
 0xeb4   : > { %v5589_v33 = vmul.f32 %v19123_v31, %v19123_v31  ;;  %15104 = vmatpush3.bf16.msra.mxu1 %v15101_v56 }
 0xeb5   : > { %v5612_v51 = vsel %vm3016_vm3, %v5590_v25, 0.0  ;;  %15106 = vmatprep.subr.bf16.mxu1 %v15105_v41 }
 0xeb6   : > { %5613 = vadd.xlane.f32.xlu0 %v5612_v51  ;;  %v5609_v8 = vsel %vm3016_vm3, %v5589_v33, 0.0 }
 0xeb7   : > { %5610 = vadd.xlane.f32.xlu1 %v5609_v8 }
 0xeb8   : > { %15108 = vmatpush3.bf16.msra.mxu1 %v15105_v41 }
 0xf37   : > { %v5596_v61 = vpop.xlane.xlu0 %5595 }
 0xf38   : > { %v5616_v62 = vmul.f32 0.03125, %v5596_v61  ;;  %v5593_v37 = vpop.xlane.xlu1 %5592 }
 0xf39   : > { %v5615_v60 = vmul.f32 0.03125, %v5593_v37  ;;  %v17499_v37 = vmov 0.0  }
 0xf3a   : > { %v5624_v59 = vadd.f32 1e-05, %v5616_v62 }
 0xf3b   : > { %v5623_v2 = vadd.f32 1e-05, %v5615_v60  ;;  %v5602_v5 = vpop.xlane.xlu0 %5601 }
 0xf3c   : > { %16351 = vrsqrt.f32 %v5624_v59  ;;  %v5618_v16 = vmul.f32 0.03125, %v5602_v5  ;;  %v5599_v27 = vpop.xlane.xlu1 %5598  ;;  %v5830_v5 = vld [vmem:[%s17884_s19 + $0x38] sm:$0xff] }
 0xf3d   : > { %16353 = vrsqrt.f32 %v5623_v2  ;;  %v5617_v18 = vmul.f32 0.03125, %v5599_v27  ;;  %v5829_v2 = vld [vmem:[%s17884_s19 + $0x30] sm:$0xff]  ;;  %v13012_v27 = vld [vmem:[#allocation37] ss:$0 sm:$0xff] }
 0xf3e   : > { %v5626_v1 = vadd.f32 1e-05, %v5618_v16  ;;  %v15109_v16 = vpack.c.bf16 %v5830_v5, %v5829_v2 }
 0xf3f   : > { %v5625_v46 = vadd.f32 1e-05, %v5617_v18  ;;  %v5608_v10 = vpop.xlane.xlu0 %5607 }
 0xf40   : > { %16355 = vrsqrt.f32 %v5626_v1  ;;  %v5620_v13 = vmul.f32 0.03125, %v5608_v10  ;;  %v5605_v28 = vpop.xlane.xlu1 %5604  ;;  %15110 = vmatprep.subr.bf16.mxu1 %v15109_v16 }
 0xf41   : > { %16357 = vrsqrt.f32 %v5625_v46  ;;  %v5619_v6 = vmul.f32 0.03125, %v5605_v28  ;;  %15112 = vmatpush3.bf16.msra.mxu1 %v15109_v16 }
 0xf42   : > { %v5628_v42 = vadd.f32 1e-05, %v5620_v13  ;;  %15119 = vmatprep.subr.bf16.mxu1 %v17498_v34 }
 0xf43   : > { %v5627_v3 = vadd.f32 1e-05, %v5619_v6  ;;  %v5614_v11 = vpop.xlane.xlu0 %5613 }
 0xf44   : > { %16359 = vrsqrt.f32 %v5628_v42  ;;  %v5622_v17 = vmul.f32 0.03125, %v5614_v11  ;;  %v5611_v19 = vpop.xlane.xlu1 %5610 }
 0xf45   : > { %16361 = vrsqrt.f32 %v5627_v3  ;;  %v5621_v14 = vmul.f32 0.03125, %v5611_v19 }
 0xf46   : > { %v16352_v40 = vpop.eup %16351  ;;  %v5630_v52 = vadd.f32 1e-05, %v5622_v17 }
 0xf47   : > { %v16354_v26 = vpop.eup %16353  ;;  %v5640_v35 = vmul.f32 %v16352_v40, %v19092_v38  ;;  %v5629_v4 = vadd.f32 1e-05, %v5621_v14 }
 0xf48   : > { %16363 = vrsqrt.f32 %v5630_v52  ;;  %v5639_v9 = vmul.f32 %v16354_v26, %v19094_v24  ;;  %v6113_v24 = vld [vmem:[%s20456_s1 + $0x10] sm:$0xff]  ;;  %s20458_s1 = smov 96  }
 0xf49   : > { %v5654_v50 = vmul.f32 %v13010_v48, %v5640_v35  ;;  %16365 = vrsqrt.f32 %v5629_v4  ;;  %v15117_v30 = vpack.c.bf16 %v6114_v63, %v6113_v24 }
 0xf4a   : > { %v16356_v23 = vpop.eup %16355  ;;  %v5653_v25 = vmul.f32 %v13010_v48, %v5639_v9 }
 0xf4b   : > { %v16358_v33 = vpop.eup %16357  ;;  %v5642_v51 = vmul.f32 %v16356_v23, %v19100_v55  ;;  %v19151_v39 = vadd.f32 %v13011_v21, %v5654_v50 }
 0xf4c   : > { %v19148_v8 = vadd.f32 %v13011_v21, %v5653_v25  ;;  %v5641_v38 = vmul.f32 %v16358_v33, %v19103_v43 }
 0xf4d   : > { %v5656_v36 = vmul.f32 %v13010_v48, %v5642_v51 }
 0xf4e   : > { %v16360_v45 = vpop.eup %16359  ;;  %14159 = vmatprep.mubr.msk.f32.mxu0 %vm3016_vm3, %v19148_v8  ;;  %v5655_v47 = vmul.f32 %v13010_v48, %v5641_v38  ;;  %v19227_v38 = vld [vmem:[#allocation39] ss:$0 sm:$0xff] }
 0xf4f   : > { %v16362_v49 = vpop.eup %16361  ;;  %14160 = vmatmul.mubr.msk.f32.vlgmr.msra.gmra.mrb[48].mxu0 %vm3016_vm3, %v19151_v39  ;;  %v5644_v55 = vmul.f32 %v16360_v45, %v19110_v57  ;;  %v19163_v20 = vadd.f32 %v13011_v21, %v5656_v36 }
 0xf50   : > { %15115 = vmatpush3.bf16.msra.mxu0 %v15114_v0  ;;  %v19160_v53 = vadd.f32 %v13011_v21, %v5655_v47  ;;  %v5643_v43 = vmul.f32 %v16362_v49, %v19113_v32  ;;  %v6195_v49 = vld [vmem:[%s20459_s3] sm:$0xff] }
 0xf51   : > { %v5658_v54 = vmul.f32 %v13010_v48, %v5644_v55  ;;  %15116 = vmatprep.subr.bf16.mxu0 %v17498_v34  ;;  %v6196_v55 = vld [vmem:[%s20459_s3 + $0x8] sm:$0xff] }
 0xf52   : > { %v16364_v56 = vpop.eup %16363  ;;  %14162 = vmatprep.mubr.msk.f32.mxu0 %vm3016_vm3, %v19160_v53  ;;  %v5657_v44 = vmul.f32 %v13010_v48, %v5643_v43  ;;  %v6197_v43 = vld [vmem:[%s20459_s3 + $0x10] sm:$0xff] }
 0xf53   : > { %v16366_v58 = vpop.eup %16365  ;;  %14163 = vmatmul.mubr.msk.f32.gmra.mrb[50].mxu0 %vm3016_vm3, %v19163_v20  ;;  %v5646_v57 = vmul.f32 %v16364_v56, %v19120_v29  ;;  %v19174_v61 = vadd.f32 %v13011_v21, %v5658_v54  ;;  %v6198_v54 = vld [vmem:[%s20459_s3 + $0x18] sm:$0xff]  ;;  %s20462_s3 = smov 88  }
 0xf54   : > { %v19171_v41 = vadd.f32 %v13011_v21, %v5657_v44  ;;  %15118 = vmatpush3.bf16.msra.mxu0 %v15117_v30  ;;  %v5645_v32 = vmul.f32 %v16366_v58, %v19123_v31  ;;  %v19192_v31 = vld [vmem:[%s20457_s8] sm:$0xff]  ;;  %v15120_v30 = vpack.c.bf16 %v6196_v55, %v6195_v49  ;;  %v15123_v58 = vpack.c.bf16 %v6198_v54, %v6197_v43 }
 0xf55   : > { %v5660_v62 = vmul.f32 %v13010_v48, %v5646_v57  ;;  %14221 = vmatprep.subr.mxu0 %v17499_v37 }
 0xf56   : > { %14165 = vmatprep.mubr.msk.f32.mxu0 %vm3016_vm3, %v19171_v41  ;;  %v5659_v60 = vmul.f32 %v13010_v48, %v5645_v32 }
 0xf57   : > { %14166 = vmatmul.mubr.msk.f32.gmra.mrb[52].mxu0 %vm3016_vm3, %v19174_v61  ;;  %v19183_v59 = vadd.f32 %v13011_v21, %v5660_v62 }
 0xf58   : > { %v19181_v29 = vadd.f32 %v13011_v21, %v5659_v60 }
 0xf5a   : > { %14168 = vmatprep.mubr.msk.f32.mxu0 %vm3016_vm3, %v19181_v29 }
 0xf5b   : > { %14169 = vmatmul.mubr.msk.f32.gmra.mrb[54].mxu0 %vm3016_vm3, %v19183_v59 }
 0xf5c   : > { %14207 = vmatprep.mubr.msk.f32.mxu0 %vm17500_vm6, %v17499_v37 }
 0xf5f   : > { %14208 = vmatmul.mubr.msk.f32.vlgmr.msra.gmra.mrb[56].mxu0 %vm3016_vm3, %v19192_v31 }
 0xf60   : > { %14223 = vmatprep.mubr.msk.f32.mxu0 %vm17500_vm6, %v17499_v37 }
0x1022   : > { %v14161_v18 = vpop.f32.mrb[48].mxu0 }
0x1023   : > { %v5782_v1 = vadd.f32 %v14161_v18, %v13012_v27  ;;  %v5776_v46 = vpop.f32.mrb[49].mxu0 }
0x1024   : > { %v5777_v10 = vadd.f32 %v13012_v27, %v5776_v46 }
0x1025   : > { %v5816_v6 = vmax.f32 %v5782_v1, 0.0 }
0x1026   : > { %v5815_v13 = vmax.f32 %v5777_v10, 0.0  ;;  %v14164_v28 = vpop.f32.mrb[50].mxu0 }
0x1027   : > { %v5792_v42 = vadd.f32 %v14164_v28, %v13012_v27  ;;  %v5786_v3 = vpop.f32.mrb[51].mxu0 }
0x1028   : > { %v5787_v11 = vadd.f32 %v13012_v27, %v5786_v3  ;;  %14187 = vmatprep.mubr.msk.f32.mxu1 %vm3474_vm5, %v5815_v13  ;;  %v13034_v13 = vld [vmem:[#allocation15] ss:$0 sm:$0xff] }
0x1029   : > { %14188 = vmatmul.mubr.msk.f32.vlgmr.msra.gmra.mrb[56].mxu1 %vm3474_vm5, %v5816_v6  ;;  %v5818_v14 = vmax.f32 %v5792_v42, 0.0 }
0x102a   : > { %v5817_v17 = vmax.f32 %v5787_v11, 0.0  ;;  %v14167_v19 = vpop.f32.mrb[52].mxu0  ;;  %15121 = vmatpush3.bf16.msra.mxu1 %v15120_v30 }
0x102b   : > { %v5802_v40 = vadd.f32 %v14167_v19, %v13012_v27  ;;  %v5796_v48 = vpop.f32.mrb[53].mxu0  ;;  %15122 = vmatprep.subr.bf16.mxu1 %v17498_v34 }
0x102c   : > { %v5797_v52 = vadd.f32 %v13012_v27, %v5796_v48  ;;  %14190 = vmatprep.mubr.msk.f32.mxu1 %vm3474_vm5, %v5817_v17 }
0x102d   : > { %14191 = vmatmul.mubr.msk.f32.gmra.mrb[58].mxu1 %vm3474_vm5, %v5818_v14  ;;  %v5820_v4 = vmax.f32 %v5802_v40, 0.0 }
0x102e   : > { %v5819_v26 = vmax.f32 %v5797_v52, 0.0  ;;  %v14170_v35 = vpop.f32.mrb[54].mxu0  ;;  %15124 = vmatpush3.bf16.msra.mxu1 %v15123_v58  ;;  %v6279_v52 = vld [vmem:[%s20463_s6] sm:$0xff] }
0x102f   : > { %v5812_v9 = vadd.f32 %v14170_v35, %v13012_v27  ;;  %v5806_v50 = vpop.f32.mrb[55].mxu0  ;;  %14226 = vmatprep.subr.mxu1 %v17499_v37 }
0x1030   : > { %v5807_v21 = vadd.f32 %v13012_v27, %v5806_v50  ;;  %14193 = vmatprep.mubr.msk.f32.mxu1 %vm3474_vm5, %v5819_v26 }
0x1031   : > { %14194 = vmatmul.mubr.msk.f32.gmra.mrb[60].mxu1 %vm3474_vm5, %v5820_v4  ;;  %v5822_v25 = vmax.f32 %v5812_v9, 0.0 }
0x1032   : > { %v5821_v15 = vmax.f32 %v5807_v21, 0.0  ;;  %v6191_v23 = vpop.f32.mrb[56].mxu0 }
0x1033   : > { %v19207_v33 = vadd.f32 %v13032_v22, %v6191_v23  ;;  %v14209_v51 = vpop.f32.mrb[57].mxu0 }
0x1034   : > { %14196 = vmatprep.mubr.msk.f32.mxu1 %vm3474_vm5, %v5821_v15 }
0x1035   : > { %6285 = vrot.lane.b32.xlu1 %v19207_v33, %s20458_s1  ;;  %14197 = vmatmul.mubr.msk.f32.gmra.mrb[62].mxu1 %vm3474_vm5, %v5822_v25 }
0x1036   : > { %14218 = vmatprep.mubr.msk.f32.mxu1 %vm17500_vm6, %v17499_v37 }
0x1039   : > { %6526 = vrot.lane.b32.xlu1 %v19207_v33, %s20460_s4  ;;  %14219 = vmatmul.mubr.f32.vlgmr.msra.gmra.mrb[64].mxu1 %v17499_v37 }
0x103a   : > { %14228 = vmatprep.mubr.msk.f32.mxu1 %vm17500_vm6, %v17499_v37 }
0x103d   : > { %6769 = vrot.lane.b32.xlu1 %v19207_v33, %s20461_s5 }
0x1041   : > { %6767 = vrot.lane.b32.xlu1 %v19207_v33, %s20455_s2 }
0x10a7   : > { %v6286_v0 = vpop.permute.xlu1 %6285 }
0x10a8   : > { %14222 = vmatpush3.xpose.msk.msra.mxu0 %vm2867_vm2, %v6286_v0 }
0x10a9   : > { %14231 = vmatprep.subr.mxu0 %v17499_v37 }
0x10ab   : > { %14224 = vmatmul.mubr.msk.f32.vlgmr.msra.gmra.mrb[58].mxu0 %vm2867_vm2, %v19207_v33  ;;  %v6527_v11 = vpop.permute.xlu1 %6526 }
0x10ac   : > { %14233 = vmatprep.mubr.msk.f32.mxu0 %vm17500_vm6, %v17499_v37  ;;  %14232 = vmatpush3.msra.mxu0 %v6279_v52 }
0x10ad   : > { %14241 = vmatprep.subr.mxu0 %v17499_v37 }
0x10af   : > { %v6770_v40 = vpop.permute.xlu1 %6769 }
0x10b3   : > { %v6768_v48 = vpop.permute.xlu1 %6767 }
0x10fc   : > { %v14189_v36 = vpop.f32.mrb[56].mxu1 }
0x10fd   : > { %v19230_v24 = vadd.f32 %v14189_v36, %v19227_v38  ;;  %v19232_v63 = vpop.f32.mrb[57].mxu1 }
0x1100   : > { %v19234_v45 = vpop.f32.mrb[58].mxu1 }
0x1101   : > { %v19236_v47 = vpop.f32.mrb[59].mxu1  ;;  %v5944_v54 = vadd.f32 %v19234_v45, %v19227_v38 }
0x1102   : > { %v5939_v30 = vadd.f32 %v19227_v38, %v19236_v47 }
0x1104   : > { %v19242_v56 = vpop.f32.mrb[60].mxu1  ;;  %v5969_v58 = vadd.f32 %v5939_v30, %v19160_v53 }
0x1105   : > { %v19244_v44 = vpop.f32.mrb[61].mxu1 }
0x1108   : > { %v19247_v57 = vpop.f32.mrb[62].mxu1 }
0x1109   : > { %v5958_v32 = vpop.f32.mrb[63].mxu1 }
0x110a   : > { %v19250_v62 = vadd.f32 %v19227_v38, %v5958_v32 }
0x110c   : > { %v6275_v28 = vpop.f32.mrb[64].mxu1 }
0x110d   : > { %v19258_v6 = vadd.f32 %v13034_v13, %v6275_v28  ;;  %v14220_v42 = vpop.f32.mrb[65].mxu1 }
0x110f   : > { %14227 = vmatpush3.msra.mxu1 %v19258_v6 }
0x1110   : > { %14236 = vmatprep.subr.mxu1 %v17499_v37 }
0x117e   : > { %v6357_v60 = vpop.f32.mrb[58].mxu0 }
0x117f   : > { %v6361_v2 = vmul.f32 0.35355338, %v6357_v60  ;;  %v14225_v5 = vpop.f32.mrb[59].mxu0  ;;  %v19303_v60 = vadd.f32 %v5944_v54, %v19163_v20  ;;  %v5964_v20 = vadd.f32 %v19247_v57, %v19227_v38 }
0x1181   : > { %v6362_v16 = vsel %vm2867_vm2, %v6361_v2, -inf  ;;  %v5986_v53 = vsel %vm3016_vm3, %v19303_v60, 0.0  ;;  %v19320_v5 = vadd.f32 %v5964_v20, %v19183_v59  ;;  %v5973_v20 = vadd.f32 %v19250_v62, %v19181_v29 }
0x1182   : > { %6363 = vmax.xlane.f32.xlu0 %v6362_v16 }
0x120f   : > { %v6364_v27 = vpop.xlane.xlu0 %6363 }
0x1210   : > { %v6365_v18 = vsub.f32 %v6361_v2, %v6364_v27  ;;  %v5949_v2 = vadd.f32 %v19227_v38, %v19244_v44 }
0x1212   : > { %v6366_v1 = vmul.f32 1.442695, %v6365_v18  ;;  %v5971_v47 = vadd.f32 %v5949_v2, %v19171_v41  ;;  %v5998_v41 = vsel %vm3016_vm3, %v19320_v5, 0.0 }
0x1214   : > { %16367 = vpow2.f32 %v6366_v1  ;;  %v5989_v44 = vsel %vm3016_vm3, %v5971_v47, 0.0 }
0x121e   : > { %v16368_v46 = vpop.eup %16367 }
0x121f   : > { %v6368_v10 = vsel %vm2867_vm2, %v16368_v46, 0.0 }
0x1220   : > { %6369 = vadd.xlane.f32.xlu0 %v6368_v10 }
0x1236   : > { %6528 = vrot.lane.b32.xlu0 %v19207_v33, %s20462_s3 }
0x12ad   : > { %v6370_v3 = vpop.xlane.xlu0 %6369 }
0x12ae   : > { %16369 = vrcp.f32 %v6370_v3 }
0x12b1   : > { %v6529_v14 = vpop.permute.xlu0 %6528 }
0x12b8   : > { %v16370_v17 = vpop.eup %16369 }
0x12b9   : > { %v6372_v19 = vmul.f32 %v16370_v17, %v16368_v46 }
0x12bb   : > { %14229 = vmatmul.mubr.msk.f32.vlgmr.msra.gmra.mrb[66].mxu1 %vm2867_vm2, %v6372_v19 }
0x12bc   : > { %14237 = vmatpush3.xpose.msk.msra.mxu1 %vm2867_vm2, %v6529_v14  ;;  %14238 = vmatprep.mubr.msk.f32.mxu1 %vm17500_vm6, %v17499_v37 }
0x12bd   : > { %14251 = vmatprep.subr.mxu1 %v17499_v37 }
0x12bf   : > { %14239 = vmatmul.mubr.msk.f32.vlgmr.msra.gmra.mrb[68].mxu1 %vm2867_vm2, %v6527_v11 }
0x12c0   : > { %14252 = vmatpush3.xpose.msk.msra.mxu1 %vm2867_vm2, %v6770_v40  ;;  %14253 = vmatprep.mubr.msk.f32.mxu1 %vm17500_vm6, %v17499_v37 }
0x12c1   : > { %14256 = vmatprep.subr.mxu1 %v17499_v37 }
0x12c3   : > { %14254 = vmatmul.mubr.msk.f32.vlgmr.msra.gmra.mrb[70].mxu1 %vm2867_vm2, %v6768_v48 }
0x12c4   : > { %14258 = vmatprep.mubr.msk.f32.mxu1 %vm17500_vm6, %v17499_v37 }
0x138e   : > { %v6442_v26 = vpop.f32.mrb[66].mxu1 }
0x138f   : > { %v14230_v35 = vpop.f32.mrb[67].mxu1  ;;  %14234 = vmatmul.mubr.msk.f32.vlgmr.msra.gmra.mrb[60].mxu0 %vm2867_vm2, %v6442_v26 }
0x1390   : > { %14243 = vmatprep.mubr.msk.f32.mxu0 %vm17500_vm6, %v17499_v37 }
0x1392   : > { %v6600_v4 = vpop.f32.mrb[68].mxu1 }
0x1393   : > { %v14240_v9 = vpop.f32.mrb[69].mxu1  ;;  %v6604_v49 = vmul.f32 0.35355338, %v6600_v4 }
0x1395   : > { %v6605_v55 = vsel %vm2867_vm2, %v6604_v49, -inf }
0x1396   : > { %v6841_v50 = vpop.f32.mrb[70].mxu1 }
0x1397   : > { %v6845_v21 = vmul.f32 0.35355338, %v6841_v50  ;;  %v14255_v22 = vpop.f32.mrb[71].mxu1 }
0x1399   : > { %v6846_v15 = vsel %vm2867_vm2, %v6845_v21, -inf }
0x139a   : > { %6847 = vmax.xlane.f32.xlu1 %v6846_v15 }
0x13ab   : > { %7009 = vrot.lane.b32.xlu1 %v19207_v33, %s20464_s10 }
0x13af   : > { %7007 = vrot.lane.b32.xlu1 %v19207_v33, %s20465_s11  ;;  %v5929_v33 = vadd.f32 %v19227_v38, %v19232_v63  ;;  %v5983_v63 = vsel %vm3016_vm3, %v5969_v58, 0.0 }
0x13b1   : > { %v5967_v43 = vadd.f32 %v5929_v33, %v19148_v8  ;;  %v5954_v8 = vadd.f32 %v19242_v56, %v19227_v38 }
0x13b3   : > { %v5977_v32 = vsel %vm3016_vm3, %v5967_v43, 0.0  ;;  %v19314_v45 = vadd.f32 %v5954_v8, %v19174_v61 }
0x13b5   : > { %v5992_v56 = vsel %vm3016_vm3, %v19314_v45, 0.0 }
0x1427   : > { %v6848_v23 = vpop.xlane.xlu1 %6847 }
0x1428   : > { %v6849_v25 = vsub.f32 %v6845_v21, %v6848_v23 }
0x142a   : > { %v6850_v51 = vmul.f32 1.442695, %v6849_v25 }
0x142b   : > { %v7010_v57 = vpop.permute.xlu1 %7009 }
0x142c   : > { %16371 = vpow2.f32 %v6850_v51 }
0x142f   : > { %v7008_v59 = vpop.permute.xlu1 %7007 }
0x1436   : > { %v16372_v0 = vpop.eup %16371 }
0x1437   : > { %v6852_v36 = vsel %vm2867_vm2, %v16372_v0, 0.0 }
0x1438   : > { %6853 = vadd.xlane.f32.xlu0 %v6852_v36 }
0x144e   : > { %6857 = vrot.lane.b32.xlu0 %v19258_v6, %s20455_s2 }
0x146d   : > { %6606 = vmax.xlane.f32.xlu0 %v6605_v55 }
0x1483   : > { %6617 = vrot.lane.b32.xlu0 %v19258_v6, %s20460_s4 }
0x14a2   : > { %5978 = vadd.xlane.f32.xlu0 %v5977_v32 }
0x14a6   : > { %5984 = vadd.xlane.f32.xlu0 %v5983_v63  ;;  %v6281_v63 = vld [vmem:[%s20463_s6 + $0x10] sm:$0xff] }
0x14aa   : > { %5987 = vadd.xlane.f32.xlu0 %v5986_v53  ;;  %v5968_v53 = vadd.f32 %v19230_v24, %v19151_v39 }
0x14ae   : > { %5990 = vadd.xlane.f32.xlu0 %v5989_v44  ;;  %v5980_v44 = vsel %vm3016_vm3, %v5968_v53, 0.0 }
0x14b2   : > { %5993 = vadd.xlane.f32.xlu0 %v5992_v56 }
0x14b6   : > { %5999 = vadd.xlane.f32.xlu0 %v5998_v41 }
0x14c5   : > { %v6854_v16 = vpop.xlane.xlu0 %6853 }
0x14c6   : > { %16373 = vrcp.f32 %v6854_v16 }
0x14c9   : > { %v6858_v61 = vpop.permute.xlu0 %6857 }
0x14ca   : > { %14257 = vmatpush3.msra.mxu1 %v6858_v61 }
0x14cb   : > { %14266 = vmatprep.subr.mxu1 %v17499_v37 }
0x14d0   : > { %v16374_v38 = vpop.eup %16373 }
0x14d1   : > { %v6856_v27 = vmul.f32 %v16374_v38, %v16372_v0 }
0x14d3   : > { %14259 = vmatmul.mubr.msk.f32.vlgmr.msra.gmra.mrb[72].mxu1 %vm2867_vm2, %v6856_v27  ;;  %v6282_v27 = vld [vmem:[%s20463_s6 + $0x18] sm:$0xff] }
0x14d4   : > { %14267 = vmatpush3.xpose.msk.msra.mxu1 %vm2867_vm2, %v7010_v57  ;;  %14268 = vmatprep.mubr.msk.f32.mxu1 %vm17500_vm6, %v17499_v37 }
0x14d5   : > { %15125 = vmatprep.subr.bf16.mxu1 %v17498_v34 }
0x14d7   : > { %14269 = vmatmul.mubr.msk.f32.vlgmr.msra.gmra.mrb[74].mxu1 %vm2867_vm2, %v7008_v59 }
0x14d8   : > { %14289 = vmatprep.mubr.msk.f32.mxu1 %vm17500_vm6, %v17499_v37 }
0x14fa   : > { %v6607_v18 = vpop.xlane.xlu0 %6606 }
0x14fb   : > { %v6608_v1 = vsub.f32 %v6604_v49, %v6607_v18 }
0x14fd   : > { %v6609_v46 = vmul.f32 1.442695, %v6608_v1 }
0x14fe   : > { %v6618_v10 = vpop.permute.xlu0 %6617 }
0x14ff   : > { %16375 = vpow2.f32 %v6609_v46  ;;  %14242 = vmatpush3.msra.mxu0 %v6618_v10 }
0x1500   : > { %14246 = vmatprep.subr.mxu0 %v17499_v37 }
0x1509   : > { %v16376_v13 = vpop.eup %16375 }
0x150a   : > { %v6611_v28 = vsel %vm2867_vm2, %v16376_v13, 0.0 }
0x150b   : > { %6612 = vadd.xlane.f32.xlu1 %v6611_v28 }
0x152f   : > { %v5979_v42 = vpop.xlane.xlu0 %5978 }
0x1530   : > { %v6001_v3 = vmul.f32 0.03125, %v5979_v42  ;;  %v19388_v42 = vld [vmem:[#allocation45] ss:$0 sm:$0xff] }
0x1532   : > { %v19337_v11 = vsub.f32 %v5967_v43, %v6001_v3  ;;  %v6280_v43 = vld [vmem:[%s20463_s6 + $0x8] sm:$0xff]  ;;  %s20467_s6 = sld [smem:[#allocation89_spill]] }
0x1533   : > { %v5985_v17 = vpop.xlane.xlu0 %5984 }
0x1534   : > { %v6003_v19 = vmul.f32 0.03125, %v5985_v17  ;;  %v6017_v14 = vmul.f32 %v19337_v11, %v19337_v11  ;;  %v19391_v17 = vld [vmem:[#allocation43] ss:$0 sm:$0xff] }
0x1536   : > { %v19341_v40 = vsub.f32 %v5969_v58, %v6003_v19  ;;  %v6025_v48 = vsel %vm3016_vm3, %v6017_v14, 0.0 }
0x1537   : > { %6026 = vadd.xlane.f32.xlu0 %v6025_v48  ;;  %v19344_v52 = vpop.xlane.xlu0 %5987  ;;  %v16465_v48 = vld [vmem:[%s18342_s9] sm:$0xff] }
0x1538   : > { %v6019_v26 = vmul.f32 %v19341_v40, %v19341_v40 }
0x153a   : > { %v6031_v35 = vsel %vm3016_vm3, %v6019_v26, 0.0 }
0x153b   : > { %6032 = vadd.xlane.f32.xlu0 %v6031_v35  ;;  %v5991_v4 = vpop.xlane.xlu0 %5990 }
0x153c   : > { %v6005_v9 = vmul.f32 0.03125, %v5991_v4  ;;  %v19407_v4 = vld [vmem:[%s20466_s12 + $0x8] sm:$0xff] }
0x153e   : > { %v19349_v50 = vsub.f32 %v5971_v47, %v6005_v9 }
0x153f   : > { %v5994_v59 = vpop.xlane.xlu0 %5993 }
0x1540   : > { %v6021_v21 = vmul.f32 %v19349_v50, %v19349_v50 }
0x1542   : > { %v6037_v22 = vsel %vm3016_vm3, %v6021_v21, 0.0 }
0x1543   : > { %6038 = vadd.xlane.f32.xlu0 %v6037_v22  ;;  %v6000_v18 = vpop.xlane.xlu0 %5999  ;;  %v13039_v22 = vld [vmem:[#allocation12] ss:$0 sm:$0xff] }
0x1598   : > { %v6613_v15 = vpop.xlane.xlu1 %6612 }
0x1599   : > { %16377 = vrcp.f32 %v6613_v15  ;;  %v6004_v15 = vmul.f32 0.03125, %v19344_v52  ;;  %v6008_v52 = vmul.f32 0.03125, %v6000_v18 }
0x15a3   : > { %v16378_v23 = vpop.eup %16377 }
0x15a4   : > { %v6615_v25 = vmul.f32 %v16378_v23, %v16376_v13 }
0x15a6   : > { %14244 = vmatmul.mubr.msk.f32.vlgmr.msra.gmra.mrb[62].mxu0 %vm2867_vm2, %v6615_v25  ;;  %v6929_v51 = vpop.f32.mrb[72].mxu1 }
0x15a7   : > { %v14260_v0 = vpop.f32.mrb[73].mxu1  ;;  %14248 = vmatprep.mubr.msk.f32.mxu0 %vm17500_vm6, %v17499_v37  ;;  %14247 = vmatpush3.msra.mxu0 %v6280_v43 }
0x15a8   : > { %14261 = vmatprep.subr.mxu0 %v17499_v37 }
0x15aa   : > { %v7081_v36 = vpop.f32.mrb[74].mxu1 }
0x15ab   : > { %v7085_v49 = vmul.f32 0.35355338, %v7081_v36  ;;  %v14270_v55 = vpop.f32.mrb[75].mxu1  ;;  %v19416_v36 = vsub.f32 %v19303_v60, %v6004_v15  ;;  %v19428_v60 = vsub.f32 %v19320_v5, %v6008_v52  ;;  %v19438_v5 = vld [vmem:[%s20466_s12 + $0x10] sm:$0xff] }
0x15ad   : > { %v7086_v33 = vsel %vm2867_vm2, %v7085_v49, -inf }
0x15ae   : > { %7087 = vmax.xlane.f32.xlu1 %v7086_v33 }
0x15c4   : > { %v6027_v1 = vpop.xlane.xlu0 %6026 }
0x15c5   : > { %v6049_v46 = vmul.f32 0.03125, %v6027_v1 }
0x15c7   : > { %v6057_v10 = vadd.f32 1e-05, %v6049_v46 }
0x163b   : > { %v7088_v30 = vpop.xlane.xlu1 %7087 }
0x163c   : > { %v7089_v54 = vsub.f32 %v7085_v49, %v7088_v30  ;;  %v6006_v49 = vmul.f32 0.03125, %v5994_v59 }
0x163e   : > { %v7090_v58 = vmul.f32 1.442695, %v7089_v54  ;;  %v19422_v43 = vsub.f32 %v19314_v45, %v6006_v49  ;;  %v6020_v54 = vmul.f32 %v19416_v36, %v19416_v36 }
0x1640   : > { %16379 = vpow2.f32 %v7090_v58  ;;  %v6034_v58 = vsel %vm3016_vm3, %v6020_v54, 0.0 }
0x164a   : > { %v16380_v32 = vpop.eup %16379 }
0x164b   : > { %v7092_v2 = vsel %vm2867_vm2, %v16380_v32, 0.0 }
0x164c   : > { %7093 = vadd.xlane.f32.xlu1 %v7092_v2  ;;  %v6024_v2 = vmul.f32 %v19428_v60, %v19428_v60 }
0x165d   : > { %7097 = vrot.lane.b32.xlu1 %v19258_v6, %s20465_s11  ;;  %v5995_v6 = vsel %vm3016_vm3, %v5973_v20, 0.0 }
0x1679   : > { %v6689_v8 = vpop.f32.mrb[62].mxu0 }
0x167a   : > { %v14245_v47 = vpop.f32.mrb[63].mxu0  ;;  %14249 = vmatmul.mubr.msk.f32.vlgmr.msra.gmra.mrb[60].mxu0 %vm2867_vm2, %v6689_v8  ;;  %v6033_v8 = vpop.xlane.xlu0 %6032 }
0x167b   : > { %14262 = vmatpush3.msra.mxu0 %v6281_v63  ;;  %14263 = vmatprep.mubr.msk.f32.mxu0 %vm17500_vm6, %v17499_v37  ;;  %v6046_v63 = vsel %vm3016_vm3, %v6024_v2, 0.0 }
0x167c   : > { %14271 = vmatprep.subr.mxu0 %v17499_v37 }
0x167e   : > { %v6039_v47 = vpop.xlane.xlu0 %6038 }
0x1681   : > { %5981 = vadd.xlane.f32.xlu1 %v5980_v44 }
0x1682   : > { %14264 = vmatmul.mubr.msk.f32.vlgmr.msra.gmra.mrb[60].mxu0 %vm2867_vm2, %v6929_v51 }
0x1683   : > { %14273 = vmatprep.mubr.msk.f32.mxu0 %vm17500_vm6, %v17499_v37 }
0x1685   : > { %5996 = vadd.xlane.f32.xlu1 %v5995_v6 }
0x16d9   : > { %v7094_v56 = vpop.xlane.xlu1 %7093 }
0x16da   : > { %16381 = vrcp.f32 %v7094_v56 }
0x16db   : > { %16383 = vrsqrt.f32 %v6057_v10 }
0x16dd   : > { %v7098_v39 = vpop.permute.xlu1 %7097 }
0x16de   : > { %14272 = vmatpush3.msra.mxu0 %v7098_v39 }
0x16df   : > { %14276 = vmatprep.subr.mxu0 %v17499_v37 }
0x16e4   : > { %v16382_v24 = vpop.eup %16381 }
0x16e5   : > { %v7096_v29 = vmul.f32 %v16382_v24, %v16380_v32  ;;  %v16384_v13 = vpop.eup %16383  ;;  %v6022_v32 = vmul.f32 %v19422_v43, %v19422_v43 }
0x16e6   : > { %v6073_v28 = vmul.f32 %v16384_v13, %v19337_v11  ;;  %v19404_v11 = vld [vmem:[%s20466_s12] sm:$0xff] }
0x16e7   : > { %14274 = vmatmul.mubr.msk.f32.vlgmr.msra.gmra.mrb[64].mxu0 %vm2867_vm2, %v7096_v29  ;;  %v15963_v9 = vpack.i.bf16 %v19407_v4, %v19404_v11  ;;  %v6040_v45 = vsel %vm3016_vm3, %v6022_v32, 0.0  ;;  %v19447_v29 = vld [vmem:[%s20467_s6] ss:$0 sm:$0xff]  ;;  %s20468_s6 = sld [smem:[#allocation93_spill]] }
0x16e8   : > { %14278 = vmatprep.mubr.msk.f32.mxu0 %vm17500_vm6, %v17499_v37  ;;  %14277 = vmatpush3.msra.mxu0 %v6282_v27  ;;  %v6087_v3 = vmul.f32 %v19388_v42, %v6073_v28 }
0x16ea   : > { %v19394_v19 = vadd.f32 %v19391_v17, %v6087_v3 }
0x16ec   : > { %v19398_v26 = vadd.f32 %v16465_v48, %v19394_v19 }
0x170e   : > { %v5982_v62 = vpop.xlane.xlu1 %5981 }
0x170f   : > { %v6002_v21 = vmul.f32 0.03125, %v5982_v62  ;;  %v6051_v62 = vmul.f32 0.03125, %v6033_v8 }
0x1711   : > { %v19413_v23 = vsub.f32 %v5968_v53, %v6002_v21  ;;  %v19441_v53 = vld [vmem:[%s20466_s12 + $0x18] sm:$0xff]  ;;  %s20475_s12 = sld [smem:[#allocation87_spill]] }
0x1712   : > { %v5997_v41 = vpop.xlane.xlu1 %5996  ;;  %v15968_v44 = vpack.i.bf16 %v19441_v53, %v19438_v5 }
0x1713   : > { %v6007_v16 = vmul.f32 0.03125, %v5997_v41  ;;  %v6018_v33 = vmul.f32 %v19413_v23, %v19413_v23  ;;  %v6059_v41 = vadd.f32 1e-05, %v6051_v62  ;;  %v16467_v62 = vld [vmem:[%s18342_s9 + $0x10] sm:$0xff] }
0x1715   : > { %v19381_v61 = vsub.f32 %v5973_v20, %v6007_v16  ;;  %v6028_v30 = vsel %vm3016_vm3, %v6018_v33, 0.0  ;;  %v6053_v16 = vmul.f32 0.03125, %v6039_v47  ;;  %16385 = vrsqrt.f32 %v6059_v41 }
0x1717   : > { %v6023_v38 = vmul.f32 %v19381_v61, %v19381_v61  ;;  %v6061_v27 = vadd.f32 1e-05, %v6053_v16 }
0x1719   : > { %v6043_v57 = vsel %vm3016_vm3, %v6023_v38, 0.0  ;;  %16387 = vrsqrt.f32 %v6061_v27 }
0x171a   : > { %6044 = vadd.xlane.f32.xlu0 %v6043_v57 }
0x1730   : > { %15964 = vrot.lane.b32.xlu0 %v15963_v9, %s20458_s1  ;;  %v16386_v9 = vpop.eup %16385 }
0x1731   : > { %v6075_v15 = vmul.f32 %v16386_v9, %v19341_v40 }
0x1733   : > { %v6089_v52 = vmul.f32 %v19388_v42, %v6075_v15 }
0x1734   : > { %7386 = vrot.lane.b32.xlu0 %v19447_v29, %s20458_s1 }
0x1735   : > { %v19462_v47 = vadd.f32 %v19391_v17, %v6089_v52  ;;  %v7520_v52 = vld [vmem:[%s20468_s6 + $0x10] sm:$0xff] }
0x17a7   : > { %v6045_v20 = vpop.xlane.xlu0 %6044 }
0x17a8   : > { %v6055_v59 = vmul.f32 0.03125, %v6045_v20 }
0x17aa   : > { %v6063_v13 = vadd.f32 1e-05, %v6055_v59 }
0x17ab   : > { %v15965_v6 = vpop.permute.xlu0 %15964 }
0x17ac   : > { %v15967_v56 = vunpack.i.h.bf16 %v15965_v6  ;;  %v15966_v39 = vunpack.i.l.bf16 %v15965_v6  ;;  %v16466_v6 = vld [vmem:[%s18342_s9 + $0x8] sm:$0xff] }
0x17ae   : > { %v15131_v24 = vpack.c.bf16 %v15967_v56, %v15966_v39 }
0x17b0   : > { %15132 = vmatprep.subr.bf16.mxu0 %v15131_v24 }
0x17ba   : > { %v7169_v14 = vpop.f32.mrb[64].mxu0 }
0x17bb   : > { %v14275_v35 = vpop.f32.mrb[65].mxu0  ;;  %14279 = vmatmul.mubr.msk.f32.vlgmr.msra.gmra.mrb[60].mxu0 %vm2867_vm2, %v7169_v14 }
0x17bc   : > { %14300 = vmatprep.mubr.msk.f32.mxu0 %vm3016_vm3, %v19398_v26  ;;  %15134 = vmatpush3.bf16.msra.mxu0 %v15131_v24 }
0x188e   : > { %v7242_v25 = vpop.f32.mrb[60].mxu0 }
0x188f   : > { %v15473_v51 = vadd.f32 %v13039_v22, %v7242_v25  ;;  %v14280_v0 = vpop.f32.mrb[61].mxu0 }
0x1890   : > { %v16388_v0 = vpop.eup %16387 }
0x1891   : > { %v7250_v55 = vsel %vm3016_vm3, %v15473_v51, 0.0 }
0x1892   : > { %7251 = vadd.xlane.f32.xlu1 %v7250_v55 }
0x1896   : > { %6029 = vadd.xlane.f32.xlu1 %v6028_v30  ;;  %v6077_v30 = vmul.f32 %v16388_v0, %v19349_v50 }
0x189a   : > { %6035 = vadd.xlane.f32.xlu1 %v6034_v58 }
0x189e   : > { %6041 = vadd.xlane.f32.xlu1 %v6040_v45 }
0x18a2   : > { %6047 = vadd.xlane.f32.xlu1 %v6046_v63 }
0x18b3   : > { %15969 = vrot.lane.b32.xlu1 %v15968_v44, %s20458_s1  ;;  %v6091_v44 = vmul.f32 %v19388_v42, %v6077_v30  ;;  %v7521_v30 = vld [vmem:[%s20468_s6 + $0x18] sm:$0xff] }
0x18b5   : > { %v19485_v16 = vadd.f32 %v19391_v17, %v6091_v44 }
0x191f   : > { %v7252_v38 = vpop.xlane.xlu1 %7251 }
0x1920   : > { %v7253_v57 = vmul.f32 0.03125, %v7252_v38 }
0x1922   : > { %v19451_v18 = vsub.f32 %v15473_v51, %v7253_v57  ;;  %v16468_v57 = vld [vmem:[%s18342_s9 + $0x18] sm:$0xff] }
0x1923   : > { %v6030_v1 = vpop.xlane.xlu1 %6029 }
0x1924   : > { %v6050_v46 = vmul.f32 0.03125, %v6030_v1  ;;  %v7255_v10 = vmul.f32 %v19451_v18, %v19451_v18 }
0x1926   : > { %v6058_v28 = vadd.f32 1e-05, %v6050_v46  ;;  %v7256_v3 = vsel %vm3016_vm3, %v7255_v10, 0.0  ;;  %v16469_v46 = vld [vmem:[%s18342_s9 + $0x20] sm:$0xff] }
0x1927   : > { %7257 = vadd.xlane.f32.xlu1 %v7256_v3  ;;  %v6036_v14 = vpop.xlane.xlu1 %6035  ;;  %v19500_v10 = vadd.f32 %v16469_v46, %v19485_v16 }
0x1928   : > { %16389 = vrsqrt.f32 %v6058_v28  ;;  %v6052_v48 = vmul.f32 0.03125, %v6036_v14 }
0x1929   : > { %16391 = vrsqrt.f32 %v6063_v13 }
0x192a   : > { %v6060_v35 = vadd.f32 1e-05, %v6052_v48  ;;  %v16471_v48 = vld [vmem:[%s18342_s9 + $0x30] sm:$0xff] }
0x192b   : > { %v6042_v21 = vpop.xlane.xlu1 %6041 }
0x192c   : > { %16393 = vrsqrt.f32 %v6060_v35  ;;  %v6054_v22 = vmul.f32 0.03125, %v6042_v21  ;;  %v15126_v21 = vpack.c.bf16 %v19407_v4, %v19404_v11 }
0x192e   : > { %v6062_v25 = vadd.f32 1e-05, %v6054_v22  ;;  %v16472_v22 = vld [vmem:[%s18342_s9 + $0x38] sm:$0xff]  ;;  %15127 = vmatpush3.bf16.msra.mxu1 %v15126_v21 }
0x192f   : > { %v6048_v51 = vpop.xlane.xlu1 %6047  ;;  %15128 = vmatprep.subr.bf16.mxu1 %v17498_v34 }
0x1930   : > { %16395 = vrsqrt.f32 %v6062_v25  ;;  %v6056_v49 = vmul.f32 0.03125, %v6048_v51  ;;  %v7518_v25 = vld [vmem:[%s20468_s6] sm:$0xff] }
0x1932   : > { %v16390_v55 = vpop.eup %16389  ;;  %v6064_v33 = vadd.f32 1e-05, %v6056_v49 }
0x1933   : > { %v6074_v54 = vmul.f32 %v16390_v55, %v19413_v23  ;;  %v15970_v58 = vpop.permute.xlu1 %15969  ;;  %v16392_v32 = vpop.eup %16391  ;;  %v13053_v55 = vld [vmem:[#allocation2] ss:$0 sm:$0xff] }
0x1934   : > { %16397 = vrsqrt.f32 %v6064_v33  ;;  %v15972_v45 = vunpack.i.h.bf16 %v15970_v58  ;;  %v15971_v40 = vunpack.i.l.bf16 %v15970_v58  ;;  %v6079_v20 = vmul.f32 %v16392_v32, %v19381_v61 }
0x1935   : > { %v6088_v2 = vmul.f32 %v19388_v42, %v6074_v54  ;;  %v19477_v61 = vadd.f32 %v16467_v62, %v19462_v47  ;;  %v15143_v32 = vpack.c.bf16 %v7521_v30, %v7520_v52 }
0x1936   : > { %v16394_v63 = vpop.eup %16393  ;;  %v15135_v8 = vpack.c.bf16 %v15972_v45, %v15971_v40  ;;  %v6093_v38 = vmul.f32 %v19388_v42, %v6079_v20 }
0x1937   : > { %v6076_v50 = vmul.f32 %v16394_v63, %v19416_v36  ;;  %v19467_v23 = vadd.f32 %v19391_v17, %v6088_v2 }
0x1938   : > { %15136 = vmatprep.subr.bf16.mxu0 %v15135_v8  ;;  %v19506_v28 = vadd.f32 %v19391_v17, %v6093_v38 }
0x1939   : > { %15138 = vmatpush3.bf16.msra.mxu0 %v15135_v8  ;;  %v19472_v56 = vadd.f32 %v16466_v6, %v19467_v23  ;;  %v6090_v39 = vmul.f32 %v19388_v42, %v6076_v50 }
0x193a   : > { %v16396_v24 = vpop.eup %16395  ;;  %15147 = vmatprep.subr.bf16.mxu0 %v17498_v34  ;;  %v19519_v35 = vadd.f32 %v16471_v48, %v19506_v28 }
0x193b   : > { %v6078_v36 = vmul.f32 %v16396_v24, %v19422_v43  ;;  %v19482_v41 = vadd.f32 %v19391_v17, %v6090_v39 }
0x193c   : > { %14301 = vmatmul.mubr.msk.f32.vlgmr.msra.gmra.mrb[66].mxu0 %vm3016_vm3, %v19472_v56 }
0x193d   : > { %14303 = vmatprep.mubr.msk.f32.mxu0 %vm3016_vm3, %v19477_v61  ;;  %v19494_v27 = vadd.f32 %v16468_v57, %v19482_v41  ;;  %v6092_v43 = vmul.f32 %v19388_v42, %v6078_v36 }
0x193e   : > { %v16398_v59 = vpop.eup %16397 }
0x193f   : > { %v6080_v1 = vmul.f32 %v16398_v59, %v19428_v60  ;;  %v19503_v13 = vadd.f32 %v19391_v17, %v6092_v43  ;;  %v16470_v60 = vld [vmem:[%s18342_s9 + $0x28] sm:$0xff]  ;;  %s20469_s9 = sld [smem:[#allocation90_spill]] }
0x1940   : > { %14304 = vmatmul.mubr.msk.f32.gmra.mrb[68].mxu0 %vm3016_vm3, %v19494_v27 }
0x1941   : > { %14306 = vmatprep.mubr.msk.f32.mxu0 %vm3016_vm3, %v19500_v10  ;;  %v19514_v3 = vadd.f32 %v16470_v60, %v19503_v13  ;;  %v6094_v14 = vmul.f32 %v19388_v42, %v6080_v1  ;;  %v15129_v42 = vpack.c.bf16 %v19441_v53, %v19438_v5  ;;  %v13052_v53 = vld [vmem:[#allocation4] ss:$0 sm:$0xff] }
0x1943   : > { %v19522_v9 = vadd.f32 %v19391_v17, %v6094_v14  ;;  %v7519_v17 = vld [vmem:[%s20468_s6 + $0x8] sm:$0xff]  ;;  %15130 = vmatpush3.bf16.msra.mxu1 %v15129_v42  ;;  %s20471_s6 = sld [smem:[#allocation88_spill]] }
0x1944   : > { %14307 = vmatmul.mubr.msk.f32.gmra.mrb[70].mxu0 %vm3016_vm3, %v19514_v3  ;;  %v15139_v51 = vpack.c.bf16 %v7519_v17, %v7518_v25 }
0x1945   : > { %14309 = vmatprep.mubr.msk.f32.mxu0 %vm3016_vm3, %v19519_v35  ;;  %v19532_v15 = vadd.f32 %v16472_v22, %v19522_v9  ;;  %v13064_v17 = vld [vmem:[%s20469_s9] ss:$0 sm:$0xff]  ;;  %s20470_s9 = sld [smem:[#allocation91_spill]] }
0x1946   : > { %15140 = vmatprep.subr.bf16.mxu1 %v15139_v51 }
0x1948   : > { %14310 = vmatmul.mubr.msk.f32.gmra.mrb[72].mxu0 %vm3016_vm3, %v19532_v15 }
0x1949   : > { %14348 = vmatprep.mubr.msk.f32.mxu0 %vm17500_vm6, %v17499_v37 }
0x19b4   : > { %v7258_v11 = vpop.xlane.xlu1 %7257 }
0x19b5   : > { %v7259_v4 = vmul.f32 0.03125, %v7258_v11 }
0x19b7   : > { %v7260_v0 = vadd.f32 1e-05, %v7259_v4 }
0x19b9   : > { %16399 = vrsqrt.f32 %v7260_v0 }
0x19c3   : > { %v16400_v5 = vpop.eup %16399 }
0x19c4   : > { %v7262_v49 = vmul.f32 %v16400_v5, %v19451_v18 }
0x19c6   : > { %v7269_v33 = vmul.f32 %v13052_v53, %v7262_v49 }
0x19c8   : > { %v19546_v54 = vadd.f32 %v13053_v55, %v7269_v33 }
0x19ca   : > { %v7277_v58 = vadd.f32 %v19546_v54, %v19192_v31  ;;  %v7387_v31 = vpop.permute.xlu0 %7386 }
0x19cc   : > { %14290 = vmatmul.mubr.msk.f32.vlgmr.msra.gmra.mrb[76].mxu1 %vm3016_vm3, %v7277_v58 }
0x19cd   : > { %15142 = vmatpush3.bf16.msra.mxu1 %v15139_v51  ;;  %14320 = vmatprep.mubr.msk.f32.mxu1 %vm3016_vm3, %v19394_v19 }
0x19ce   : > { %15144 = vmatprep.subr.bf16.mxu1 %v15143_v32 }
0x19d1   : > { %15146 = vmatpush3.bf16.msra.mxu1 %v15143_v32 }
0x19d2   : > { %15163 = vmatprep.subr.bf16.mxu1 %v17498_v34 }
0x19d4   : > { %14321 = vmatmul.mubr.msk.f32.vlgmr.msra.gmra.mrb[78].mxu1 %vm3016_vm3, %v19467_v23 }
0x19d5   : > { %14323 = vmatprep.mubr.msk.f32.mxu1 %vm3016_vm3, %v19462_v47 }
0x19d8   : > { %14324 = vmatmul.mubr.msk.f32.gmra.mrb[80].mxu1 %vm3016_vm3, %v19482_v41 }
0x19d9   : > { %14326 = vmatprep.mubr.msk.f32.mxu1 %vm3016_vm3, %v19485_v16 }
0x19dc   : > { %14327 = vmatmul.mubr.msk.f32.gmra.mrb[82].mxu1 %vm3016_vm3, %v19503_v13 }
0x19dd   : > { %14329 = vmatprep.mubr.msk.f32.mxu1 %vm3016_vm3, %v19506_v28 }
0x19e0   : > { %14330 = vmatmul.mubr.msk.f32.gmra.mrb[84].mxu1 %vm3016_vm3, %v19522_v9 }
0x19e1   : > { %14367 = vmatprep.mubr.msk.f32.mxu1 %vm17500_vm6, %v17499_v37 }
0x1a0f   : > { %v14302_v18 = vpop.f32.mrb[66].mxu0 }
0x1a10   : > { %v7485_v45 = vadd.f32 %v14302_v18, %v7387_v31  ;;  %v7479_v40 = vpop.f32.mrb[67].mxu0 }
0x1a11   : > { %v7480_v2 = vadd.f32 %v7479_v40, %v7387_v31 }
0x1a13   : > { %v15148_v63 = vpack.c.bf16 %v7485_v45, %v7480_v2  ;;  %v14305_v8 = vpop.f32.mrb[68].mxu0  ;;  %v19570_v20 = vpack.i.bf16 %v7485_v45, %v7480_v2 }
0x1a14   : > { %v7495_v50 = vadd.f32 %v14305_v8, %v7387_v31  ;;  %v7489_v44 = vpop.f32.mrb[69].mxu0 }
0x1a15   : > { %v7490_v6 = vadd.f32 %v7489_v44, %v7387_v31  ;;  %15150 = vmatpush3.bf16.xpose.msk.msra.mxu0 %vm18477_vm4, %v15148_v63 }
0x1a16   : > { %15151 = vmatprep.subr.bf16.mxu0 %v17498_v34 }
0x1a17   : > { %v15152_v39 = vpack.c.bf16 %v7495_v50, %v7490_v6  ;;  %v14308_v24 = vpop.f32.mrb[70].mxu0  ;;  %v19575_v62 = vpack.i.bf16 %v7495_v50, %v7490_v6 }
0x1a18   : > { %v7505_v36 = vadd.f32 %v14308_v24, %v7387_v31  ;;  %v7499_v38 = vpop.f32.mrb[71].mxu0 }
0x1a19   : > { %v7500_v57 = vadd.f32 %v7499_v38, %v7387_v31 }
0x1a1b   : > { %v15156_v43 = vpack.c.bf16 %v7505_v36, %v7500_v57  ;;  %v14311_v59 = vpop.f32.mrb[72].mxu0  ;;  %v19577_v1 = vpack.i.bf16 %v7505_v36, %v7500_v57 }
0x1a1c   : > { %v7515_v46 = vadd.f32 %v14311_v59, %v7387_v31  ;;  %v7509_v60 = vpop.f32.mrb[73].mxu0 }
0x1a1d   : > { %v7510_v14 = vadd.f32 %v7509_v60, %v7387_v31  ;;  %15154 = vmatpush3.bf16.xpose.msk.msra.mxu0 %vm18477_vm4, %v15152_v39 }
0x1a1e   : > { %15155 = vmatprep.subr.bf16.mxu0 %v17498_v34 }
0x1a1f   : > { %v15160_v48 = vpack.c.bf16 %v7515_v46, %v7510_v14  ;;  %v19582_v21 = vpack.i.bf16 %v7515_v46, %v7510_v14 }
0x1a25   : > { %15158 = vmatpush3.bf16.xpose.msk.msra.mxu0 %vm18477_vm4, %v15156_v43 }
0x1a26   : > { %15159 = vmatprep.subr.bf16.mxu0 %v17498_v34 }
0x1a2d   : > { %15162 = vmatpush3.bf16.xpose.msk.msra.mxu0 %vm18477_vm4, %v15160_v48 }
0x1a2e   : > { %15191 = vmatprep.subr.bf16.mxu0 %v17498_v34 }
0x1a9f   : > { %v7366_v22 = vpop.f32.mrb[76].mxu1 }
0x1aa0   : > { %v19591_v42 = vadd.f32 %v19447_v29, %v7366_v22  ;;  %v14291_v25 = vpop.f32.mrb[77].mxu1 }
0x1aa2   : > { %14349 = vmatmul.mubr.msk.f32.vlgmr.msra.gmra.mrb[74].mxu0 %vm2867_vm2, %v19591_v42 }
0x1aa3   : > { %14410 = vmatprep.mubr.msk.f32.mxu0 %vm17500_vm6, %v17499_v37 }
0x1aa7   : > { %v14322_v51 = vpop.f32.mrb[78].mxu1 }
0x1aa8   : > { %v7625_v11 = vadd.f32 %v14322_v51, %v13064_v17  ;;  %v7619_v4 = vpop.f32.mrb[79].mxu1 }
0x1aa9   : > { %v7620_v0 = vadd.f32 %v13064_v17, %v7619_v4 }
0x1aab   : > { %v14325_v5 = vpop.f32.mrb[80].mxu1  ;;  %v15164_v53 = vpack.c.bf16 %v7625_v11, %v7620_v0  ;;  %v19598_v49 = vpack.i.bf16 %v7625_v11, %v7620_v0 }
0x1aac   : > { %v7635_v55 = vadd.f32 %v14325_v5, %v13064_v17  ;;  %v7629_v33 = vpop.f32.mrb[81].mxu1 }
0x1aad   : > { %v7630_v29 = vadd.f32 %v13064_v17, %v7629_v33  ;;  %15165 = vmatpush3.bf16.msra.mxu1 %v15164_v53 }
0x1aae   : > { %15166 = vmatprep.subr.bf16.mxu1 %v17498_v34 }
0x1aaf   : > { %v14328_v52 = vpop.f32.mrb[82].mxu1  ;;  %v15167_v30 = vpack.c.bf16 %v7635_v55, %v7630_v29  ;;  %v19601_v58 = vpack.i.bf16 %v7635_v55, %v7630_v29 }
0x1ab0   : > { %v7645_v32 = vadd.f32 %v14328_v52, %v13064_v17  ;;  %v7639_v31 = vpop.f32.mrb[83].mxu1 }
0x1ab1   : > { %v7640_v18 = vadd.f32 %v13064_v17, %v7639_v31  ;;  %15168 = vmatpush3.bf16.msra.mxu1 %v15167_v30 }
0x1ab2   : > { %15169 = vmatprep.subr.bf16.mxu1 %v17498_v34 }
0x1ab3   : > { %v14331_v45 = vpop.f32.mrb[84].mxu1  ;;  %v15170_v40 = vpack.c.bf16 %v7645_v32, %v7640_v18  ;;  %v19604_v2 = vpack.i.bf16 %v7645_v32, %v7640_v18 }
0x1ab4   : > { %v7655_v63 = vadd.f32 %v14331_v45, %v13064_v17  ;;  %v7649_v8 = vpop.f32.mrb[85].mxu1 }
0x1ab5   : > { %v7650_v50 = vadd.f32 %v13064_v17, %v7649_v8  ;;  %15171 = vmatpush3.bf16.msra.mxu1 %v15170_v40  ;;  %v7658_v17 = vld [vmem:[%s20470_s9] sm:$0xff] }
0x1ab6   : > { %15172 = vmatprep.subr.bf16.mxu1 %v17498_v34 }
0x1ab7   : > { %v15173_v44 = vpack.c.bf16 %v7655_v63, %v7650_v50  ;;  %v19607_v6 = vpack.i.bf16 %v7655_v63, %v7650_v50 }
0x1ab9   : > { %15174 = vmatpush3.bf16.msra.mxu1 %v15173_v44 }
0x1aba   : > { %14370 = vmatprep.subr.mxu1 %v17499_v37 }
0x1b75   : > { %v7756_v39 = vpop.f32.mrb[74].mxu0 }
0x1b76   : > { %v7760_v24 = vmul.f32 0.35355338, %v7756_v39  ;;  %v14350_v36 = vpop.f32.mrb[75].mxu0 }
0x1b78   : > { %v7761_v38 = vadd.f32 %v7760_v24, %v18537_v12 }
0x1b7a   : > { %v7762_v57 = vsel %vm3474_vm5, %v7761_v38, -inf }
0x1b7b   : > { %7763 = vmax.xlane.f32.xlu0 %v7762_v57 }
0x1b91   : > { %15974 = vrot.lane.b32.xlu0 %v19570_v20, %s20460_s4 }
0x1b95   : > { %15989 = vrot.lane.b32.xlu0 %v19582_v21, %s20460_s4 }
0x1c08   : > { %v7764_v43 = vpop.xlane.xlu0 %7763 }
0x1c09   : > { %v7765_v59 = vsub.f32 %v7761_v38, %v7764_v43 }
0x1c0b   : > { %v7766_v46 = vmul.f32 1.442695, %v7765_v59 }
0x1c0c   : > { %v15975_v51 = vpop.permute.xlu0 %15974 }
0x1c0d   : > { %16401 = vpow2.f32 %v7766_v46  ;;  %v15977_v11 = vunpack.i.h.bf16 %v15975_v51  ;;  %v15976_v4 = vunpack.i.l.bf16 %v15975_v51 }
0x1c0f   : > { %v15176_v0 = vpack.c.bf16 %v15977_v11, %v15976_v4 }
0x1c10   : > { %v15990_v45 = vpop.permute.xlu0 %15989 }
0x1c11   : > { %v15992_v40 = vunpack.i.h.bf16 %v15990_v45  ;;  %v15991_v63 = vunpack.i.l.bf16 %v15990_v45 }
0x1c13   : > { %v15188_v8 = vpack.c.bf16 %v15992_v40, %v15991_v63 }
0x1c17   : > { %v16402_v60 = vpop.eup %16401 }
0x1c18   : > { %v7768_v14 = vsel %vm3474_vm5, %v16402_v60, 0.0 }
0x1c19   : > { %7769 = vadd.xlane.f32.xlu1 %v7768_v14 }
0x1c2a   : > { %15979 = vrot.lane.b32.xlu1 %v19575_v62, %s20460_s4 }
0x1c2e   : > { %15984 = vrot.lane.b32.xlu1 %v19577_v1, %s20460_s4 }
0x1c32   : > { %7926 = vrot.lane.b32.xlu1 %v19591_v42, %s20460_s4 }
0x1c36   : > { %15999 = vrot.lane.b32.xlu1 %v19601_v58, %s20460_s4 }
0x1ca6   : > { %v7770_v48 = vpop.xlane.xlu1 %7769 }
0x1ca7   : > { %16403 = vrcp.f32 %v7770_v48 }
0x1caa   : > { %v15980_v53 = vpop.permute.xlu1 %15979 }
0x1cab   : > { %v15982_v33 = vunpack.i.h.bf16 %v15980_v53  ;;  %v15981_v29 = vunpack.i.l.bf16 %v15980_v53 }
0x1cad   : > { %v15180_v52 = vpack.c.bf16 %v15982_v33, %v15981_v29 }
0x1cae   : > { %v15985_v30 = vpop.permute.xlu1 %15984 }
0x1caf   : > { %v15987_v32 = vunpack.i.h.bf16 %v15985_v30  ;;  %v15986_v31 = vunpack.i.l.bf16 %v15985_v30 }
0x1cb1   : > { %v16404_v22 = vpop.eup %16403  ;;  %v15184_v18 = vpack.c.bf16 %v15987_v32, %v15986_v31 }
0x1cb2   : > { %v7772_v25 = vmul.f32 %v16404_v22, %v16402_v60  ;;  %v7927_v50 = vpop.permute.xlu1 %7926 }
0x1cb4   : > { %14368 = vmatmul.mubr.msk.f32.vlgmr.msra.gmra.mrb[86].mxu1 %vm3474_vm5, %v7772_v25 }
0x1cb5   : > { %14371 = vmatpush3.msra.mxu1 %v7658_v17  ;;  %14372 = vmatprep.mubr.msk.f32.mxu1 %vm17500_vm6, %v17499_v37 }
0x1cb6   : > { %15175 = vmatprep.subr.bf16.mxu1 %v17498_v34  ;;  %v16000_v14 = vpop.permute.xlu1 %15999 }
0x1cb7   : > { %v16002_v17 = vunpack.i.h.bf16 %v16000_v14  ;;  %v16001_v51 = vunpack.i.l.bf16 %v16000_v14 }
0x1d87   : > { %v7842_v5 = vpop.f32.mrb[86].mxu1 }
0x1d88   : > { %v14369_v55 = vpop.f32.mrb[87].mxu1  ;;  %14373 = vmatmul.mubr.msk.f32.vlgmr.msra.gmra.mrb[88].mxu1 %vm2867_vm2, %v7842_v5 }
0x1d89   : > { %15178 = vmatpush3.bf16.xpose.msk.msra.mxu1 %vm18477_vm4, %v15176_v0  ;;  %14391 = vmatprep.mubr.msk.f32.mxu1 %vm17500_vm6, %v17499_v37  ;;  %v15195_v0 = vpack.c.bf16 %v16002_v17, %v16001_v51 }
0x1d8a   : > { %15179 = vmatprep.subr.bf16.mxu1 %v17498_v34 }
0x1d91   : > { %15182 = vmatpush3.bf16.xpose.msk.msra.mxu1 %vm18477_vm4, %v15180_v52 }
0x1d92   : > { %15183 = vmatprep.subr.bf16.mxu1 %v17498_v34 }
0x1d99   : > { %15186 = vmatpush3.bf16.xpose.msk.msra.mxu1 %vm18477_vm4, %v15184_v18 }
0x1d9a   : > { %15187 = vmatprep.subr.bf16.mxu1 %v17498_v34 }
0x1da1   : > { %15190 = vmatpush3.bf16.xpose.msk.msra.mxu1 %vm18477_vm4, %v15188_v8 }
0x1da2   : > { %15219 = vmatprep.subr.bf16.mxu1 %v17498_v34 }
0x1da8   : > { %14392 = vmatmul.mubr.msk.f32.vlgmr.msra.gmra.mrb[90].mxu1 %vm2867_vm2, %v7927_v50 }
0x1da9   : > { %14453 = vmatprep.mubr.msk.f32.mxu1 %vm17500_vm6, %v17499_v37 }
0x1e5b   : > { %v19648_v44 = vpop.f32.mrb[88].mxu1 }
0x1e5c   : > { %v14374_v39 = vpop.f32.mrb[89].mxu1 }
0x1e7b   : > { %v8028_v24 = vpop.f32.mrb[90].mxu1 }
0x1e7c   : > { %v8032_v36 = vmul.f32 0.35355338, %v8028_v24  ;;  %v14393_v38 = vpop.f32.mrb[91].mxu1 }
0x1e7e   : > { %v8033_v57 = vadd.f32 %v8032_v36, %v18537_v12 }
0x1e80   : > { %v8034_v43 = vsel %vm3474_vm5, %v8033_v57, -inf }
0x1e81   : > { %8035 = vmax.xlane.f32.xlu0 %v8034_v43 }
0x1e97   : > { %15994 = vrot.lane.b32.xlu0 %v19598_v49, %s20460_s4 }
0x1e9b   : > { %16004 = vrot.lane.b32.xlu0 %v19604_v2, %s20460_s4 }
0x1e9f   : > { %16014 = vrot.lane.b32.xlu0 %v19570_v20, %s20455_s2 }
0x1ea3   : > { %16024 = vrot.lane.b32.xlu0 %v19577_v1, %s20455_s2 }
0x1ea7   : > { %8224 = vrot.lane.b32.xlu0 %v19591_v42, %s20455_s2 }
0x1eab   : > { %16034 = vrot.lane.b32.xlu0 %v19598_v49, %s20455_s2 }
0x1f0e   : > { %v8036_v59 = vpop.xlane.xlu0 %8035 }
0x1f0f   : > { %v8037_v46 = vsub.f32 %v8033_v57, %v8036_v59  ;;  %v7659_v57 = vld [vmem:[%s20470_s9 + $0x8] sm:$0xff] }
0x1f11   : > { %v8038_v60 = vmul.f32 1.442695, %v8037_v46 }
0x1f12   : > { %v15995_v48 = vpop.permute.xlu0 %15994 }
0x1f13   : > { %16405 = vpow2.f32 %v8038_v60  ;;  %v15997_v22 = vunpack.i.h.bf16 %v15995_v48  ;;  %v15996_v25 = vunpack.i.l.bf16 %v15995_v48 }
0x1f15   : > { %v15192_v11 = vpack.c.bf16 %v15997_v22, %v15996_v25 }
0x1f16   : > { %v16005_v4 = vpop.permute.xlu0 %16004 }
0x1f17   : > { %15193 = vmatpush3.bf16.msra.mxu0 %v15192_v11  ;;  %v16007_v5 = vunpack.i.h.bf16 %v16005_v4  ;;  %v16006_v53 = vunpack.i.l.bf16 %v16005_v4 }
0x1f18   : > { %15194 = vmatprep.subr.bf16.mxu0 %v17498_v34 }
0x1f19   : > { %v15198_v29 = vpack.c.bf16 %v16007_v5, %v16006_v53 }
0x1f1a   : > { %v16015_v55 = vpop.permute.xlu0 %16014 }
0x1f1b   : > { %15196 = vmatpush3.bf16.msra.mxu0 %v15195_v0  ;;  %v16017_v43 = vunpack.i.h.bf16 %v16015_v55  ;;  %v16016_v59 = vunpack.i.l.bf16 %v16015_v55 }
0x1f1c   : > { %15197 = vmatprep.subr.bf16.mxu0 %v17498_v34 }
0x1f1d   : > { %v16406_v33 = vpop.eup %16405  ;;  %v15204_v46 = vpack.c.bf16 %v16017_v43, %v16016_v59 }
0x1f1e   : > { %v16025_v52 = vpop.permute.xlu0 %16024  ;;  %v8040_v30 = vsel %vm3474_vm5, %v16406_v33, 0.0 }
0x1f1f   : > { %8041 = vadd.xlane.f32.xlu1 %v8040_v30  ;;  %15199 = vmatpush3.bf16.msra.mxu0 %v15198_v29  ;;  %v16027_v51 = vunpack.i.h.bf16 %v16025_v52  ;;  %v16026_v11 = vunpack.i.l.bf16 %v16025_v52 }
0x1f20   : > { %15200 = vmatprep.subr.bf16.mxu0 %v17498_v34 }
0x1f21   : > { %v15212_v4 = vpack.c.bf16 %v16027_v51, %v16026_v11 }
0x1f22   : > { %v8225_v32 = vpop.permute.xlu0 %8224 }
0x1f26   : > { %v16035_v31 = vpop.permute.xlu0 %16034 }
0x1f27   : > { %v16037_v18 = vunpack.i.h.bf16 %v16035_v31  ;;  %v16036_v45 = vunpack.i.l.bf16 %v16035_v31 }
0x1f29   : > { %v15220_v40 = vpack.c.bf16 %v16037_v18, %v16036_v45 }
0x1f2b   : > { %15221 = vmatpush3.bf16.msra.mxu1 %v15220_v40 }
0x1f2c   : > { %15222 = vmatprep.subr.bf16.mxu1 %v17498_v34 }
0x1f30   : > { %16009 = vrot.lane.b32.xlu1 %v19607_v6, %s20460_s4 }
0x1f34   : > { %16019 = vrot.lane.b32.xlu1 %v19575_v62, %s20455_s2 }
0x1f38   : > { %16029 = vrot.lane.b32.xlu1 %v19582_v21, %s20455_s2 }
0x1fac   : > { %v8042_v63 = vpop.xlane.xlu1 %8041 }
0x1fad   : > { %16407 = vrcp.f32 %v8042_v63 }
0x1fb0   : > { %v16010_v8 = vpop.permute.xlu1 %16009 }
0x1fb1   : > { %v16012_v50 = vunpack.i.h.bf16 %v16010_v8  ;;  %v16011_v39 = vunpack.i.l.bf16 %v16010_v8 }
0x1fb3   : > { %v15201_v24 = vpack.c.bf16 %v16012_v50, %v16011_v39 }
0x1fb4   : > { %v16020_v14 = vpop.permute.xlu1 %16019 }
0x1fb5   : > { %15202 = vmatpush3.bf16.msra.mxu0 %v15201_v24  ;;  %v16022_v22 = vunpack.i.h.bf16 %v16020_v14  ;;  %v16021_v25 = vunpack.i.l.bf16 %v16020_v14 }
0x1fb6   : > { %14413 = vmatprep.subr.mxu0 %v17499_v37 }
0x1fb7   : > { %v16408_v36 = vpop.eup %16407  ;;  %v15208_v17 = vpack.c.bf16 %v16022_v22, %v16021_v25 }
0x1fb8   : > { %v8044_v38 = vmul.f32 %v16408_v36, %v16406_v33  ;;  %v16030_v0 = vpop.permute.xlu1 %16029  ;;  %v13084_v33 = vld [vmem:[%s20471_s6] ss:$0 sm:$0xff]  ;;  %s20472_s6 = sld [smem:[#allocation104_spill]] }
0x1fb9   : > { %v16032_v5 = vunpack.i.h.bf16 %v16030_v0  ;;  %v16031_v53 = vunpack.i.l.bf16 %v16030_v0  ;;  %v7925_v29 = vadd.f32 %v13084_v33, %v19648_v44 }
0x1fba   : > { %14411 = vmatmul.mubr.msk.f32.vlgmr.msra.gmra.mrb[76].mxu0 %vm3474_vm5, %v8044_v38 }
0x1fbb   : > { %14414 = vmatpush3.msra.mxu0 %v7659_v57  ;;  %14415 = vmatprep.mubr.msk.f32.mxu0 %vm17500_vm6, %v17499_v37  ;;  %v15216_v55 = vpack.c.bf16 %v16032_v5, %v16031_v53 }
0x1fbc   : > { %15203 = vmatprep.subr.bf16.mxu0 %v17498_v34 }
0x208d   : > { %v8146_v60 = vpop.f32.mrb[76].mxu0 }
0x208e   : > { %v14412_v48 = vpop.f32.mrb[77].mxu0  ;;  %14416 = vmatmul.mubr.msk.f32.vlgmr.msra.gmra.mrb[78].mxu0 %vm2867_vm2, %v8146_v60 }
0x208f   : > { %15206 = vmatpush3.bf16.xpose.msk.msra.mxu0 %vm18477_vm4, %v15204_v46  ;;  %14434 = vmatprep.mubr.msk.f32.mxu0 %vm17500_vm6, %v17499_v37 }
0x2090   : > { %15207 = vmatprep.subr.bf16.mxu0 %v17498_v34 }
0x2097   : > { %15210 = vmatpush3.bf16.xpose.msk.msra.mxu0 %vm18477_vm4, %v15208_v17  ;;  %v7660_v17 = vld [vmem:[%s20470_s9 + $0x10] sm:$0xff] }
0x2098   : > { %15211 = vmatprep.subr.bf16.mxu0 %v17498_v34 }
0x209f   : > { %15214 = vmatpush3.bf16.xpose.msk.msra.mxu0 %vm18477_vm4, %v15212_v4 }
0x20a0   : > { %15215 = vmatprep.subr.bf16.mxu0 %v17498_v34 }
0x20a7   : > { %15218 = vmatpush3.bf16.xpose.msk.msra.mxu0 %vm18477_vm4, %v15216_v55 }
0x20a8   : > { %15247 = vmatprep.subr.bf16.mxu0 %v17498_v34 }
0x20ae   : > { %14435 = vmatmul.mubr.msk.f32.vlgmr.msra.gmra.mrb[80].mxu0 %vm2867_vm2, %v8225_v32 }
0x20af   : > { %14496 = vmatprep.mubr.msk.f32.mxu0 %vm17500_vm6, %v17499_v37 }
0x2161   : > { %v8219_v52 = vpop.f32.mrb[78].mxu0 }
0x2162   : > { %v19701_v30 = vadd.f32 %v8219_v52, %v7925_v29  ;;  %v14417_v31 = vpop.f32.mrb[79].mxu0 }
0x2181   : > { %v8326_v18 = vpop.f32.mrb[80].mxu0 }
0x2182   : > { %v8330_v45 = vmul.f32 0.35355338, %v8326_v18  ;;  %v14436_v40 = vpop.f32.mrb[81].mxu0 }
0x2184   : > { %v8331_v63 = vadd.f32 %v8330_v45, %v18537_v12 }
0x2186   : > { %v8332_v8 = vsel %vm3474_vm5, %v8331_v63, -inf }
0x2187   : > { %8333 = vmax.xlane.f32.xlu1 %v8332_v8 }
0x2198   : > { %16039 = vrot.lane.b32.xlu1 %v19601_v58, %s20455_s2 }
0x219c   : > { %16044 = vrot.lane.b32.xlu1 %v19604_v2, %s20455_s2 }
0x21a0   : > { %16054 = vrot.lane.b32.xlu1 %v19570_v20, %s20465_s11 }
0x21a4   : > { %16064 = vrot.lane.b32.xlu1 %v19577_v1, %s20465_s11 }
0x21a8   : > { %8514 = vrot.lane.b32.xlu1 %v19591_v42, %s20465_s11 }
0x21ac   : > { %16079 = vrot.lane.b32.xlu1 %v19601_v58, %s20465_s11 }
0x2214   : > { %v8334_v44 = vpop.xlane.xlu1 %8333 }
0x2215   : > { %v8335_v32 = vsub.f32 %v8331_v63, %v8334_v44 }
0x2217   : > { %v8336_v50 = vmul.f32 1.442695, %v8335_v32 }
0x2218   : > { %v16040_v39 = vpop.permute.xlu1 %16039 }
0x2219   : > { %16409 = vpow2.f32 %v8336_v50  ;;  %v16042_v24 = vunpack.i.h.bf16 %v16040_v39  ;;  %v16041_v36 = vunpack.i.l.bf16 %v16040_v39 }
0x221b   : > { %v15223_v38 = vpack.c.bf16 %v16042_v24, %v16041_v36 }
0x221c   : > { %v16045_v57 = vpop.permute.xlu1 %16044 }
0x221d   : > { %v16047_v43 = vunpack.i.h.bf16 %v16045_v57  ;;  %v16046_v20 = vunpack.i.l.bf16 %v16045_v57  ;;  %15224 = vmatpush3.bf16.msra.mxu1 %v15223_v38 }
0x221e   : > { %15225 = vmatprep.subr.bf16.mxu1 %v17498_v34 }
0x221f   : > { %v15226_v1 = vpack.c.bf16 %v16047_v43, %v16046_v20 }
0x2221   : > { %15227 = vmatpush3.bf16.msra.mxu1 %v15226_v1 }
0x2222   : > { %15228 = vmatprep.subr.bf16.mxu1 %v17498_v34 }
0x2223   : > { %v16410_v42 = vpop.eup %16409 }
0x2224   : > { %v8338_v58 = vsel %vm3474_vm5, %v16410_v42, 0.0 }
0x2225   : > { %8339 = vadd.xlane.f32.xlu0 %v8338_v58 }
0x223b   : > { %16049 = vrot.lane.b32.xlu0 %v19607_v6, %s20455_s2 }
0x223f   : > { %16059 = vrot.lane.b32.xlu0 %v19575_v62, %s20465_s11  ;;  %v16055_v62 = vpop.permute.xlu1 %16054 }
0x2240   : > { %v16056_v51 = vunpack.i.l.bf16 %v16055_v62 }
0x2243   : > { %16069 = vrot.lane.b32.xlu0 %v19582_v21, %s20465_s11  ;;  %v16057_v21 = vunpack.i.h.bf16 %v16055_v62  ;;  %v16065_v29 = vpop.permute.xlu1 %16064 }
0x2244   : > { %v16067_v52 = vunpack.i.h.bf16 %v16065_v29  ;;  %v16066_v31 = vunpack.i.l.bf16 %v16065_v29 }
0x2245   : > { %v15232_v11 = vpack.c.bf16 %v16057_v21, %v16056_v51 }
0x2246   : > { %v15240_v18 = vpack.c.bf16 %v16067_v52, %v16066_v31 }
0x2247   : > { %v8515_v44 = vpop.permute.xlu1 %8514 }
0x224b   : > { %v16080_v58 = vpop.permute.xlu1 %16079 }
0x22b2   : > { %v8340_v59 = vpop.xlane.xlu0 %8339 }
0x22b3   : > { %16411 = vrcp.f32 %v8340_v59 }
0x22b6   : > { %v16050_v46 = vpop.permute.xlu0 %16049 }
0x22b7   : > { %v16052_v60 = vunpack.i.h.bf16 %v16050_v46  ;;  %v16051_v14 = vunpack.i.l.bf16 %v16050_v46 }
0x22b9   : > { %v15229_v48 = vpack.c.bf16 %v16052_v60, %v16051_v14  ;;  %v16082_v60 = vunpack.i.h.bf16 %v16080_v58  ;;  %v16081_v14 = vunpack.i.l.bf16 %v16080_v58 }
0x22ba   : > { %v16060_v0 = vpop.permute.xlu0 %16059 }
0x22bb   : > { %15230 = vmatpush3.bf16.msra.mxu1 %v15229_v48  ;;  %v16062_v53 = vunpack.i.h.bf16 %v16060_v0  ;;  %v16061_v55 = vunpack.i.l.bf16 %v16060_v0 }
0x22bc   : > { %14456 = vmatprep.subr.mxu1 %v17499_v37 }
0x22bd   : > { %v16412_v22 = vpop.eup %16411  ;;  %v15236_v33 = vpack.c.bf16 %v16062_v53, %v16061_v55 }
0x22be   : > { %v8342_v25 = vmul.f32 %v16412_v22, %v16410_v42  ;;  %v16070_v45 = vpop.permute.xlu0 %16069 }
0x22bf   : > { %v16072_v40 = vunpack.i.h.bf16 %v16070_v45  ;;  %v16071_v63 = vunpack.i.l.bf16 %v16070_v45 }
0x22c0   : > { %14454 = vmatmul.mubr.msk.f32.vlgmr.msra.gmra.mrb[92].mxu1 %vm3474_vm5, %v8342_v25  ;;  %v15251_v25 = vpack.c.bf16 %v16082_v60, %v16081_v14 }
0x22c1   : > { %14457 = vmatpush3.msra.mxu1 %v7660_v17  ;;  %14458 = vmatprep.mubr.msk.f32.mxu1 %vm17500_vm6, %v17499_v37  ;;  %v15244_v8 = vpack.c.bf16 %v16072_v40, %v16071_v63 }
0x22c2   : > { %15231 = vmatprep.subr.bf16.mxu1 %v17498_v34 }
0x2393   : > { %v8436_v4 = vpop.f32.mrb[92].mxu1 }
0x2394   : > { %v14455_v5 = vpop.f32.mrb[93].mxu1  ;;  %14459 = vmatmul.mubr.msk.f32.vlgmr.msra.gmra.mrb[94].mxu1 %vm2867_vm2, %v8436_v4 }
0x2395   : > { %15234 = vmatpush3.bf16.xpose.msk.msra.mxu1 %vm18477_vm4, %v15232_v11  ;;  %14477 = vmatprep.mubr.msk.f32.mxu1 %vm17500_vm6, %v17499_v37 }
0x2396   : > { %15235 = vmatprep.subr.bf16.mxu1 %v17498_v34 }
0x239d   : > { %15238 = vmatpush3.bf16.xpose.msk.msra.mxu1 %vm18477_vm4, %v15236_v33  ;;  %v7661_v33 = vld [vmem:[%s20470_s9 + $0x18] sm:$0xff]  ;;  %s20473_s9 = sld [smem:[#allocation105_spill]] }
0x239e   : > { %15239 = vmatprep.subr.bf16.mxu1 %v17498_v34 }
0x23a3   : > { %v8922_v58 = vld [vmem:[%s20473_s9 + $0x18] sm:$0xff] }
0x23a5   : > { %15242 = vmatpush3.bf16.xpose.msk.msra.mxu1 %vm18477_vm4, %v15240_v18 }
0x23a6   : > { %15243 = vmatprep.subr.bf16.mxu1 %v17498_v34 }
0x23ad   : > { %15246 = vmatpush3.bf16.xpose.msk.msra.mxu1 %vm18477_vm4, %v15244_v8 }
0x23ae   : > { %15265 = vmatprep.subr.bf16.mxu1 %v17498_v34 }
0x23b4   : > { %14478 = vmatmul.mubr.msk.f32.vlgmr.msra.gmra.mrb[96].mxu1 %vm2867_vm2, %v8515_v44 }
0x23b5   : > { %14531 = vmatprep.mubr.msk.f32.mxu1 %vm17500_vm6, %v17499_v37 }
0x2467   : > { %v8509_v32 = vpop.f32.mrb[94].mxu1 }
0x2468   : > { %v8513_v50 = vadd.f32 %v8509_v32, %v19701_v30  ;;  %v14460_v39 = vpop.f32.mrb[95].mxu1 }
0x2487   : > { %v8616_v24 = vpop.f32.mrb[96].mxu1 }
0x2488   : > { %v8620_v36 = vmul.f32 0.35355338, %v8616_v24  ;;  %v14479_v38 = vpop.f32.mrb[97].mxu1  ;;  %v8835_v24 = vld [vmem:[%s20472_s6 + $0x8] sm:$0xff] }
0x2489   : > { %v8837_v38 = vld [vmem:[%s20472_s6 + $0x18] sm:$0xff] }
0x248a   : > { %v8621_v57 = vadd.f32 %v8620_v36, %v18537_v12 }
0x248c   : > { %v8622_v43 = vsel %vm3474_vm5, %v8621_v57, -inf }
0x248d   : > { %8623 = vmax.xlane.f32.xlu0 %v8622_v43  ;;  %v8919_v43 = vld [vmem:[%s20473_s9] sm:$0xff] }
0x24a3   : > { %16074 = vrot.lane.b32.xlu0 %v19598_v49, %s20465_s11 }
0x24a7   : > { %16084 = vrot.lane.b32.xlu0 %v19604_v2, %s20465_s11 }
0x251a   : > { %v8624_v20 = vpop.xlane.xlu0 %8623 }
0x251b   : > { %v8625_v1 = vsub.f32 %v8621_v57, %v8624_v20  ;;  %v8920_v20 = vld [vmem:[%s20473_s9 + $0x8] sm:$0xff] }
0x251d   : > { %v8626_v42 = vmul.f32 1.442695, %v8625_v1  ;;  %v8921_v1 = vld [vmem:[%s20473_s9 + $0x10] sm:$0xff] }
0x251e   : > { %v16075_v30 = vpop.permute.xlu0 %16074 }
0x251f   : > { %16413 = vpow2.f32 %v8626_v42  ;;  %v16077_v59 = vunpack.i.h.bf16 %v16075_v30  ;;  %v16076_v46 = vunpack.i.l.bf16 %v16075_v30  ;;  %v15266_v42 = vpack.c.bf16 %v8920_v20, %v8919_v43 }
0x2520   : > { %v15269_v30 = vpack.c.bf16 %v8922_v58, %v8921_v1 }
0x2521   : > { %v15248_v48 = vpack.c.bf16 %v16077_v59, %v16076_v46  ;;  %15267 = vmatpush3.bf16.msra.mxu1 %v15266_v42  ;;  %v8923_v59 = vld [vmem:[%s20473_s9 + $0x20] sm:$0xff]  ;;  %v8924_v46 = vld [vmem:[%s20473_s9 + $0x28] sm:$0xff] }
0x2522   : > { %v16085_v22 = vpop.permute.xlu0 %16084  ;;  %15268 = vmatprep.subr.bf16.mxu1 %v17498_v34  ;;  %v15272_v60 = vpack.c.bf16 %v8924_v46, %v8923_v59  ;;  %v13124_v42 = vld [vmem:[#allocation10] ss:$0 sm:$0xff] }
0x2523   : > { %15249 = vmatpush3.bf16.msra.mxu0 %v15248_v48  ;;  %v16087_v49 = vunpack.i.h.bf16 %v16085_v22  ;;  %v16086_v17 = vunpack.i.l.bf16 %v16085_v22 }
0x2524   : > { %15250 = vmatprep.subr.bf16.mxu0 %v17498_v34 }
0x2525   : > { %v15254_v62 = vpack.c.bf16 %v16087_v49, %v16086_v17  ;;  %15270 = vmatpush3.bf16.msra.mxu1 %v15269_v30  ;;  %v13118_v49 = vld [vmem:[#allocation7] ss:$0 sm:$0xff]  ;;  %v13125_v30 = vld [vmem:[#allocation9] ss:$0 sm:$0xff] }
0x2526   : > { %15271 = vmatprep.subr.bf16.mxu1 %v17498_v34 }
0x2527   : > { %15252 = vmatpush3.bf16.msra.mxu0 %v15251_v25 }
0x2528   : > { %15253 = vmatprep.subr.bf16.mxu0 %v17498_v34 }
0x2529   : > { %v16414_v2 = vpop.eup %16413  ;;  %15273 = vmatpush3.bf16.msra.mxu1 %v15272_v60 }
0x252a   : > { %v8628_v21 = vsel %vm3474_vm5, %v16414_v2, 0.0  ;;  %15274 = vmatprep.subr.bf16.mxu1 %v17498_v34 }
0x252b   : > { %8629 = vadd.xlane.f32.xlu1 %v8628_v21  ;;  %15255 = vmatpush3.bf16.msra.mxu0 %v15254_v62 }
0x252c   : > { %15256 = vmatprep.subr.bf16.mxu0 %v17498_v34 }
0x253c   : > { %16089 = vrot.lane.b32.xlu1 %v19607_v6, %s20465_s11 }
0x25b8   : > { %v8630_v51 = vpop.xlane.xlu1 %8629 }
0x25b9   : > { %16415 = vrcp.f32 %v8630_v51  ;;  %v8925_v51 = vld [vmem:[%s20473_s9 + $0x30] sm:$0xff] }
0x25bc   : > { %v16090_v11 = vpop.permute.xlu1 %16089 }
0x25bd   : > { %v16092_v4 = vunpack.i.h.bf16 %v16090_v11  ;;  %v16091_v0 = vunpack.i.l.bf16 %v16090_v11  ;;  %v8926_v11 = vld [vmem:[%s20473_s9 + $0x38] sm:$0xff] }
0x25bf   : > { %v15257_v5 = vpack.c.bf16 %v16092_v4, %v16091_v0  ;;  %v15275_v4 = vpack.c.bf16 %v8926_v11, %v8925_v51 }
0x25c1   : > { %15258 = vmatpush3.bf16.msra.mxu0 %v15257_v5  ;;  %15276 = vmatpush3.bf16.msra.mxu1 %v15275_v4 }
0x25c2   : > { %14499 = vmatprep.subr.mxu0 %v17499_v37  ;;  %14556 = vmatprep.subr.mxu1 %v17499_v37 }
0x25c3   : > { %v16416_v53 = vpop.eup %16415 }
0x25c4   : > { %v8632_v55 = vmul.f32 %v16416_v53, %v16414_v2  ;;  %v13119_v2 = vld [vmem:[#allocation6] ss:$0 sm:$0xff] }
0x25c6   : > { %14497 = vmatmul.mubr.msk.f32.vlgmr.msra.gmra.mrb[82].mxu0 %vm3474_vm5, %v8632_v55 }
0x25c7   : > { %14500 = vmatpush3.msra.mxu0 %v7661_v33  ;;  %14501 = vmatprep.mubr.msk.f32.mxu0 %vm17500_vm6, %v17499_v37 }
0x25c8   : > { %15259 = vmatprep.subr.bf16.mxu0 %v17498_v34 }
0x2699   : > { %v8726_v6 = vpop.f32.mrb[82].mxu0 }
0x269a   : > { %v14498_v29 = vpop.f32.mrb[83].mxu0  ;;  %14502 = vmatmul.mubr.msk.f32.vlgmr.msra.gmra.mrb[84].mxu0 %vm2867_vm2, %v8726_v6  ;;  %v13122_v6 = vld [vmem:[%s20475_s12] ss:$0 sm:$0xff]  ;;  %s20477_s12 = sld [smem:[#allocation121_spill]] }
0x269b   : > { %14512 = vmatprep.mubr.msk.f32.mxu0 %vm17500_vm6, %v17499_v37 }
0x26a0   : > { %v9122_v46 = vld [vmem:[%s20477_s12] sm:$0xff]  ;;  %v9123_v60 = vld [vmem:[%s20477_s12 + $0x8] sm:$0xff] }
0x276d   : > { %v8799_v52 = vpop.f32.mrb[84].mxu0 }
0x276e   : > { %v8803_v31 = vadd.f32 %v8799_v52, %v8513_v50  ;;  %v14503_v18 = vpop.f32.mrb[85].mxu0  ;;  %v8834_v50 = vld [vmem:[%s20472_s6] sm:$0xff] }
0x276f   : > { %v15260_v36 = vpack.c.bf16 %v8835_v24, %v8834_v50  ;;  %v9039_v50 = vld [vmem:[%s20476_s13 + $0x8] sm:$0xff] }
0x2770   : > { %v8804_v45 = vadd.f32 %v8803_v31, %v19546_v54  ;;  %v8836_v54 = vld [vmem:[%s20472_s6 + $0x10] sm:$0xff]  ;;  %s20474_s6 = sld [smem:[#allocation86_spill]] }
0x2771   : > { %15261 = vmatpush3.bf16.msra.mxu0 %v15260_v36  ;;  %v15263_v57 = vpack.c.bf16 %v8837_v38, %v8836_v54  ;;  %v9040_v36 = vld [vmem:[%s20476_s13 + $0x10] sm:$0xff]  ;;  %v9041_v54 = vld [vmem:[%s20476_s13 + $0x18] sm:$0xff] }
0x2772   : > { %v8807_v40 = vsel %vm3016_vm3, %v8804_v45, 0.0  ;;  %15262 = vmatprep.subr.bf16.mxu0 %v17498_v34  ;;  %v15281_v38 = vpack.c.bf16 %v9041_v54, %v9040_v36 }
0x2773   : > { %8808 = vadd.xlane.f32.xlu0 %v8807_v40 }
0x2775   : > { %15264 = vmatpush3.bf16.msra.mxu0 %v15263_v57 }
0x2776   : > { %15277 = vmatprep.subr.bf16.mxu0 %v17498_v34  ;;  %v13120_v0 = vld [vmem:[%s20474_s6] ss:$0 sm:$0xff]  ;;  %s20478_s6 = sld [smem:[#allocation119_spill]] }
0x2800   : > { %v8809_v63 = vpop.xlane.xlu0 %8808 }
0x2801   : > { %v8810_v8 = vmul.f32 0.03125, %v8809_v63 }
0x2803   : > { %v8811_v44 = vsub.f32 %v8804_v45, %v8810_v8 }
0x2805   : > { %v8812_v32 = vmul.f32 %v8811_v44, %v8811_v44 }
0x2807   : > { %v8813_v39 = vsel %vm3016_vm3, %v8812_v32, 0.0 }
0x2808   : > { %8814 = vadd.xlane.f32.xlu1 %v8813_v39  ;;  %v9038_v39 = vld [vmem:[%s20476_s13] sm:$0xff] }
0x2809   : > { %v15278_v24 = vpack.c.bf16 %v9039_v50, %v9038_v39 }
0x2895   : > { %v8815_v14 = vpop.xlane.xlu1 %8814 }
0x2896   : > { %v8816_v48 = vmul.f32 0.03125, %v8815_v14 }
0x2898   : > { %v8817_v22 = vadd.f32 1e-05, %v8816_v48  ;;  %v15284_v48 = vpack.c.bf16 %v9123_v60, %v9122_v46 }
0x289a   : > { %16417 = vrsqrt.f32 %v8817_v22  ;;  %v19814_v22 = vld [vmem:[%s20457_s8] sm:$0xff] }
0x28a4   : > { %v16418_v25 = vpop.eup %16417 }
0x28a5   : > { %v8819_v17 = vmul.f32 %v16418_v25, %v8811_v44 }
0x28a7   : > { %v8826_v62 = vmul.f32 %v13118_v49, %v8819_v17  ;;  %v9124_v49 = vld [vmem:[%s20477_s12 + $0x10] sm:$0xff]  ;;  %v9125_v17 = vld [vmem:[%s20477_s12 + $0x18] sm:$0xff] }
0x28a9   : > { %v8833_v21 = vadd.f32 %v13119_v2, %v8826_v62  ;;  %v15287_v2 = vpack.c.bf16 %v9125_v17, %v9124_v49  ;;  %v13126_v62 = vld [vmem:[#allocation34] ss:$0 sm:$0xff] }
0x28ab   : > { %14513 = vmatmul.mubr.msk.f32.vlgmr.msra.gmra.mrb[86].mxu0 %vm3016_vm3, %v8833_v21 }
0x28ac   : > { %14542 = vmatprep.mubr.msk.f32.mxu0 %vm17500_vm6, %v17499_v37  ;;  %15279 = vmatpush3.bf16.msra.mxu0 %v15278_v24  ;;  %v9206_v24 = vld [vmem:[%s20478_s6] sm:$0xff] }
0x28ad   : > { %15280 = vmatprep.subr.bf16.mxu0 %v17498_v34 }
0x28b0   : > { %15282 = vmatpush3.bf16.msra.mxu0 %v15281_v38 }
0x28b1   : > { %15283 = vmatprep.subr.bf16.mxu0 %v17498_v34 }
0x297e   : > { %v8914_v5 = vpop.f32.mrb[86].mxu0 }
0x297f   : > { %v8915_v53 = vadd.f32 %v13120_v0, %v8914_v5  ;;  %v14514_v55 = vpop.f32.mrb[87].mxu0  ;;  %v13128_v5 = vld [vmem:[#allocation36] ss:$0 sm:$0xff] }
0x2981   : > { %v8918_v33 = vmax.f32 %v8915_v53, 0.0 }
0x2983   : > { %14532 = vmatmul.mubr.msk.f32.vlgmr.msra.gmra.mrb[98].mxu1 %vm3474_vm5, %v8918_v33 }
0x2984   : > { %14558 = vmatprep.mubr.msk.f32.mxu1 %vm17500_vm6, %v17499_v37 }
0x2a56   : > { %v9003_v29 = vpop.f32.mrb[98].mxu1 }
0x2a57   : > { %v9004_v52 = vadd.f32 %v13122_v6, %v9003_v29  ;;  %v14533_v31 = vpop.f32.mrb[99].mxu1 }
0x2a59   : > { %v9007_v18 = vadd.f32 %v9004_v52, %v8833_v21 }
0x2a5b   : > { %v9010_v45 = vsel %vm3016_vm3, %v9007_v18, 0.0 }
0x2a5c   : > { %9011 = vadd.xlane.f32.xlu0 %v9010_v45 }
0x2ae9   : > { %v9012_v40 = vpop.xlane.xlu0 %9011 }
0x2aea   : > { %v9013_v63 = vmul.f32 0.03125, %v9012_v40 }
0x2aec   : > { %v9014_v8 = vsub.f32 %v9007_v18, %v9013_v63 }
0x2aee   : > { %v9015_v44 = vmul.f32 %v9014_v8, %v9014_v8 }
0x2af0   : > { %v9016_v32 = vsel %vm3016_vm3, %v9015_v44, 0.0 }
0x2af1   : > { %9017 = vadd.xlane.f32.xlu0 %v9016_v32 }
0x2b7e   : > { %v9018_v57 = vpop.xlane.xlu0 %9017 }
0x2b7f   : > { %v9019_v43 = vmul.f32 0.03125, %v9018_v57 }
0x2b81   : > { %v9020_v20 = vadd.f32 1e-05, %v9019_v43 }
0x2b83   : > { %16419 = vrsqrt.f32 %v9020_v20 }
0x2b8d   : > { %v16420_v1 = vpop.eup %16419 }
0x2b8e   : > { %v9022_v58 = vmul.f32 %v16420_v1, %v9014_v8 }
0x2b90   : > { %v9029_v59 = vmul.f32 %v13124_v42, %v9022_v58 }
0x2b92   : > { %v19811_v14 = vadd.f32 %v13125_v30, %v9029_v59 }
0x2b94   : > { %v9037_v25 = vadd.f32 %v19814_v22, %v19811_v14 }
0x2b96   : > { %14543 = vmatmul.mubr.msk.f32.vlgmr.msra.gmra.mrb[88].mxu0 %vm3016_vm3, %v9037_v25 }
0x2b97   : > { %15285 = vmatpush3.bf16.msra.mxu0 %v15284_v48  ;;  %14553 = vmatprep.mubr.msk.f32.mxu0 %vm17500_vm6, %v17499_v37 }
0x2b98   : > { %15286 = vmatprep.subr.bf16.mxu0 %v17498_v34 }
0x2b9b   : > { %15288 = vmatpush3.bf16.msra.mxu0 %v15287_v2 }
0x2b9c   : > { %14566 = vmatprep.subr.mxu0 %v17499_v37 }
0x2b9e   : > { %14554 = vmatmul.mubr.msk.f32.vlgmr.msra.gmra.mrb[90].mxu0 %vm3016_vm3, %v19811_v14 }
0x2b9f   : > { %14568 = vmatprep.mubr.msk.f32.mxu0 %vm17500_vm6, %v17499_v37  ;;  %14567 = vmatpush3.msra.mxu0 %v9206_v24 }
0x2ba0   : > { %14576 = vmatprep.subr.mxu0 %v17499_v37 }
0x2c69   : > { %v9118_v21 = vpop.f32.mrb[88].mxu0 }
0x2c6a   : > { %v19829_v51 = vadd.f32 %v13126_v62, %v9118_v21  ;;  %v14544_v11 = vpop.f32.mrb[89].mxu0  ;;  %v9207_v21 = vld [vmem:[%s20478_s6 + $0x8] sm:$0xff] }
0x2c6c   : > { %9212 = vrot.lane.b32.xlu1 %v19829_v51, %s20458_s1 }
0x2c70   : > { %9453 = vrot.lane.b32.xlu1 %v19829_v51, %s20460_s4 }
0x2c71   : > { %v9202_v4 = vpop.f32.mrb[90].mxu0 }
0x2c72   : > { %v14555_v0 = vpop.f32.mrb[91].mxu0  ;;  %v19837_v55 = vadd.f32 %v13128_v5, %v9202_v4 }
0x2cde   : > { %v9213_v53 = vpop.permute.xlu1 %9212 }
0x2cdf   : > { %14557 = vmatpush3.xpose.msk.msra.mxu1 %vm2867_vm2, %v9213_v53 }
0x2ce0   : > { %14561 = vmatprep.subr.mxu1 %v17499_v37 }
0x2ce2   : > { %14559 = vmatmul.mubr.msk.f32.vlgmr.msra.gmra.mrb[100].mxu1 %vm2867_vm2, %v19829_v51  ;;  %v9454_v50 = vpop.permute.xlu1 %9453 }
0x2ce3   : > { %14562 = vmatpush3.msra.mxu1 %v19837_v55  ;;  %14563 = vmatprep.mubr.msk.f32.mxu1 %vm17500_vm6, %v17499_v37 }
0x2ce4   : > { %14571 = vmatprep.subr.mxu1 %v17499_v37 }
0x2db5   : > { %v9284_v33 = vpop.f32.mrb[100].mxu1 }
0x2db6   : > { %v9288_v6 = vmul.f32 0.35355338, %v9284_v33  ;;  %v14560_v29 = vpop.f32.mrb[101].mxu1 }
0x2db8   : > { %v9289_v52 = vsel %vm2867_vm2, %v9288_v6, -inf }
0x2db9   : > { %9290 = vmax.xlane.f32.xlu0 %v9289_v52 }
0x2e46   : > { %v9291_v31 = vpop.xlane.xlu0 %9290 }
0x2e47   : > { %v9292_v18 = vsub.f32 %v9288_v6, %v9291_v31 }
0x2e49   : > { %v9293_v45 = vmul.f32 1.442695, %v9292_v18 }
0x2e4b   : > { %16421 = vpow2.f32 %v9293_v45 }
0x2e55   : > { %v16422_v40 = vpop.eup %16421 }
0x2e56   : > { %v9295_v63 = vsel %vm2867_vm2, %v16422_v40, 0.0 }
0x2e57   : > { %9296 = vadd.xlane.f32.xlu0 %v9295_v63 }
0x2e6d   : > { %9455 = vrot.lane.b32.xlu0 %v19829_v51, %s20462_s3  ;;  %s20480_s3 = sld [smem:[#allocation112_spill]] }
0x2ee4   : > { %v9297_v8 = vpop.xlane.xlu0 %9296 }
0x2ee5   : > { %16423 = vrcp.f32 %v9297_v8 }
0x2ee8   : > { %v9456_v39 = vpop.permute.xlu0 %9455 }
0x2eef   : > { %v16424_v44 = vpop.eup %16423 }
0x2ef0   : > { %v9299_v32 = vmul.f32 %v16424_v44, %v16422_v40  ;;  %v13134_v40 = vld [vmem:[#allocation33] ss:$0 sm:$0xff] }
0x2ef2   : > { %14564 = vmatmul.mubr.msk.f32.vlgmr.msra.gmra.mrb[102].mxu1 %vm2867_vm2, %v9299_v32 }
0x2ef3   : > { %14572 = vmatpush3.xpose.msk.msra.mxu1 %vm2867_vm2, %v9456_v39  ;;  %14573 = vmatprep.mubr.msk.f32.mxu1 %vm17500_vm6, %v17499_v37 }
0x2ef4   : > { %14581 = vmatprep.subr.mxu1 %v17499_v37 }
0x2ef6   : > { %14574 = vmatmul.mubr.msk.f32.vlgmr.msra.gmra.mrb[104].mxu1 %vm2867_vm2, %v9454_v50 }
0x2ef7   : > { %14583 = vmatprep.mubr.msk.f32.mxu1 %vm17500_vm6, %v17499_v37  ;;  %14582 = vmatpush3.msra.mxu1 %v9207_v21 }
0x2ef8   : > { %14591 = vmatprep.subr.mxu1 %v17499_v37 }
0x2fc5   : > { %v9369_v36 = vpop.f32.mrb[102].mxu1 }
0x2fc6   : > { %v14565_v54 = vpop.f32.mrb[103].mxu1  ;;  %14569 = vmatmul.mubr.msk.f32.vlgmr.msra.gmra.mrb[92].mxu0 %vm2867_vm2, %v9369_v36 }
0x2fc7   : > { %14578 = vmatprep.mubr.msk.f32.mxu0 %vm17500_vm6, %v17499_v37  ;;  %v9208_v54 = vld [vmem:[%s20478_s6 + $0x10] sm:$0xff] }
0x2fc9   : > { %v9527_v38 = vpop.f32.mrb[104].mxu1 }
0x2fca   : > { %v9531_v57 = vmul.f32 0.35355338, %v9527_v38  ;;  %v14575_v43 = vpop.f32.mrb[105].mxu1 }
0x2fcc   : > { %v9532_v20 = vsel %vm2867_vm2, %v9531_v57, -inf }
0x2fcd   : > { %9533 = vmax.xlane.f32.xlu1 %v9532_v20 }
0x2fde   : > { %9544 = vrot.lane.b32.xlu1 %v19837_v55, %s20460_s4 }
0x2fe2   : > { %9694 = vrot.lane.b32.xlu1 %v19829_v51, %s20455_s2 }
0x305a   : > { %v9534_v1 = vpop.xlane.xlu1 %9533 }
0x305b   : > { %v9535_v42 = vsub.f32 %v9531_v57, %v9534_v1 }
0x305d   : > { %v9536_v58 = vmul.f32 1.442695, %v9535_v42 }
0x305e   : > { %v9545_v30 = vpop.permute.xlu1 %9544 }
0x305f   : > { %16425 = vpow2.f32 %v9536_v58  ;;  %14577 = vmatpush3.msra.mxu0 %v9545_v30 }
0x3060   : > { %14586 = vmatprep.subr.mxu0 %v17499_v37 }
0x3062   : > { %v9695_v62 = vpop.permute.xlu1 %9694 }
0x3069   : > { %v16426_v59 = vpop.eup %16425 }
0x306a   : > { %v9538_v46 = vsel %vm2867_vm2, %v16426_v59, 0.0 }
0x306b   : > { %9539 = vadd.xlane.f32.xlu0 %v9538_v46 }
0x3081   : > { %9696 = vrot.lane.b32.xlu0 %v19829_v51, %s20461_s5  ;;  %s20479_s5 = sld [smem:[#allocation111_spill]] }
0x3099   : > { %v9442_v60 = vpop.f32.mrb[92].mxu0 }
0x309a   : > { %v14570_v48 = vpop.f32.mrb[93].mxu0  ;;  %v9452_v63 = vadd.f32 %v13134_v40, %v9442_v60 }
0x309b   : > { %v9209_v48 = vld [vmem:[%s20478_s6 + $0x18] sm:$0xff]  ;;  %s20492_s6 = sld [smem:[#allocation74_spill]] }
0x30f8   : > { %v9540_v25 = vpop.xlane.xlu0 %9539 }
0x30f9   : > { %16427 = vrcp.f32 %v9540_v25 }
0x30fc   : > { %v9697_v2 = vpop.permute.xlu0 %9696 }
0x3103   : > { %v16428_v49 = vpop.eup %16427 }
0x3104   : > { %v9542_v17 = vmul.f32 %v16428_v49, %v16426_v59 }
0x3106   : > { %14579 = vmatmul.mubr.msk.f32.vlgmr.msra.gmra.mrb[94].mxu0 %vm2867_vm2, %v9542_v17 }
0x3107   : > { %14587 = vmatpush3.xpose.msk.msra.mxu0 %vm2867_vm2, %v9697_v2  ;;  %14588 = vmatprep.mubr.msk.f32.mxu0 %vm17500_vm6, %v17499_v37 }
0x3108   : > { %14596 = vmatprep.subr.mxu0 %v17499_v37 }
0x310a   : > { %14589 = vmatmul.mubr.msk.f32.vlgmr.msra.gmra.mrb[96].mxu0 %vm2867_vm2, %v9695_v62 }
0x310b   : > { %14598 = vmatprep.mubr.msk.f32.mxu0 %vm17500_vm6, %v17499_v37  ;;  %14597 = vmatpush3.msra.mxu0 %v9208_v54 }
0x310c   : > { %14606 = vmatprep.subr.mxu0 %v17499_v37 }
0x31d9   : > { %v9616_v11 = vpop.f32.mrb[94].mxu0 }
0x31da   : > { %v14580_v4 = vpop.f32.mrb[95].mxu0  ;;  %14584 = vmatmul.mubr.msk.f32.vlgmr.msra.gmra.mrb[106].mxu1 %vm2867_vm2, %v9616_v11 }
0x31db   : > { %14593 = vmatprep.mubr.msk.f32.mxu1 %vm17500_vm6, %v17499_v37 }
0x31dd   : > { %v9768_v0 = vpop.f32.mrb[96].mxu0 }
0x31de   : > { %v9772_v5 = vmul.f32 0.35355338, %v9768_v0  ;;  %v14590_v53 = vpop.f32.mrb[97].mxu0  ;;  %v10207_v0 = vld [vmem:[%s20479_s5 + $0x10] sm:$0xff] }
0x31e0   : > { %v9773_v33 = vsel %vm2867_vm2, %v9772_v5, -inf }
0x31e1   : > { %9774 = vmax.xlane.f32.xlu1 %v9773_v33 }
0x31f2   : > { %9784 = vrot.lane.b32.xlu1 %v19837_v55, %s20455_s2 }
0x31f6   : > { %9934 = vrot.lane.b32.xlu1 %v19829_v51, %s20465_s11 }
0x326e   : > { %v9775_v6 = vpop.xlane.xlu1 %9774 }
0x326f   : > { %v9776_v29 = vsub.f32 %v9772_v5, %v9775_v6  ;;  %v10208_v5 = vld [vmem:[%s20479_s5 + $0x18] sm:$0xff] }
0x3270   : > { %v16098_v53 = vpack.i.bf16 %v10208_v5, %v10207_v0 }
0x3271   : > { %v9777_v52 = vmul.f32 1.442695, %v9776_v29 }
0x3272   : > { %v9785_v31 = vpop.permute.xlu1 %9784 }
0x3273   : > { %16429 = vpow2.f32 %v9777_v52  ;;  %14592 = vmatpush3.msra.mxu1 %v9785_v31 }
0x3274   : > { %14601 = vmatprep.subr.mxu1 %v17499_v37 }
0x327d   : > { %v16430_v18 = vpop.eup %16429 }
0x327e   : > { %v9779_v45 = vsel %vm2867_vm2, %v16430_v18, 0.0 }
0x327f   : > { %9780 = vadd.xlane.f32.xlu0 %v9779_v45  ;;  %v10206_v45 = vld [vmem:[%s20479_s5 + $0x8] sm:$0xff] }
0x3295   : > { %9936 = vrot.lane.b32.xlu0 %v19829_v51, %s20464_s10  ;;  %v9935_v51 = vpop.permute.xlu1 %9934  ;;  %s20481_s10 = sld [smem:[#allocation110_spill]] }
0x32ad   : > { %v9689_v8 = vpop.f32.mrb[106].mxu1 }
0x32ae   : > { %v9693_v44 = vadd.f32 %v9689_v8, %v9452_v63  ;;  %v14585_v32 = vpop.f32.mrb[107].mxu1  ;;  %v19926_v63 = vld [vmem:[#allocation21] ss:$0 sm:$0xff] }
0x330c   : > { %v9781_v39 = vpop.xlane.xlu0 %9780 }
0x330d   : > { %16431 = vrcp.f32 %v9781_v39 }
0x3310   : > { %v9937_v36 = vpop.permute.xlu0 %9936 }
0x3317   : > { %v16432_v50 = vpop.eup %16431 }
0x3318   : > { %v9783_v24 = vmul.f32 %v16432_v50, %v16430_v18  ;;  %v10205_v18 = vld [vmem:[%s20479_s5] sm:$0xff]  ;;  %s20488_s5 = sld [smem:[#allocation77_spill]] }
0x3319   : > { %v16093_v40 = vpack.i.bf16 %v10206_v45, %v10205_v18 }
0x331a   : > { %14594 = vmatmul.mubr.msk.f32.vlgmr.msra.gmra.mrb[108].mxu1 %vm2867_vm2, %v9783_v24 }
0x331b   : > { %14602 = vmatpush3.xpose.msk.msra.mxu1 %vm2867_vm2, %v9937_v36  ;;  %14603 = vmatprep.mubr.msk.f32.mxu1 %vm17500_vm6, %v17499_v37 }
0x331c   : > { %14611 = vmatprep.subr.mxu1 %v17499_v37 }
0x331e   : > { %14604 = vmatmul.mubr.msk.f32.vlgmr.msra.gmra.mrb[110].mxu1 %vm2867_vm2, %v9935_v51 }
0x331f   : > { %14613 = vmatprep.mubr.msk.f32.mxu1 %vm17500_vm6, %v17499_v37  ;;  %14612 = vmatpush3.msra.mxu1 %v9209_v48 }
0x33ed   : > { %v9856_v38 = vpop.f32.mrb[108].mxu1 }
0x33ee   : > { %v14595_v57 = vpop.f32.mrb[109].mxu1  ;;  %14599 = vmatmul.mubr.msk.f32.vlgmr.msra.gmra.mrb[98].mxu0 %vm2867_vm2, %v9856_v38 }
0x33ef   : > { %14608 = vmatprep.mubr.msk.f32.mxu0 %vm17500_vm6, %v17499_v37 }
0x33f1   : > { %v10008_v43 = vpop.f32.mrb[110].mxu1 }
0x33f2   : > { %v10012_v20 = vmul.f32 0.35355338, %v10008_v43  ;;  %v14605_v1 = vpop.f32.mrb[111].mxu1 }
0x33f3   : > { %v13147_v1 = vld [vmem:[#allocation25] ss:$0 sm:$0xff] }
0x33f4   : > { %v10013_v42 = vsel %vm2867_vm2, %v10012_v20, -inf }
0x33f5   : > { %10014 = vmax.xlane.f32.xlu1 %v10013_v42 }
0x3482   : > { %v10015_v58 = vpop.xlane.xlu1 %10014 }
0x3483   : > { %v10016_v30 = vsub.f32 %v10012_v20, %v10015_v58  ;;  %v13148_v58 = vld [vmem:[#allocation24] ss:$0 sm:$0xff] }
0x3485   : > { %v10017_v59 = vmul.f32 1.442695, %v10016_v30 }
0x3487   : > { %16433 = vpow2.f32 %v10017_v59  ;;  %v10415_v59 = vld [vmem:[%s20480_s3 + $0x10] sm:$0xff] }
0x3491   : > { %v16434_v46 = vpop.eup %16433 }
0x3492   : > { %v10019_v60 = vsel %vm2867_vm2, %v16434_v46, 0.0 }
0x3493   : > { %10020 = vadd.xlane.f32.xlu0 %v10019_v60 }
0x34a9   : > { %10024 = vrot.lane.b32.xlu0 %v19837_v55, %s20465_s11 }
0x34ad   : > { %16099 = vrot.lane.b32.xlu0 %v16098_v53, %s20458_s1 }
0x34b1   : > { %10305 = vrot.lane.b32.xlu0 %v19926_v63, %s20458_s1 }
0x34c1   : > { %v9929_v25 = vpop.f32.mrb[98].mxu0 }
0x34c2   : > { %v9933_v49 = vadd.f32 %v9929_v25, %v9693_v44  ;;  %v14600_v17 = vpop.f32.mrb[99].mxu0 }
0x3520   : > { %v10021_v2 = vpop.xlane.xlu0 %10020 }
0x3521   : > { %16435 = vrcp.f32 %v10021_v2 }
0x3524   : > { %v10025_v62 = vpop.permute.xlu0 %10024 }
0x3525   : > { %14607 = vmatpush3.msra.mxu0 %v10025_v62 }
0x3526   : > { %15289 = vmatprep.subr.bf16.mxu0 %v17498_v34 }
0x3528   : > { %v16100_v8 = vpop.permute.xlu0 %16099 }
0x3529   : > { %v16102_v39 = vunpack.i.h.bf16 %v16100_v8  ;;  %v16101_v50 = vunpack.i.l.bf16 %v16100_v8 }
0x352b   : > { %v16436_v21 = vpop.eup %16435  ;;  %v15299_v38 = vpack.c.bf16 %v16102_v39, %v16101_v50 }
0x352c   : > { %v10023_v11 = vmul.f32 %v16436_v21, %v16434_v46  ;;  %v10416_v46 = vld [vmem:[%s20480_s3 + $0x18] sm:$0xff] }
0x352d   : > { %v15307_v25 = vpack.c.bf16 %v10416_v46, %v10415_v59 }
0x352e   : > { %14609 = vmatmul.mubr.msk.f32.vlgmr.msra.gmra.mrb[100].mxu0 %vm2867_vm2, %v10023_v11 }
0x352f   : > { %14624 = vmatprep.mubr.msk.f32.mxu0 %vm17500_vm6, %v17499_v37 }
0x3601   : > { %v10096_v55 = vpop.f32.mrb[100].mxu0 }
0x3602   : > { %v14610_v4 = vpop.f32.mrb[101].mxu0  ;;  %14614 = vmatmul.mubr.msk.f32.vlgmr.msra.gmra.mrb[112].mxu1 %vm2867_vm2, %v10096_v55 }
0x3603   : > { %14635 = vmatprep.mubr.msk.f32.mxu1 %vm3016_vm3, %v19398_v26 }
0x36d5   : > { %v10169_v33 = vpop.f32.mrb[112].mxu1 }
0x36d6   : > { %v10173_v6 = vadd.f32 %v10169_v33, %v9933_v49  ;;  %v14615_v29 = vpop.f32.mrb[113].mxu1 }
0x36d8   : > { %v10174_v52 = vadd.f32 %v10173_v6, %v19811_v14 }
0x36da   : > { %v10177_v31 = vsel %vm3016_vm3, %v10174_v52, 0.0 }
0x36db   : > { %10178 = vadd.xlane.f32.xlu1 %v10177_v31 }
0x36ec   : > { %16094 = vrot.lane.b32.xlu1 %v16093_v40, %s20458_s1  ;;  %s20485_s1 = sld [smem:[#allocation85_spill]] }
0x3768   : > { %v10179_v26 = vpop.xlane.xlu1 %10178 }
0x3769   : > { %v10180_v44 = vmul.f32 0.03125, %v10179_v26  ;;  %v13159_v26 = vld [vmem:[#allocation22] ss:$0 sm:$0xff] }
0x376b   : > { %v10181_v32 = vsub.f32 %v10174_v52, %v10180_v44 }
0x376c   : > { %v16095_v14 = vpop.permute.xlu1 %16094 }
0x376d   : > { %v16097_v24 = vunpack.i.h.bf16 %v16095_v14  ;;  %v16096_v36 = vunpack.i.l.bf16 %v16095_v14  ;;  %v10182_v51 = vmul.f32 %v10181_v32, %v10181_v32 }
0x376f   : > { %v15295_v54 = vpack.c.bf16 %v16097_v24, %v16096_v36  ;;  %v10183_v57 = vsel %vm3016_vm3, %v10182_v51, 0.0 }
0x3770   : > { %10184 = vadd.xlane.f32.xlu1 %v10183_v57 }
0x3771   : > { %15296 = vmatprep.subr.bf16.mxu1 %v15295_v54 }
0x3772   : > { %15298 = vmatpush3.bf16.msra.mxu1 %v15295_v54 }
0x3773   : > { %15300 = vmatprep.subr.bf16.mxu1 %v15299_v38 }
0x3776   : > { %15302 = vmatpush3.bf16.msra.mxu1 %v15299_v38 }
0x3777   : > { %15311 = vmatprep.subr.bf16.mxu1 %v17498_v34 }
0x3779   : > { %14636 = vmatmul.mubr.msk.f32.vlgmr.msra.gmra.mrb[114].mxu1 %vm3016_vm3, %v19472_v56  ;;  %v15290_v56 = vpack.c.bf16 %v10206_v45, %v10205_v18 }
0x377a   : > { %14638 = vmatprep.mubr.msk.f32.mxu1 %vm3016_vm3, %v19477_v61  ;;  %v15293_v61 = vpack.c.bf16 %v10208_v5, %v10207_v0 }
0x377b   : > { %15291 = vmatpush3.bf16.msra.mxu0 %v15290_v56 }
0x377c   : > { %15292 = vmatprep.subr.bf16.mxu0 %v17498_v34 }
0x377d   : > { %14639 = vmatmul.mubr.msk.f32.gmra.mrb[116].mxu1 %vm3016_vm3, %v19494_v27  ;;  %v10413_v27 = vld [vmem:[%s20480_s3] sm:$0xff] }
0x377e   : > { %14641 = vmatprep.mubr.msk.f32.mxu1 %vm3016_vm3, %v19500_v10  ;;  %v10414_v10 = vld [vmem:[%s20480_s3 + $0x8] sm:$0xff]  ;;  %s20486_s3 = sld [smem:[#allocation76_spill]] }
0x377f   : > { %v15303_v43 = vpack.c.bf16 %v10414_v10, %v10413_v27  ;;  %15294 = vmatpush3.bf16.msra.mxu0 %v15293_v61 }
0x3781   : > { %14642 = vmatmul.mubr.msk.f32.gmra.mrb[118].mxu1 %vm3016_vm3, %v19514_v3  ;;  %15304 = vmatprep.subr.bf16.mxu0 %v15303_v43 }
0x3782   : > { %14644 = vmatprep.mubr.msk.f32.mxu1 %vm3016_vm3, %v19519_v35 }
0x3785   : > { %14645 = vmatmul.mubr.msk.f32.gmra.mrb[120].mxu1 %vm3016_vm3, %v19532_v15 }
0x3786   : > { %14683 = vmatprep.mubr.msk.f32.mxu1 %vm17500_vm6, %v17499_v37 }
0x37fd   : > { %v10185_v3 = vpop.xlane.xlu1 %10184 }
0x37fe   : > { %v10186_v35 = vmul.f32 0.03125, %v10185_v3 }
0x3800   : > { %v10187_v20 = vadd.f32 1e-05, %v10186_v35 }
0x3802   : > { %16437 = vrsqrt.f32 %v10187_v20 }
0x380c   : > { %v16438_v15 = vpop.eup %16437 }
0x380d   : > { %v10189_v42 = vmul.f32 %v16438_v15, %v10181_v32 }
0x380f   : > { %v10196_v30 = vmul.f32 %v13147_v1, %v10189_v42 }
0x3811   : > { %v19953_v60 = vadd.f32 %v13148_v58, %v10196_v30 }
0x3813   : > { %v10204_v48 = vadd.f32 %v19814_v22, %v19953_v60 }
0x3815   : > { %14625 = vmatmul.mubr.msk.f32.vlgmr.msra.gmra.mrb[102].mxu0 %vm3016_vm3, %v10204_v48 }
0x3816   : > { %15306 = vmatpush3.bf16.msra.mxu0 %v15303_v43  ;;  %14655 = vmatprep.mubr.msk.f32.mxu0 %vm3016_vm3, %v19394_v19  ;;  %v10306_v19 = vpop.permute.xlu0 %10305 }
0x3817   : > { %15308 = vmatprep.subr.bf16.mxu0 %v15307_v25 }
0x381a   : > { %15310 = vmatpush3.bf16.msra.mxu0 %v15307_v25 }
0x381b   : > { %15327 = vmatprep.subr.bf16.mxu0 %v17498_v34 }
0x381d   : > { %14656 = vmatmul.mubr.msk.f32.vlgmr.msra.gmra.mrb[104].mxu0 %vm3016_vm3, %v19467_v23 }
0x381e   : > { %14658 = vmatprep.mubr.msk.f32.mxu0 %vm3016_vm3, %v19462_v47 }
0x3821   : > { %14659 = vmatmul.mubr.msk.f32.gmra.mrb[106].mxu0 %vm3016_vm3, %v19482_v41 }
0x3822   : > { %14661 = vmatprep.mubr.msk.f32.mxu0 %vm3016_vm3, %v19485_v16 }
0x3825   : > { %14662 = vmatmul.mubr.msk.f32.gmra.mrb[108].mxu0 %vm3016_vm3, %v19503_v13 }
0x3826   : > { %14664 = vmatprep.mubr.msk.f32.mxu0 %vm3016_vm3, %v19506_v28 }
0x3829   : > { %14665 = vmatmul.mubr.msk.f32.gmra.mrb[110].mxu0 %vm3016_vm3, %v19522_v9 }
0x382a   : > { %14702 = vmatprep.mubr.msk.f32.mxu0 %vm17500_vm6, %v17499_v37 }
0x384c   : > { %v14637_v47 = vpop.f32.mrb[114].mxu1 }
0x384d   : > { %v10380_v23 = vadd.f32 %v14637_v47, %v10306_v19  ;;  %v10374_v22 = vpop.f32.mrb[115].mxu1 }
0x384e   : > { %v10375_v41 = vadd.f32 %v10374_v22, %v10306_v19 }
0x3850   : > { %v15312_v49 = vpack.c.bf16 %v10380_v23, %v10375_v41  ;;  %v14640_v17 = vpop.f32.mrb[116].mxu1  ;;  %v19977_v16 = vpack.i.bf16 %v10380_v23, %v10375_v41 }
0x3851   : > { %v10390_v2 = vadd.f32 %v14640_v17, %v10306_v19  ;;  %v10384_v13 = vpop.f32.mrb[117].mxu1 }
0x3852   : > { %v10385_v62 = vadd.f32 %v10384_v13, %v10306_v19  ;;  %15314 = vmatpush3.bf16.xpose.msk.msra.mxu1 %vm18477_vm4, %v15312_v49 }
0x3853   : > { %15315 = vmatprep.subr.bf16.mxu1 %v17498_v34 }
0x3854   : > { %v15316_v28 = vpack.c.bf16 %v10390_v2, %v10385_v62  ;;  %v14643_v9 = vpop.f32.mrb[118].mxu1  ;;  %v19982_v21 = vpack.i.bf16 %v10390_v2, %v10385_v62  ;;  %v10529_v2 = vld [vmem:[%s20481_s10] sm:$0xff] }
0x3855   : > { %v10400_v11 = vadd.f32 %v14643_v9, %v10306_v19  ;;  %v10394_v55 = vpop.f32.mrb[119].mxu1 }
0x3856   : > { %v10395_v4 = vadd.f32 %v10394_v55, %v10306_v19 }
0x3858   : > { %v15320_v0 = vpack.c.bf16 %v10400_v11, %v10395_v4  ;;  %v14646_v5 = vpop.f32.mrb[120].mxu1  ;;  %v19984_v53 = vpack.i.bf16 %v10400_v11, %v10395_v4 }
0x3859   : > { %v10410_v33 = vadd.f32 %v14646_v5, %v10306_v19  ;;  %v10404_v6 = vpop.f32.mrb[121].mxu1 }
0x385a   : > { %v10405_v29 = vadd.f32 %v10404_v6, %v10306_v19  ;;  %15318 = vmatpush3.bf16.xpose.msk.msra.mxu1 %vm18477_vm4, %v15316_v28 }
0x385b   : > { %15319 = vmatprep.subr.bf16.mxu1 %v17498_v34 }
0x385c   : > { %v15324_v52 = vpack.c.bf16 %v10410_v33, %v10405_v29  ;;  %v19989_v31 = vpack.i.bf16 %v10410_v33, %v10405_v29 }
0x3862   : > { %15322 = vmatpush3.bf16.xpose.msk.msra.mxu1 %vm18477_vm4, %v15320_v0 }
0x3863   : > { %15323 = vmatprep.subr.bf16.mxu1 %v17498_v34 }
0x386a   : > { %15326 = vmatpush3.bf16.xpose.msk.msra.mxu1 %vm18477_vm4, %v15324_v52 }
0x386b   : > { %15355 = vmatprep.subr.bf16.mxu1 %v17498_v34 }
0x38e8   : > { %v10285_v18 = vpop.f32.mrb[102].mxu0 }
0x38e9   : > { %v19998_v45 = vadd.f32 %v19926_v63, %v10285_v18  ;;  %v14626_v40 = vpop.f32.mrb[103].mxu0 }
0x38eb   : > { %14684 = vmatmul.mubr.msk.f32.vlgmr.msra.gmra.mrb[122].mxu1 %vm2867_vm2, %v19998_v45 }
0x38ec   : > { %14745 = vmatprep.mubr.msk.f32.mxu1 %vm17500_vm6, %v17499_v37 }
0x38f0   : > { %v14657_v8 = vpop.f32.mrb[104].mxu0 }
0x38f1   : > { %v10496_v44 = vadd.f32 %v14657_v8, %v13159_v26  ;;  %v10490_v32 = vpop.f32.mrb[105].mxu0 }
0x38f2   : > { %v10491_v39 = vadd.f32 %v13159_v26, %v10490_v32 }
0x38f4   : > { %v14660_v50 = vpop.f32.mrb[106].mxu0  ;;  %v15328_v14 = vpack.c.bf16 %v10496_v44, %v10491_v39  ;;  %v20004_v24 = vpack.i.bf16 %v10496_v44, %v10491_v39 }
0x38f5   : > { %v10506_v36 = vadd.f32 %v14660_v50, %v13159_v26  ;;  %v10500_v51 = vpop.f32.mrb[107].mxu0 }
0x38f6   : > { %v10501_v63 = vadd.f32 %v13159_v26, %v10500_v51  ;;  %15329 = vmatpush3.bf16.msra.mxu0 %v15328_v14 }
0x38f7   : > { %15330 = vmatprep.subr.bf16.mxu0 %v17498_v34 }
0x38f8   : > { %v14663_v54 = vpop.f32.mrb[108].mxu0  ;;  %v15331_v38 = vpack.c.bf16 %v10506_v36, %v10501_v63  ;;  %v20007_v57 = vpack.i.bf16 %v10506_v36, %v10501_v63 }
0x38f9   : > { %v10516_v56 = vadd.f32 %v14663_v54, %v13159_v26  ;;  %v10510_v61 = vpop.f32.mrb[109].mxu0 }
0x38fa   : > { %v10511_v27 = vadd.f32 %v13159_v26, %v10510_v61  ;;  %15332 = vmatpush3.bf16.msra.mxu0 %v15331_v38 }
0x38fb   : > { %15333 = vmatprep.subr.bf16.mxu0 %v17498_v34 }
0x38fc   : > { %v14666_v10 = vpop.f32.mrb[110].mxu0  ;;  %v15334_v43 = vpack.c.bf16 %v10516_v56, %v10511_v27  ;;  %v20010_v3 = vpack.i.bf16 %v10516_v56, %v10511_v27 }
0x38fd   : > { %v10526_v35 = vadd.f32 %v14666_v10, %v13159_v26  ;;  %v10520_v20 = vpop.f32.mrb[111].mxu0 }
0x38fe   : > { %v10521_v15 = vadd.f32 %v13159_v26, %v10520_v20  ;;  %15335 = vmatpush3.bf16.msra.mxu0 %v15334_v43 }
0x38ff   : > { %15336 = vmatprep.subr.bf16.mxu0 %v17498_v34 }
0x3900   : > { %v15337_v1 = vpack.c.bf16 %v10526_v35, %v10521_v15  ;;  %v20013_v42 = vpack.i.bf16 %v10526_v35, %v10521_v15 }
0x3902   : > { %15338 = vmatpush3.bf16.msra.mxu0 %v15337_v1 }
0x3903   : > { %14705 = vmatprep.subr.mxu0 %v17499_v37 }
0x39be   : > { %v10627_v58 = vpop.f32.mrb[122].mxu1 }
0x39bf   : > { %v10631_v30 = vmul.f32 0.35355338, %v10627_v58  ;;  %v14685_v59 = vpop.f32.mrb[123].mxu1 }
0x39c1   : > { %v10632_v46 = vadd.f32 %v10631_v30, %v18537_v12 }
0x39c3   : > { %v10633_v48 = vsel %vm3474_vm5, %v10632_v46, -inf }
0x39c4   : > { %10634 = vmax.xlane.f32.xlu0 %v10633_v48 }
0x39da   : > { %16104 = vrot.lane.b32.xlu0 %v19977_v16, %s20460_s4 }
0x39de   : > { %16119 = vrot.lane.b32.xlu0 %v19989_v31, %s20460_s4 }
0x3a51   : > { %v10635_v25 = vpop.xlane.xlu0 %10634 }
0x3a52   : > { %v10636_v19 = vsub.f32 %v10632_v46, %v10635_v25 }
0x3a54   : > { %v10637_v47 = vmul.f32 1.442695, %v10636_v19 }
0x3a55   : > { %v16105_v13 = vpop.permute.xlu0 %16104 }
0x3a56   : > { %16439 = vpow2.f32 %v10637_v47  ;;  %v16107_v62 = vunpack.i.h.bf16 %v16105_v13  ;;  %v16106_v28 = vunpack.i.l.bf16 %v16105_v13 }
0x3a58   : > { %v15340_v9 = vpack.c.bf16 %v16107_v62, %v16106_v28 }
0x3a59   : > { %v16120_v40 = vpop.permute.xlu0 %16119 }
0x3a5a   : > { %v16122_v26 = vunpack.i.h.bf16 %v16120_v40  ;;  %v16121_v8 = vunpack.i.l.bf16 %v16120_v40 }
0x3a5c   : > { %v15352_v44 = vpack.c.bf16 %v16122_v26, %v16121_v8 }
0x3a60   : > { %v16440_v23 = vpop.eup %16439 }
0x3a61   : > { %v10639_v22 = vsel %vm3474_vm5, %v16440_v23, 0.0 }
0x3a62   : > { %10640 = vadd.xlane.f32.xlu1 %v10639_v22 }
0x3a73   : > { %16109 = vrot.lane.b32.xlu1 %v19982_v21, %s20460_s4 }
0x3a77   : > { %16114 = vrot.lane.b32.xlu1 %v19984_v53, %s20460_s4 }
0x3a7b   : > { %10797 = vrot.lane.b32.xlu1 %v19998_v45, %s20460_s4 }
0x3a7f   : > { %16129 = vrot.lane.b32.xlu1 %v20007_v57, %s20460_s4 }
0x3aef   : > { %v10641_v41 = vpop.xlane.xlu1 %10640 }
0x3af0   : > { %16441 = vrcp.f32 %v10641_v41 }
0x3af3   : > { %v16110_v55 = vpop.permute.xlu1 %16109 }
0x3af4   : > { %v16112_v0 = vunpack.i.h.bf16 %v16110_v55  ;;  %v16111_v5 = vunpack.i.l.bf16 %v16110_v55 }
0x3af6   : > { %v15344_v33 = vpack.c.bf16 %v16112_v0, %v16111_v5  ;;  %v10530_v0 = vld [vmem:[%s20481_s10 + $0x8] sm:$0xff] }
0x3af7   : > { %v16115_v6 = vpop.permute.xlu1 %16114 }
0x3af8   : > { %v16117_v29 = vunpack.i.h.bf16 %v16115_v6  ;;  %v16116_v52 = vunpack.i.l.bf16 %v16115_v6 }
0x3afa   : > { %v16442_v49 = vpop.eup %16441  ;;  %v15348_v18 = vpack.c.bf16 %v16117_v29, %v16116_v52 }
0x3afb   : > { %v10643_v17 = vmul.f32 %v16442_v49, %v16440_v23  ;;  %v10798_v32 = vpop.permute.xlu1 %10797 }
0x3afd   : > { %14703 = vmatmul.mubr.msk.f32.vlgmr.msra.gmra.mrb[112].mxu0 %vm3474_vm5, %v10643_v17 }
0x3afe   : > { %14706 = vmatpush3.msra.mxu0 %v10529_v2  ;;  %14707 = vmatprep.mubr.msk.f32.mxu0 %vm17500_vm6, %v17499_v37 }
0x3aff   : > { %15339 = vmatprep.subr.bf16.mxu0 %v17498_v34  ;;  %v16130_v27 = vpop.permute.xlu1 %16129 }
0x3b00   : > { %v16132_v20 = vunpack.i.h.bf16 %v16130_v27  ;;  %v16131_v15 = vunpack.i.l.bf16 %v16130_v27 }
0x3b02   : > { %v15359_v30 = vpack.c.bf16 %v16132_v20, %v16131_v15 }
0x3bd0   : > { %v10713_v11 = vpop.f32.mrb[112].mxu0 }
0x3bd1   : > { %v14704_v4 = vpop.f32.mrb[113].mxu0  ;;  %14708 = vmatmul.mubr.msk.f32.vlgmr.msra.gmra.mrb[114].mxu0 %vm2867_vm2, %v10713_v11 }
0x3bd2   : > { %15342 = vmatpush3.bf16.xpose.msk.msra.mxu0 %vm18477_vm4, %v15340_v9  ;;  %14726 = vmatprep.mubr.msk.f32.mxu0 %vm17500_vm6, %v17499_v37 }
0x3bd3   : > { %15343 = vmatprep.subr.bf16.mxu0 %v17498_v34 }
0x3bda   : > { %15346 = vmatpush3.bf16.xpose.msk.msra.mxu0 %vm18477_vm4, %v15344_v33 }
0x3bdb   : > { %15347 = vmatprep.subr.bf16.mxu0 %v17498_v34 }
0x3be2   : > { %15350 = vmatpush3.bf16.xpose.msk.msra.mxu0 %vm18477_vm4, %v15348_v18 }
0x3be3   : > { %15351 = vmatprep.subr.bf16.mxu0 %v17498_v34 }
0x3bea   : > { %15354 = vmatpush3.bf16.xpose.msk.msra.mxu0 %vm18477_vm4, %v15352_v44 }
0x3beb   : > { %15383 = vmatprep.subr.bf16.mxu0 %v17498_v34 }
0x3bf1   : > { %14727 = vmatmul.mubr.msk.f32.vlgmr.msra.gmra.mrb[116].mxu0 %vm2867_vm2, %v10798_v32 }
0x3bf2   : > { %14788 = vmatprep.mubr.msk.f32.mxu0 %vm17500_vm6, %v17499_v37 }
0x3ca4   : > { %v20054_v39 = vpop.f32.mrb[114].mxu0 }
0x3ca5   : > { %v14709_v50 = vpop.f32.mrb[115].mxu0 }
0x3cc4   : > { %v10899_v14 = vpop.f32.mrb[116].mxu0 }
0x3cc5   : > { %v10903_v36 = vmul.f32 0.35355338, %v10899_v14  ;;  %v14728_v51 = vpop.f32.mrb[117].mxu0 }
0x3cc7   : > { %v10904_v63 = vadd.f32 %v10903_v36, %v18537_v12 }
0x3cc9   : > { %v10905_v54 = vsel %vm3474_vm5, %v10904_v63, -inf }
0x3cca   : > { %10906 = vmax.xlane.f32.xlu0 %v10905_v54  ;;  %v13179_v54 = vld [vmem:[#allocation19] ss:$0 sm:$0xff] }
0x3ce0   : > { %16124 = vrot.lane.b32.xlu0 %v20004_v24, %s20460_s4 }
0x3ce4   : > { %16134 = vrot.lane.b32.xlu0 %v20010_v3, %s20460_s4 }
0x3ce8   : > { %16144 = vrot.lane.b32.xlu0 %v19977_v16, %s20455_s2 }
0x3cec   : > { %16154 = vrot.lane.b32.xlu0 %v19984_v53, %s20455_s2 }
0x3cf0   : > { %11095 = vrot.lane.b32.xlu0 %v19998_v45, %s20455_s2 }
0x3cf4   : > { %16164 = vrot.lane.b32.xlu0 %v20004_v24, %s20455_s2 }
0x3d57   : > { %v10907_v38 = vpop.xlane.xlu0 %10906 }
0x3d58   : > { %v10908_v56 = vsub.f32 %v10904_v63, %v10907_v38  ;;  %v10796_v38 = vadd.f32 %v13179_v54, %v20054_v39 }
0x3d5a   : > { %v10909_v61 = vmul.f32 1.442695, %v10908_v56 }
0x3d5b   : > { %v16125_v10 = vpop.permute.xlu0 %16124 }
0x3d5c   : > { %16443 = vpow2.f32 %v10909_v61  ;;  %v16127_v43 = vunpack.i.h.bf16 %v16125_v10  ;;  %v16126_v35 = vunpack.i.l.bf16 %v16125_v10 }
0x3d5e   : > { %v15356_v1 = vpack.c.bf16 %v16127_v43, %v16126_v35 }
0x3d5f   : > { %v16135_v58 = vpop.permute.xlu0 %16134 }
0x3d60   : > { %15357 = vmatpush3.bf16.msra.mxu1 %v15356_v1  ;;  %v16137_v59 = vunpack.i.h.bf16 %v16135_v58  ;;  %v16136_v46 = vunpack.i.l.bf16 %v16135_v58 }
0x3d61   : > { %15358 = vmatprep.subr.bf16.mxu1 %v17498_v34 }
0x3d62   : > { %v15362_v19 = vpack.c.bf16 %v16137_v59, %v16136_v46 }
0x3d63   : > { %v16145_v48 = vpop.permute.xlu0 %16144 }
0x3d64   : > { %15360 = vmatpush3.bf16.msra.mxu1 %v15359_v30  ;;  %v16147_v5 = vunpack.i.h.bf16 %v16145_v48  ;;  %v16146_v33 = vunpack.i.l.bf16 %v16145_v48 }
0x3d65   : > { %15361 = vmatprep.subr.bf16.mxu1 %v17498_v34 }
0x3d66   : > { %v16444_v25 = vpop.eup %16443  ;;  %v15368_v6 = vpack.c.bf16 %v16147_v5, %v16146_v33 }
0x3d67   : > { %v16155_v47 = vpop.permute.xlu0 %16154  ;;  %v10911_v23 = vsel %vm3474_vm5, %v16444_v25, 0.0 }
0x3d68   : > { %10912 = vadd.xlane.f32.xlu1 %v10911_v23  ;;  %15363 = vmatpush3.bf16.msra.mxu1 %v15362_v19  ;;  %v16157_v44 = vunpack.i.h.bf16 %v16155_v47  ;;  %v16156_v32 = vunpack.i.l.bf16 %v16155_v47 }
0x3d69   : > { %15364 = vmatprep.subr.bf16.mxu1 %v17498_v34 }
0x3d6a   : > { %v15376_v50 = vpack.c.bf16 %v16157_v44, %v16156_v32 }
0x3d6b   : > { %v11096_v22 = vpop.permute.xlu0 %11095 }
0x3d6f   : > { %v16165_v41 = vpop.permute.xlu0 %16164 }
0x3d70   : > { %v16167_v49 = vunpack.i.h.bf16 %v16165_v41  ;;  %v16166_v17 = vunpack.i.l.bf16 %v16165_v41 }
0x3d72   : > { %v15384_v2 = vpack.c.bf16 %v16167_v49, %v16166_v17 }
0x3d74   : > { %15385 = vmatpush3.bf16.msra.mxu0 %v15384_v2 }
0x3d75   : > { %15386 = vmatprep.subr.bf16.mxu0 %v17498_v34 }
0x3d79   : > { %16139 = vrot.lane.b32.xlu1 %v20013_v42, %s20460_s4  ;;  %s20482_s4 = sld [smem:[#allocation122_spill]] }
0x3d7d   : > { %16149 = vrot.lane.b32.xlu1 %v19982_v21, %s20455_s2 }
0x3d81   : > { %16159 = vrot.lane.b32.xlu1 %v19989_v31, %s20455_s2 }
0x3df5   : > { %v10913_v13 = vpop.xlane.xlu1 %10912 }
0x3df6   : > { %16445 = vrcp.f32 %v10913_v13  ;;  %v10531_v13 = vld [vmem:[%s20481_s10 + $0x10] sm:$0xff] }
0x3df9   : > { %v16140_v62 = vpop.permute.xlu1 %16139 }
0x3dfa   : > { %v16142_v28 = vunpack.i.h.bf16 %v16140_v62  ;;  %v16141_v9 = vunpack.i.l.bf16 %v16140_v62 }
0x3dfc   : > { %v15365_v11 = vpack.c.bf16 %v16142_v28, %v16141_v9 }
0x3dfd   : > { %v16150_v52 = vpop.permute.xlu1 %16149 }
0x3dfe   : > { %15366 = vmatpush3.bf16.msra.mxu1 %v15365_v11  ;;  %v16152_v40 = vunpack.i.h.bf16 %v16150_v52  ;;  %v16151_v26 = vunpack.i.l.bf16 %v16150_v52 }
0x3dff   : > { %14748 = vmatprep.subr.mxu1 %v17499_v37 }
0x3e00   : > { %v16446_v55 = vpop.eup %16445  ;;  %v15372_v8 = vpack.c.bf16 %v16152_v40, %v16151_v26 }
0x3e01   : > { %v10915_v4 = vmul.f32 %v16446_v55, %v16444_v25  ;;  %v16160_v14 = vpop.permute.xlu1 %16159 }
0x3e02   : > { %v16162_v36 = vunpack.i.h.bf16 %v16160_v14  ;;  %v16161_v51 = vunpack.i.l.bf16 %v16160_v14 }
0x3e03   : > { %14746 = vmatmul.mubr.msk.f32.vlgmr.msra.gmra.mrb[124].mxu1 %vm3474_vm5, %v10915_v4 }
0x3e04   : > { %14749 = vmatpush3.msra.mxu1 %v10530_v0  ;;  %14750 = vmatprep.mubr.msk.f32.mxu1 %vm17500_vm6, %v17499_v37  ;;  %v15380_v63 = vpack.c.bf16 %v16162_v36, %v16161_v51 }
0x3e05   : > { %15367 = vmatprep.subr.bf16.mxu1 %v17498_v34 }
0x3ed6   : > { %v11017_v29 = vpop.f32.mrb[124].mxu1 }
0x3ed7   : > { %v14747_v18 = vpop.f32.mrb[125].mxu1  ;;  %14751 = vmatmul.mubr.msk.f32.vlgmr.msra.gmra.mrb[126].mxu1 %vm2867_vm2, %v11017_v29 }
0x3ed8   : > { %15370 = vmatpush3.bf16.xpose.msk.msra.mxu1 %vm18477_vm4, %v15368_v6  ;;  %14769 = vmatprep.mubr.msk.f32.mxu1 %vm17500_vm6, %v17499_v37 }
0x3ed9   : > { %15371 = vmatprep.subr.bf16.mxu1 %v17498_v34 }
0x3ee0   : > { %15374 = vmatpush3.bf16.xpose.msk.msra.mxu1 %vm18477_vm4, %v15372_v8 }
0x3ee1   : > { %15375 = vmatprep.subr.bf16.mxu1 %v17498_v34 }
0x3ee8   : > { %15378 = vmatpush3.bf16.xpose.msk.msra.mxu1 %vm18477_vm4, %v15376_v50 }
0x3ee9   : > { %15379 = vmatprep.subr.bf16.mxu1 %v17498_v34 }
0x3ef0   : > { %15382 = vmatpush3.bf16.xpose.msk.msra.mxu1 %vm18477_vm4, %v15380_v63 }
0x3ef1   : > { %15411 = vmatprep.subr.bf16.mxu1 %v17498_v34 }
0x3ef7   : > { %14770 = vmatmul.mubr.msk.f32.vlgmr.msra.gmra.mrb[128].mxu1 %vm2867_vm2, %v11096_v22 }
0x3ef8   : > { %14831 = vmatprep.mubr.msk.f32.mxu1 %vm17500_vm6, %v17499_v37 }
0x3faa   : > { %v11090_v56 = vpop.f32.mrb[126].mxu1 }
0x3fab   : > { %v20106_v61 = vadd.f32 %v11090_v56, %v10796_v38  ;;  %v14752_v27 = vpop.f32.mrb[127].mxu1 }
0x3fca   : > { %v11197_v10 = vpop.f32.mrb[128].mxu1 }
0x3fcb   : > { %v11201_v43 = vmul.f32 0.35355338, %v11197_v10  ;;  %v14771_v35 = vpop.f32.mrb[129].mxu1 }
0x3fcd   : > { %v11202_v20 = vadd.f32 %v11201_v43, %v18537_v12 }
0x3fcf   : > { %v11203_v15 = vsel %vm3474_vm5, %v11202_v20, -inf }
0x3fd0   : > { %11204 = vmax.xlane.f32.xlu1 %v11203_v15 }
0x3fe1   : > { %16169 = vrot.lane.b32.xlu1 %v20007_v57, %s20455_s2 }
0x3fe5   : > { %16174 = vrot.lane.b32.xlu1 %v20010_v3, %s20455_s2 }
0x3fe9   : > { %16184 = vrot.lane.b32.xlu1 %v19977_v16, %s20465_s11 }
0x3fed   : > { %16194 = vrot.lane.b32.xlu1 %v19984_v53, %s20465_s11 }
0x3ff1   : > { %11385 = vrot.lane.b32.xlu1 %v19998_v45, %s20465_s11 }
0x3ff5   : > { %16209 = vrot.lane.b32.xlu1 %v20007_v57, %s20465_s11 }
0x405d   : > { %v11205_v39 = vpop.xlane.xlu1 %11204 }
0x405e   : > { %v11206_v1 = vsub.f32 %v11202_v20, %v11205_v39 }
0x4060   : > { %v11207_v58 = vmul.f32 1.442695, %v11206_v1 }
0x4061   : > { %v16170_v30 = vpop.permute.xlu1 %16169 }
0x4062   : > { %16447 = vpow2.f32 %v11207_v58  ;;  %v16172_v59 = vunpack.i.h.bf16 %v16170_v30  ;;  %v16171_v46 = vunpack.i.l.bf16 %v16170_v30 }
0x4064   : > { %v15387_v48 = vpack.c.bf16 %v16172_v59, %v16171_v46 }
0x4065   : > { %v16175_v25 = vpop.permute.xlu1 %16174 }
0x4066   : > { %v16177_v19 = vunpack.i.h.bf16 %v16175_v25  ;;  %v16176_v16 = vunpack.i.l.bf16 %v16175_v25  ;;  %15388 = vmatpush3.bf16.msra.mxu0 %v15387_v48 }
0x4067   : > { %15389 = vmatprep.subr.bf16.mxu0 %v17498_v34 }
0x4068   : > { %v15390_v53 = vpack.c.bf16 %v16177_v19, %v16176_v16 }
0x406a   : > { %15391 = vmatpush3.bf16.msra.mxu0 %v15390_v53 }
0x406b   : > { %15392 = vmatprep.subr.bf16.mxu0 %v17498_v34 }
0x406c   : > { %v16448_v45 = vpop.eup %16447 }
0x406d   : > { %v11209_v57 = vsel %vm3474_vm5, %v16448_v45, 0.0 }
0x406e   : > { %11210 = vadd.xlane.f32.xlu0 %v11209_v57  ;;  %v10532_v57 = vld [vmem:[%s20481_s10 + $0x18] sm:$0xff] }
0x4084   : > { %16179 = vrot.lane.b32.xlu0 %v20013_v42, %s20455_s2  ;;  %s20484_s2 = sld [smem:[#allocation80_spill]] }
0x4088   : > { %16189 = vrot.lane.b32.xlu0 %v19982_v21, %s20465_s11  ;;  %v16185_v21 = vpop.permute.xlu1 %16184 }
0x4089   : > { %v16186_v62 = vunpack.i.l.bf16 %v16185_v21 }
0x408c   : > { %16199 = vrot.lane.b32.xlu0 %v19989_v31, %s20465_s11  ;;  %v16187_v31 = vunpack.i.h.bf16 %v16185_v21  ;;  %v16195_v33 = vpop.permute.xlu1 %16194 }
0x408d   : > { %v16197_v6 = vunpack.i.h.bf16 %v16195_v33  ;;  %v16196_v29 = vunpack.i.l.bf16 %v16195_v33 }
0x408e   : > { %v15396_v28 = vpack.c.bf16 %v16187_v31, %v16186_v62 }
0x408f   : > { %v15404_v52 = vpack.c.bf16 %v16197_v6, %v16196_v29 }
0x4090   : > { %v11386_v44 = vpop.permute.xlu1 %11385 }
0x4094   : > { %v16210_v10 = vpop.permute.xlu1 %16209 }
0x4095   : > { %v16212_v20 = vunpack.i.h.bf16 %v16210_v10  ;;  %v16211_v15 = vunpack.i.l.bf16 %v16210_v10 }
0x4097   : > { %v15415_v1 = vpack.c.bf16 %v16212_v20, %v16211_v15  ;;  %v13217_v20 = vld [vmem:[#allocation18] ss:$0 sm:$0xff] }
0x40fb   : > { %v11211_v47 = vpop.xlane.xlu0 %11210 }
0x40fc   : > { %16449 = vrcp.f32 %v11211_v47 }
0x40ff   : > { %v16180_v23 = vpop.permute.xlu0 %16179 }
0x4100   : > { %v16182_v22 = vunpack.i.h.bf16 %v16180_v23  ;;  %v16181_v41 = vunpack.i.l.bf16 %v16180_v23 }
0x4102   : > { %v15393_v49 = vpack.c.bf16 %v16182_v22, %v16181_v41 }
0x4103   : > { %v16190_v11 = vpop.permute.xlu0 %16189 }
0x4104   : > { %15394 = vmatpush3.bf16.msra.mxu0 %v15393_v49  ;;  %v16192_v4 = vunpack.i.h.bf16 %v16190_v11  ;;  %v16191_v0 = vunpack.i.l.bf16 %v16190_v11 }
0x4105   : > { %14791 = vmatprep.subr.mxu0 %v17499_v37 }
0x4106   : > { %v16450_v17 = vpop.eup %16449  ;;  %v15400_v5 = vpack.c.bf16 %v16192_v4, %v16191_v0 }
0x4107   : > { %v11213_v2 = vmul.f32 %v16450_v17, %v16448_v45  ;;  %v16200_v18 = vpop.permute.xlu0 %16199 }
0x4108   : > { %v16202_v40 = vunpack.i.h.bf16 %v16200_v18  ;;  %v16201_v26 = vunpack.i.l.bf16 %v16200_v18 }
0x4109   : > { %14789 = vmatmul.mubr.msk.f32.vlgmr.msra.gmra.mrb[118].mxu0 %vm3474_vm5, %v11213_v2 }
0x410a   : > { %14792 = vmatpush3.msra.mxu0 %v10531_v13  ;;  %14793 = vmatprep.mubr.msk.f32.mxu0 %vm17500_vm6, %v17499_v37  ;;  %v15408_v8 = vpack.c.bf16 %v16202_v40, %v16201_v26 }
0x410b   : > { %15395 = vmatprep.subr.bf16.mxu0 %v17498_v34 }
0x41dc   : > { %v11307_v9 = vpop.f32.mrb[118].mxu0 }
0x41dd   : > { %v14790_v55 = vpop.f32.mrb[119].mxu0  ;;  %14794 = vmatmul.mubr.msk.f32.vlgmr.msra.gmra.mrb[120].mxu0 %vm2867_vm2, %v11307_v9  ;;  %v11706_v9 = vld [vmem:[%s20482_s4 + $0x8] sm:$0xff] }
0x41de   : > { %15398 = vmatpush3.bf16.xpose.msk.msra.mxu0 %vm18477_vm4, %v15396_v28  ;;  %14812 = vmatprep.mubr.msk.f32.mxu0 %vm17500_vm6, %v17499_v37  ;;  %v11705_v28 = vld [vmem:[%s20482_s4] sm:$0xff]  ;;  %v11708_v55 = vld [vmem:[%s20482_s4 + $0x18] sm:$0xff] }
0x41df   : > { %15399 = vmatprep.subr.bf16.mxu0 %v17498_v34  ;;  %v15424_v11 = vpack.c.bf16 %v11706_v9, %v11705_v28  ;;  %v11940_v28 = vld [vmem:[%s20484_s2 + $0x18] sm:$0xff] }
0x41e6   : > { %15402 = vmatpush3.bf16.xpose.msk.msra.mxu0 %vm18477_vm4, %v15400_v5 }
0x41e7   : > { %15403 = vmatprep.subr.bf16.mxu0 %v17498_v34 }
0x41ee   : > { %15406 = vmatpush3.bf16.xpose.msk.msra.mxu0 %vm18477_vm4, %v15404_v52 }
0x41ef   : > { %15407 = vmatprep.subr.bf16.mxu0 %v17498_v34 }
0x41f6   : > { %15410 = vmatpush3.bf16.xpose.msk.msra.mxu0 %vm18477_vm4, %v15408_v8 }
0x41f7   : > { %15429 = vmatprep.subr.bf16.mxu0 %v17498_v34 }
0x41fd   : > { %14813 = vmatmul.mubr.msk.f32.vlgmr.msra.gmra.mrb[122].mxu0 %vm2867_vm2, %v11386_v44 }
0x41fe   : > { %14866 = vmatprep.mubr.msk.f32.mxu0 %vm17500_vm6, %v17499_v37 }
0x42b0   : > { %v11380_v32 = vpop.f32.mrb[120].mxu0 }
0x42b1   : > { %v11384_v50 = vadd.f32 %v11380_v32, %v20106_v61  ;;  %v14795_v14 = vpop.f32.mrb[121].mxu0 }
0x42b2   : > { %v13213_v14 = vld [vmem:[#allocation28] ss:$0 sm:$0xff] }
0x42d0   : > { %v11487_v36 = vpop.f32.mrb[122].mxu0 }
0x42d1   : > { %v11491_v51 = vmul.f32 0.35355338, %v11487_v36  ;;  %v14814_v63 = vpop.f32.mrb[123].mxu0 }
0x42d3   : > { %v11492_v54 = vadd.f32 %v11491_v51, %v18537_v12  ;;  %v13214_v51 = vld [vmem:[#allocation27] ss:$0 sm:$0xff] }
0x42d5   : > { %v11493_v7 = vsel %vm3474_vm5, %v11492_v54, -inf }
0x42d6   : > { %11494 = vmax.xlane.f32.xlu0 %v11493_v7 }
0x42ec   : > { %16204 = vrot.lane.b32.xlu0 %v20004_v24, %s20465_s11 }
0x42f0   : > { %16214 = vrot.lane.b32.xlu0 %v20010_v3, %s20465_s11 }
0x4363   : > { %v11495_v38 = vpop.xlane.xlu0 %11494 }
0x4364   : > { %v11496_v56 = vsub.f32 %v11492_v54, %v11495_v38 }
0x4366   : > { %v11497_v27 = vmul.f32 1.442695, %v11496_v56 }
0x4367   : > { %v16205_v61 = vpop.permute.xlu0 %16204 }
0x4368   : > { %16451 = vpow2.f32 %v11497_v27  ;;  %v16207_v43 = vunpack.i.h.bf16 %v16205_v61  ;;  %v16206_v35 = vunpack.i.l.bf16 %v16205_v61  ;;  %v13215_v27 = vld [vmem:[#allocation16] ss:$0 sm:$0xff] }
0x436a   : > { %v15412_v12 = vpack.c.bf16 %v16207_v43, %v16206_v35 }
0x436b   : > { %v16215_v39 = vpop.permute.xlu0 %16214 }
0x436c   : > { %15413 = vmatpush3.bf16.msra.mxu1 %v15412_v12  ;;  %v16217_v24 = vunpack.i.h.bf16 %v16215_v39  ;;  %v16216_v58 = vunpack.i.l.bf16 %v16215_v39 }
0x436d   : > { %15414 = vmatprep.subr.bf16.mxu1 %v17498_v34 }
0x436e   : > { %v15418_v30 = vpack.c.bf16 %v16217_v24, %v16216_v58 }
0x4370   : > { %15416 = vmatpush3.bf16.msra.mxu1 %v15415_v1 }
0x4371   : > { %15417 = vmatprep.subr.bf16.mxu1 %v17498_v34 }
0x4372   : > { %v16452_v3 = vpop.eup %16451 }
0x4373   : > { %v11499_v59 = vsel %vm3474_vm5, %v16452_v3, 0.0 }
0x4374   : > { %11500 = vadd.xlane.f32.xlu1 %v11499_v59  ;;  %15419 = vmatpush3.bf16.msra.mxu1 %v15418_v30 }
0x4375   : > { %15420 = vmatprep.subr.bf16.mxu1 %v17498_v34 }
0x4385   : > { %16219 = vrot.lane.b32.xlu1 %v20013_v42, %s20465_s11  ;;  %s20483_s11 = sld [smem:[#allocation123_spill]] }
0x438b   : > { %v11790_v0 = vld [vmem:[%s20483_s11] sm:$0xff]  ;;  %v11791_v5 = vld [vmem:[%s20483_s11 + $0x8] sm:$0xff]  ;;  %v11792_v33 = vld [vmem:[%s20483_s11 + $0x10] sm:$0xff] }
0x438c   : > { %v15430_v6 = vpack.c.bf16 %v11791_v5, %v11790_v0  ;;  %v11793_v29 = vld [vmem:[%s20483_s11 + $0x18] sm:$0xff]  ;;  %v11794_v18 = vld [vmem:[%s20483_s11 + $0x20] sm:$0xff]  ;;  %v11795_v40 = vld [vmem:[%s20483_s11 + $0x28] sm:$0xff] }
0x438d   : > { %v15433_v52 = vpack.c.bf16 %v11793_v29, %v11792_v33  ;;  %v15436_v26 = vpack.c.bf16 %v11795_v40, %v11794_v18  ;;  %v11796_v7 = vld [vmem:[%s20483_s11 + $0x30] sm:$0xff]  ;;  %v11797_v38 = vld [vmem:[%s20483_s11 + $0x38] sm:$0xff]  ;;  %v13221_v0 = vld [vmem:[%s20485_s1] ss:$0 sm:$0xff]  ;;  %s20489_s1 = sld [smem:[#allocation78_spill]] }
0x438e   : > { %15431 = vmatpush3.bf16.msra.mxu0 %v15430_v6  ;;  %v15439_v56 = vpack.c.bf16 %v11797_v38, %v11796_v7  ;;  %v12022_v33 = vld [vmem:[%s20486_s3] sm:$0xff]  ;;  %v12023_v6 = vld [vmem:[%s20486_s3 + $0x8] sm:$0xff] }
0x438f   : > { %15432 = vmatprep.subr.bf16.mxu0 %v17498_v34  ;;  %v15448_v18 = vpack.c.bf16 %v12023_v6, %v12022_v33 }
0x4392   : > { %15434 = vmatpush3.bf16.msra.mxu0 %v15433_v52 }
0x4393   : > { %15435 = vmatprep.subr.bf16.mxu0 %v17498_v34  ;;  %v12190_v7 = vld [vmem:[%s20489_s1 + $0x8] sm:$0xff] }
0x4396   : > { %15437 = vmatpush3.bf16.msra.mxu0 %v15436_v26  ;;  %v12024_v26 = vld [vmem:[%s20486_s3 + $0x10] sm:$0xff] }
0x4397   : > { %15438 = vmatprep.subr.bf16.mxu0 %v17498_v34 }
0x439a   : > { %15440 = vmatpush3.bf16.msra.mxu0 %v15439_v56 }
0x439b   : > { %15453 = vmatprep.subr.bf16.mxu0 %v17498_v34 }
0x4401   : > { %v11501_v46 = vpop.xlane.xlu1 %11500 }
0x4402   : > { %16453 = vrcp.f32 %v11501_v46 }
0x4405   : > { %v16220_v48 = vpop.permute.xlu1 %16219 }
0x4406   : > { %v16222_v25 = vunpack.i.h.bf16 %v16220_v48  ;;  %v16221_v19 = vunpack.i.l.bf16 %v16220_v48 }
0x4408   : > { %v15421_v16 = vpack.c.bf16 %v16222_v25, %v16221_v19 }
0x440a   : > { %15422 = vmatpush3.bf16.msra.mxu1 %v15421_v16 }
0x440b   : > { %14834 = vmatprep.subr.mxu1 %v17499_v37 }
0x440c   : > { %v16454_v53 = vpop.eup %16453 }
0x440d   : > { %v11503_v45 = vmul.f32 %v16454_v53, %v16452_v3  ;;  %v13219_v53 = vld [vmem:[#allocation31] ss:$0 sm:$0xff] }
0x440f   : > { %14832 = vmatmul.mubr.msk.f32.vlgmr.msra.gmra.mrb[130].mxu1 %vm3474_vm5, %v11503_v45 }
0x4410   : > { %14835 = vmatpush3.msra.mxu1 %v10532_v57  ;;  %14836 = vmatprep.mubr.msk.f32.mxu1 %vm17500_vm6, %v17499_v37  ;;  %v13220_v57 = vld [vmem:[#allocation30] ss:$0 sm:$0xff] }
0x4411   : > { %15423 = vmatprep.subr.bf16.mxu1 %v17498_v34 }
0x44e2   : > { %v11597_v42 = vpop.f32.mrb[130].mxu1 }
0x44e3   : > { %v14833_v47 = vpop.f32.mrb[131].mxu1  ;;  %14837 = vmatmul.mubr.msk.f32.vlgmr.msra.gmra.mrb[132].mxu1 %vm2867_vm2, %v11597_v42 }
0x44e4   : > { %14847 = vmatprep.mubr.msk.f32.mxu1 %vm17500_vm6, %v17499_v37  ;;  %15425 = vmatpush3.bf16.msra.mxu1 %v15424_v11 }
0x44e5   : > { %15426 = vmatprep.subr.bf16.mxu1 %v17498_v34 }
0x45b6   : > { %v11670_v23 = vpop.f32.mrb[132].mxu1 }
0x45b7   : > { %v11674_v22 = vadd.f32 %v11670_v23, %v11384_v50  ;;  %v14838_v41 = vpop.f32.mrb[133].mxu1 }
0x45b9   : > { %v11675_v49 = vadd.f32 %v11674_v22, %v19953_v60  ;;  %v11707_v60 = vld [vmem:[%s20482_s4 + $0x10] sm:$0xff]  ;;  %s20487_s4 = sld [smem:[#allocation84_spill]] }
0x45ba   : > { %v15427_v4 = vpack.c.bf16 %v11708_v55, %v11707_v60 }
0x45bb   : > { %v11678_v17 = vsel %vm3016_vm3, %v11675_v49, 0.0 }
0x45bc   : > { %11679 = vadd.xlane.f32.xlu0 %v11678_v17  ;;  %15428 = vmatpush3.bf16.msra.mxu1 %v15427_v4 }
0x45bd   : > { %15441 = vmatprep.subr.bf16.mxu1 %v17498_v34 }
0x45bf   : > { %v13222_v29 = vld [vmem:[%s20487_s4] ss:$0 sm:$0xff]  ;;  %s20490_s4 = sld [smem:[#allocation79_spill]] }
0x4649   : > { %v11680_v2 = vpop.xlane.xlu0 %11679 }
0x464a   : > { %v11681_v13 = vmul.f32 0.03125, %v11680_v2 }
0x464c   : > { %v11682_v21 = vsub.f32 %v11675_v49, %v11681_v13  ;;  %v11937_v13 = vld [vmem:[%s20484_s2] sm:$0xff] }
0x464e   : > { %v11683_v31 = vmul.f32 %v11682_v21, %v11682_v21 }
0x4650   : > { %v11684_v62 = vsel %vm3016_vm3, %v11683_v31, 0.0 }
0x4651   : > { %11685 = vadd.xlane.f32.xlu1 %v11684_v62  ;;  %v11939_v62 = vld [vmem:[%s20484_s2 + $0x10] sm:$0xff] }
0x4652   : > { %v15445_v9 = vpack.c.bf16 %v11940_v28, %v11939_v62 }
0x46de   : > { %v11686_v8 = vpop.xlane.xlu1 %11685 }
0x46df   : > { %v11687_v44 = vmul.f32 0.03125, %v11686_v8  ;;  %v12025_v8 = vld [vmem:[%s20486_s3 + $0x18] sm:$0xff]  ;;  %s12842_s3 = sshll.u32 %s20495_s0, 3 }
0x46e0   : > { %s2686_s8 = scalar_lea.vmem %s17889_s29, %s12842_s3 }
0x46e1   : > { %v11688_v32 = vadd.f32 1e-05, %v11687_v44  ;;  %v15451_v44 = vpack.c.bf16 %v12025_v8, %v12024_v26 }
0x46e3   : > { %16455 = vrsqrt.f32 %v11688_v32  ;;  %v12104_v32 = vld [vmem:[%s20488_s5] sm:$0xff] }
0x46ed   : > { %v16456_v50 = vpop.eup %16455 }
0x46ee   : > { %v11690_v36 = vmul.f32 %v16456_v50, %v11682_v21  ;;  %v11938_v21 = vld [vmem:[%s20484_s2 + $0x8] sm:$0xff]  ;;  %s20491_s2 = sld [smem:[#allocation73_spill]] }
0x46ef   : > { %v15442_v31 = vpack.c.bf16 %v11938_v21, %v11937_v13  ;;  %v12105_v50 = vld [vmem:[%s20488_s5 + $0x8] sm:$0xff] }
0x46f0   : > { %v11697_v63 = vmul.f32 %v13213_v14, %v11690_v36  ;;  %v15454_v14 = vpack.c.bf16 %v12105_v50, %v12104_v32  ;;  %v12106_v36 = vld [vmem:[%s20488_s5 + $0x10] sm:$0xff] }
0x46f2   : > { %v11704_v54 = vadd.f32 %v13214_v51, %v11697_v63  ;;  %v12107_v51 = vld [vmem:[%s20488_s5 + $0x18] sm:$0xff]  ;;  %s20493_s5 = sld [smem:[#allocation75_spill]] }
0x46f3   : > { %v15457_v63 = vpack.c.bf16 %v12107_v51, %v12106_v36 }
0x46f4   : > { %14848 = vmatmul.mubr.msk.f32.vlgmr.msra.gmra.mrb[134].mxu1 %vm3016_vm3, %v11704_v54 }
0x46f5   : > { %14877 = vmatprep.mubr.msk.f32.mxu1 %vm17500_vm6, %v17499_v37  ;;  %15443 = vmatpush3.bf16.msra.mxu1 %v15442_v31 }
0x46f6   : > { %15444 = vmatprep.subr.bf16.mxu1 %v17498_v34 }
0x46f9   : > { %15446 = vmatpush3.bf16.msra.mxu1 %v15445_v9 }
0x46fa   : > { %15447 = vmatprep.subr.bf16.mxu1 %v17498_v34 }
0x47c7   : > { %v11785_v10 = vpop.f32.mrb[134].mxu1 }
0x47c8   : > { %v11786_v61 = vadd.f32 %v13215_v27, %v11785_v10  ;;  %v14849_v43 = vpop.f32.mrb[135].mxu1 }
0x47ca   : > { %v11789_v35 = vmax.f32 %v11786_v61, 0.0  ;;  %v13225_v61 = vld [vmem:[%s20491_s2] ss:$0 sm:$0xff] }
0x47cc   : > { %14867 = vmatmul.mubr.msk.f32.vlgmr.msra.gmra.mrb[124].mxu0 %vm3474_vm5, %v11789_v35 }
0x47cd   : > { %14899 = vmatprep.mubr.msk.f32.mxu0 %vm17500_vm6, %v17499_v37  ;;  %15455 = vmatpush3.bf16.msra.mxu0 %v15454_v14 }
0x47ce   : > { %15456 = vmatprep.subr.bf16.mxu0 %v17498_v34 }
0x47d1   : > { %15458 = vmatpush3.bf16.msra.mxu0 %v15457_v63 }
0x489f   : > { %v11874_v15 = vpop.f32.mrb[124].mxu0 }
0x48a0   : > { %v11875_v12 = vadd.f32 %v13217_v20, %v11874_v15  ;;  %v14868_v39 = vpop.f32.mrb[125].mxu0 }
0x48a1   : > { %v12192_v39 = vld [vmem:[%s20489_s1 + $0x18] sm:$0xff] }
0x48a2   : > { %v11878_v1 = vadd.f32 %v11875_v12, %v11704_v54  ;;  %v12189_v54 = vld [vmem:[%s20489_s1] sm:$0xff]  ;;  %v12191_v12 = vld [vmem:[%s20489_s1 + $0x10] sm:$0xff] }
0x48a3   : > { %v15460_v38 = vpack.c.bf16 %v12190_v7, %v12189_v54 }
0x48a4   : > { %v11881_v24 = vsel %vm3016_vm3, %v11878_v1, 0.0 }
0x48a5   : > { %11882 = vadd.xlane.f32.xlu0 %v11881_v24 }
0x4932   : > { %v11883_v58 = vpop.xlane.xlu0 %11882 }
0x4933   : > { %v11884_v3 = vmul.f32 0.03125, %v11883_v58 }
0x4935   : > { %v11885_v30 = vsub.f32 %v11878_v1, %v11884_v3  ;;  %v13227_v1 = vld [vmem:[%s20492_s6] ss:$0 sm:$0xff] }
0x4937   : > { %v11886_v59 = vmul.f32 %v11885_v30, %v11885_v30 }
0x4939   : > { %v11887_v46 = vsel %vm3016_vm3, %v11886_v59, 0.0  ;;  %v13229_v59 = vld [vmem:[%s20493_s5] ss:$0 sm:$0xff] }
0x493a   : > { %11888 = vadd.xlane.f32.xlu0 %v11887_v46 }
0x49c7   : > { %v11889_v48 = vpop.xlane.xlu0 %11888 }
0x49c8   : > { %v11890_v25 = vmul.f32 0.03125, %v11889_v48 }
0x49ca   : > { %v11891_v19 = vadd.f32 1e-05, %v11890_v25 }
0x49cc   : > { %16457 = vrsqrt.f32 %v11891_v19 }
0x49d6   : > { %v16458_v16 = vpop.eup %16457 }
0x49d7   : > { %v11893_v45 = vmul.f32 %v16458_v16, %v11885_v30 }
0x49d9   : > { %v11900_v42 = vmul.f32 %v13219_v53, %v11893_v45 }
0x49db   : > { %v11907_v47 = vadd.f32 %v13220_v57, %v11900_v42 }
0x49dd   : > { %v11910_v23 = vsel %vm3016_vm3, %v11907_v47, 0.0 }
0x49de   : > { %11911 = vadd.xlane.f32.xlu1 %v11910_v23 }
0x4a6b   : > { %v11912_v22 = vpop.xlane.xlu1 %11911 }
0x4a6c   : > { %v11913_v41 = vmul.f32 0.03125, %v11912_v22 }
0x4a6e   : > { %v11914_v49 = vsub.f32 %v11907_v47, %v11913_v41 }
0x4a70   : > { %v11915_v17 = vmul.f32 %v11914_v49, %v11914_v49 }
0x4a72   : > { %v11916_v2 = vsel %vm3016_vm3, %v11915_v17, 0.0 }
0x4a73   : > { %11917 = vadd.xlane.f32.xlu0 %v11916_v2 }
0x4b00   : > { %v11918_v11 = vpop.xlane.xlu0 %11917 }
0x4b01   : > { %v11919_v60 = vmul.f32 0.03125, %v11918_v11 }
0x4b03   : > { %v11920_v55 = vadd.f32 1e-05, %v11919_v60 }
0x4b05   : > { %16459 = vrsqrt.f32 %v11920_v55 }
0x4b0f   : > { %v16460_v4 = vpop.eup %16459 }
0x4b10   : > { %v11922_v5 = vmul.f32 %v16460_v4, %v11914_v49 }
0x4b12   : > { %v11929_v52 = vmul.f32 %v13221_v0, %v11922_v5 }
0x4b14   : > { %v11936_v40 = vadd.f32 %v13222_v29, %v11929_v52 }
0x4b16   : > { %14878 = vmatmul.mubr.msk.f32.vlgmr.msra.gmra.mrb[136].mxu1 %vm3016_vm3, %v11936_v40 }
0x4b17   : > { %15449 = vmatpush3.bf16.msra.mxu1 %v15448_v18  ;;  %14888 = vmatprep.mubr.msk.f32.mxu1 %vm17500_vm6, %v17499_v37 }
0x4b18   : > { %15450 = vmatprep.subr.bf16.mxu1 %v17498_v34 }
0x4b1b   : > { %15452 = vmatpush3.bf16.msra.mxu1 %v15451_v44 }
0x4b1c   : > { %15459 = vmatprep.subr.bf16.mxu1 %v17498_v34 }
0x4b1e   : > { %14889 = vmatmul.mubr.msk.f32.vlgmr.msra.gmra.mrb[138].mxu1 %vm3016_vm3, %v11936_v40 }
0x4b1f   : > { %14910 = vmatprep.mubr.msk.f32.mxu1 %vm17500_vm6, %v17499_v37  ;;  %15461 = vmatpush3.bf16.msra.mxu1 %v15460_v38  ;;  %v13223_v37 = vld [vmem:[%s20490_s4] ss:$0 sm:$0xff] }
0x4b20   : > { %15462 = vmatprep.subr.bf16.mxu1 %v17498_v34  ;;  %v15463_v34 = vpack.c.bf16 %v12192_v39, %v12191_v12 }
0x4b23   : > { %15464 = vmatpush3.bf16.msra.mxu1 %v15463_v34 }
0x4be9   : > { %v12017_v56 = vpop.f32.mrb[136].mxu1 }
0x4bea   : > { %v12018_v27 = vadd.f32 %v13223_v37, %v12017_v56  ;;  %v14879_v10 = vpop.f32.mrb[137].mxu1 }
0x4bec   : > { %12021 = vst [vmem:[%s2686_s8] sm:$0xff] %v12018_v27  ;;  %s2690_s8 = scalar_lea.vmem %s17894_s24, %s12842_s3 }
0x4bf1   : > { %v12099_v43 = vpop.f32.mrb[138].mxu1 }
0x4bf2   : > { %v12100_v35 = vadd.f32 %v13225_v61, %v12099_v43  ;;  %v14890_v20 = vpop.f32.mrb[139].mxu1 }
0x4bf4   : > { %v12103_v15 = vmax.f32 %v12100_v35, 0.0 }
0x4bf6   : > { %14900 = vmatmul.mubr.msk.f32.vlgmr.msra.gmra.mrb[126].mxu0 %vm3016_vm3, %v12103_v15 }
0x4cc9   : > { %v12184_v24 = vpop.f32.mrb[126].mxu0 }
0x4cca   : > { %v12185_v58 = vadd.f32 %v13227_v1, %v12184_v24  ;;  %v14901_v3 = vpop.f32.mrb[127].mxu0 }
0x4ccc   : > { %v12188_v30 = vmax.f32 %v12185_v58, 0.0 }
0x4cce   : > { %14911 = vmatmul.mubr.msk.f32.vlgmr.msra.gmra.mrb[140].mxu1 %vm3016_vm3, %v12188_v30 }
0x4da1   : > { %v12269_v46 = vpop.f32.mrb[140].mxu1 }
0x4da2   : > { %v12270_v48 = vadd.f32 %v13229_v59, %v12269_v46  ;;  %v14912_v25 = vpop.f32.mrb[141].mxu1 }
0x4da4   : > { %v12273_v19 = vsub.f32 0.0, %v12270_v48 }
0x4da6   : > { %v12274_v16 = vmul.f32 1.442695, %v12273_v19 }
0x4da8   : > { %16461 = vpow2.f32 %v12274_v16 }
0x4db2   : > { %v16462_v53 = vpop.eup %16461 }
0x4db3   : > { %v12276_v45 = vadd.f32 1.0, %v16462_v53 }
0x4db5   : > { %16463 = vrcp.f32 %v12276_v45 }
0x4dbf   : > { %v16464_v57 = vpop.eup %16463 }
0x4dc0   : > { %12279 = vst [vmem:[%s2690_s8] sm:$0xff] %v16464_v57 }
0x4dc1 PF: > { %s183_s7 = sadd.s32 1, %s17380_s7  }
0x4dc2   : > { %p180_p3 = scmp.ge.s32.totalorder %s183_s7, 4  }
0x4dc4   :  { %182 = sbr.rel (!%p180_p3) target bundleno = 166 (0xa6), region = 578 }
0x4dcb   :  { %12313 = vsyncpa [#allocation3], 1 }
0x4dcc   :  { %12315 = vsyncpa [#allocation3 + $0x1], 1 }
0x4dcd   :  { %12316 = vsyncpa [#allocation5], 1 }
0x4dce   :  { %12317 = vsyncpa [#allocation8], 1 }
0x4dcf   :  { %12318 = vsyncpa [#allocation11], 1 }
0x4dd0   :  { %12319 = vsyncpa [#allocation14], 1 }
0x4dd1   :  { %12320 = vsyncpa [#allocation17], 1 }
0x4dd2   :  { %12321 = vsyncpa [#allocation20], 1 }
0x4dd3   :  { %12322 = vsyncpa [#allocation23], 1 }
0x4dd4   :  { %12323 = vsyncpa [#allocation26], 1 }
0x4dd5   :  { %12324 = vsyncpa [#allocation29], 1 }
0x4dd6   :  { %12325 = vsyncpa [#allocation32], 1 }
0x4dd7   :  { %12326 = vsyncpa [#allocation35], 1 }
0x4dd8   :  { %12327 = vsyncpa [#allocation38], 1 }
0x4dd9   :  { %12328 = vsyncpa [#allocation41], 1 }
0x4dda   :  { %12329 = vsyncpa [#allocation44], 1 }
0x4ddb   :  { %12330 = vsyncpa [#allocation47], 1 }
0x4ddc   :  { %12331 = vsyncpa [#allocation50], 1 }

</bundles_post_ra>
